<compile_context>
chip_gen: v6e
topology: v6e:2x2x1
jax: 0.10.0
libtpu: 0.0.40
codegen_flags: <defaults>
</compile_context>

<pallas_src>
import jax
import jax.numpy as jnp
from jax.experimental import pallas as pl
from jax.experimental.pallas import tpu as pltpu


# ------------------------------------------------------------------ kernels ---
def _decoder_stack_kernel(x_ref, skip_ref, w2_ref, b2_ref, w3_ref, b3_ref,
                          w4_ref, b4_ref, o_ref):
    """Fused deconv2 -> antirect(+skip) -> deconv3 -> antirect -> deconv4.

    Per grid step (one tile of TM pixel rows (b, i, j)):
      x_ref    : (TM, 512)  bf16, Cin zero-padded 480 -> 512
      skip_ref : (TM, 1024) bf16, cols = (d1i, d1j, 256ch), ch 224..255 zero
      o_ref    : (TM, 128)  f32,  cols = (d1i, d1j, d2i, d2j, d3i, d3j, re/im)
      weights  : VMEM-resident (constant index_maps), bf16; biases f32.
    """
    # deconv2: per-pixel matmul onto all 4 taps at once (cols = (d1i, d1j, co)).
    y2 = jnp.dot(x_ref[...], w2_ref[...],
                 preferred_element_type=jnp.float32) + b2_ref[...]

    # Static unroll over the 4 deconv2 taps; every slice is 128-lane aligned.
    for t in range(4):
        h = y2[:, t * 128:(t + 1) * 128]                       # (TM, 128) f32
        sk_pos = skip_ref[:, t * 256:t * 256 + 128].astype(jnp.float32)
        sk_neg = skip_ref[:, t * 256 + 128:(t + 1) * 256].astype(jnp.float32)

        # AntiRectifier fused with the skip add on the first 224 channels:
        #   ch   0..127 : relu(h)        + skip[:, :128]
        #   ch 128..223 : relu(-h)[:96]  + skip[:, 128:224]
        #   ch 224..255 : relu(-h)[96:]             (skip cols 224..255 are zero)
        pos = jnp.maximum(h, 0.0) + sk_pos
        neg = jnp.maximum(-h, 0.0) + sk_neg

        # deconv3: single K=256 matmul (antirect folded by weight-row split).
        pn = jnp.concatenate([pos, neg], axis=1).astype(jnp.bfloat16)
        y3 = jnp.dot(pn, w3_ref[...],
                     preferred_element_type=jnp.float32) + b3_ref[...]

        # TODO(synk): nn.Dropout(p=0.3) treated as eval-mode identity (no RNG mask).

        # deconv4: single K=256 matmul; w4 is tap2-block-diagonal, so each
        # 32-channel tap2 chunk of y3 only feeds its own 8 output columns.
        pn4 = jnp.concatenate([jnp.maximum(y3, 0.0), jnp.maximum(-y3, 0.0)],
                              axis=1).astype(jnp.bfloat16)
        y4 = jnp.dot(pn4, w4_ref[...],
                     preferred_element_type=jnp.float32) + b4_ref[...]

        o_ref[:, t * 32:(t + 1) * 32] = y4


def _psd_kernel(k_ref, zr_ref, zi_ref):
    """Rz = normalize_F((K + K^H)/2) + I, one batch element per grid step.

    k_ref : (2, n, n) f32 (real, imag); transpose + identity built in-kernel.
    """
    kr = k_ref[0]
    ki = k_ref[1]
    zr = 0.5 * (kr + kr.T)
    zi = 0.5 * (ki - ki.T)
    sq = jnp.sum(zr * zr + zi * zi, axis=1, keepdims=True)
    sq = jnp.sum(sq, axis=0, keepdims=True)
    scale = 1.0 / jnp.maximum(jnp.sqrt(sq), 1e-12)
    n = kr.shape[0]
    row = jax.lax.broadcasted_iota(jnp.int32, (n, n), 0)
    col = jax.lax.broadcasted_iota(jnp.int32, (n, n), 1)
    eye = jnp.where(row == col, 1.0, 0.0).astype(jnp.float32)
    zr_ref[...] = zr * scale + eye
    zi_ref[...] = zi * scale


# ----------------------------------------------------------------- wrappers ---
def init_params(key):
    """Raw parameters in the PyTorch ConvTranspose2d layout (Cin, Cout, kH, kW)."""
    ks = jax.random.split(key, 6)
    w = lambda k, s: 0.05 * jax.random.normal(k, s, jnp.float32)
    return {
        "deconv2_w": w(ks[0], (480, 128, 2, 2)), "deconv2_b": w(ks[1], (128,)),
        "deconv3_w": w(ks[2], (256, 32, 2, 2)),  "deconv3_b": w(ks[3], (32,)),
        "deconv4_w": w(ks[4], (64, 2, 2, 2)),    "deconv4_b": w(ks[5], (2,)),
    }


def prepare_params(params):
    """One-time weight layout transforms (kept out of the jitted hot path)."""
    def mat(w):  # (Cin, Cout, 2, 2) -> (Cin, 4*Cout), cols ordered (di, dj, co)
        cin, cout = w.shape[0], w.shape[1]
        return jnp.transpose(w, (0, 2, 3, 1)).reshape(cin, 4 * cout)

    w2 = jnp.pad(mat(params["deconv2_w"]), ((0, 32), (0, 0)))   # K pad 480 -> 512
    w3 = mat(params["deconv3_w"])                                # (256, 128)
    w4m = mat(params["deconv4_w"])                               # (64, 8)
    eye4 = jnp.eye(4, dtype=jnp.float32)
    w4 = jnp.concatenate([jnp.kron(eye4, w4m[:32, :]),           # block-diag over tap2
                          jnp.kron(eye4, w4m[32:, :])], axis=0)  # (256, 32)
    return {
        "w2": w2.astype(jnp.bfloat16),
        "b2": jnp.tile(params["deconv2_b"], 4).reshape(1, 512).astype(jnp.float32),
        "w3": w3.astype(jnp.bfloat16),
        "b3": jnp.tile(params["deconv3_b"], 4).reshape(1, 128).astype(jnp.float32),
        "w4": w4.astype(jnp.bfloat16),
        "b4": jnp.tile(params["deconv4_b"], 16).reshape(1, 32).astype(jnp.float32),
    }


@jax.jit
def decoder_forward(x, x_skip, p):
    """x: (B,480,H,W) f32, x_skip: (B,224,2H,2W) f32 -> Rz: (B,8H,8W) complex64."""
    B, cin, H, W = x.shape
    assert H == W, "final Hermitian step requires a square spatial output"
    n = 8 * H
    m1 = B * H * W

    # NCHW -> per-pixel rows (b, i, j) x Cin, zero-padded 480 -> 512, bf16.
    x_rows = jnp.transpose(x, (0, 2, 3, 1)).reshape(m1, cin)
    x_rows = jnp.pad(x_rows, ((0, 0), (0, 512 - cin))).astype(jnp.bfloat16)

    # Skip: NCHW -> rows (b, i, j), cols (d1i, d1j, 256ch) with ch 224..255 zero
    # (same tap ordering as deconv2's output columns), bf16.
    cs = x_skip.shape[1]
    s = jnp.transpose(x_skip, (0, 2, 3, 1)).reshape(B, H, 2, W, 2, cs)
    s = jnp.transpose(s, (0, 1, 3, 2, 4, 5))
    s = jnp.pad(s, ((0, 0),) * 5 + ((0, 256 - cs),))
    s = s.reshape(m1, 1024).astype(jnp.bfloat16)

    # Row tiling: TM = 256 pixel rows per grid step (pad rows when needed).
    TM = 256
    if m1 <= TM:
        TM, mp = m1, m1
    else:
        mp = pl.cdiv(m1, TM) * TM
    if mp != m1:
        x_rows = jnp.pad(x_rows, ((0, mp - m1), (0, 0)))
        s = jnp.pad(s, ((0, mp - m1), (0, 0)))
    gm = mp // TM

    out = pl.pallas_call(
        _decoder_stack_kernel,
        out_shape=jax.ShapeDtypeStruct((mp, 128), jnp.float32),
        grid=(gm,),
        in_specs=[
            pl.BlockSpec((TM, 512), lambda i: (i, 0)),      # x rows (streamed)
            pl.BlockSpec((TM, 1024), lambda i: (i, 0)),     # skip rows (streamed)
            pl.BlockSpec((512, 512), lambda i: (0, 0)),     # w2 (resident)
            pl.BlockSpec((1, 512), lambda i: (0, 0)),       # b2
            pl.BlockSpec((256, 128), lambda i: (0, 0)),     # w3
            pl.BlockSpec((1, 128), lambda i: (0, 0)),       # b3
            pl.BlockSpec((256, 32), lambda i: (0, 0)),      # w4
            pl.BlockSpec((1, 32), lambda i: (0, 0)),        # b4
        ],
        out_specs=pl.BlockSpec((TM, 128), lambda i: (i, 0)),
        compiler_params=pltpu.CompilerParams(
            dimension_semantics=("parallel",),
            vmem_limit_bytes=32 * 1024 * 1024),
    )(x_rows, s, p["w2"], p["b2"], p["w3"], p["b3"], p["w4"], p["b4"])

    out = out[:m1]

    # TODO(synk): un-nesting the packed tap bits (d1i,d1j,d2i,d2j,d3i,d3j,c) into the
    # raster image is still one host-side XLA transpose pass; moving it into a Pallas
    # depth-to-space kernel would need sub-vreg lane shuffles.
    o = out.reshape(B, H, W, 2, 2, 2, 2, 2, 2, 2)          # b i j d1i d1j d2i d2j d3i d3j c
    o = jnp.transpose(o, (0, 9, 1, 3, 5, 7, 2, 4, 6, 8))   # b c (i d1i d2i d3i) (j d1j d2j d3j)
    o = o.reshape(B, 2, n, n)

    # Hermitian symmetrize + Frobenius normalize + identity (grid over batch).
    zr, zi = pl.pallas_call(
        _psd_kernel,
        out_shape=(jax.ShapeDtypeStruct((B, n, n), jnp.float32),
                   jax.ShapeDtypeStruct((B, n, n), jnp.float32)),
        grid=(B,),
        in_specs=[pl.BlockSpec((None, 2, n, n), lambda b: (b, 0, 0, 0))],
        out_specs=(pl.BlockSpec((None, n, n), lambda b: (b, 0, 0)),
                   pl.BlockSpec((None, n, n), lambda b: (b, 0, 0))),
        compiler_params=pltpu.CompilerParams(
            dimension_semantics=("parallel",)),
    )(o)

    # TODO(synk): PyTorch returns complex128; TPU has no float64, so complex64 here.
    return jax.lax.complex(zr, zi)


# -------------------------------------------------- pure-JAX reference check ---
def _tconv_ref(x, w, b):  # ConvTranspose2d(k=2, s=2), NCHW
    y = jnp.einsum("bchw,cokl->bohwkl", x, w)
    y = jnp.transpose(y, (0, 1, 2, 4, 3, 5))
    B, co, H, _, W, _ = y.shape
    return y.reshape(B, co, 2 * H, 2 * W) + b[None, :, None, None]


def _decoder_ref(x, x_skip, params):
    h = _tconv_ref(x, params["deconv2_w"], params["deconv2_b"])
    h = jnp.concatenate([jnp.maximum(h, 0.0), jnp.maximum(-h, 0.0)], axis=1)
    h = h.at[:, :x_skip.shape[1]].add(x_skip)
    h = _tconv_ref(h, params["deconv3_w"], params["deconv3_b"])
    h = jnp.concatenate([jnp.maximum(h, 0.0), jnp.maximum(-h, 0.0)], axis=1)
    h = _tconv_ref(h, params["deconv4_w"], params["deconv4_b"])
    kr, ki = h[:, 0], h[:, 1]
    zr = 0.5 * (kr + jnp.transpose(kr, (0, 2, 1)))
    zi = 0.5 * (ki - jnp.transpose(ki, (0, 2, 1)))
    nrm = jnp.sqrt(jnp.sum(zr * zr + zi * zi, axis=(1, 2), keepdims=True))
    scale = 1.0 / jnp.maximum(nrm, 1e-12)
    eye = jnp.eye(zr.shape[-1], dtype=zr.dtype)[None]
    return jax.lax.complex(zr * scale + eye, zi * scale)


if __name__ == "__main__":
    key = jax.random.PRNGKey(0)
    kp, kx, ks = jax.random.split(key, 3)

    params = init_params(kp)
    prepped = prepare_params(params)          # one-time layout transforms (outside jit)

    # Small but tiling-exercising shapes: m1 = 512 pixel rows -> 2 grid tiles of 256,
    # final image n = 128 (lane-aligned PSD blocks).
    B, H, W = 2, 16, 16                       # x: (2,480,16,16), x_skip: (2,224,32,32)
    x = jax.random.normal(kx, (B, 480, H, W), jnp.float32)
    x_skip = jax.random.normal(ks, (B, 224, 2 * H, 2 * W), jnp.float32)

    rz = decoder_forward(x, x_skip, prepped)
    jax.block_until_ready(rz)

    assert rz.shape == (B, 8 * H, 8 * W), rz.shape
    assert rz.dtype == jnp.complex64, rz.dtype
    assert bool(jnp.all(jnp.isfinite(jnp.real(rz)) & jnp.isfinite(jnp.imag(rz))))

    ref = _decoder_ref(x, x_skip, params)
    assert bool(jnp.allclose(jnp.real(rz), jnp.real(ref), atol=1e-2, rtol=5e-2))
    assert bool(jnp.allclose(jnp.imag(rz), jnp.imag(ref), atol=1e-2, rtol=5e-2))

    print("KERNEL_OK")
</pallas_src>

<mosaic_0001>
module attributes {stable_mosaic.version = 11 : i64} {
  func.func @_decoder_stack_kernel(%arg0: i32, %arg1: memref<256x512xbf16, #tpu.memory_space<vmem>>, %arg2: memref<256x1024xbf16, #tpu.memory_space<vmem>>, %arg3: memref<512x512xbf16, #tpu.memory_space<vmem>>, %arg4: memref<1x512xf32, #tpu.memory_space<vmem>>, %arg5: memref<256x128xbf16, #tpu.memory_space<vmem>>, %arg6: memref<1x128xf32, #tpu.memory_space<vmem>>, %arg7: memref<256x32xbf16, #tpu.memory_space<vmem>>, %arg8: memref<1x32xf32, #tpu.memory_space<vmem>>, %arg9: memref<256x128xf32, #tpu.memory_space<vmem>>) attributes {dimension_semantics = [#tpu.dimension_semantics<parallel>], iteration_bounds = array<i64: 2>, scalar_prefetch = 0 : i64, scratch_operands = 0 : i64, tpu.core_type = #tpu.core_type<tc>, window_params = [{transform_indices = @transform_0, window_bounds = array<i64: 256, 512>}, {transform_indices = @transform_1, window_bounds = array<i64: 256, 1024>}, {pipeline_mode = #tpu.pipeline_mode<synchronous>, transform_indices = @transform_2, window_bounds = array<i64: 512, 512>}, {pipeline_mode = #tpu.pipeline_mode<synchronous>, transform_indices = @transform_3, window_bounds = array<i64: 1, 512>}, {pipeline_mode = #tpu.pipeline_mode<synchronous>, transform_indices = @transform_4, window_bounds = array<i64: 256, 128>}, {pipeline_mode = #tpu.pipeline_mode<synchronous>, transform_indices = @transform_5, window_bounds = array<i64: 1, 128>}, {pipeline_mode = #tpu.pipeline_mode<synchronous>, transform_indices = @transform_6, window_bounds = array<i64: 256, 32>}, {pipeline_mode = #tpu.pipeline_mode<synchronous>, transform_indices = @transform_7, window_bounds = array<i64: 1, 32>}, {transform_indices = @transform_8, window_bounds = array<i64: 256, 128>}]} {
    %c0 = arith.constant 0 : index
    %c0_0 = arith.constant 0 : index
    %0 = vector.load %arg1[%c0, %c0_0] : memref<256x512xbf16, #tpu.memory_space<vmem>>, vector<256x512xbf16>
    %c0_1 = arith.constant 0 : index
    %c0_2 = arith.constant 0 : index
    %1 = vector.load %arg3[%c0_1, %c0_2] : memref<512x512xbf16, #tpu.memory_space<vmem>>, vector<512x512xbf16>
    %cst = arith.constant dense<0.000000e+00> : vector<256x512xf32>
    %2 = tpu.matmul %0, %1, %cst {dimension_numbers = #tpu.dot_dimension_numbers<[1], [0], [0], [1], [0, 0, 1, 1], [], []>} : vector<256x512xbf16>, vector<512x512xbf16>, vector<256x512xf32> -> vector<256x512xf32>
    %c0_3 = arith.constant 0 : index
    %c0_4 = arith.constant 0 : index
    %3 = vector.load %arg4[%c0_3, %c0_4] : memref<1x512xf32, #tpu.memory_space<vmem>>, vector<1x512xf32>
    %4 = vector.broadcast %3 : vector<1x512xf32> to vector<256x512xf32>
    %5 = arith.addf %2, %4 : vector<256x512xf32>
    %6 = vector.extract_strided_slice %5 {offsets = [0, 0], sizes = [256, 128], strides = [1, 1]} : vector<256x512xf32> to vector<256x128xf32>
    %c0_5 = arith.constant 0 : index
    %c0_6 = arith.constant 0 : index
    %7 = vector.load %arg2[%c0_5, %c0_6] : memref<256x1024xbf16, #tpu.memory_space<vmem>>, vector<256x128xbf16>
    %8 = arith.extf %7 : vector<256x128xbf16> to vector<256x128xf32>
    %c0_7 = arith.constant 0 : index
    %c128 = arith.constant 128 : index
    %9 = vector.load %arg2[%c0_7, %c128] : memref<256x1024xbf16, #tpu.memory_space<vmem>>, vector<256x128xbf16>
    %10 = arith.extf %9 : vector<256x128xbf16> to vector<256x128xf32>
    %cst_8 = arith.constant 0.000000e+00 : f32
    %11 = vector.broadcast %cst_8 : f32 to vector<256x128xf32>
    %12 = arith.maximumf %6, %11 : vector<256x128xf32>
    %13 = arith.addf %12, %8 : vector<256x128xf32>
    %cst_9 = arith.constant 0.000000e+00 : f32
    %14 = vector.broadcast %cst_9 : f32 to vector<256x128xf32>
    %15 = arith.subf %14, %6 : vector<256x128xf32>
    %cst_10 = arith.constant 0.000000e+00 : f32
    %16 = vector.broadcast %cst_10 : f32 to vector<256x128xf32>
    %17 = arith.maximumf %15, %16 : vector<256x128xf32>
    %18 = arith.addf %17, %10 : vector<256x128xf32>
    %19 = tpu.concatenate %13, %18 in 1 : vector<256x128xf32>, vector<256x128xf32> -> vector<256x256xf32>
    %20 = arith.truncf %19 : vector<256x256xf32> to vector<256x256xbf16>
    %c0_11 = arith.constant 0 : index
    %c0_12 = arith.constant 0 : index
    %21 = vector.load %arg5[%c0_11, %c0_12] : memref<256x128xbf16, #tpu.memory_space<vmem>>, vector<256x128xbf16>
    %cst_13 = arith.constant dense<0.000000e+00> : vector<256x128xf32>
    %22 = tpu.matmul %20, %21, %cst_13 {dimension_numbers = #tpu.dot_dimension_numbers<[1], [0], [0], [1], [0, 0, 1, 1], [], []>} : vector<256x256xbf16>, vector<256x128xbf16>, vector<256x128xf32> -> vector<256x128xf32>
    %c0_14 = arith.constant 0 : index
    %c0_15 = arith.constant 0 : index
    %23 = vector.load %arg6[%c0_14, %c0_15] : memref<1x128xf32, #tpu.memory_space<vmem>>, vector<1x128xf32>
    %24 = vector.broadcast %23 : vector<1x128xf32> to vector<256x128xf32>
    %25 = arith.addf %22, %24 : vector<256x128xf32>
    %cst_16 = arith.constant 0.000000e+00 : f32
    %26 = vector.broadcast %cst_16 : f32 to vector<256x128xf32>
    %27 = arith.maximumf %25, %26 : vector<256x128xf32>
    %cst_17 = arith.constant 0.000000e+00 : f32
    %28 = vector.broadcast %cst_17 : f32 to vector<256x128xf32>
    %29 = arith.subf %28, %25 : vector<256x128xf32>
    %cst_18 = arith.constant 0.000000e+00 : f32
    %30 = vector.broadcast %cst_18 : f32 to vector<256x128xf32>
    %31 = arith.maximumf %29, %30 : vector<256x128xf32>
    %32 = tpu.concatenate %27, %31 in 1 : vector<256x128xf32>, vector<256x128xf32> -> vector<256x256xf32>
    %33 = arith.truncf %32 : vector<256x256xf32> to vector<256x256xbf16>
    %c0_19 = arith.constant 0 : index
    %c0_20 = arith.constant 0 : index
    %34 = vector.load %arg7[%c0_19, %c0_20] : memref<256x32xbf16, #tpu.memory_space<vmem>>, vector<256x32xbf16>
    %cst_21 = arith.constant dense<0.000000e+00> : vector<256x32xf32>
    %35 = tpu.matmul %33, %34, %cst_21 {dimension_numbers = #tpu.dot_dimension_numbers<[1], [0], [0], [1], [0, 0, 1, 1], [], []>} : vector<256x256xbf16>, vector<256x32xbf16>, vector<256x32xf32> -> vector<256x32xf32>
    %c0_22 = arith.constant 0 : index
    %c0_23 = arith.constant 0 : index
    %36 = vector.load %arg8[%c0_22, %c0_23] : memref<1x32xf32, #tpu.memory_space<vmem>>, vector<1x32xf32>
    %37 = vector.broadcast %36 : vector<1x32xf32> to vector<256x32xf32>
    %38 = arith.addf %35, %37 : vector<256x32xf32>
    %c0_24 = arith.constant 0 : index
    %c0_25 = arith.constant 0 : index
    %39 = vector.load %arg9[%c0_24, %c0_25] : memref<256x128xf32, #tpu.memory_space<vmem>>, vector<256x32xf32>
    tpu.vector_store %arg9[%c0_24, %c0_25], %38 {strides = array<i32>} : memref<256x128xf32, #tpu.memory_space<vmem>>, vector<256x32xf32>,
    %40 = vector.extract_strided_slice %5 {offsets = [0, 128], sizes = [256, 128], strides = [1, 1]} : vector<256x512xf32> to vector<256x128xf32>
    %c0_26 = arith.constant 0 : index
    %c256 = arith.constant 256 : index
    %41 = vector.load %arg2[%c0_26, %c256] : memref<256x1024xbf16, #tpu.memory_space<vmem>>, vector<256x128xbf16>
    %42 = arith.extf %41 : vector<256x128xbf16> to vector<256x128xf32>
    %c0_27 = arith.constant 0 : index
    %c384 = arith.constant 384 : index
    %43 = vector.load %arg2[%c0_27, %c384] : memref<256x1024xbf16, #tpu.memory_space<vmem>>, vector<256x128xbf16>
    %44 = arith.extf %43 : vector<256x128xbf16> to vector<256x128xf32>
    %cst_28 = arith.constant 0.000000e+00 : f32
    %45 = vector.broadcast %cst_28 : f32 to vector<256x128xf32>
    %46 = arith.maximumf %40, %45 : vector<256x128xf32>
    %47 = arith.addf %46, %42 : vector<256x128xf32>
    %cst_29 = arith.constant 0.000000e+00 : f32
    %48 = vector.broadcast %cst_29 : f32 to vector<256x128xf32>
    %49 = arith.subf %48, %40 : vector<256x128xf32>
    %cst_30 = arith.constant 0.000000e+00 : f32
    %50 = vector.broadcast %cst_30 : f32 to vector<256x128xf32>
    %51 = arith.maximumf %49, %50 : vector<256x128xf32>
    %52 = arith.addf %51, %44 : vector<256x128xf32>
    %53 = tpu.concatenate %47, %52 in 1 : vector<256x128xf32>, vector<256x128xf32> -> vector<256x256xf32>
    %54 = arith.truncf %53 : vector<256x256xf32> to vector<256x256xbf16>
    %c0_31 = arith.constant 0 : index
    %c0_32 = arith.constant 0 : index
    %55 = vector.load %arg5[%c0_31, %c0_32] : memref<256x128xbf16, #tpu.memory_space<vmem>>, vector<256x128xbf16>
    %cst_33 = arith.constant dense<0.000000e+00> : vector<256x128xf32>
    %56 = tpu.matmul %54, %55, %cst_33 {dimension_numbers = #tpu.dot_dimension_numbers<[1], [0], [0], [1], [0, 0, 1, 1], [], []>} : vector<256x256xbf16>, vector<256x128xbf16>, vector<256x128xf32> -> vector<256x128xf32>
    %c0_34 = arith.constant 0 : index
    %c0_35 = arith.constant 0 : index
    %57 = vector.load %arg6[%c0_34, %c0_35] : memref<1x128xf32, #tpu.memory_space<vmem>>, vector<1x128xf32>
    %58 = vector.broadcast %57 : vector<1x128xf32> to vector<256x128xf32>
    %59 = arith.addf %56, %58 : vector<256x128xf32>
    %cst_36 = arith.constant 0.000000e+00 : f32
    %60 = vector.broadcast %cst_36 : f32 to vector<256x128xf32>
    %61 = arith.maximumf %59, %60 : vector<256x128xf32>
    %cst_37 = arith.constant 0.000000e+00 : f32
    %62 = vector.broadcast %cst_37 : f32 to vector<256x128xf32>
    %63 = arith.subf %62, %59 : vector<256x128xf32>
    %cst_38 = arith.constant 0.000000e+00 : f32
    %64 = vector.broadcast %cst_38 : f32 to vector<256x128xf32>
    %65 = arith.maximumf %63, %64 : vector<256x128xf32>
    %66 = tpu.concatenate %61, %65 in 1 : vector<256x128xf32>, vector<256x128xf32> -> vector<256x256xf32>
    %67 = arith.truncf %66 : vector<256x256xf32> to vector<256x256xbf16>
    %c0_39 = arith.constant 0 : index
    %c0_40 = arith.constant 0 : index
    %68 = vector.load %arg7[%c0_39, %c0_40] : memref<256x32xbf16, #tpu.memory_space<vmem>>, vector<256x32xbf16>
    %cst_41 = arith.constant dense<0.000000e+00> : vector<256x32xf32>
    %69 = tpu.matmul %67, %68, %cst_41 {dimension_numbers = #tpu.dot_dimension_numbers<[1], [0], [0], [1], [0, 0, 1, 1], [], []>} : vector<256x256xbf16>, vector<256x32xbf16>, vector<256x32xf32> -> vector<256x32xf32>
    %c0_42 = arith.constant 0 : index
    %c0_43 = arith.constant 0 : index
    %70 = vector.load %arg8[%c0_42, %c0_43] : memref<1x32xf32, #tpu.memory_space<vmem>>, vector<1x32xf32>
    %71 = vector.broadcast %70 : vector<1x32xf32> to vector<256x32xf32>
    %72 = arith.addf %69, %71 : vector<256x32xf32>
    %c0_44 = arith.constant 0 : index
    %c32 = arith.constant 32 : index
    %73 = vector.load %arg9[%c0_44, %c32] : memref<256x128xf32, #tpu.memory_space<vmem>>, vector<256x32xf32>
    tpu.vector_store %arg9[%c0_44, %c32], %72 {strides = array<i32>} : memref<256x128xf32, #tpu.memory_space<vmem>>, vector<256x32xf32>,
    %74 = vector.extract_strided_slice %5 {offsets = [0, 256], sizes = [256, 128], strides = [1, 1]} : vector<256x512xf32> to vector<256x128xf32>
    %c0_45 = arith.constant 0 : index
    %c512 = arith.constant 512 : index
    %75 = vector.load %arg2[%c0_45, %c512] : memref<256x1024xbf16, #tpu.memory_space<vmem>>, vector<256x128xbf16>
    %76 = arith.extf %75 : vector<256x128xbf16> to vector<256x128xf32>
    %c0_46 = arith.constant 0 : index
    %c640 = arith.constant 640 : index
    %77 = vector.load %arg2[%c0_46, %c640] : memref<256x1024xbf16, #tpu.memory_space<vmem>>, vector<256x128xbf16>
    %78 = arith.extf %77 : vector<256x128xbf16> to vector<256x128xf32>
    %cst_47 = arith.constant 0.000000e+00 : f32
    %79 = vector.broadcast %cst_47 : f32 to vector<256x128xf32>
    %80 = arith.maximumf %74, %79 : vector<256x128xf32>
    %81 = arith.addf %80, %76 : vector<256x128xf32>
    %cst_48 = arith.constant 0.000000e+00 : f32
    %82 = vector.broadcast %cst_48 : f32 to vector<256x128xf32>
    %83 = arith.subf %82, %74 : vector<256x128xf32>
    %cst_49 = arith.constant 0.000000e+00 : f32
    %84 = vector.broadcast %cst_49 : f32 to vector<256x128xf32>
    %85 = arith.maximumf %83, %84 : vector<256x128xf32>
    %86 = arith.addf %85, %78 : vector<256x128xf32>
    %87 = tpu.concatenate %81, %86 in 1 : vector<256x128xf32>, vector<256x128xf32> -> vector<256x256xf32>
    %88 = arith.truncf %87 : vector<256x256xf32> to vector<256x256xbf16>
    %c0_50 = arith.constant 0 : index
    %c0_51 = arith.constant 0 : index
    %89 = vector.load %arg5[%c0_50, %c0_51] : memref<256x128xbf16, #tpu.memory_space<vmem>>, vector<256x128xbf16>
    %cst_52 = arith.constant dense<0.000000e+00> : vector<256x128xf32>
    %90 = tpu.matmul %88, %89, %cst_52 {dimension_numbers = #tpu.dot_dimension_numbers<[1], [0], [0], [1], [0, 0, 1, 1], [], []>} : vector<256x256xbf16>, vector<256x128xbf16>, vector<256x128xf32> -> vector<256x128xf32>
    %c0_53 = arith.constant 0 : index
    %c0_54 = arith.constant 0 : index
    %91 = vector.load %arg6[%c0_53, %c0_54] : memref<1x128xf32, #tpu.memory_space<vmem>>, vector<1x128xf32>
    %92 = vector.broadcast %91 : vector<1x128xf32> to vector<256x128xf32>
    %93 = arith.addf %90, %92 : vector<256x128xf32>
    %cst_55 = arith.constant 0.000000e+00 : f32
    %94 = vector.broadcast %cst_55 : f32 to vector<256x128xf32>
    %95 = arith.maximumf %93, %94 : vector<256x128xf32>
    %cst_56 = arith.constant 0.000000e+00 : f32
    %96 = vector.broadcast %cst_56 : f32 to vector<256x128xf32>
    %97 = arith.subf %96, %93 : vector<256x128xf32>
    %cst_57 = arith.constant 0.000000e+00 : f32
    %98 = vector.broadcast %cst_57 : f32 to vector<256x128xf32>
    %99 = arith.maximumf %97, %98 : vector<256x128xf32>
    %100 = tpu.concatenate %95, %99 in 1 : vector<256x128xf32>, vector<256x128xf32> -> vector<256x256xf32>
    %101 = arith.truncf %100 : vector<256x256xf32> to vector<256x256xbf16>
    %c0_58 = arith.constant 0 : index
    %c0_59 = arith.constant 0 : index
    %102 = vector.load %arg7[%c0_58, %c0_59] : memref<256x32xbf16, #tpu.memory_space<vmem>>, vector<256x32xbf16>
    %cst_60 = arith.constant dense<0.000000e+00> : vector<256x32xf32>
    %103 = tpu.matmul %101, %102, %cst_60 {dimension_numbers = #tpu.dot_dimension_numbers<[1], [0], [0], [1], [0, 0, 1, 1], [], []>} : vector<256x256xbf16>, vector<256x32xbf16>, vector<256x32xf32> -> vector<256x32xf32>
    %c0_61 = arith.constant 0 : index
    %c0_62 = arith.constant 0 : index
    %104 = vector.load %arg8[%c0_61, %c0_62] : memref<1x32xf32, #tpu.memory_space<vmem>>, vector<1x32xf32>
    %105 = vector.broadcast %104 : vector<1x32xf32> to vector<256x32xf32>
    %106 = arith.addf %103, %105 : vector<256x32xf32>
    %c0_63 = arith.constant 0 : index
    %c64 = arith.constant 64 : index
    %107 = vector.load %arg9[%c0_63, %c64] : memref<256x128xf32, #tpu.memory_space<vmem>>, vector<256x32xf32>
    tpu.vector_store %arg9[%c0_63, %c64], %106 {strides = array<i32>} : memref<256x128xf32, #tpu.memory_space<vmem>>, vector<256x32xf32>,
    %108 = vector.extract_strided_slice %5 {offsets = [0, 384], sizes = [256, 128], strides = [1, 1]} : vector<256x512xf32> to vector<256x128xf32>
    %c0_64 = arith.constant 0 : index
    %c768 = arith.constant 768 : index
    %109 = vector.load %arg2[%c0_64, %c768] : memref<256x1024xbf16, #tpu.memory_space<vmem>>, vector<256x128xbf16>
    %110 = arith.extf %109 : vector<256x128xbf16> to vector<256x128xf32>
    %c0_65 = arith.constant 0 : index
    %c896 = arith.constant 896 : index
    %111 = vector.load %arg2[%c0_65, %c896] : memref<256x1024xbf16, #tpu.memory_space<vmem>>, vector<256x128xbf16>
    %112 = arith.extf %111 : vector<256x128xbf16> to vector<256x128xf32>
    %cst_66 = arith.constant 0.000000e+00 : f32
    %113 = vector.broadcast %cst_66 : f32 to vector<256x128xf32>
    %114 = arith.maximumf %108, %113 : vector<256x128xf32>
    %115 = arith.addf %114, %110 : vector<256x128xf32>
    %cst_67 = arith.constant 0.000000e+00 : f32
    %116 = vector.broadcast %cst_67 : f32 to vector<256x128xf32>
    %117 = arith.subf %116, %108 : vector<256x128xf32>
    %cst_68 = arith.constant 0.000000e+00 : f32
    %118 = vector.broadcast %cst_68 : f32 to vector<256x128xf32>
    %119 = arith.maximumf %117, %118 : vector<256x128xf32>
    %120 = arith.addf %119, %112 : vector<256x128xf32>
    %121 = tpu.concatenate %115, %120 in 1 : vector<256x128xf32>, vector<256x128xf32> -> vector<256x256xf32>
    %122 = arith.truncf %121 : vector<256x256xf32> to vector<256x256xbf16>
    %c0_69 = arith.constant 0 : index
    %c0_70 = arith.constant 0 : index
    %123 = vector.load %arg5[%c0_69, %c0_70] : memref<256x128xbf16, #tpu.memory_space<vmem>>, vector<256x128xbf16>
    %cst_71 = arith.constant dense<0.000000e+00> : vector<256x128xf32>
    %124 = tpu.matmul %122, %123, %cst_71 {dimension_numbers = #tpu.dot_dimension_numbers<[1], [0], [0], [1], [0, 0, 1, 1], [], []>} : vector<256x256xbf16>, vector<256x128xbf16>, vector<256x128xf32> -> vector<256x128xf32>
    %c0_72 = arith.constant 0 : index
    %c0_73 = arith.constant 0 : index
    %125 = vector.load %arg6[%c0_72, %c0_73] : memref<1x128xf32, #tpu.memory_space<vmem>>, vector<1x128xf32>
    %126 = vector.broadcast %125 : vector<1x128xf32> to vector<256x128xf32>
    %127 = arith.addf %124, %126 : vector<256x128xf32>
    %cst_74 = arith.constant 0.000000e+00 : f32
    %128 = vector.broadcast %cst_74 : f32 to vector<256x128xf32>
    %129 = arith.maximumf %127, %128 : vector<256x128xf32>
    %cst_75 = arith.constant 0.000000e+00 : f32
    %130 = vector.broadcast %cst_75 : f32 to vector<256x128xf32>
    %131 = arith.subf %130, %127 : vector<256x128xf32>
    %cst_76 = arith.constant 0.000000e+00 : f32
    %132 = vector.broadcast %cst_76 : f32 to vector<256x128xf32>
    %133 = arith.maximumf %131, %132 : vector<256x128xf32>
    %134 = tpu.concatenate %129, %133 in 1 : vector<256x128xf32>, vector<256x128xf32> -> vector<256x256xf32>
    %135 = arith.truncf %134 : vector<256x256xf32> to vector<256x256xbf16>
    %c0_77 = arith.constant 0 : index
    %c0_78 = arith.constant 0 : index
    %136 = vector.load %arg7[%c0_77, %c0_78] : memref<256x32xbf16, #tpu.memory_space<vmem>>, vector<256x32xbf16>
    %cst_79 = arith.constant dense<0.000000e+00> : vector<256x32xf32>
    %137 = tpu.matmul %135, %136, %cst_79 {dimension_numbers = #tpu.dot_dimension_numbers<[1], [0], [0], [1], [0, 0, 1, 1], [], []>} : vector<256x256xbf16>, vector<256x32xbf16>, vector<256x32xf32> -> vector<256x32xf32>
    %c0_80 = arith.constant 0 : index
    %c0_81 = arith.constant 0 : index
    %138 = vector.load %arg8[%c0_80, %c0_81] : memref<1x32xf32, #tpu.memory_space<vmem>>, vector<1x32xf32>
    %139 = vector.broadcast %138 : vector<1x32xf32> to vector<256x32xf32>
    %140 = arith.addf %137, %139 : vector<256x32xf32>
    %c0_82 = arith.constant 0 : index
    %c96 = arith.constant 96 : index
    %141 = vector.load %arg9[%c0_82, %c96] : memref<256x128xf32, #tpu.memory_space<vmem>>, vector<256x32xf32>
    tpu.vector_store %arg9[%c0_82, %c96], %140 {strides = array<i32>} : memref<256x128xf32, #tpu.memory_space<vmem>>, vector<256x32xf32>,
    return
  }
  func.func @transform_0(%arg0: i32) -> (i32, i32) {
    %c0_i32 = arith.constant 0 : i32
    %c0_i32_0 = arith.constant 0 : i32
    return %arg0, %c0_i32 : i32, i32
  }
  func.func @transform_1(%arg0: i32) -> (i32, i32) {
    %c0_i32 = arith.constant 0 : i32
    %c0_i32_0 = arith.constant 0 : i32
    return %arg0, %c0_i32 : i32, i32
  }
  func.func @transform_2(%arg0: i32) -> (i32, i32) {
    %c0_i32 = arith.constant 0 : i32
    %c0_i32_0 = arith.constant 0 : i32
    %c0_i32_1 = arith.constant 0 : i32
    return %c0_i32, %c0_i32_0 : i32, i32
  }
  func.func @transform_3(%arg0: i32) -> (i32, i32) {
    %c0_i32 = arith.constant 0 : i32
    %c0_i32_0 = arith.constant 0 : i32
    %c0_i32_1 = arith.constant 0 : i32
    return %c0_i32, %c0_i32_0 : i32, i32
  }
  func.func @transform_4(%arg0: i32) -> (i32, i32) {
    %c0_i32 = arith.constant 0 : i32
    %c0_i32_0 = arith.constant 0 : i32
    %c0_i32_1 = arith.constant 0 : i32
    return %c0_i32, %c0_i32_0 : i32, i32
  }
  func.func @transform_5(%arg0: i32) -> (i32, i32) {
    %c0_i32 = arith.constant 0 : i32
    %c0_i32_0 = arith.constant 0 : i32
    %c0_i32_1 = arith.constant 0 : i32
    return %c0_i32, %c0_i32_0 : i32, i32
  }
  func.func @transform_6(%arg0: i32) -> (i32, i32) {
    %c0_i32 = arith.constant 0 : i32
    %c0_i32_0 = arith.constant 0 : i32
    %c0_i32_1 = arith.constant 0 : i32
    return %c0_i32, %c0_i32_0 : i32, i32
  }
  func.func @transform_7(%arg0: i32) -> (i32, i32) {
    %c0_i32 = arith.constant 0 : i32
    %c0_i32_0 = arith.constant 0 : i32
    %c0_i32_1 = arith.constant 0 : i32
    return %c0_i32, %c0_i32_0 : i32, i32
  }
  func.func @transform_8(%arg0: i32) -> (i32, i32) {
    %c0_i32 = arith.constant 0 : i32
    %c0_i32_0 = arith.constant 0 : i32
    return %arg0, %c0_i32 : i32, i32
  }
}

module attributes {stable_mosaic.version = 11 : i64} {
  func.func @_psd_kernel(%arg0: i32, %arg1: memref<1x2x128x128xf32, #tpu.memory_space<vmem>>, %arg2: memref<1x128x128xf32, #tpu.memory_space<vmem>>, %arg3: memref<1x128x128xf32, #tpu.memory_space<vmem>>) attributes {dimension_semantics = [#tpu.dimension_semantics<parallel>], iteration_bounds = array<i64: 2>, scalar_prefetch = 0 : i64, scratch_operands = 0 : i64, tpu.core_type = #tpu.core_type<tc>, window_params = [{transform_indices = @transform_0, window_bounds = array<i64: 1, 2, 128, 128>}, {transform_indices = @transform_1, window_bounds = array<i64: 1, 128, 128>}, {transform_indices = @transform_2, window_bounds = array<i64: 1, 128, 128>}]} {
    %c0 = arith.constant 0 : index
    %c0_0 = arith.constant 0 : index
    %c0_1 = arith.constant 0 : index
    %c0_2 = arith.constant 0 : index
    %0 = vector.load %arg1[%c0, %c0_0, %c0_1, %c0_2] : memref<1x2x128x128xf32, #tpu.memory_space<vmem>>, vector<1x1x128x128xf32>
    %1 = vector.shape_cast %0 : vector<1x1x128x128xf32> to vector<128x128xf32>
    %c0_3 = arith.constant 0 : index
    %c1 = arith.constant 1 : index
    %c0_4 = arith.constant 0 : index
    %c0_5 = arith.constant 0 : index
    %2 = vector.load %arg1[%c0_3, %c1, %c0_4, %c0_5] : memref<1x2x128x128xf32, #tpu.memory_space<vmem>>, vector<1x1x128x128xf32>
    %3 = vector.shape_cast %2 : vector<1x1x128x128xf32> to vector<128x128xf32>
    %4 = tpu.transpose %1, [1, 0] : vector<128x128xf32> -> vector<128x128xf32>
    %5 = arith.addf %1, %4 : vector<128x128xf32>
    %cst = arith.constant 5.000000e-01 : f32
    %6 = vector.broadcast %cst : f32 to vector<128x128xf32>
    %7 = arith.mulf %6, %5 : vector<128x128xf32>
    %8 = tpu.transpose %3, [1, 0] : vector<128x128xf32> -> vector<128x128xf32>
    %9 = arith.subf %3, %8 : vector<128x128xf32>
    %cst_6 = arith.constant 5.000000e-01 : f32
    %10 = vector.broadcast %cst_6 : f32 to vector<128x128xf32>
    %11 = arith.mulf %10, %9 : vector<128x128xf32>
    %12 = arith.mulf %7, %7 : vector<128x128xf32>
    %13 = arith.mulf %11, %11 : vector<128x128xf32>
    %14 = arith.addf %12, %13 : vector<128x128xf32>
    %cst_7 = arith.constant dense<0.000000e+00> : vector<128xf32>
    %15 = vector.multi_reduction <add>, %14, %cst_7 [1] : vector<128x128xf32> to vector<128xf32>
    %16 = vector.shape_cast %15 : vector<128xf32> to vector<128x1xf32>
    %cst_8 = arith.constant dense<0.000000e+00> : vector<1xf32>
    %17 = vector.multi_reduction <add>, %16, %cst_8 [0] : vector<128x1xf32> to vector<1xf32>
    %18 = vector.shape_cast %17 : vector<1xf32> to vector<1x1xf32>
    %19 = math.sqrt %18 : vector<1x1xf32>
    %cst_9 = arith.constant 9.99999996E-13 : f32
    %20 = vector.broadcast %cst_9 : f32 to vector<1x1xf32>
    %21 = arith.maximumf %19, %20 : vector<1x1xf32>
    %cst_10 = arith.constant 1.000000e+00 : f32
    %22 = vector.broadcast %cst_10 : f32 to vector<1x1xf32>
    %23 = arith.divf %22, %21 : vector<1x1xf32>
    %24 = tpu.iota {dimensions = array<i32: 0>} : vector<128x128xi32>
    %25 = tpu.iota {dimensions = array<i32: 1>} : vector<128x128xi32>
    %26 = arith.cmpi eq, %24, %25 : vector<128x128xi32>
    %cst_11 = arith.constant 1.000000e+00 : f32
    %cst_12 = arith.constant 0.000000e+00 : f32
    %27 = vector.broadcast %cst_11 : f32 to vector<128x128xf32>
    %28 = vector.broadcast %cst_12 : f32 to vector<128x128xf32>
    %29 = arith.select %26, %27, %28 : vector<128x128xi1>, vector<128x128xf32>
    %30 = vector.broadcast %23 : vector<1x1xf32> to vector<128x128xf32>
    %31 = arith.mulf %7, %30 : vector<128x128xf32>
    %32 = arith.addf %31, %29 : vector<128x128xf32>
    %c0_13 = arith.constant 0 : index
    %c0_14 = arith.constant 0 : index
    %c0_15 = arith.constant 0 : index
    %33 = vector.load %arg2[%c0_13, %c0_14, %c0_15] : memref<1x128x128xf32, #tpu.memory_space<vmem>>, vector<1x128x128xf32>
    %34 = vector.shape_cast %33 : vector<1x128x128xf32> to vector<128x128xf32>
    %35 = vector.shape_cast %32 : vector<128x128xf32> to vector<1x128x128xf32>
    tpu.vector_store %arg2[%c0_13, %c0_14, %c0_15], %35 {strides = array<i32>} : memref<1x128x128xf32, #tpu.memory_space<vmem>>, vector<1x128x128xf32>,
    %36 = vector.broadcast %23 : vector<1x1xf32> to vector<128x128xf32>
    %37 = arith.mulf %11, %36 : vector<128x128xf32>
    %c0_16 = arith.constant 0 : index
    %c0_17 = arith.constant 0 : index
    %c0_18 = arith.constant 0 : index
    %38 = vector.load %arg3[%c0_16, %c0_17, %c0_18] : memref<1x128x128xf32, #tpu.memory_space<vmem>>, vector<1x128x128xf32>
    %39 = vector.shape_cast %38 : vector<1x128x128xf32> to vector<128x128xf32>
    %40 = vector.shape_cast %37 : vector<128x128xf32> to vector<1x128x128xf32>
    tpu.vector_store %arg3[%c0_16, %c0_17, %c0_18], %40 {strides = array<i32>} : memref<1x128x128xf32, #tpu.memory_space<vmem>>, vector<1x128x128xf32>,
    return
  }
  func.func @transform_0(%arg0: i32) -> (i32, i32, i32, i32) {
    %c0_i32 = arith.constant 0 : i32
    %c0_i32_0 = arith.constant 0 : i32
    %c0_i32_1 = arith.constant 0 : i32
    %c0_i32_2 = arith.constant 0 : i32
    return %arg0, %c0_i32, %c0_i32_0, %c0_i32_1 : i32, i32, i32, i32
  }
  func.func @transform_1(%arg0: i32) -> (i32, i32, i32) {
    %c0_i32 = arith.constant 0 : i32
    %c0_i32_0 = arith.constant 0 : i32
    %c0_i32_1 = arith.constant 0 : i32
    return %arg0, %c0_i32, %c0_i32_0 : i32, i32, i32
  }
  func.func @transform_2(%arg0: i32) -> (i32, i32, i32) {
    %c0_i32 = arith.constant 0 : i32
    %c0_i32_0 = arith.constant 0 : i32
    %c0_i32_1 = arith.constant 0 : i32
    return %arg0, %c0_i32, %c0_i32_0 : i32, i32, i32
  }
}

</mosaic_0001>

<bundles_post_ra>
// kernel: decoder_forward.2
= control target key start
LH: loop header
LB: loop body
LE: loop exit
PB: predicated region body
PF: predicated region fallthrough
CT: control target
= control target key end

     0   :  { %s8803_s27 = smov 0   ;;  %s13046_s0 = inlined_call_operand.vmem [shape: bf16[512,512], index: 0, kind: input, shape index: {}]   ;;  %s13047_s1 = inlined_call_operand.vmem [shape: bf16[512,1024], index: 1, kind: input, shape index: {}]   ;;  %s13048_s2 = inlined_call_operand.vmem [shape: bf16[512,512], index: 2, kind: input, shape index: {}]   ;;  %s13049_s3 = inlined_call_operand.vmem [shape: f32[1,512], index: 3, kind: input, shape index: {}]   ;;  %s13050_s4 = inlined_call_operand.vmem [shape: bf16[256,128], index: 4, kind: input, shape index: {}]   ;;  %s13051_s5 = inlined_call_operand.vmem [shape: f32[1,128], index: 5, kind: input, shape index: {}]   ;;  %s13052_s6 = inlined_call_operand.vmem [shape: bf16[256,32], index: 6, kind: input, shape index: {}]   ;;  %s13053_s7 = inlined_call_operand.vmem [shape: f32[1,32], index: 7, kind: input, shape index: {}]   ;;  %s13054_s8 = inlined_call_operand.vmem [shape: f32[512,128], index: 8, kind: output, shape index: {}]  }
   0x1 LB: > { %s7028_s28 = sadd.s32 4294967295, %s8753_s27   ;;  %p7032_p0 = scmp.ge.s32.totalorder %s8753_s27, 1  ;;  %s8753_s27 = sphi %s8803_s27, %s18_s27  }
   0x2   : > { %p276_p1 = scmp.lt.s32.totalorder %s8753_s27, 3 }
   0x4   : > { %p277_p2 = pnand %p7032_p0, %p276_p1 }
   0x6   : > { %280 = sbr.rel (%p277_p2) target bundleno = 1404 (0x57c), region = 52 }
   0xb   : > { %v8280_v0 = vld [vmem:[%s13048_s2 + $0xe4] ss:$16 sps:$4 sm:$0xff]   ;;  %v8282_v1 = vld [vmem:[%s13048_s2 + $0xe0] ss:$16 sps:$4 sm:$0xff]   ;;  %s7033_s29 = sshll.u32 %s7028_s28, 5  ;;  %vm3324_vm0 = vcmask 261120  }
   0xc   : > { %1512 = vmatprep.subr.bf16.mxu0 %v8280_v0  ;;  %v8283_v2 = vld [vmem:[%s13048_s2 + $0x2e4] ss:$16 sps:$4 sm:$0xff]   ;;  %v8285_v3 = vld [vmem:[%s13048_s2 + $0x2e0] ss:$16 sps:$4 sm:$0xff]   ;;  %p318_p3 = scmp.lt.s32.totalorder %s7033_s29, 63  ;;  %s8755_s19 = smov 32  }
   0xd   : > { %1513 = vmatpush1.bf16.msra.mxu0 %v8282_v1  ;;  %v8286_v4 = vld [vmem:[%s13048_s2 + $0xc4] ss:$16 sps:$4 sm:$0xff]   ;;  %v8288_v5 = vld [vmem:[%s13048_s2 + $0xc0] ss:$16 sps:$4 sm:$0xff]   ;;  %1705 = vmatprep.subr.bf16.mxu1 %v8283_v2  ;;  %v8381_v1 = vld [vmem:[%s13048_s2 + $0xec] ss:$16 sps:$4 sm:$0xff]  }
   0xe   : > { %v8289_v6 = vld [vmem:[%s13048_s2 + $0x2c4] ss:$16 sps:$4 sm:$0xff]   ;;  %1706 = vmatpush1.bf16.msra.mxu1 %v8285_v3  ;;  %1514 = vmatprep.subr.bf16.mxu0 %v8286_v4  ;;  %v8291_v7 = vld [vmem:[%s13048_s2 + $0x2c0] ss:$16 sps:$4 sm:$0xff]   ;;  %s14088_s29 = smov (!%p318_p3, %s7033_s29), 63  ;;  %vm4525_vm1 = vcmask 523520  }
   0xf   : > { %1707 = vmatprep.subr.bf16.mxu1 %v8289_v6  ;;  %v8292_v8 = vld [vmem:[%s13048_s2 + $0xa4] ss:$16 sps:$4 sm:$0xff]   ;;  %v8294_v9 = vld [vmem:[%s13048_s2 + $0xa0] ss:$16 sps:$4 sm:$0xff]   ;;  %s7371_s10 = sshll.u32 %s14088_s29, 4  ;;  %s7372_s12 = sshll.u32 %s14088_s29, 5 }
  0x10   : > { %v8295_v10 = vld [vmem:[%s13048_s2 + $0x2a4] ss:$16 sps:$4 sm:$0xff]   ;;  %v8297_v12 = vld [vmem:[%s13048_s2 + $0x2a0] ss:$16 sps:$4 sm:$0xff]   ;;  %s8951_s18 = scalar_lea.vmem %s13046_s0, %s7371_s10  ;;  %v8379_v4 = vld [vmem:[%s13048_s2 + $0xe8] ss:$16 sps:$4 sm:$0xff]   ;;  %s9396_s15 = scalar_lea.vmem %s13047_s1, %s7372_s12 }
  0x11   : > { %1515 = vmatpush1.bf16.msra.mxu0 %v8288_v5  ;;  %v8298_v11 = vld [vmem:[%s13048_s2 + $0x84] ss:$16 sps:$4 sm:$0xff]   ;;  %v8300_v14 = vld [vmem:[%s13048_s2 + $0x80] ss:$16 sps:$4 sm:$0xff]   ;;  %v8384_v51 = vld [vmem:[%s8951_s18 + $0xc] ss:$16 sps:$4 sm:$0xff]  }
  0x12   : > { %1516 = vmatprep.subr.bf16.mxu0 %v8292_v8  ;;  %1708 = vmatpush1.bf16.msra.mxu1 %v8291_v7  ;;  %v8301_v13 = vld [vmem:[%s13048_s2 + $0x284] ss:$16 sps:$4 sm:$0xff]   ;;  %v8303_v16 = vld [vmem:[%s13048_s2 + $0x280] ss:$16 sps:$4 sm:$0xff]   ;;  %v9025_v5 = vld [vmem:[%s8951_s18 + $0x8] ss:$16 sps:$4 sm:$0xff]  }
  0x13   : > { %1709 = vmatprep.subr.bf16.mxu1 %v8295_v10  ;;  %v8304_v15 = vld [vmem:[%s13048_s2 + $0x64] ss:$16 sps:$4 sm:$0xff]   ;;  %v8306_v18 = vld [vmem:[%s13048_s2 + $0x60] ss:$16 sps:$4 sm:$0xff]   ;;  %1737 = vmatprep.mubr.bf16.mxu1 %v8384_v51  ;;  %v8390_v7 = vld [vmem:[%s13048_s2 + $0xcc] ss:$16 sps:$4 sm:$0xff]  }
  0x14   : > { %v8307_v17 = vld [vmem:[%s13048_s2 + $0x264] ss:$16 sps:$4 sm:$0xff]   ;;  %v8309_v20 = vld [vmem:[%s13048_s2 + $0x260] ss:$16 sps:$4 sm:$0xff]   ;;  %v9034_v8 = vld [vmem:[%s8951_s18 + $0x2c] ss:$16 sps:$4 sm:$0xff]  }
  0x15   : > { %1517 = vmatpush1.bf16.msra.mxu0 %v8294_v9  ;;  %v8310_v19 = vld [vmem:[%s13048_s2 + $0x44] ss:$16 sps:$4 sm:$0xff]   ;;  %v8312_v22 = vld [vmem:[%s13048_s2 + $0x40] ss:$16 sps:$4 sm:$0xff]   ;;  %v8388_v9 = vld [vmem:[%s13048_s2 + $0xc8] ss:$16 sps:$4 sm:$0xff]  }
  0x16   : > { %1518 = vmatprep.subr.bf16.mxu0 %v8298_v11  ;;  %1710 = vmatpush1.bf16.msra.mxu1 %v8297_v12  ;;  %v8313_v21 = vld [vmem:[%s13048_s2 + $0x244] ss:$16 sps:$4 sm:$0xff]   ;;  %v8315_v24 = vld [vmem:[%s13048_s2 + $0x240] ss:$16 sps:$4 sm:$0xff]   ;;  %v8399_v10 = vld [vmem:[%s13048_s2 + $0xac] ss:$16 sps:$4 sm:$0xff]  }
  0x17   : > { %1711 = vmatprep.subr.bf16.mxu1 %v8301_v13  ;;  %v8316_v23 = vld [vmem:[%s13048_s2 + $0x24] ss:$16 sps:$4 sm:$0xff]   ;;  %v8318_v26 = vld [vmem:[%s13048_s2 + $0x20] ss:$16 sps:$4 sm:$0xff]   ;;  %v8393_v12 = vld [vmem:[%s8951_s18 + $0x28] ss:$16 sps:$4 sm:$0xff]  }
  0x18   : > { %v8319_v25 = vld [vmem:[%s13048_s2 + $0x224] ss:$16 sps:$4 sm:$0xff]   ;;  %v8321_v28 = vld [vmem:[%s13048_s2 + $0x220] ss:$16 sps:$4 sm:$0xff]   ;;  %v8492_v51 = vld [vmem:[%s13048_s2 + $0x24c] ss:$16 sps:$4 sm:$0xff]  }
  0x19   : > { %1519 = vmatpush1.bf16.msra.mxu0 %v8300_v14  ;;  %v8322_v27 = vld [vmem:[%s13048_s2 + $0x4] ss:$16 sps:$4 sm:$0xff]   ;;  %v8324_v30 = vld [vmem:[%s13048_s2] ss:$16 sps:$4 sm:$0xff]   ;;  %v8397_v14 = vld [vmem:[%s13048_s2 + $0xa8] ss:$16 sps:$4 sm:$0xff]  }
  0x1a   : > { %1520 = vmatprep.subr.bf16.mxu0 %v8304_v15  ;;  %1712 = vmatpush1.bf16.msra.mxu1 %v8303_v16  ;;  %v8325_v29 = vld [vmem:[%s13048_s2 + $0x204] ss:$16 sps:$4 sm:$0xff]   ;;  %v8327_v32 = vld [vmem:[%s13048_s2 + $0x200] ss:$16 sps:$4 sm:$0xff]   ;;  %v8408_v15 = vld [vmem:[%s13048_s2 + $0x8c] ss:$16 sps:$4 sm:$0xff]  }
  0x1b   : > { %1713 = vmatprep.subr.bf16.mxu1 %v8307_v17  ;;  %v8328_v31 = vld [vmem:[%s13048_s2 + $0x1e4] ss:$16 sps:$4 sm:$0xff]   ;;  %v8330_v34 = vld [vmem:[%s13048_s2 + $0x1e0] ss:$16 sps:$4 sm:$0xff]   ;;  %v9060_v16 = vld [vmem:[%s8951_s18 + $0x4c] ss:$16 sps:$4 sm:$0xff]  }
  0x1c   : > { %v8331_v33 = vld [vmem:[%s13048_s2 + $0x3e4] ss:$16 sps:$4 sm:$0xff]   ;;  %v8333_v36 = vld [vmem:[%s13048_s2 + $0x3e0] ss:$16 sps:$4 sm:$0xff]   ;;  %v8406_v17 = vld [vmem:[%s13048_s2 + $0x88] ss:$16 sps:$4 sm:$0xff]  }
  0x1d   : > { %1521 = vmatpush1.bf16.msra.mxu0 %v8306_v18  ;;  %v8334_v35 = vld [vmem:[%s13048_s2 + $0x1c4] ss:$16 sps:$4 sm:$0xff]   ;;  %v8336_v38 = vld [vmem:[%s13048_s2 + $0x1c0] ss:$16 sps:$4 sm:$0xff]   ;;  %v8417_v18 = vld [vmem:[%s13048_s2 + $0x6c] ss:$16 sps:$4 sm:$0xff]  }
  0x1e   : > { %1522 = vmatprep.subr.bf16.mxu0 %v8310_v19  ;;  %1714 = vmatpush1.bf16.msra.mxu1 %v8309_v20  ;;  %v8337_v37 = vld [vmem:[%s13048_s2 + $0x3c4] ss:$16 sps:$4 sm:$0xff]   ;;  %v8339_v40 = vld [vmem:[%s13048_s2 + $0x3c0] ss:$16 sps:$4 sm:$0xff]   ;;  %v8402_v20 = vld [vmem:[%s8951_s18 + $0x48] ss:$16 sps:$4 sm:$0xff]  }
  0x1f   : > { %1715 = vmatprep.subr.bf16.mxu1 %v8313_v21  ;;  %v8340_v39 = vld [vmem:[%s13048_s2 + $0x1a4] ss:$16 sps:$4 sm:$0xff]   ;;  %v8342_v42 = vld [vmem:[%s13048_s2 + $0x1a0] ss:$16 sps:$4 sm:$0xff]   ;;  %s7040_s20 = sshll.u32 %s14088_s29, 3  ;;  %s8756_s22 = smov 64  }
  0x20   : > { %v8343_v41 = vld [vmem:[%s13048_s2 + $0x3a4] ss:$16 sps:$4 sm:$0xff]   ;;  %v8345_v44 = vld [vmem:[%s13048_s2 + $0x3a0] ss:$16 sps:$4 sm:$0xff]   ;;  %s12333_s25 = scalar_lea.vmem %s13054_s8, %s7040_s20  ;;  %vm5726_vm2 = vcmask 785920   ;;  %s8757_s30 = smov 96  }
  0x21   : > { %1523 = vmatpush1.bf16.msra.mxu0 %v8312_v22  ;;  %v8346_v43 = vld [vmem:[%s13048_s2 + $0x184] ss:$16 sps:$4 sm:$0xff]   ;;  %v8348_v46 = vld [vmem:[%s13048_s2 + $0x180] ss:$16 sps:$4 sm:$0xff]   ;;  %v8415_v22 = vld [vmem:[%s13048_s2 + $0x68] ss:$16 sps:$4 sm:$0xff]  }
  0x22   : > { %1524 = vmatprep.subr.bf16.mxu0 %v8316_v23  ;;  %1716 = vmatpush1.bf16.msra.mxu1 %v8315_v24  ;;  %v8349_v45 = vld [vmem:[%s13048_s2 + $0x384] ss:$16 sps:$4 sm:$0xff]   ;;  %v8351_v49 = vld [vmem:[%s13048_s2 + $0x380] ss:$16 sps:$4 sm:$0xff]   ;;  %v8409_v23 = vld [vmem:[%s8951_s18 + $0x6c] ss:$16 sps:$4 sm:$0xff]  }
  0x23   : > { %1717 = vmatprep.subr.bf16.mxu1 %v8319_v25  ;;  %v8377_v47 = vld [vmem:[%s8951_s18 + $0x4] ss:$16 sps:$4 sm:$0xff]   ;;  %v8354_v52 = vld [vmem:[%s13048_s2 + $0x160] ss:$16 sps:$4 sm:$0xff]   ;;  %v8457_v24 = vld [vmem:[%s13048_s2 + $0x2e8] ss:$16 sps:$4 sm:$0xff]  }
  0x24   : > { %v8352_v48 = vld [vmem:[%s13048_s2 + $0x164] ss:$16 sps:$4 sm:$0xff]   ;;  %1544 = vmatprep.mubr.bf16.mxu0 %v8377_v47  ;;  %v8357_v54 = vld [vmem:[%s13048_s2 + $0x360] ss:$16 sps:$4 sm:$0xff]   ;;  %v8459_v25 = vld [vmem:[%s13048_s2 + $0x2ec] ss:$16 sps:$4 sm:$0xff]  }
  0x25   : > { %1525 = vmatpush1.bf16.msra.mxu0 %v8318_v26  ;;  %v8355_v50 = vld [vmem:[%s13048_s2 + $0x364] ss:$16 sps:$4 sm:$0xff]   ;;  %v8360_v56 = vld [vmem:[%s13048_s2 + $0x140] ss:$16 sps:$4 sm:$0xff]   ;;  %v8426_v26 = vld [vmem:[%s13048_s2 + $0x4c] ss:$16 sps:$4 sm:$0xff]  }
  0x26   : > { %1526 = vmatprep.subr.bf16.mxu0 %v8322_v27  ;;  %1718 = vmatpush1.bf16.msra.mxu1 %v8321_v28  ;;  %v8358_v53 = vld [vmem:[%s13048_s2 + $0x144] ss:$16 sps:$4 sm:$0xff]   ;;  %v8363_v58 = vld [vmem:[%s13048_s2 + $0x340] ss:$16 sps:$4 sm:$0xff]   ;;  %v8462_v27 = vld [vmem:[%s13048_s2 + $0x2cc] ss:$16 sps:$4 sm:$0xff]  }
  0x27   : > { %1719 = vmatprep.subr.bf16.mxu1 %v8325_v29  ;;  %v8361_v55 = vld [vmem:[%s13048_s2 + $0x344] ss:$16 sps:$4 sm:$0xff]   ;;  %v8366_v60 = vld [vmem:[%s13048_s2 + $0x120] ss:$16 sps:$4 sm:$0xff]   ;;  %v8460_v28 = vld [vmem:[%s13048_s2 + $0x2c8] ss:$16 sps:$4 sm:$0xff]  }
  0x28   : > { %v8364_v57 = vld [vmem:[%s13048_s2 + $0x124] ss:$16 sps:$4 sm:$0xff]   ;;  %v8369_v62 = vld [vmem:[%s13048_s2 + $0x320] ss:$16 sps:$4 sm:$0xff]   ;;  %v8424_v29 = vld [vmem:[%s13048_s2 + $0x48] ss:$16 sps:$4 sm:$0xff]  }
  0x29   : > { %1527 = vmatpush1.bf16.msra.mxu0 %v8324_v30  ;;  %v8367_v59 = vld [vmem:[%s13048_s2 + $0x324] ss:$16 sps:$4 sm:$0xff]   ;;  %v8372_v0 = vld [vmem:[%s13048_s2 + $0x100] ss:$16 sps:$4 sm:$0xff]   ;;  %v8487_v47 = vld [vmem:[%s13048_s2 + $0x268] ss:$16 sps:$4 sm:$0xff]  }
  0x2a   : > { %1528 = vmatprep.subr.bf16.mxu0 %v8328_v31  ;;  %1720 = vmatpush1.bf16.msra.mxu1 %v8327_v32  ;;  %v8370_v61 = vld [vmem:[%s13048_s2 + $0x104] ss:$16 sps:$4 sm:$0xff]   ;;  %v8378_v2 = vld [vmem:[%s13048_s2 + $0x300] ss:$16 sps:$4 sm:$0xff]   ;;  %v8435_v31 = vld [vmem:[%s13048_s2 + $0x2c] ss:$16 sps:$4 sm:$0xff]  }
  0x2b   : > { %1721 = vmatprep.subr.bf16.mxu1 %v8331_v33  ;;  %v8373_v63 = vld [vmem:[%s13048_s2 + $0x304] ss:$16 sps:$4 sm:$0xff]   ;;  %v9019_v3 = vld [vmem:[%s8951_s18] ss:$16 sps:$4 sm:$0xff]   ;;  %v8411_v33 = vld [vmem:[%s8951_s18 + $0x68] ss:$16 sps:$4 sm:$0xff]  }
  0x2c   : > { %v9028_v6 = vld [vmem:[%s8951_s18 + $0x24] ss:$16 sps:$4 sm:$0xff]   ;;  %v9047_v11 = vld [vmem:[%s8951_s18 + $0x20] ss:$16 sps:$4 sm:$0xff]   ;;  %vm6927_vm3 = vcmask 1048320  }
  0x2d   : > { %1529 = vmatpush2.bf16.msra.mxu0 %v8330_v34  ;;  %v9051_v13 = vld [vmem:[%s8951_s18 + $0x44] ss:$16 sps:$4 sm:$0xff]   ;;  %v8396_v19 = vld [vmem:[%s8951_s18 + $0x40] ss:$16 sps:$4 sm:$0xff]   ;;  %v8472_v34 = vld [vmem:[%s13048_s2 + $0x2a8] ss:$16 sps:$4 sm:$0xff]  }
  0x2e   : > { %1530 = vmatprep.subr.bf16.mxu0 %v8334_v35  ;;  %1722 = vmatpush2.bf16.msra.mxu1 %v8333_v36  ;;  %v8403_v21 = vld [vmem:[%s8951_s18 + $0x64] ss:$16 sps:$4 sm:$0xff]   ;;  %v8405_v30 = vld [vmem:[%s8951_s18 + $0x60] ss:$16 sps:$4 sm:$0xff]   ;;  %v8474_v35 = vld [vmem:[%s13048_s2 + $0x2ac] ss:$16 sps:$4 sm:$0xff]  }
  0x2f   : > { %1723 = vmatprep.subr.bf16.mxu1 %v8337_v37  ;;  %v8412_v32 = vld [vmem:[%s8951_s18 + $0x84] ss:$16 sps:$4 sm:$0xff]   ;;  %v8418_v36 = vld [vmem:[%s8951_s18 + $0x8c] ss:$16 sps:$4 sm:$0xff]   ;;  %v8433_v37 = vld [vmem:[%s13048_s2 + $0x28] ss:$16 sps:$4 sm:$0xff]  }
  0x31   : > { %1531 = vmatpush2.bf16.msra.mxu0 %v8336_v38  ;;  %v8444_v38 = vld [vmem:[%s13048_s2 + $0xc] ss:$16 sps:$4 sm:$0xff]  }
  0x32   : > { %1532 = vmatprep.subr.bf16.mxu0 %v8340_v39  ;;  %1724 = vmatpush2.bf16.msra.mxu1 %v8339_v40  ;;  %v8477_v39 = vld [vmem:[%s13048_s2 + $0x28c] ss:$16 sps:$4 sm:$0xff]   ;;  %v8475_v40 = vld [vmem:[%s13048_s2 + $0x288] ss:$16 sps:$4 sm:$0xff]  }
  0x33   : > { %1725 = vmatprep.subr.bf16.mxu1 %v8343_v41  ;;  %v8442_v41 = vld [vmem:[%s13048_s2 + $0x8] ss:$16 sps:$4 sm:$0xff]  }
  0x35   : > { %1533 = vmatpush2.bf16.msra.mxu0 %v8342_v42  ;;  %v9125_v42 = vld [vmem:[%s8951_s18 + $0x80] ss:$16 sps:$4 sm:$0xff]  }
  0x36   : > { %1534 = vmatprep.subr.bf16.mxu0 %v8346_v43  ;;  %1726 = vmatpush2.bf16.msra.mxu1 %v8345_v44  ;;  %v8453_v43 = vld [vmem:[%s13048_s2 + $0x1ec] ss:$16 sps:$4 sm:$0xff]  }
  0x37   : > { %1727 = vmatprep.subr.bf16.mxu1 %v8349_v45  ;;  %v8489_v44 = vld [vmem:[%s13048_s2 + $0x26c] ss:$16 sps:$4 sm:$0xff]   ;;  %v9134_v45 = vld [vmem:[%s8951_s18 + $0x88] ss:$16 sps:$4 sm:$0xff]  }
  0x39   : > { %1535 = vmatpush2.bf16.msra.mxu0 %v8348_v46  ;;  %v9137_v46 = vld [vmem:[%s8951_s18 + $0xa4] ss:$16 sps:$4 sm:$0xff]  }
  0x3a   : > { %1536 = vmatprep.subr.bf16.mxu0 %v8352_v48  ;;  %1728 = vmatpush2.bf16.msra.mxu1 %v8351_v49  ;;  %v9143_v48 = vld [vmem:[%s8951_s18 + $0xac] ss:$16 sps:$4 sm:$0xff]   ;;  %v8451_v49 = vld [vmem:[%s13048_s2 + $0x1e8] ss:$16 sps:$4 sm:$0xff]  }
  0x3b   : > { %1729 = vmatprep.subr.bf16.mxu1 %v8355_v50  ;;  %v8468_v50 = vld [vmem:[%s13048_s2 + $0x1cc] ss:$16 sps:$4 sm:$0xff]  }
  0x3d   : > { %1537 = vmatpush2.bf16.msra.mxu0 %v8354_v52  ;;  %v8490_v52 = vld [vmem:[%s13048_s2 + $0x248] ss:$16 sps:$4 sm:$0xff]  }
  0x3e   : > { %1538 = vmatprep.subr.bf16.mxu0 %v8358_v53  ;;  %1730 = vmatpush2.bf16.msra.mxu1 %v8357_v54  ;;  %v8466_v53 = vld [vmem:[%s13048_s2 + $0x1c8] ss:$16 sps:$4 sm:$0xff]   ;;  %v8504_v54 = vld [vmem:[%s13048_s2 + $0x22c] ss:$16 sps:$4 sm:$0xff]  }
  0x3f   : > { %1731 = vmatprep.subr.bf16.mxu1 %v8361_v55  ;;  %v8483_v55 = vld [vmem:[%s13048_s2 + $0x1ac] ss:$16 sps:$4 sm:$0xff]  }
  0x41   : > { %1539 = vmatpush2.bf16.msra.mxu0 %v8360_v56  ;;  %v9170_v56 = vld [vmem:[%s8951_s18 + $0xa0] ss:$16 sps:$4 sm:$0xff]  }
  0x42   : > { %1540 = vmatprep.subr.bf16.mxu0 %v8364_v57  ;;  %1732 = vmatpush2.bf16.msra.mxu1 %v8363_v58  ;;  %v9174_v57 = vld [vmem:[%s8951_s18 + $0xa8] ss:$16 sps:$4 sm:$0xff]   ;;  %v9177_v58 = vld [vmem:[%s8951_s18 + $0xc4] ss:$16 sps:$4 sm:$0xff]  }
  0x43   : > { %1733 = vmatprep.subr.bf16.mxu1 %v8367_v59  ;;  %v8502_v59 = vld [vmem:[%s13048_s2 + $0x228] ss:$16 sps:$4 sm:$0xff]  }
  0x45   : > { %1541 = vmatpush2.bf16.msra.mxu0 %v8366_v60  ;;  %v9183_v60 = vld [vmem:[%s8951_s18 + $0xcc] ss:$16 sps:$4 sm:$0xff]  }
  0x46   : > { %1542 = vmatprep.subr.bf16.mxu0 %v8370_v61  ;;  %1734 = vmatpush2.bf16.msra.mxu1 %v8369_v62  ;;  %v8481_v61 = vld [vmem:[%s13048_s2 + $0x1a8] ss:$16 sps:$4 sm:$0xff]   ;;  %v8498_v62 = vld [vmem:[%s13048_s2 + $0x18c] ss:$16 sps:$4 sm:$0xff]  }
  0x47   : > { %1735 = vmatprep.subr.bf16.mxu1 %v8373_v63  ;;  %v8507_v63 = vld [vmem:[%s13048_s2 + $0x20c] ss:$16 sps:$4 sm:$0xff]  }
  0x49   : > { %1543 = vmatpush2.bf16.msra.mxu0 %v8372_v0  ;;  %v8505_v0 = vld [vmem:[%s13048_s2 + $0x208] ss:$16 sps:$4 sm:$0xff]  }
  0x4a   : > { %1898 = vmatprep.subr.bf16.mxu0 %v8381_v1  ;;  %1736 = vmatpush2.bf16.msra.mxu1 %v8378_v2  ;;  %v8496_v1 = vld [vmem:[%s13048_s2 + $0x188] ss:$16 sps:$4 sm:$0xff]   ;;  %v8519_v2 = vld [vmem:[%s13048_s2 + $0x3ec] ss:$16 sps:$4 sm:$0xff]  }
  0x4b   : > { %2091 = vmatprep.subr.bf16.mxu1 %v8459_v25  ;;  %v8532_v25 = vld [vmem:[%s13048_s2 + $0x3a8] ss:$16 sps:$4 sm:$0xff]  }
  0x4c   : > { %1545 = vmatmul.mubr.bf16.vlgmr.msra.gmra.mxu0 %v9019_v3 }
  0x4d   : > { %1899 = vmatpush1.bf16.msra.mxu0 %v8379_v4  ;;  %1554 = vmatprep.mubr.bf16.mxu0 %v9028_v6  ;;  %v8513_v4 = vld [vmem:[%s13048_s2 + $0x16c] ss:$16 sps:$4 sm:$0xff]  }
  0x4e   : > { %1738 = vmatmul.mubr.bf16.vlgmr.msra.gmra.mxu1 %v9025_v5  ;;  %1900 = vmatprep.subr.bf16.mxu0 %v8390_v7  ;;  %v9210_v7 = vld [vmem:[%s8951_s18 + $0xc0] ss:$16 sps:$4 sm:$0xff]  }
  0x4f   : > { %1747 = vmatprep.mubr.bf16.mxu1 %v9034_v8  ;;  %2092 = vmatpush1.bf16.msra.mxu1 %v8457_v24  ;;  %v8447_v24 = vld [vmem:[%s8951_s18 + $0xe8] ss:$16 sps:$4 sm:$0xff]  }
  0x50   : > { %2093 = vmatprep.subr.bf16.mxu1 %v8462_v27  ;;  %v8537_v27 = vld [vmem:[%s13048_s2 + $0x38c] ss:$16 sps:$4 sm:$0xff]  }
  0x51   : > { %1901 = vmatpush1.bf16.msra.mxu0 %v8388_v9  ;;  %v8438_v9 = vld [vmem:[%s8951_s18 + $0xc8] ss:$16 sps:$4 sm:$0xff]  }
  0x52   : > { %1902 = vmatprep.subr.bf16.mxu0 %v8399_v10  ;;  %v8439_v10 = vld [vmem:[%s8951_s18 + $0xe4] ss:$16 sps:$4 sm:$0xff]  }
  0x53   : > { %2094 = vmatpush1.bf16.msra.mxu1 %v8460_v28  ;;  %v8541_v28 = vld [vmem:[%s13048_s2 + $0x128] ss:$16 sps:$4 sm:$0xff]  }
  0x54   : > { %1555 = vmatmul.mubr.bf16.gmra.mxu0 %v9047_v11  ;;  %2095 = vmatprep.subr.bf16.mxu1 %v8474_v35  ;;  %v8456_v35 = vld [vmem:[%s8951_s18 + $0x108] ss:$16 sps:$4 sm:$0xff]  }
  0x55   : > { %1564 = vmatprep.mubr.bf16.mxu0 %v9051_v13  ;;  %1903 = vmatpush1.bf16.msra.mxu0 %v8397_v14  ;;  %v8445_v14 = vld [vmem:[%s8951_s18 + $0xec] ss:$16 sps:$4 sm:$0xff]  }
  0x56   : > { %1748 = vmatmul.mubr.bf16.gmra.mxu1 %v8393_v12  ;;  %1904 = vmatprep.subr.bf16.mxu0 %v8408_v15  ;;  %v8517_v12 = vld [vmem:[%s13048_s2 + $0x3e8] ss:$16 sps:$4 sm:$0xff]  }
  0x57   : > { %1757 = vmatprep.mubr.bf16.mxu1 %v9060_v16  ;;  %2096 = vmatpush1.bf16.msra.mxu1 %v8472_v34  ;;  %v8511_v15 = vld [vmem:[%s13048_s2 + $0x168] ss:$16 sps:$4 sm:$0xff]   ;;  %v8450_v34 = vld [vmem:[%s8951_s18 + $0x100] ss:$16 sps:$4 sm:$0xff]  }
  0x58   : > { %2097 = vmatprep.subr.bf16.mxu1 %v8477_v39  ;;  %v8568_v39 = vld [vmem:[%s13050_s4 + $0x78] sm:$0xff]  }
  0x59   : > { %1905 = vmatpush1.bf16.msra.mxu0 %v8406_v17  ;;  %v8522_v17 = vld [vmem:[%s13048_s2 + $0x3cc] ss:$16 sps:$4 sm:$0xff]  }
  0x5a   : > { %1906 = vmatprep.subr.bf16.mxu0 %v8417_v18  ;;  %v8528_v18 = vld [vmem:[%s13048_s2 + $0x14c] ss:$16 sps:$4 sm:$0xff]  }
  0x5b   : > { %2098 = vmatpush1.bf16.msra.mxu1 %v8475_v40  ;;  %v8469_v40 = vld [vmem:[%s8951_s18 + $0x12c] ss:$16 sps:$4 sm:$0xff]  }
  0x5c   : > { %1565 = vmatmul.mubr.bf16.gmra.mxu0 %v8396_v19  ;;  %2099 = vmatprep.subr.bf16.mxu1 %v8489_v44  ;;  %v8520_v19 = vld [vmem:[%s13048_s2 + $0x3c8] ss:$16 sps:$4 sm:$0xff]   ;;  %v8465_v44 = vld [vmem:[%s8951_s18 + $0x120] ss:$16 sps:$4 sm:$0xff]  }
  0x5d   : > { %1574 = vmatprep.mubr.bf16.mxu0 %v8403_v21  ;;  %1907 = vmatpush1.bf16.msra.mxu0 %v8415_v22  ;;  %v8534_v21 = vld [vmem:[%s13048_s2 + $0x3ac] ss:$16 sps:$4 sm:$0xff]   ;;  %v8441_v22 = vld [vmem:[%s8951_s18 + $0xe0] ss:$16 sps:$4 sm:$0xff]  }
  0x5e   : > { %1758 = vmatmul.mubr.bf16.gmra.mxu1 %v8402_v20  ;;  %1908 = vmatprep.subr.bf16.mxu0 %v8426_v26  ;;  %v8526_v20 = vld [vmem:[%s13048_s2 + $0x148] ss:$16 sps:$4 sm:$0xff]   ;;  %v8448_v26 = vld [vmem:[%s8951_s18 + $0x104] ss:$16 sps:$4 sm:$0xff]  }
  0x5f   : > { %1767 = vmatprep.mubr.bf16.mxu1 %v8409_v23  ;;  %2100 = vmatpush1.bf16.msra.mxu1 %v8487_v47  ;;  %v8543_v23 = vld [vmem:[%s13048_s2 + $0x12c] ss:$16 sps:$4 sm:$0xff]   ;;  %v8478_v47 = vld [vmem:[%s8951_s18 + $0x144] ss:$16 sps:$4 sm:$0xff]  }
  0x60   : > { %2101 = vmatprep.subr.bf16.mxu1 %v8492_v51  ;;  %v8471_v51 = vld [vmem:[%s8951_s18 + $0x128] ss:$16 sps:$4 sm:$0xff]  }
  0x61   : > { %1909 = vmatpush1.bf16.msra.mxu0 %v8424_v29  ;;  %v8454_v29 = vld [vmem:[%s8951_s18 + $0x10c] ss:$16 sps:$4 sm:$0xff]  }
  0x62   : > { %1910 = vmatprep.subr.bf16.mxu0 %v8435_v31  ;;  %v8549_v31 = vld [vmem:[%s13048_s2 + $0x36c] ss:$16 sps:$4 sm:$0xff]  }
  0x63   : > { %2102 = vmatpush1.bf16.msra.mxu1 %v8490_v52  ;;  %v8484_v52 = vld [vmem:[%s8951_s18 + $0x14c] ss:$16 sps:$4 sm:$0xff]  }
  0x64   : > { %1575 = vmatmul.mubr.bf16.gmra.mxu0 %v8405_v30  ;;  %2103 = vmatprep.subr.bf16.mxu1 %v8504_v54  ;;  %v8535_v30 = vld [vmem:[%s13048_s2 + $0x388] ss:$16 sps:$4 sm:$0xff]   ;;  %v8480_v54 = vld [vmem:[%s8951_s18 + $0x140] ss:$16 sps:$4 sm:$0xff]  }
  0x65   : > { %1584 = vmatprep.mubr.bf16.mxu0 %v8412_v32  ;;  %1911 = vmatpush1.bf16.msra.mxu0 %v8433_v37  ;;  %v8558_v32 = vld [vmem:[%s13048_s2 + $0x10c] ss:$16 sps:$4 sm:$0xff]   ;;  %v8463_v37 = vld [vmem:[%s8951_s18 + $0x124] ss:$16 sps:$4 sm:$0xff]  }
  0x66   : > { %1768 = vmatmul.mubr.bf16.gmra.mxu1 %v8411_v33  ;;  %1912 = vmatprep.subr.bf16.mxu0 %v8444_v38  ;;  %v8556_v33 = vld [vmem:[%s13048_s2 + $0x108] ss:$16 sps:$4 sm:$0xff]   ;;  %v8552_v38 = vld [vmem:[%s13048_s2 + $0x34c] ss:$16 sps:$4 sm:$0xff]  }
  0x67   : > { %1777 = vmatprep.mubr.bf16.mxu1 %v8418_v36  ;;  %2104 = vmatpush1.bf16.msra.mxu1 %v8502_v59  ;;  %v8547_v36 = vld [vmem:[%s13048_s2 + $0x368] ss:$16 sps:$4 sm:$0xff]   ;;  %v8493_v59 = vld [vmem:[%s8951_s18 + $0x164] ss:$16 sps:$4 sm:$0xff]  }
  0x68   : > { %2105 = vmatprep.subr.bf16.mxu1 %v8507_v63  ;;  %v8508_v63 = vld [vmem:[%s8951_s18 + $0x184] ss:$16 sps:$4 sm:$0xff]  }
  0x69   : > { %1913 = vmatpush1.bf16.msra.mxu0 %v8442_v41  ;;  %v8550_v41 = vld [vmem:[%s13048_s2 + $0x348] ss:$16 sps:$4 sm:$0xff]  }
  0x6a   : > { %1914 = vmatprep.subr.bf16.mxu0 %v8453_v43  ;;  %v8564_v43 = vld [vmem:[%s13048_s2 + $0x32c] ss:$16 sps:$4 sm:$0xff]  }
  0x6b   : > { %2106 = vmatpush1.bf16.msra.mxu1 %v8505_v0  ;;  %v8501_v0 = vld [vmem:[%s8951_s18 + $0x168] ss:$16 sps:$4 sm:$0xff]  }
  0x6c   : > { %1585 = vmatmul.mubr.bf16.gmra.mxu0 %v9125_v42  ;;  %2107 = vmatprep.subr.bf16.mxu1 %v8519_v2  ;;  %v8510_v2 = vld [vmem:[%s8951_s18 + $0x180] ss:$16 sps:$4 sm:$0xff]  }
  0x6d   : > { %1594 = vmatprep.mubr.bf16.mxu0 %v9137_v46  ;;  %1915 = vmatpush2.bf16.msra.mxu0 %v8451_v49  ;;  %v8562_v49 = vld [vmem:[%s13048_s2 + $0x328] ss:$16 sps:$4 sm:$0xff]  }
  0x6e   : > { %1778 = vmatmul.mubr.bf16.gmra.mxu1 %v9134_v45  ;;  %1916 = vmatprep.subr.bf16.mxu0 %v8468_v50  ;;  %v8567_v50 = vld [vmem:[%s13048_s2 + $0x30c] ss:$16 sps:$4 sm:$0xff]  }
  0x6f   : > { %1787 = vmatprep.mubr.bf16.mxu1 %v9143_v48  ;;  %2108 = vmatpush2.bf16.msra.mxu1 %v8517_v12  ;;  %v8525_v12 = vld [vmem:[%s8951_s18 + $0x1a0] ss:$16 sps:$4 sm:$0xff]  }
  0x70   : > { %2109 = vmatprep.subr.bf16.mxu1 %v8522_v17  ;;  %v8544_v17 = vld [vmem:[%s8951_s18 + $0x1cc] ss:$16 sps:$4 sm:$0xff]  }
  0x71   : > { %1917 = vmatpush2.bf16.msra.mxu0 %v8466_v53  ;;  %v8565_v53 = vld [vmem:[%s13048_s2 + $0x308] ss:$16 sps:$4 sm:$0xff]  }
  0x72   : > { %1918 = vmatprep.subr.bf16.mxu0 %v8483_v55  ;;  %v8486_v55 = vld [vmem:[%s8951_s18 + $0x148] ss:$16 sps:$4 sm:$0xff]  }
  0x73   : > { %2110 = vmatpush2.bf16.msra.mxu1 %v8520_v19  ;;  %v8546_v19 = vld [vmem:[%s8951_s18 + $0x1c8] ss:$16 sps:$4 sm:$0xff]  }
  0x74   : > { %1595 = vmatmul.mubr.bf16.gmra.mxu0 %v9170_v56  ;;  %2111 = vmatprep.subr.bf16.mxu1 %v8534_v21  ;;  %v8559_v21 = vld [vmem:[%s8951_s18 + $0x1ec] ss:$16 sps:$4 sm:$0xff]  }
  0x75   : > { %1604 = vmatprep.mubr.bf16.mxu0 %v9177_v58  ;;  %1919 = vmatpush2.bf16.msra.mxu0 %v8481_v61  ;;  %v8499_v61 = vld [vmem:[%s8951_s18 + $0x16c] ss:$16 sps:$4 sm:$0xff]  }
  0x76   : > { %1788 = vmatmul.mubr.bf16.gmra.mxu1 %v9174_v57  ;;  %1920 = vmatprep.subr.bf16.mxu0 %v8498_v62  ;;  %v8495_v62 = vld [vmem:[%s8951_s18 + $0x160] ss:$16 sps:$4 sm:$0xff]  }
  0x77   : > { %1797 = vmatprep.mubr.bf16.mxu1 %v9183_v60  ;;  %2112 = vmatpush2.bf16.msra.mxu1 %v8532_v25  ;;  %v8697_v25 = vld [vmem:[%s8951_s18 + $0xc] ss:$16 sps:$4 sm:$0xff]  }
  0x78   : > { %2113 = vmatprep.subr.bf16.mxu1 %v8537_v27  ;;  %v8570_v27 = vld [vmem:[%s13050_s4 + $0x70] sm:$0xff]  }
  0x79   : > { %1921 = vmatpush2.bf16.msra.mxu0 %v8496_v1  ;;  %v8514_v1 = vld [vmem:[%s8951_s18 + $0x18c] ss:$16 sps:$4 sm:$0xff]  }
  0x7a   : > { %1922 = vmatprep.subr.bf16.mxu0 %v8513_v4  ;;  %v8516_v4 = vld [vmem:[%s8951_s18 + $0x188] ss:$16 sps:$4 sm:$0xff]  }
  0x7b   : > { %2114 = vmatpush2.bf16.msra.mxu1 %v8535_v30  ;;  %v8573_v30 = vld [vmem:[%s13050_s4 + $0x28] sm:$0xff]  }
  0x7c   : > { %1605 = vmatmul.mubr.bf16.gmra.mxu0 %v9210_v7  ;;  %2115 = vmatprep.subr.bf16.mxu1 %v8549_v31  ;;  %v8577_v31 = vld [vmem:[%s13050_s4 + $0x18] sm:$0xff]  }
  0x7d   : > { %1614 = vmatprep.mubr.bf16.mxu0 %v8439_v10  ;;  %1923 = vmatpush2.bf16.msra.mxu0 %v8511_v15  ;;  %v8529_v10 = vld [vmem:[%s8951_s18 + $0x1ac] ss:$16 sps:$4 sm:$0xff]   ;;  %v8531_v15 = vld [vmem:[%s8951_s18 + $0x1a8] ss:$16 sps:$4 sm:$0xff]  }
  0x7e   : > { %1798 = vmatmul.mubr.bf16.gmra.mxu1 %v8438_v9  ;;  %1924 = vmatprep.subr.bf16.mxu0 %v8528_v18  ;;  %v8523_v9 = vld [vmem:[%s8951_s18 + $0x1a4] ss:$16 sps:$4 sm:$0xff]   ;;  %v8540_v18 = vld [vmem:[%s8951_s18 + $0x1c0] ss:$16 sps:$4 sm:$0xff]  }
  0x7f   : > { %1807 = vmatprep.mubr.bf16.mxu1 %v8445_v14  ;;  %2116 = vmatpush2.bf16.msra.mxu1 %v8547_v36  ;;  %v8538_v14 = vld [vmem:[%s8951_s18 + $0x1c4] ss:$16 sps:$4 sm:$0xff]   ;;  %v8581_v36 = vld [vmem:[%s13050_s4 + $0x8] sm:$0xff]  }
  0x80   : > { %2117 = vmatprep.subr.bf16.mxu1 %v8552_v38  ;;  %v8583_v38 = vld [vmem:[%s13050_s4] sm:$0xff]  }
  0x81   : > { %1925 = vmatpush2.bf16.msra.mxu0 %v8526_v20  ;;  %v8553_v20 = vld [vmem:[%s8951_s18 + $0x1e4] ss:$16 sps:$4 sm:$0xff]  }
  0x82   : > { %1926 = vmatprep.subr.bf16.mxu0 %v8543_v23  ;;  %v8561_v23 = vld [vmem:[%s8951_s18 + $0x1e8] ss:$16 sps:$4 sm:$0xff]  }
  0x83   : > { %2118 = vmatpush2.bf16.msra.mxu1 %v8550_v41  ;;  %v8584_v41 = vld [vmem:[%s13050_s4 + $0x78] sm:$0xff]  }
  0x84   : > { %1615 = vmatmul.mubr.bf16.gmra.mxu0 %v8441_v22  ;;  %2119 = vmatprep.subr.bf16.mxu1 %v8564_v43  ;;  %v8555_v22 = vld [vmem:[%s8951_s18 + $0x1e0] ss:$16 sps:$4 sm:$0xff]   ;;  %v8705_v43 = vld [vmem:[%s8951_s18 + $0x68] ss:$16 sps:$4 sm:$0xff]  }
  0x85   : > { %1624 = vmatprep.mubr.bf16.mxu0 %v8448_v26  ;;  %1927 = vmatpush2.bf16.msra.mxu0 %v8541_v28  ;;  %v8569_v26 = vld [vmem:[%s13050_s4 + $0x38] sm:$0xff]   ;;  %v8571_v28 = vld [vmem:[%s13050_s4 + $0x30] sm:$0xff]  }
  0x86   : > { %1808 = vmatmul.mubr.bf16.gmra.mxu1 %v8447_v24  ;;  %1928 = vmatprep.subr.bf16.mxu0 %v8558_v32  ;;  %v8696_v24 = vld [vmem:[%s8951_s18 + $0x4] ss:$16 sps:$4 sm:$0xff]   ;;  %v8699_v32 = vld [vmem:[%s8951_s18 + $0x40] ss:$16 sps:$4 sm:$0xff]  }
  0x87   : > { %1817 = vmatprep.mubr.bf16.mxu1 %v8454_v29  ;;  %2120 = vmatpush2.bf16.msra.mxu1 %v8562_v49  ;;  %v8572_v29 = vld [vmem:[%s13050_s4 + $0x68] sm:$0xff]  }
  0x88   : > { %2121 = vmatprep.subr.bf16.mxu1 %v8567_v50  ;;  %v9409_v50 = vld [vmem:[%s9396_s15 + $0x8] sm:$0xff]  }
  0x89   : > { %1929 = vmatpush2.bf16.msra.mxu0 %v8556_v33  ;;  %v8700_v33 = vld [vmem:[%s8951_s18 + $0x64] ss:$16 sps:$4 sm:$0xff]  }
  0x8a   : > { %7373 = vmatprep.subr.bf16.mxu0 %v8568_v39  ;;  %v8703_v39 = vld [vmem:[%s8951_s18 + $0x60] ss:$16 sps:$4 sm:$0xff]  }
  0x8b   : > { %2122 = vmatpush2.bf16.msra.mxu1 %v8565_v53  ;;  %v9419_v53 = vld [vmem:[%s9396_s15 + $0x40] sm:$0xff]  }
  0x8c   : > { %1625 = vmatmul.mubr.bf16.gmra.mxu0 %v8450_v34  ;;  %v8701_v34 = vld [vmem:[%s8951_s18 + $0x48] ss:$16 sps:$4 sm:$0xff]  }
  0x8d   : > { %1634 = vmatprep.mubr.bf16.mxu0 %v8463_v37  ;;  %v8582_v37 = vld [vmem:[%s13050_s4 + $0x40] sm:$0xff]  }
  0x8e   : > { %1818 = vmatmul.mubr.bf16.gmra.mxu1 %v8456_v35  ;;  %v8702_v35 = vld [vmem:[%s8951_s18 + $0x6c] ss:$16 sps:$4 sm:$0xff]  }
  0x8f   : > { %1827 = vmatprep.mubr.bf16.mxu1 %v8469_v40  ;;  %v8704_v40 = vld [vmem:[%s8951_s18 + $0x84] ss:$16 sps:$4 sm:$0xff]  }
  0x94   : > { %1635 = vmatmul.mubr.bf16.gmra.mxu0 %v8465_v44  ;;  %v8706_v44 = vld [vmem:[%s8951_s18 + $0x8c] ss:$16 sps:$4 sm:$0xff]  }
  0x95   : > { %1644 = vmatprep.mubr.bf16.mxu0 %v8478_v47  ;;  %v532_v47 = vlaneseq }
  0x96   : > { %1828 = vmatmul.mubr.bf16.gmra.mxu1 %v8471_v51  ;;  %v9413_v51 = vld [vmem:[%s9396_s15 + $0x20] sm:$0xff]  }
  0x97   : > { %1837 = vmatprep.mubr.bf16.mxu1 %v8484_v52  ;;  %v9389_v49 = vshrl.u32 %v532_v47, 7  ;;  %v9416_v52 = vld [vmem:[%s9396_s15 + $0x28] sm:$0xf]  ;;  %v9567_v47 = vld [vmem:[%s9396_s15 + $0x200] sm:$0xff]  }
  0x98   : > { %13277 = vst [vmem:[#allocation4_spill] sm:$0xff] %v9567_v47 }
  0x9c   : > { %1645 = vmatmul.mubr.bf16.gmra.mxu0 %v8480_v54  ;;  %v9423_v54 = vld [vmem:[%s9396_s15 + $0x48] sm:$0xff]  }
  0x9d   : > { %1654 = vmatprep.mubr.bf16.mxu0 %v8493_v59  ;;  %v9430_v59 = vld [vmem:[%s9396_s15 + $0x68] sm:$0xf] }
  0x9e   : > { %1838 = vmatmul.mubr.bf16.gmra.mxu1 %v8486_v55  ;;  %v9426_v55 = vld [vmem:[%s9396_s15 + $0x60] sm:$0xff]  }
  0x9f   : > { %1847 = vmatprep.mubr.bf16.mxu1 %v8499_v61 }
  0xa4   : > { %1655 = vmatmul.mubr.bf16.gmra.mxu0 %v8495_v62  ;;  %v9657_v62 = vld [vmem:[%s9396_s15 + $0x320] sm:$0xff]  }
  0xa5   : > { %1664 = vmatprep.mubr.bf16.mxu0 %v8508_v63  ;;  %13295 = vst [vmem:[#allocation22_spill] sm:$0xff] %v9657_v62  ;;  %v9660_v63 = vld [vmem:[%s9396_s15 + $0x38] ss:$752 sps:$4 sm:$0xff]  }
  0xa6   : > { %1848 = vmatmul.mubr.bf16.gmra.mxu1 %v8501_v0  ;;  %13296 = vst [vmem:[#allocation23_spill] sm:$0xff] %v9660_v63  ;;  %v8715_v0 = vld [vmem:[%s8951_s18 + $0x124] ss:$16 sps:$4 sm:$0xff]  }
  0xa7   : > { %1857 = vmatprep.mubr.bf16.mxu1 %v8514_v1  ;;  %v9679_v1 = vld [vmem:[%s9396_s15 + $0x360] sm:$0xff]  }
  0xa8   : > { %13299 = vst [vmem:[#allocation26_spill] sm:$0xff] %v9679_v1 }
  0xac   : > { %1665 = vmatmul.mubr.bf16.gmra.mxu0 %v8510_v2  ;;  %v8714_v2 = vld [vmem:[%s8951_s18 + $0x100] ss:$16 sps:$4 sm:$0xff]  }
  0xad   : > { %1674 = vmatprep.mubr.bf16.mxu0 %v8523_v9  ;;  %v9451_v9 = vld [vmem:[%s9396_s15 + $0x88] sm:$0xff]  }
  0xae   : > { %1858 = vmatmul.mubr.bf16.gmra.mxu1 %v8516_v4  ;;  %v9634_v4 = vld [vmem:[%s9396_s15 + $0x2c8] sm:$0xff]  }
  0xaf   : > { %1867 = vmatprep.mubr.bf16.mxu1 %v8529_v10  ;;  %v9454_v10 = vld [vmem:[%s9396_s15 + $0xa0] sm:$0xff]   ;;  %13290 = vst [vmem:[#allocation17_spill] sm:$0xff] %v9634_v4  ;;  %v8717_v4 = vld [vmem:[%s8951_s18 + $0x12c] ss:$16 sps:$4 sm:$0xff]  }
  0xb4   : > { %1675 = vmatmul.mubr.bf16.gmra.mxu0 %v8525_v12  ;;  %v9644_v12 = vld [vmem:[%s9396_s15 + $0x2e8] sm:$0xf] }
  0xb5   : > { %1684 = vmatprep.mubr.bf16.mxu0 %v8538_v14  ;;  %13292 = vst [vmem:[#allocation19_spill] sm:$0xff] %v9644_v12  ;;  %v9650_v14 = vld [vmem:[%s9396_s15 + $0x308] sm:$0xff]  }
  0xb6   : > { %1868 = vmatmul.mubr.bf16.gmra.mxu1 %v8531_v15  ;;  %v8713_v15 = vld [vmem:[%s8951_s18 + $0x10c] ss:$16 sps:$4 sm:$0xff]   ;;  %13294 = vst [vmem:[#allocation21_spill] sm:$0xff] %v9650_v14 }
  0xb7   : > { %1877 = vmatprep.mubr.bf16.mxu1 %v8544_v17  ;;  %v9647_v17 = vld [vmem:[%s9396_s15 + $0x300] sm:$0xff]  }
  0xb8   : > { %13293 = vst [vmem:[#allocation20_spill] sm:$0xff] %v9647_v17 }
  0xbc   : > { %1685 = vmatmul.mubr.bf16.gmra.mxu0 %v8540_v18  ;;  %v9461_v18 = vld [vmem:[%s9396_s15 + $0xa8] sm:$0xf] }
  0xbd   : > { %1694 = vmatprep.mubr.bf16.mxu0 %v8553_v20  ;;  %v9467_v20 = vld [vmem:[%s9396_s15 + $0x2c] ss:$268 sps:$4 sm:$0xff]  }
  0xbe   : > { %1878 = vmatmul.mubr.bf16.gmra.mxu1 %v8546_v19  ;;  %v9464_v19 = vld [vmem:[%s9396_s15 + $0xc0] sm:$0xff]   ;;  %13275 = vst [vmem:[#allocation2_spill] sm:$0xff] %v9467_v20 }
  0xbf   : > { %1887 = vmatprep.mubr.bf16.mxu1 %v8559_v21  ;;  %v9617_v21 = vld [vmem:[%s9396_s15 + $0x2a0] sm:$0xff]  }
  0xc0   : > { %13287 = vst [vmem:[#allocation14_spill] sm:$0xff] %v9617_v21  ;;  %v9668_v20 = vld [vmem:[%s9396_s15 + $0x340] sm:$0xff]   ;;  %v9676_v21 = vld [vmem:[%s9396_s15 + $0x348] sm:$0xff]  }
  0xc1   : > { %13297 = vst [vmem:[#allocation24_spill] sm:$0xff] %v9668_v20  ;;  %13298 = vst [vmem:[#allocation25_spill] sm:$0xff] %v9676_v21 }
  0xc4   : > { %1695 = vmatmul.mubr.bf16.gmra.mxu0 %v8555_v22  ;;  %v9606_v22 = vld [vmem:[%s9396_s15 + $0x280] sm:$0xff]  }
  0xc5   : > { %1930 = vmatprep.mubr.bf16.mxu0 %v8696_v24  ;;  %v8712_v24 = vld [vmem:[%s8951_s18 + $0xe8] ss:$16 sps:$4 sm:$0xff]   ;;  %13285 = vst [vmem:[#allocation12_spill] sm:$0xff] %v9606_v22  ;;  %v8719_v22 = vld [vmem:[%s8951_s18 + $0x144] ss:$16 sps:$4 sm:$0xff]  }
  0xc6   : > { %1888 = vmatmul.mubr.bf16.gmra.mxu1 %v8561_v23  ;;  %v9624_v23 = vld [vmem:[%s9396_s15 + $0x2a8] sm:$0xf] }
  0xc7   : > { %2123 = vmatprep.mubr.bf16.mxu1 %v8697_v25  ;;  %v9474_v25 = vld [vmem:[%s9396_s15 + $0xc8] sm:$0xff]   ;;  %13288 = vst [vmem:[#allocation15_spill] sm:$0xff] %v9624_v23 }
  0xc8   : > { %v9698_v23 = vld [vmem:[%s9396_s15 + $0x388] sm:$0xff]  }
  0xc9   : > { %13301 = vst [vmem:[#allocation28_spill] sm:$0xff] %v9698_v23 }
  0xcc   : > { %1931 = vmatmul.mubr.bf16.vlgmr.msra.gmra.mxu0 %v9019_v3  ;;  %v8574_v3 = vld [vmem:[%s13050_s4 + $0x60] sm:$0xff]  }
  0xcd   : > { %7374 = vmatpush3.bf16.msra.mxu0 %v8569_v26  ;;  %1940 = vmatprep.mubr.bf16.mxu0 %v9028_v6  ;;  %v8575_v6 = vld [vmem:[%s13050_s4 + $0x20] sm:$0xff]  }
  0xce   : > { %2124 = vmatmul.mubr.bf16.vlgmr.msra.gmra.mxu1 %v9025_v5  ;;  %7375 = vmatprep.subr.bf16.mxu0 %v8570_v27  ;;  %v8576_v5 = vld [vmem:[%s13050_s4 + $0x58] sm:$0xff]   ;;  %v9477_v26 = vld [vmem:[%s9396_s15 + $0xe0] sm:$0xff]  }
  0xcf   : > { %2133 = vmatprep.mubr.bf16.mxu1 %v9034_v8  ;;  %v8698_v8 = vld [vmem:[%s8951_s18 + $0x28] ss:$16 sps:$4 sm:$0xff]   ;;  %v9589_v27 = vld [vmem:[%s9396_s15 + $0x240] sm:$0xff]  }
  0xd0   : > { %13281 = vst [vmem:[#allocation8_spill] sm:$0xff] %v9589_v27  ;;  %v9729_v27 = vld [vmem:[%s9396_s15 + $0x3e0] sm:$0xff]  }
  0xd1   : > { %7376 = vmatpush3.bf16.msra.mxu0 %v8571_v28  ;;  %13305 = vst [vmem:[#allocation32_spill] sm:$0xff] %v9729_v27  ;;  %v8722_v27 = vld [vmem:[%s8951_s18 + $0x140] ss:$16 sps:$4 sm:$0xff]  }
  0xd2   : > { %7377 = vmatprep.subr.bf16.mxu0 %v8572_v29  ;;  %v8711_v29 = vld [vmem:[%s8951_s18 + $0x104] ss:$16 sps:$4 sm:$0xff]  }
  0xd4   : > { %1941 = vmatmul.mubr.bf16.gmra.mxu0 %v9047_v11  ;;  %v8578_v11 = vld [vmem:[%s13050_s4 + $0x50] sm:$0xff]  }
  0xd5   : > { %1950 = vmatprep.mubr.bf16.mxu0 %v9051_v13  ;;  %7378 = vmatpush3.bf16.msra.mxu0 %v8573_v30  ;;  %v8579_v13 = vld [vmem:[%s13050_s4 + $0x10] sm:$0xff]   ;;  %v9581_v30 = vld [vmem:[%s9396_s15 + $0x228] sm:$0xf] }
  0xd6   : > { %2134 = vmatmul.mubr.bf16.gmra.mxu1 %v8698_v8  ;;  %7379 = vmatprep.subr.bf16.mxu0 %v8574_v3  ;;  %v9485_v3 = vld [vmem:[%s9396_s15 + $0xe8] sm:$0xf]  ;;  %v8707_v8 = vld [vmem:[%s8951_s18 + $0xe4] ss:$16 sps:$4 sm:$0xff]   ;;  %13280 = vst [vmem:[#allocation7_spill] sm:$0xff] %v9581_v30 }
  0xd7   : > { %2143 = vmatprep.mubr.bf16.mxu1 %v9060_v16  ;;  %v8580_v16 = vld [vmem:[%s13050_s4 + $0x48] sm:$0xff]  }
  0xd9   : > { %7380 = vmatpush3.bf16.msra.mxu0 %v8575_v6  ;;  %v9488_v6 = vld [vmem:[%s9396_s15 + $0x100] sm:$0xff]  }
  0xda   : > { %7381 = vmatprep.subr.bf16.mxu0 %v8576_v5  ;;  %v9491_v5 = vld [vmem:[%s9396_s15 + $0x108] sm:$0xff]  }
  0xdc   : > { %1951 = vmatmul.mubr.bf16.gmra.mxu0 %v8699_v32  ;;  %v9501_v32 = vld [vmem:[%s9396_s15 + $0x128] sm:$0xf] }
  0xdd   : > { %1960 = vmatprep.mubr.bf16.mxu0 %v8700_v33  ;;  %7382 = vmatpush3.bf16.msra.mxu0 %v8577_v31  ;;  %v9547_v33 = vld [vmem:[%s9396_s15 + $0x1c0] sm:$0xff]   ;;  %v9592_v31 = vld [vmem:[%s9396_s15 + $0x248] sm:$0xff]  }
  0xde   : > { %2144 = vmatmul.mubr.bf16.gmra.mxu1 %v8701_v34  ;;  %7383 = vmatprep.subr.bf16.mxu0 %v8578_v11  ;;  %v9570_v34 = vld [vmem:[%s9396_s15 + $0x208] sm:$0xff]   ;;  %13282 = vst [vmem:[#allocation9_spill] sm:$0xff] %v9592_v31 }
  0xdf   : > { %2153 = vmatprep.mubr.bf16.mxu1 %v8702_v35  ;;  %v9564_v35 = vld [vmem:[%s9396_s15 + $0x1e8] sm:$0xf]  ;;  %13278 = vst [vmem:[#allocation5_spill] sm:$0xff] %v9570_v34 }
  0xe0   : > { %13276 = vst [vmem:[#allocation3_spill] sm:$0xff] %v9564_v35  ;;  %v9603_v11 = vld [vmem:[%s9396_s15 + $0x268] sm:$0xf] }
  0xe1   : > { %7384 = vmatpush3.bf16.msra.mxu0 %v8579_v13  ;;  %v9498_v13 = vld [vmem:[%s9396_s15 + $0x120] sm:$0xff]   ;;  %13284 = vst [vmem:[#allocation11_spill] sm:$0xff] %v9603_v11 }
  0xe2   : > { %7385 = vmatprep.subr.bf16.mxu0 %v8580_v16  ;;  %v8708_v16 = vld [vmem:[%s8951_s18 + $0xc8] ss:$16 sps:$4 sm:$0xff]   ;;  %v9715_v11 = vld [vmem:[%s9396_s15 + $0x3c0] sm:$0xff]  }
  0xe3   : > { %13303 = vst [vmem:[#allocation30_spill] sm:$0xff] %v9715_v11 }
  0xe4   : > { %1961 = vmatmul.mubr.bf16.gmra.mxu0 %v8703_v39  ;;  %v9513_v39 = vld [vmem:[%s9396_s15 + $0x148] sm:$0xff]  }
  0xe5   : > { %1970 = vmatprep.mubr.bf16.mxu0 %v8704_v40  ;;  %7386 = vmatpush3.bf16.msra.mxu0 %v8581_v36  ;;  %v8709_v40 = vld [vmem:[%s8951_s18 + $0xec] ss:$16 sps:$4 sm:$0xff]   ;;  %v9544_v36 = vld [vmem:[%s9396_s15 + $0x1a8] sm:$0xf] }
  0xe6   : > { %2154 = vmatmul.mubr.bf16.gmra.mxu1 %v8705_v43  ;;  %7387 = vmatprep.subr.bf16.mxu0 %v8582_v37  ;;  %v9554_v37 = vld [vmem:[%s9396_s15 + $0x1c8] sm:$0xff]   ;;  %v9578_v43 = vld [vmem:[%s9396_s15 + $0x220] sm:$0xff]  }
  0xe7   : > { %2163 = vmatprep.mubr.bf16.mxu1 %v8706_v44  ;;  %v9534_v44 = vld [vmem:[%s9396_s15 + $0x188] sm:$0xff]   ;;  %13279 = vst [vmem:[#allocation6_spill] sm:$0xff] %v9578_v43  ;;  %v13310_v43 = vunpack.c.l.bf16 %v9409_v50 }
  0xe9   : > { %7388 = vmatpush3.bf16.msra.mxu0 %v8583_v38  ;;  %v9510_v38 = vld [vmem:[%s9396_s15 + $0x140] sm:$0xff]  }
  0xea   : > { %7597 = vmatprep.subr.bf16.mxu0 %v8584_v41  ;;  %v9537_v41 = vld [vmem:[%s9396_s15 + $0x1a0] sm:$0xff]  }
  0xec   : > { %1971 = vmatmul.mubr.bf16.gmra.mxu0 %v9125_v42  ;;  %v9401_v42 = vld [vmem:[%s13049_s3] sm:$0xf] }
  0xed   : > { %1980 = vmatprep.mubr.bf16.mxu0 %v9137_v46  ;;  %v538_v46 = vsub.s32 1, %v9389_v49 }
  0xee   : > { %2164 = vmatmul.mubr.bf16.gmra.mxu1 %v9134_v45  ;;  %v534_v45 = vsub.s32 0, %v9389_v49 }
  0xef   : > { %2173 = vmatprep.mubr.bf16.mxu1 %v9143_v48  ;;  %v9406_v48 = vld [vmem:[%s9396_s15] sm:$0xff]   ;;  %v9437_v61 = vrot.slane %v9401_v42, %v538_v46  ;;  %v9524_v46 = vld [vmem:[%s9396_s15 + $0x168] sm:$0xf] }
  0xf4   : > { %1981 = vmatmul.mubr.bf16.gmra.mxu0 %v9170_v56  ;;  %v9434_v56 = vrot.slane %v9401_v42, %v534_v45  ;;  %v9521_v45 = vld [vmem:[%s9396_s15 + $0x160] sm:$0xff]  }
  0xf5   : > { %1990 = vmatprep.mubr.bf16.mxu0 %v9177_v58  ;;  %v9440_v58 = vld [vmem:[%s9396_s15 + $0x80] sm:$0xff]  }
  0xf6   : > { %2174 = vmatmul.mubr.bf16.gmra.mxu1 %v9174_v57  ;;  %v9687_v57 = vld [vmem:[%s9396_s15 + $0x78] ss:$752 sps:$4 sm:$0xff]  }
  0xf7   : > { %2183 = vmatprep.mubr.bf16.mxu1 %v9183_v60 }
  0xfc   : > { %1991 = vmatmul.mubr.bf16.gmra.mxu0 %v9210_v7  ;;  %v8710_v7 = vld [vmem:[%s8951_s18 + $0xe0] ss:$16 sps:$4 sm:$0xff]  }
  0xfd   : > { %2000 = vmatprep.mubr.bf16.mxu0 %v8707_v8  ;;  %v9527_v8 = vld [vmem:[%s9396_s15 + $0x180] sm:$0xff]  }
  0xfe   : > { %2184 = vmatmul.mubr.bf16.gmra.mxu1 %v8708_v16  ;;  %v9557_v16 = vld [vmem:[%s9396_s15 + $0x1e0] sm:$0xff]  }
  0xff   : > { %2193 = vmatprep.mubr.bf16.mxu1 %v8709_v40  ;;  %v9600_v40 = vld [vmem:[%s9396_s15 + $0x260] sm:$0xff]  }
 0x100   : > { %13283 = vst [vmem:[#allocation10_spill] sm:$0xff] %v9600_v40 }
 0x104   : > { %2001 = vmatmul.mubr.bf16.gmra.mxu0 %v8710_v7  ;;  %v9627_v7 = vld [vmem:[%s9396_s15 + $0x2c0] sm:$0xff]  }
 0x105   : > { %2010 = vmatprep.mubr.bf16.mxu0 %v8711_v29  ;;  %v9614_v29 = vld [vmem:[%s9396_s15 + $0x288] sm:$0xff]   ;;  %13289 = vst [vmem:[#allocation16_spill] sm:$0xff] %v9627_v7  ;;  %v9695_v7 = vld [vmem:[%s9396_s15 + $0x380] sm:$0xff]  }
 0x106   : > { %2194 = vmatmul.mubr.bf16.gmra.mxu1 %v8712_v24  ;;  %13286 = vst [vmem:[#allocation13_spill] sm:$0xff] %v9614_v29  ;;  %13300 = vst [vmem:[#allocation27_spill] sm:$0xff] %v9695_v7  ;;  %v542_v29 = vsub.s32 2, %v9389_v49  ;;  %v8718_v7 = vld [vmem:[%s8951_s18 + $0x120] ss:$16 sps:$4 sm:$0xff]  }
 0x107   : > { %2203 = vmatprep.mubr.bf16.mxu1 %v8713_v15  ;;  %v9637_v15 = vld [vmem:[%s9396_s15 + $0x2e0] sm:$0xff]  }
 0x108   : > { %13291 = vst [vmem:[#allocation18_spill] sm:$0xff] %v9637_v15  ;;  %v8716_v15 = vld [vmem:[%s8951_s18 + $0x108] ss:$16 sps:$4 sm:$0xff]  }
 0x10c   : > { %v1546_v28 = vpop.f32.mrf.mxu0  ;;  %2011 = vmatmul.mubr.bf16.gmra.mxu0 %v8714_v2 }
 0x10d   : > { %2020 = vmatprep.mubr.bf16.mxu0 %v8715_v0  ;;  %v1547_v17 = vadd.f32 %v1546_v28, %v9434_v56 }
 0x10e   : > { %v1548_v24 = vpop.f32.mrf.mxu0  ;;  %v1739_v60 = vpop.f32.mrf.mxu1  ;;  %2204 = vmatmul.mubr.bf16.gmra.mxu1 %v8716_v15  ;;  %v9708_v15 = vld [vmem:[%s9396_s15 + $0xb8] ss:$752 sps:$4 sm:$0xff]  }
 0x10f   : > { %v1549_v12 = vadd.f32 %v1548_v24, %v9437_v61  ;;  %2213 = vmatprep.mubr.bf16.mxu1 %v8717_v4  ;;  %v9705_v24 = vld [vmem:[%s9396_s15 + $0x3a0] sm:$0xff]  }
 0x110   : > { %v1550_v2 = vpop.f32.mrf.mxu0  ;;  %v1741_v62 = vpop.f32.mrf.mxu1  ;;  %13302 = vst [vmem:[#allocation29_spill] sm:$0xff] %v9705_v24 }
 0x111   : > { %v1551_v0 = vadd.f32 %v1550_v2, %v9434_v56  ;;  %v9711_v20 = vadd.f32 %v1741_v62, %v1549_v12  ;;  %v9723_v62 = vld [vmem:[%s9396_s15 + $0x3c8] sm:$0xff]   ;;  %v1740_v12 = vadd.f32 %v1739_v60, %v1547_v17  ;;  %v546_v60 = vsub.s32 3, %v9389_v49 }
 0x112   : > { %v1552_v14 = vpop.f32.mrf.mxu0  ;;  %v1743_v28 = vpop.f32.mrf.mxu1  ;;  %13304 = vst [vmem:[#allocation31_spill] sm:$0xff] %v9723_v62  ;;  %v8720_v2 = vld [vmem:[%s8951_s18 + $0x128] ss:$16 sps:$4 sm:$0xff]  }
 0x113   : > { %v1553_v4 = vadd.f32 %v1552_v14, %v9437_v61  ;;  %v1744_v30 = vadd.f32 %v1743_v28, %v1551_v0  ;;  %v9740_v14 = vrot.slane %v9401_v42, %v542_v29  ;;  %v2412_v31 = vmax.f32 %v1740_v12, 0.0  ;;  %v8721_v29 = vld [vmem:[%s8951_s18 + $0x14c] ss:$16 sps:$4 sm:$0xff]  }
 0x114   : > { %v1556_v1 = vpop.f32.mrf.mxu0  ;;  %v1745_v21 = vpop.f32.mrf.mxu1  ;;  %2021 = vmatmul.mubr.bf16.gmra.mxu0 %v8718_v7  ;;  %v3485_v7 = vmax.f32 %v9711_v20, 0.0  ;;  %v9761_v62 = vrot.slane %v9401_v42, %v546_v60 }
 0x115   : > { %v1557_v17 = vadd.f32 %v1556_v1, %v9434_v56  ;;  %2030 = vmatprep.mubr.bf16.mxu0 %v8719_v22  ;;  %13306 = vst [vmem:[#allocation33_spill] sm:$0xff] %v9740_v14  ;;  %v9743_v0 = vadd.f32 %v1745_v21, %v1553_v4  ;;  %v2477_v11 = vsub.f32 0.0, %v1744_v30  ;;  %v9753_v14 = vld [vmem:[%s9396_s15 + $0xf8] ss:$752 sps:$4 sm:$0xff]   ;;  %v9756_v21 = vld [vmem:[%s9396_s15 + $0x10] sm:$0xff]   ;;  %v2476_v4 = vsub.f32 0.0, %v1740_v12 }
 0x116   : > { %v1558_v28 = vpop.f32.mrf.mxu0  ;;  %v1749_v49 = vpop.f32.mrf.mxu1  ;;  %2214 = vmatmul.mubr.bf16.gmra.mxu1 %v8720_v2  ;;  %13307 = vst [vmem:[#allocation34_spill] sm:$0xff] %v9753_v14  ;;  %13308 = vst [vmem:[#allocation35_spill] sm:$0xff] %v9756_v21  ;;  %v9767_v34 = vadd.f32 %v3485_v7, %v13310_v43  ;;  %v13312_v12 = vunpack.c.l.bf16 %v9416_v52 }
 0x117   : > { %v1559_v40 = vadd.f32 %v1558_v28, %v9437_v61  ;;  %v9749_v24 = vadd.f32 %v1749_v49, %v1557_v17  ;;  %2223 = vmatprep.mubr.bf16.mxu1 %v8721_v29  ;;  %v3486_v2 = vmax.f32 %v9743_v0, 0.0  ;;  %13309 = vst [vmem:[#allocation36_spill] sm:$0xff] %v9761_v62  ;;  %v3549_v17 = vsub.f32 0.0, %v9711_v20  ;;  %v9776_v20 = vld [vmem:[%s9396_s15 + $0x18] sm:$0xff]  }
 0x118   : > { %v1560_v23 = vpop.f32.mrf.mxu0  ;;  %v1751_v1 = vpop.f32.mrf.mxu1  ;;  %v2413_v28 = vmax.f32 %v1744_v30, 0.0  ;;  %13311 = vst [vmem:[#allocation37_spill] sm:$0xff] %v9767_v34  ;;  %13314 = vst [vmem:[#allocation39_spill] sm:$0xff] %v9776_v20  ;;  %v2509_v43 = vmax.f32 %v2477_v11, 0.0  ;;  %v2508_v7 = vmax.f32 %v2476_v4, 0.0 }
 0x119   : > { %v1561_v49 = vadd.f32 %v1560_v23, %v9434_v56  ;;  %v1752_v29 = vadd.f32 %v1751_v1, %v1559_v40  ;;  %v9771_v47 = vadd.f32 %v3486_v2, %v13312_v12  ;;  %v13315_v23 = vunpack.c.l.bf16 %v9406_v48  ;;  %v8723_v4 = vld [vmem:[%s8951_s18 + $0x164] ss:$16 sps:$4 sm:$0xff]   ;;  %v8724_v34 = vld [vmem:[%s8951_s18 + $0x148] ss:$16 sps:$4 sm:$0xff]   ;;  %v8725_v1 = vld [vmem:[%s8951_s18 + $0x16c] ss:$16 sps:$4 sm:$0xff]  }
 0x11a   : > { %v1562_v35 = vpop.f32.mrf.mxu0  ;;  %v1753_v22 = vpop.f32.mrf.mxu1  ;;  %v2478_v40 = vsub.f32 0.0, %v9749_v24  ;;  %v3581_v62 = vmax.f32 %v3549_v17, 0.0  ;;  %v8727_v20 = vld [vmem:[%s8951_s18 + $0x184] ss:$16 sps:$4 sm:$0xff]  }
 0x11b   : > { %13313 = vst [vmem:[#allocation38_spill] sm:$0xff] %v9771_v47  ;;  %v9780_v30 = vadd.f32 %v2412_v31, %v13315_v23  ;;  %v1563_v2 = vadd.f32 %v1562_v35, %v9437_v61  ;;  %v1754_v12 = vadd.f32 %v1753_v22, %v1561_v49  ;;  %v13316_v31 = vunpack.c.l.bf16 %v9413_v51 }
 0x11c   : > { %v1566_v42 = vpop.f32.mrf.mxu0  ;;  %v1755_v60 = vpop.f32.mrf.mxu1  ;;  %2031 = vmatmul.mubr.bf16.gmra.mxu0 %v8722_v27  ;;  %v3550_v35 = vsub.f32 0.0, %v9743_v0  ;;  %v2414_v22 = vmax.f32 %v9749_v24, 0.0  ;;  %v9809_v0 = vld [vmem:[%s9396_s15 + $0x30] sm:$0xff]   ;;  %v13319_v24 = vunpack.c.h.bf16 %v9406_v48  ;;  %v3551_v21 = vsub.f32 0.0, %v1752_v29 }
 0x11d   : > { %v9790_v11 = vadd.f32 %v2413_v28, %v13316_v31  ;;  %v1567_v23 = vadd.f32 %v1566_v42, %v9434_v56  ;;  %2040 = vmatprep.mubr.bf16.mxu0 %v8723_v4  ;;  %v2479_v49 = vsub.f32 0.0, %v1754_v12  ;;  %v9797_v52 = vadd.f32 %v1755_v60, %v1563_v2  ;;  %13318 = vst [vmem:[#allocation40_spill] sm:$0xff] %v9809_v0 }
 0x11e   : > { %v1568_v27 = vpop.f32.mrf.mxu0  ;;  %v1759_v17 = vpop.f32.mrf.mxu1  ;;  %2224 = vmatmul.mubr.bf16.gmra.mxu1 %v8724_v34  ;;  %v13317_v28 = vunpack.c.h.bf16 %v9413_v51  ;;  %v2510_v31 = vmax.f32 %v2478_v40, 0.0  ;;  %v9813_v60 = vadd.f32 %v2508_v7, %v13319_v24  ;;  %v3487_v2 = vmax.f32 %v1752_v29, 0.0 }
 0x11f   : > { %v1569_v4 = vadd.f32 %v1568_v27, %v9437_v61  ;;  %v9805_v47 = vadd.f32 %v1759_v17, %v1567_v23  ;;  %2233 = vmatprep.mubr.bf16.mxu1 %v8725_v1  ;;  %v2415_v23 = vmax.f32 %v1754_v12, 0.0  ;;  %v9825_v7 = vmax.f32 %v3550_v35, 0.0 }
 0x120   : > { %v9802_v42 = vadd.f32 %v2509_v43, %v13317_v28  ;;  %v1570_v34 = vpop.f32.mrf.mxu0  ;;  %v1761_v14 = vpop.f32.mrf.mxu1  ;;  %v13320_v43 = vunpack.c.h.bf16 %v9409_v50  ;;  %v2511_v29 = vmax.f32 %v2479_v49, 0.0  ;;  %v13323_v50 = vunpack.c.l.bf16 %v9419_v53 }
 0x121   : > { %v1571_v27 = vadd.f32 %v1570_v34, %v9434_v56  ;;  %v9821_v1 = vadd.f32 %v1761_v14, %v1569_v4  ;;  %13322 = vst [vmem:[#allocation42_spill] sm:$0xff] %v9825_v7  ;;  %v13324_v12 = vunpack.c.h.bf16 %v9419_v53  ;;  %v2480_v4 = vsub.f32 0.0, %v9805_v47 }
 0x122   : > { %v9818_v40 = vadd.f32 %v3581_v62, %v13320_v43  ;;  %v1572_v17 = vpop.f32.mrf.mxu0  ;;  %v1763_v28 = vpop.f32.mrf.mxu1  ;;  %v9830_v62 = vadd.f32 %v2414_v22, %v13323_v50  ;;  %v13325_v49 = vunpack.c.l.bf16 %v9423_v54  ;;  %v3583_v43 = vmax.f32 %v3551_v21, 0.0  ;;  %v8726_v50 = vld [vmem:[%s8951_s18 + $0x160] ss:$16 sps:$4 sm:$0xff]  }
 0x123   : > { %v9834_v14 = vadd.f32 %v2510_v31, %v13324_v12  ;;  %v1573_v51 = vadd.f32 %v1572_v17, %v9437_v61  ;;  %v1764_v24 = vadd.f32 %v1763_v28, %v1571_v27  ;;  %v13327_v53 = vunpack.c.l.bf16 %v9426_v55  ;;  %v8597_v27 = vld [vmem:[%s13052_s6 + $0x38] sm:$0xff]  }
 0x124   : > { %13321 = vst [vmem:[#allocation41_spill] sm:$0xff] %v9818_v40  ;;  %v9841_v34 = vadd.f32 %v3487_v2, %v13325_v49  ;;  %v1576_v48 = vpop.f32.mrf.mxu0  ;;  %v1765_v22 = vpop.f32.mrf.mxu1  ;;  %2041 = vmatmul.mubr.bf16.gmra.mxu0 %v8726_v50  ;;  %v3488_v12 = vmax.f32 %v9797_v52, 0.0  ;;  %v8596_v2 = vld [vmem:[%s13052_s6 + $0x78] sm:$0xff]   ;;  %v3552_v28 = vsub.f32 0.0, %v9797_v52  ;;  %v2512_v21 = vmax.f32 %v2480_v4, 0.0 }
 0x125   : > { %v9847_v31 = vadd.f32 %v2415_v23, %v13327_v53  ;;  %v1577_v35 = vadd.f32 %v1576_v48, %v9434_v56  ;;  %2050 = vmatprep.mubr.bf16.mxu0 %v8727_v20  ;;  %v13328_v23 = vunpack.c.h.bf16 %v9426_v55  ;;  %v2416_v48 = vmax.f32 %v9805_v47, 0.0  ;;  %v8728_v53 = vld [vmem:[%s8951_s18 + $0x168] ss:$16 sps:$4 sm:$0xff]   ;;  %v8729_v55 = vld [vmem:[%s8951_s18 + $0x18c] ss:$16 sps:$4 sm:$0xff]   ;;  %7485 = vmatprep.subr.bf16.mxu1 %v8596_v2 }
 0x126   : > { %13326 = vst [vmem:[#allocation43_spill] sm:$0xff] %v9841_v34  ;;  %v9865_v20 = vadd.f32 %v1765_v22, %v1573_v51  ;;  %v1578_v49 = vpop.f32.mrf.mxu0  ;;  %v1769_v50 = vpop.f32.mrf.mxu1  ;;  %2234 = vmatmul.mubr.bf16.gmra.mxu1 %v8728_v53  ;;  %v2481_v34 = vsub.f32 0.0, %v1764_v24  ;;  %v13329_v52 = vunpack.c.h.bf16 %v9423_v54  ;;  %v3489_v47 = vmax.f32 %v9821_v1, 0.0  ;;  %v9880_v53 = vld [vmem:[%s9396_s15 + $0x50] sm:$0xff]  }
 0x127   : > { %v9861_v17 = vadd.f32 %v2511_v29, %v13328_v23  ;;  %v1579_v0 = vadd.f32 %v1578_v49, %v9437_v61  ;;  %v9869_v40 = vadd.f32 %v1769_v50, %v1577_v35  ;;  %2243 = vmatprep.mubr.bf16.mxu1 %v8729_v55  ;;  %v3553_v51 = vsub.f32 0.0, %v9821_v1  ;;  %13331 = vst [vmem:[#allocation45_spill] sm:$0xff] %v9880_v53  ;;  %v8733_v53 = vld [vmem:[%s8951_s18 + $0x1ac] ss:$16 sps:$4 sm:$0xff]  }
 0x128   : > { %v9874_v29 = vadd.f32 %v3583_v43, %v13329_v52  ;;  %v1580_v22 = vpop.f32.mrf.mxu0  ;;  %v1771_v23 = vpop.f32.mrf.mxu1  ;;  %7486 = vmatpush3.bf16.msra.mxu1 %v8597_v27  ;;  %v2417_v49 = vmax.f32 %v1764_v24, 0.0  ;;  %v13332_v43 = vunpack.c.l.bf16 %v9430_v59  ;;  %v9889_v1 = vmax.f32 %v3552_v28, 0.0 }
 0x129   : > { %v1581_v2 = vadd.f32 %v1580_v22, %v9434_v56  ;;  %v1772_v54 = vadd.f32 %v1771_v23, %v1579_v0  ;;  %v13335_v55 = vunpack.c.l.bf16 %v9440_v58  ;;  %v13336_v24 = vunpack.c.h.bf16 %v9440_v58  ;;  %v8730_v58 = vld [vmem:[%s8951_s18 + $0x180] ss:$16 sps:$4 sm:$0xff]  }
 0x12a   : > { %13330 = vst [vmem:[#allocation44_spill] sm:$0xff] %v9874_v29  ;;  %v9887_v50 = vadd.f32 %v3488_v12, %v13332_v43  ;;  %13334 = vst [vmem:[#allocation47_spill] sm:$0xff] %v9889_v1  ;;  %v1582_v4 = vpop.f32.mrf.mxu0  ;;  %v1773_v27 = vpop.f32.mrf.mxu1  ;;  %v2513_v59 = vmax.f32 %v2481_v34, 0.0  ;;  %v2482_v12 = vsub.f32 0.0, %v9869_v40  ;;  %v13337_v22 = vunpack.c.l.bf16 %v9451_v9  ;;  %v8731_v29 = vld [vmem:[%s8951_s18 + $0x1a4] ss:$16 sps:$4 sm:$0xff]  }
 0x12b   : > { %v9893_v52 = vadd.f32 %v2416_v48, %v13335_v55  ;;  %v9899_v0 = vadd.f32 %v2512_v21, %v13336_v24  ;;  %v3585_v23 = vmax.f32 %v3553_v51, 0.0  ;;  %v1583_v43 = vadd.f32 %v1582_v4, %v9437_v61  ;;  %v9917_v51 = vld [vmem:[%s9396_s15 + $0x58] sm:$0xff]  }
 0x12c   : > { %13333 = vst [vmem:[#allocation46_spill] sm:$0xff] %v9887_v50  ;;  %v9905_v48 = vadd.f32 %v3489_v47, %v13337_v22  ;;  %v1774_v55 = vadd.f32 %v1773_v27, %v1581_v2  ;;  %v1586_v35 = vpop.f32.mrf.mxu0  ;;  %v1775_v50 = vpop.f32.mrf.mxu1  ;;  %2051 = vmatmul.mubr.bf16.gmra.mxu0 %v8730_v58  ;;  %v13339_v34 = vunpack.c.l.bf16 %v9454_v10  ;;  %v3555_v24 = vsub.f32 0.0, %v1772_v54  ;;  %13340 = vst [vmem:[#allocation49_spill] sm:$0xff] %v9917_v51 }
 0x12d   : > { %v1587_v28 = vadd.f32 %v1586_v35, %v9434_v56  ;;  %2060 = vmatprep.mubr.bf16.mxu0 %v8731_v29  ;;  %v3490_v4 = vmax.f32 %v9865_v20, 0.0  ;;  %v3554_v2 = vsub.f32 0.0, %v9865_v20  ;;  %v2418_v27 = vmax.f32 %v9869_v40, 0.0 }
 0x12e   : > { %13338 = vst [vmem:[#allocation48_spill] sm:$0xff] %v9905_v48  ;;  %v9911_v21 = vadd.f32 %v2417_v49, %v13339_v34  ;;  %v9922_v22 = vadd.f32 %v1775_v50, %v1583_v43  ;;  %v1588_v49 = vpop.f32.mrf.mxu0  ;;  %v1779_v58 = vpop.f32.mrf.mxu1  ;;  %v8732_v34 = vld [vmem:[%s8951_s18 + $0x188] ss:$16 sps:$4 sm:$0xff]   ;;  %v13341_v35 = vunpack.c.h.bf16 %v9454_v10  ;;  %v2514_v29 = vmax.f32 %v2482_v12, 0.0 }
 0x12f   : > { %2244 = vmatmul.mubr.bf16.gmra.mxu1 %v8732_v34  ;;  %v2483_v47 = vsub.f32 0.0, %v1774_v55  ;;  %v1589_v1 = vadd.f32 %v1588_v49, %v9437_v61  ;;  %v13342_v20 = vunpack.c.h.bf16 %v9451_v9  ;;  %v3491_v50 = vmax.f32 %v1772_v54, 0.0  ;;  %v9942_v49 = vld [vmem:[%s9396_s15 + $0x70] sm:$0xff]  }
 0x130   : > { %v9927_v48 = vadd.f32 %v2513_v59, %v13341_v35  ;;  %2253 = vmatprep.mubr.bf16.mxu1 %v8733_v53  ;;  %v9935_v43 = vadd.f32 %v1779_v58, %v1587_v28  ;;  %v1590_v7 = vpop.f32.mrf.mxu0  ;;  %v1781_v34 = vpop.f32.mrf.mxu1  ;;  %v3587_v59 = vmax.f32 %v3555_v24, 0.0  ;;  %v2419_v35 = vmax.f32 %v1774_v55, 0.0  ;;  %v8734_v9 = vld [vmem:[%s8951_s18 + $0x1a0] ss:$16 sps:$4 sm:$0xff]  }
 0x131   : > { %v9933_v40 = vadd.f32 %v3585_v23, %v13342_v20  ;;  %v1591_v12 = vadd.f32 %v1590_v7, %v9434_v56  ;;  %v9939_v63 = vadd.f32 %v1781_v34, %v1589_v1  ;;  %v13344_v53 = vunpack.c.l.bf16 %v9461_v18 }
 0x132   : > { %v9950_v28 = vmax.f32 %v3554_v2, 0.0  ;;  %v13347_v23 = vunpack.c.l.bf16 %v9464_v19  ;;  %v1592_v55 = vpop.f32.mrf.mxu0  ;;  %v1783_v7 = vpop.f32.mrf.mxu1  ;;  %v13348_v1 = vunpack.c.h.bf16 %v9464_v19  ;;  %v2515_v20 = vmax.f32 %v2483_v47, 0.0  ;;  %v8736_v19 = vld [vmem:[%s8951_s18 + $0x1a8] ss:$16 sps:$4 sm:$0xff]  }
 0x133   : > { %13343 = vst [vmem:[#allocation50_spill] sm:$0xff] %v9933_v40  ;;  %v9948_v54 = vadd.f32 %v3490_v4, %v13344_v53  ;;  %v13349_v4 = vunpack.c.l.bf16 %v9474_v25  ;;  %v1784_v53 = vadd.f32 %v1783_v7, %v1591_v12  ;;  %v13351_v47 = vunpack.c.h.bf16 %v9474_v25  ;;  %v8735_v12 = vld [vmem:[%s8951_s18 + $0x1c4] ss:$16 sps:$4 sm:$0xff]   ;;  %v8737_v40 = vld [vmem:[%s8951_s18 + $0x1cc] ss:$16 sps:$4 sm:$0xff]  }
 0x134   : > { %13346 = vst [vmem:[#allocation52_spill] sm:$0xff] %v9950_v28  ;;  %v9954_v24 = vadd.f32 %v2418_v27, %v13347_v23  ;;  %v9958_v58 = vadd.f32 %v2514_v29, %v13348_v1  ;;  %v2484_v27 = vsub.f32 0.0, %v9935_v43  ;;  %v1596_v23 = vpop.f32.mrf.mxu0  ;;  %v1785_v10 = vpop.f32.mrf.mxu1  ;;  %2061 = vmatmul.mubr.bf16.gmra.mxu0 %v8734_v9  ;;  %v13353_v1 = vunpack.c.l.bf16 %v9477_v26  ;;  %v8600_v9 = vld [vmem:[%s13052_s6 + $0x70] sm:$0xff]  }
 0x135   : > { %13345 = vst [vmem:[#allocation51_spill] sm:$0xff] %v9948_v54  ;;  %v9965_v2 = vadd.f32 %v3491_v50, %v13349_v4  ;;  %v9972_v29 = vadd.f32 %v3587_v59, %v13351_v47  ;;  %v3557_v50 = vsub.f32 0.0, %v9939_v63  ;;  %v1597_v4 = vadd.f32 %v1596_v23, %v9434_v56  ;;  %2070 = vmatprep.mubr.bf16.mxu0 %v8735_v12  ;;  %v8601_v25 = vld [vmem:[%s13052_s6 + $0x30] sm:$0xff]  }
 0x136   : > { %v9976_v18 = vadd.f32 %v2419_v35, %v13353_v1  ;;  %v3492_v59 = vmax.f32 %v9922_v22, 0.0  ;;  %v3556_v35 = vsub.f32 0.0, %v9922_v22  ;;  %v2420_v7 = vmax.f32 %v9935_v43, 0.0  ;;  %v1598_v23 = vpop.f32.mrf.mxu0  ;;  %v1789_v1 = vpop.f32.mrf.mxu1  ;;  %7487 = vmatprep.subr.bf16.mxu1 %v8600_v9 }
 0x137   : > { %13350 = vst [vmem:[#allocation53_spill] sm:$0xff] %v9965_v2  ;;  %13352 = vst [vmem:[#allocation54_spill] sm:$0xff] %v9972_v29  ;;  %v1593_v47 = vadd.f32 %v1592_v55, %v9437_v61  ;;  %2254 = vmatmul.mubr.bf16.gmra.mxu1 %v8736_v19  ;;  %v13354_v12 = vunpack.c.h.bf16 %v9477_v26  ;;  %v2485_v2 = vsub.f32 0.0, %v1784_v53  ;;  %v1599_v29 = vadd.f32 %v1598_v23, %v9437_v61  ;;  %v10016_v19 = vld [vmem:[%s9396_s15 + $0x90] sm:$0xff]  }
 0x138   : > { %v9997_v54 = vadd.f32 %v1789_v1, %v1597_v4  ;;  %2263 = vmatprep.mubr.bf16.mxu1 %v8737_v40  ;;  %v2516_v22 = vmax.f32 %v2484_v27, 0.0  ;;  %v3493_v43 = vmax.f32 %v9939_v63, 0.0  ;;  %v2421_v55 = vmax.f32 %v1784_v53, 0.0  ;;  %v1600_v28 = vpop.f32.mrf.mxu0  ;;  %v1791_v51 = vpop.f32.mrf.mxu1  ;;  %7488 = vmatpush3.bf16.msra.mxu1 %v8601_v25  ;;  %13359 = vst [vmem:[#allocation57_spill] sm:$0xff] %v10016_v19  ;;  %v8738_v26 = vld [vmem:[%s8951_s18 + $0x1c0] ss:$16 sps:$4 sm:$0xff]  }
 0x139   : > { %v9994_v34 = vadd.f32 %v2515_v20, %v13354_v12  ;;  %v3589_v20 = vmax.f32 %v3557_v50, 0.0  ;;  %v1601_v4 = vadd.f32 %v1600_v28, %v9434_v56  ;;  %v1792_v23 = vadd.f32 %v1791_v51, %v1599_v29 }
 0x13a   : > { %v13355_v40 = vunpack.c.l.bf16 %v9485_v3  ;;  %v10009_v27 = vmax.f32 %v3556_v35, 0.0  ;;  %v13358_v63 = vunpack.c.l.bf16 %v9488_v6  ;;  %v1786_v1 = vadd.f32 %v1785_v10, %v1593_v47  ;;  %v1602_v25 = vpop.f32.mrf.mxu0  ;;  %v1793_v12 = vpop.f32.mrf.mxu1 }
 0x13b   : > { %v2517_v50 = vmax.f32 %v2485_v2, 0.0  ;;  %v2486_v51 = vsub.f32 0.0, %v9997_v54  ;;  %v13360_v29 = vunpack.c.h.bf16 %v9488_v6  ;;  %v13361_v35 = vunpack.c.l.bf16 %v9491_v5 }
 0x13c   : > { %v10007_v9 = vadd.f32 %v3492_v59, %v13355_v40  ;;  %13357 = vst [vmem:[#allocation56_spill] sm:$0xff] %v10009_v27  ;;  %v10013_v53 = vadd.f32 %v2420_v7, %v13358_v63  ;;  %v13363_v7 = vunpack.c.l.bf16 %v9498_v13  ;;  %v1794_v2 = vadd.f32 %v1793_v12, %v1601_v4  ;;  %v1606_v40 = vpop.f32.mrf.mxu0  ;;  %v1795_v63 = vpop.f32.mrf.mxu1  ;;  %2071 = vmatmul.mubr.bf16.gmra.mxu0 %v8738_v26  ;;  %v10057_v27 = vld [vmem:[%s9396_s15 + $0x98] sm:$0xff]  }
 0x13d   : > { %v10024_v59 = vadd.f32 %v2516_v22, %v13360_v29  ;;  %v10028_v10 = vadd.f32 %v3493_v43, %v13361_v35  ;;  %v13364_v28 = vunpack.c.h.bf16 %v9491_v5  ;;  %v3559_v6 = vsub.f32 0.0, %v1792_v23  ;;  %v8739_v43 = vld [vmem:[%s8951_s18 + $0x1e4] ss:$16 sps:$4 sm:$0xff]   ;;  %v8740_v5 = vld [vmem:[%s8951_s18 + $0x1c8] ss:$16 sps:$4 sm:$0xff]  }
 0x13e   : > { %13356 = vst [vmem:[#allocation55_spill] sm:$0xff] %v10007_v9  ;;  %v10032_v47 = vadd.f32 %v2421_v55, %v13363_v7  ;;  %v1607_v22 = vadd.f32 %v1606_v40, %v9434_v56  ;;  %2080 = vmatprep.mubr.bf16.mxu0 %v8739_v43  ;;  %v3494_v55 = vmax.f32 %v1786_v1, 0.0  ;;  %v3558_v35 = vsub.f32 0.0, %v1786_v1  ;;  %v1608_v7 = vpop.f32.mrf.mxu0  ;;  %v1799_v26 = vpop.f32.mrf.mxu1  ;;  %v8741_v29 = vld [vmem:[%s8951_s18 + $0x1ec] ss:$16 sps:$4 sm:$0xff]  }
 0x13f   : > { %13362 = vst [vmem:[#allocation58_spill] sm:$0xff] %v10028_v10  ;;  %v10037_v3 = vadd.f32 %v3589_v20, %v13364_v28  ;;  %v2422_v4 = vmax.f32 %v9997_v54, 0.0  ;;  %v1603_v12 = vadd.f32 %v1602_v25, %v9437_v61  ;;  %2264 = vmatmul.mubr.bf16.gmra.mxu1 %v8740_v5  ;;  %v13366_v20 = vunpack.c.h.bf16 %v9498_v13 }
 0x140   : > { %v2518_v40 = vmax.f32 %v2486_v51, 0.0  ;;  %v2487_v10 = vsub.f32 0.0, %v1794_v2  ;;  %v1609_v43 = vadd.f32 %v1608_v7, %v9437_v61  ;;  %2273 = vmatprep.mubr.bf16.mxu1 %v8741_v29  ;;  %v3495_v1 = vmax.f32 %v1792_v23, 0.0  ;;  %v1801_v9 = vpop.f32.mrf.mxu1 }
 0x141   : > { %13365 = vst [vmem:[#allocation59_spill] sm:$0xff] %v10037_v3  ;;  %v10047_v28 = vadd.f32 %v2517_v50, %v13366_v20  ;;  %v10053_v25 = vadd.f32 %v1799_v26, %v1607_v22  ;;  %v1610_v3 = vpop.f32.mrf.mxu0  ;;  %v3591_v13 = vmax.f32 %v3559_v6, 0.0  ;;  %v2423_v50 = vmax.f32 %v1794_v2, 0.0 }
 0x142   : > { %v1611_v51 = vadd.f32 %v1610_v3, %v9434_v56  ;;  %v10060_v20 = vadd.f32 %v1801_v9, %v1609_v43  ;;  %v13367_v29 = vunpack.c.l.bf16 %v9501_v32  ;;  %v10066_v23 = vmax.f32 %v3558_v35, 0.0  ;;  %v1803_v19 = vpop.f32.mrf.mxu1 }
 0x143   : > { %v13370_v22 = vunpack.c.l.bf16 %v9510_v38  ;;  %v1796_v5 = vadd.f32 %v1795_v63, %v1603_v12  ;;  %v1612_v54 = vpop.f32.mrf.mxu0  ;;  %v13371_v2 = vunpack.c.h.bf16 %v9510_v38  ;;  %v2519_v9 = vmax.f32 %v2487_v10, 0.0 }
 0x144   : > { %v10064_v7 = vadd.f32 %v3494_v55, %v13367_v29  ;;  %13369 = vst [vmem:[#allocation61_spill] sm:$0xff] %v10066_v23  ;;  %v13372_v55 = vunpack.c.l.bf16 %v9513_v39  ;;  %v1804_v63 = vadd.f32 %v1803_v19, %v1611_v51  ;;  %v1805_v43 = vpop.f32.mrf.mxu1  ;;  %v8742_v29 = vld [vmem:[%s8951_s18 + $0x1e0] ss:$16 sps:$4 sm:$0xff]   ;;  %v13374_v10 = vunpack.c.h.bf16 %v9513_v39  ;;  %v8604_v39 = vld [vmem:[%s13052_s6 + $0x68] sm:$0xff]  }
 0x145   : > { %v10070_v26 = vadd.f32 %v2422_v4, %v13370_v22  ;;  %v10074_v6 = vadd.f32 %v2518_v40, %v13371_v2  ;;  %v2488_v4 = vsub.f32 0.0, %v10053_v25  ;;  %v1616_v12 = vpop.f32.mrf.mxu0  ;;  %2081 = vmatmul.mubr.bf16.gmra.mxu0 %v8742_v29  ;;  %v13376_v22 = vunpack.c.l.bf16 %v9521_v45  ;;  %v10100_v51 = vld [vmem:[%s9396_s15 + $0xb0] sm:$0xff]   ;;  %7489 = vmatprep.subr.bf16.mxu1 %v8604_v39 }
 0x146   : > { %13368 = vst [vmem:[#allocation60_spill] sm:$0xff] %v10064_v7  ;;  %v10081_v35 = vadd.f32 %v3495_v1, %v13372_v55  ;;  %v10088_v40 = vadd.f32 %v3591_v13, %v13374_v10  ;;  %v3561_v1 = vsub.f32 0.0, %v10060_v20  ;;  %v1617_v55 = vadd.f32 %v1616_v12, %v9434_v56  ;;  %v8605_v13 = vld [vmem:[%s13052_s6 + $0x28] sm:$0xff]   ;;  %v1809_v38 = vpop.f32.mrf.mxu1 }
 0x147   : > { %v10092_v2 = vadd.f32 %v2423_v50, %v13376_v22  ;;  %v13377_v19 = vpack.c.bf16 %v9802_v42, %v9813_v60  ;;  %v3496_v50 = vmax.f32 %v1796_v5, 0.0  ;;  %v3560_v29 = vsub.f32 0.0, %v1796_v5  ;;  %v1618_v22 = vpop.f32.mrf.mxu0  ;;  %v8743_v42 = vld [vmem:[%s8951_s18 + $0x1e8] ss:$16 sps:$4 sm:$0xff]   ;;  %7490 = vmatpush3.bf16.msra.mxu1 %v8605_v13 }
 0x148   : > { %13373 = vst [vmem:[#allocation62_spill] sm:$0xff] %v10081_v35  ;;  %13375 = vst [vmem:[#allocation63_spill] sm:$0xff] %v10088_v40  ;;  %v2424_v10 = vmax.f32 %v10053_v25, 0.0  ;;  %v1613_v12 = vadd.f32 %v1612_v54, %v9437_v61  ;;  %2274 = vmatmul.mubr.bf16.gmra.mxu1 %v8743_v42  ;;  %v13378_v60 = vunpack.c.h.bf16 %v9521_v45  ;;  %v2489_v3 = vsub.f32 0.0, %v1804_v63  ;;  %v1811_v54 = vpop.f32.mrf.mxu1 }
 0x149   : > { %2771 = vmatprep.mubr.bf16.mxu0 %v13377_v19  ;;  %v1619_v32 = vadd.f32 %v1618_v22, %v9437_v61  ;;  %v10116_v35 = vadd.f32 %v1809_v38, %v1617_v55  ;;  %v2520_v40 = vmax.f32 %v2488_v4, 0.0  ;;  %v3497_v5 = vmax.f32 %v10060_v20, 0.0  ;;  %v1620_v7 = vpop.f32.mrf.mxu0  ;;  %v8585_v4 = vld [vmem:[%s13050_s4 + $0x38] sm:$0xff]  }
 0x14a   : > { %v10113_v19 = vadd.f32 %v2519_v9, %v13378_v60  ;;  %v2425_v25 = vmax.f32 %v1804_v63, 0.0  ;;  %v3593_v9 = vmax.f32 %v3561_v1, 0.0  ;;  %v1621_v42 = vadd.f32 %v1620_v7, %v9434_v56  ;;  %v1813_v22 = vpop.f32.mrf.mxu1  ;;  %v8586_v7 = vld [vmem:[%s13050_s4 + $0x70] sm:$0xff]  }
 0x14b   : > { %v10123_v60 = vadd.f32 %v1811_v54, %v1619_v32  ;;  %v13379_v20 = vunpack.c.l.bf16 %v9524_v46  ;;  %v10132_v38 = vmax.f32 %v3560_v29, 0.0  ;;  %v13382_v55 = vunpack.c.l.bf16 %v9527_v8  ;;  %v1622_v1 = vpop.f32.mrf.mxu0 }
 0x14c   : > { %v1806_v13 = vadd.f32 %v1805_v43, %v1613_v12  ;;  %v2521_v32 = vmax.f32 %v2489_v3, 0.0  ;;  %v2490_v54 = vsub.f32 0.0, %v10116_v35  ;;  %v13383_v29 = vunpack.c.h.bf16 %v9527_v8  ;;  %v1815_v45 = vpop.f32.mrf.mxu1 }
 0x14d   : > { %v10130_v63 = vadd.f32 %v3496_v50, %v13379_v20  ;;  %13381 = vst [vmem:[#allocation65_spill] sm:$0xff] %v10132_v38  ;;  %v10136_v39 = vadd.f32 %v2424_v10, %v13382_v55  ;;  %v13384_v43 = vunpack.c.l.bf16 %v9534_v44  ;;  %v13386_v20 = vunpack.c.l.bf16 %v9537_v41  ;;  %v1626_v23 = vpop.f32.mrf.mxu0 }
 0x14e   : > { %v10147_v10 = vadd.f32 %v2520_v40, %v13383_v29  ;;  %v1814_v3 = vadd.f32 %v1813_v22, %v1621_v42  ;;  %v13387_v46 = vpack.c.bf16 %v9790_v11, %v9780_v30  ;;  %v13388_v50 = vunpack.c.h.bf16 %v9534_v44  ;;  %v10174_v11 = vld [vmem:[%s9396_s15 + $0xd0] sm:$0xff]  }
 0x14f   : > { %13380 = vst [vmem:[#allocation64_spill] sm:$0xff] %v10130_v63  ;;  %v10151_v12 = vadd.f32 %v3497_v5, %v13384_v43  ;;  %v10155_v55 = vadd.f32 %v2425_v25, %v13386_v20  ;;  %v3563_v40 = vsub.f32 0.0, %v10123_v60  ;;  %v1627_v5 = vadd.f32 %v1626_v23, %v9434_v56  ;;  %v8587_v25 = vld [vmem:[%s13050_s4 + $0x30] sm:$0xff]   ;;  %v1628_v23 = vpop.f32.mrf.mxu0 }
 0x150   : > { %2772 = vmatmul.mubr.bf16.vlgmr.msra.gmra.mxu0 %v13387_v46  ;;  %v10162_v8 = vadd.f32 %v3593_v9, %v13388_v50  ;;  %v13390_v29 = vpack.c.bf16 %v9861_v17, %v9834_v14  ;;  %v3498_v44 = vmax.f32 %v1806_v13, 0.0  ;;  %v3562_v9 = vsub.f32 0.0, %v1806_v13  ;;  %v1819_v46 = vpop.f32.mrf.mxu1  ;;  %v8588_v14 = vld [vmem:[%s13050_s4 + $0x68] sm:$0xff]  }
 0x151   : > { %13385 = vst [vmem:[#allocation66_spill] sm:$0xff] %v10151_v12  ;;  %7598 = vmatpush3.bf16.msra.mxu0 %v8585_v4  ;;  %v2426_v42 = vmax.f32 %v10116_v35, 0.0  ;;  %v1623_v22 = vadd.f32 %v1622_v1, %v9437_v61  ;;  %v13391_v17 = vunpack.c.h.bf16 %v9537_v41  ;;  %v2522_v50 = vmax.f32 %v2490_v54, 0.0  ;;  %v8589_v54 = vld [vmem:[%s13050_s4 + $0x28] sm:$0xff]  }
 0x152   : > { %13389 = vst [vmem:[#allocation67_spill] sm:$0xff] %v10162_v8  ;;  %2779 = vmatprep.mubr.bf16.mxu0 %v13390_v29  ;;  %7599 = vmatprep.subr.bf16.mxu0 %v8586_v7  ;;  %v2491_v43 = vsub.f32 0.0, %v1814_v3  ;;  %v1629_v13 = vadd.f32 %v1628_v23, %v9437_v61  ;;  %v3499_v1 = vmax.f32 %v10123_v60, 0.0  ;;  %v10189_v20 = vadd.f32 %v1819_v46, %v1627_v5  ;;  %v1630_v7 = vpop.f32.mrf.mxu0  ;;  %v1821_v29 = vpop.f32.mrf.mxu1  ;;  %v10199_v23 = vld [vmem:[%s9396_s15 + $0xd8] sm:$0xff]  }
 0x153   : > { %v10183_v4 = vadd.f32 %v2521_v32, %v13391_v17  ;;  %v3595_v12 = vmax.f32 %v3563_v40, 0.0  ;;  %v2427_v41 = vmax.f32 %v1814_v3, 0.0  ;;  %v1631_v32 = vadd.f32 %v1630_v7, %v9434_v56  ;;  %13392 = vst [vmem:[#allocation68_spill] sm:$0xff] %v10199_v23  ;;  %v10427_v23 = vld [vmem:[%s9396_s15 + $0x130] sm:$0xff]  }
 0x154   : > { %v10193_v17 = vadd.f32 %v1821_v29, %v1629_v13  ;;  %v13393_v60 = vunpack.c.l.bf16 %v9544_v36  ;;  %v10205_v46 = vmax.f32 %v3562_v9, 0.0  ;;  %v13396_v40 = vunpack.c.l.bf16 %v9547_v33  ;;  %v1632_v13 = vpop.f32.mrf.mxu0  ;;  %v1823_v29 = vpop.f32.mrf.mxu1 }
 0x155   : > { %7600 = vmatpush3.bf16.msra.mxu0 %v8587_v25  ;;  %v1816_v7 = vadd.f32 %v1815_v45, %v1623_v22  ;;  %v8590_v25 = vld [vmem:[%s13050_s4 + $0x60] sm:$0xff]   ;;  %v13397_v30 = vunpack.c.h.bf16 %v9547_v33  ;;  %v2523_v36 = vmax.f32 %v2491_v43, 0.0  ;;  %v2492_v22 = vsub.f32 0.0, %v10189_v20 }
 0x156   : > { %v10203_v5 = vadd.f32 %v3498_v44, %v13393_v60  ;;  %13395 = vst [vmem:[#allocation70_spill] sm:$0xff] %v10205_v46  ;;  %v10209_v3 = vadd.f32 %v2426_v42, %v13396_v40  ;;  %7601 = vmatprep.subr.bf16.mxu0 %v8588_v14  ;;  %v13398_v42 = vunpack.c.l.bf16 %v9554_v37  ;;  %v1824_v14 = vadd.f32 %v1823_v29, %v1631_v32  ;;  %v1636_v60 = vpop.f32.mrf.mxu0  ;;  %v1825_v40 = vpop.f32.mrf.mxu1 }
 0x157   : > { %v10216_v35 = vadd.f32 %v2522_v50, %v13397_v30  ;;  %v13400_v33 = vpack.c.bf16 %v9847_v31, %v9830_v62  ;;  %v13401_v50 = vunpack.c.h.bf16 %v9554_v37  ;;  %v13403_v9 = vunpack.c.l.bf16 %v9557_v16  ;;  %v8591_v62 = vld [vmem:[%s13050_s4 + $0x20] sm:$0xff]  }
 0x158   : > { %13394 = vst [vmem:[#allocation69_spill] sm:$0xff] %v10203_v5  ;;  %v10223_v45 = vadd.f32 %v3499_v1, %v13398_v42  ;;  %v3565_v1 = vsub.f32 0.0, %v10193_v17  ;;  %v1637_v32 = vadd.f32 %v1636_v60, %v9434_v56  ;;  %v13404_v29 = vpack.c.bf16 %v9927_v48, %v9899_v0  ;;  %v8608_v37 = vld [vmem:[%s13052_s6 + $0x60] sm:$0xff]   ;;  %v1638_v48 = vpop.f32.mrf.mxu0  ;;  %v8592_v42 = vld [vmem:[%s13050_s4 + $0x58] sm:$0xff]   ;;  %v10267_v5 = vld [vmem:[%s9396_s15 + $0xf0] sm:$0xff]  }
 0x159   : > { %2780 = vmatmul.mubr.bf16.gmra.mxu0 %v13400_v33  ;;  %v10232_v43 = vadd.f32 %v3595_v12, %v13401_v50  ;;  %v10236_v44 = vadd.f32 %v2427_v41, %v13403_v9  ;;  %v8609_v31 = vld [vmem:[%s13052_s6 + $0x20] sm:$0xff]   ;;  %v3500_v12 = vmax.f32 %v1816_v7, 0.0  ;;  %v3564_v41 = vsub.f32 0.0, %v1816_v7  ;;  %7491 = vmatprep.subr.bf16.mxu1 %v8608_v37 }
 0x15a   : > { %13399 = vst [vmem:[#allocation71_spill] sm:$0xff] %v10223_v45  ;;  %2787 = vmatprep.mubr.bf16.mxu0 %v13404_v29  ;;  %7602 = vmatpush3.bf16.msra.mxu0 %v8589_v54  ;;  %v2428_v9 = vmax.f32 %v10189_v20, 0.0  ;;  %v1633_v0 = vadd.f32 %v1632_v13, %v9437_v61  ;;  %v1829_v54 = vpop.f32.mrf.mxu1  ;;  %v13405_v60 = vunpack.c.h.bf16 %v9557_v16  ;;  %v2493_v50 = vsub.f32 0.0, %v1824_v14  ;;  %v1640_v45 = vpop.f32.mrf.mxu0 }
 0x15b   : > { %13402 = vst [vmem:[#allocation72_spill] sm:$0xff] %v10232_v43  ;;  %7603 = vmatprep.subr.bf16.mxu0 %v8590_v25  ;;  %v1639_v29 = vadd.f32 %v1638_v48, %v9437_v61  ;;  %v10262_v7 = vadd.f32 %v1829_v54, %v1637_v32  ;;  %v2524_v20 = vmax.f32 %v2492_v22, 0.0  ;;  %v3501_v13 = vmax.f32 %v10193_v17, 0.0  ;;  %7492 = vmatpush3.bf16.msra.mxu1 %v8609_v31  ;;  %v8593_v17 = vld [vmem:[%s13050_s4 + $0x18] sm:$0xff]   ;;  %v13406_v22 = vld [vmem:[#allocation3_spill] sm:$0xff]  ;;  %v13410_v31 = vld [vmem:[#allocation4_spill] sm:$0xff] }
 0x15c   : > { %v10259_v33 = vadd.f32 %v2523_v36, %v13405_v60  ;;  %v2429_v30 = vmax.f32 %v1824_v14, 0.0  ;;  %v1831_v25 = vpop.f32.mrf.mxu1  ;;  %v3597_v36 = vmax.f32 %v3565_v1, 0.0  ;;  %v1641_v48 = vadd.f32 %v1640_v45, %v9434_v56  ;;  %v1642_v16 = vpop.f32.mrf.mxu0 }
 0x15d   : > { %v10272_v32 = vadd.f32 %v1831_v25, %v1639_v29  ;;  %v13407_v14 = vunpack.c.l.bf16 %v13406_v22  ;;  %v10281_v54 = vmax.f32 %v3564_v41, 0.0  ;;  %v13411_v60 = vunpack.c.l.bf16 %v13410_v31 }
 0x15e   : > { %7604 = vmatpush3.bf16.msra.mxu0 %v8591_v62  ;;  %v1826_v1 = vadd.f32 %v1825_v40, %v1633_v0  ;;  %v1833_v45 = vpop.f32.mrf.mxu1  ;;  %v8594_v62 = vld [vmem:[%s13050_s4 + $0x50] sm:$0xff]   ;;  %v2525_v29 = vmax.f32 %v2493_v50, 0.0  ;;  %v2494_v25 = vsub.f32 0.0, %v10262_v7  ;;  %v13412_v22 = vunpack.c.h.bf16 %v13410_v31  ;;  %v13413_v40 = vld [vmem:[#allocation5_spill] sm:$0xff] }
 0x15f   : > { %v10279_v37 = vadd.f32 %v3500_v12, %v13407_v14  ;;  %13409 = vst [vmem:[#allocation73_spill] sm:$0xff] %v10281_v54  ;;  %v10285_v43 = vadd.f32 %v2428_v9, %v13411_v60  ;;  %7605 = vmatprep.subr.bf16.mxu0 %v8592_v42  ;;  %v13414_v0 = vunpack.c.l.bf16 %v13413_v40  ;;  %v13416_v42 = vld [vmem:[#allocation6_spill] sm:$0xff]  ;;  %v1834_v50 = vadd.f32 %v1833_v45, %v1641_v48  ;;  %v1646_v54 = vpop.f32.mrf.mxu0 }
 0x160   : > { %v10296_v9 = vadd.f32 %v2524_v20, %v13412_v22  ;;  %v13417_v60 = vunpack.c.l.bf16 %v13416_v42  ;;  %v1835_v8 = vpop.f32.mrf.mxu1  ;;  %v13418_v12 = vpack.c.bf16 %v9911_v21, %v9893_v52  ;;  %v13419_v41 = vunpack.c.h.bf16 %v13413_v40  ;;  %v13429_v52 = vld [vmem:[#allocation8_spill] sm:$0xff] }
 0x161   : > { %13408 = vst [vmem:[#allocation3_spill] sm:$0xff] %v10279_v37  ;;  %v10300_v14 = vadd.f32 %v3501_v13, %v13414_v0  ;;  %v3567_v20 = vsub.f32 0.0, %v10272_v32  ;;  %v1647_v13 = vadd.f32 %v1646_v54, %v9434_v56  ;;  %v13421_v22 = vpack.c.bf16 %v9994_v34, %v9958_v58  ;;  %v8598_v58 = vld [vmem:[%s13050_s4 + $0x48] sm:$0xff]  }
 0x162   : > { %v10304_v37 = vadd.f32 %v2429_v30, %v13417_v60  ;;  %2788 = vmatmul.mubr.bf16.gmra.mxu0 %v13418_v12  ;;  %v10311_v31 = vadd.f32 %v3597_v36, %v13419_v41  ;;  %v8595_v30 = vld [vmem:[%s13050_s4 + $0x10] sm:$0xff]   ;;  %v3502_v21 = vmax.f32 %v1826_v1, 0.0  ;;  %v3566_v48 = vsub.f32 0.0, %v1826_v1  ;;  %v1648_v12 = vpop.f32.mrf.mxu0  ;;  %v1839_v54 = vpop.f32.mrf.mxu1 }
 0x163   : > { %13415 = vst [vmem:[#allocation4_spill] sm:$0xff] %v10300_v14  ;;  %2795 = vmatprep.mubr.bf16.mxu0 %v13421_v22  ;;  %7606 = vmatpush3.bf16.msra.mxu0 %v8593_v17  ;;  %v2430_v36 = vmax.f32 %v10262_v7, 0.0  ;;  %v1643_v45 = vadd.f32 %v1642_v16, %v9437_v61  ;;  %v13422_v34 = vunpack.c.h.bf16 %v13416_v42  ;;  %v2526_v41 = vmax.f32 %v2494_v25, 0.0  ;;  %v13423_v22 = vld [vmem:[#allocation34_spill] sm:$0xff]  ;;  %v10339_v14 = vld [vmem:[%s9396_s15 + $0x110] sm:$0xff]  }
 0x164   : > { %13420 = vst [vmem:[#allocation5_spill] sm:$0xff] %v10311_v31  ;;  %7607 = vmatprep.subr.bf16.mxu0 %v8594_v62  ;;  %v2495_v40 = vsub.f32 0.0, %v1834_v50  ;;  %v1649_v1 = vadd.f32 %v1648_v12, %v9437_v61  ;;  %v3503_v16 = vmax.f32 %v10272_v32, 0.0  ;;  %v10335_v0 = vadd.f32 %v1839_v54, %v1647_v13  ;;  %v1650_v62 = vpop.f32.mrf.mxu0  ;;  %v1841_v60 = vpop.f32.mrf.mxu1  ;;  %13424 = vst [vmem:[#allocation6_spill] sm:$0xff] %v10339_v14  ;;  %v8599_v12 = vld [vmem:[%s13050_s4 + $0x8] sm:$0xff]  }
 0x165   : > { %v10329_v17 = vadd.f32 %v2525_v29, %v13422_v34  ;;  %v3599_v42 = vmax.f32 %v3567_v20, 0.0  ;;  %v2431_v29 = vmax.f32 %v1834_v50, 0.0  ;;  %v1651_v25 = vadd.f32 %v1650_v62, %v9434_v56  ;;  %v13425_v32 = vld [vmem:[#allocation7_spill] sm:$0xff] }
 0x166   : > { %v10342_v34 = vadd.f32 %v1841_v60, %v1649_v1  ;;  %v13426_v13 = vunpack.c.l.bf16 %v13425_v32  ;;  %v10351_v7 = vmax.f32 %v3566_v48, 0.0  ;;  %v13430_v31 = vunpack.c.l.bf16 %v13429_v52  ;;  %v1652_v20 = vpop.f32.mrf.mxu0  ;;  %v1843_v1 = vpop.f32.mrf.mxu1  ;;  %v13439_v48 = vld [vmem:[#allocation10_spill] sm:$0xff] }
 0x167   : > { %7608 = vmatpush3.bf16.msra.mxu0 %v8595_v30  ;;  %v1836_v50 = vadd.f32 %v1835_v8, %v1643_v45  ;;  %v8602_v30 = vld [vmem:[%s13050_s4 + $0x40] sm:$0xff]   ;;  %v13431_v62 = vunpack.c.h.bf16 %v13429_v52  ;;  %v1844_v32 = vadd.f32 %v1843_v1, %v1651_v25  ;;  %v13435_v52 = vpack.c.bf16 %v9976_v18, %v9954_v24 }
 0x168   : > { %v10349_v54 = vadd.f32 %v3502_v21, %v13426_v13  ;;  %13428 = vst [vmem:[#allocation7_spill] sm:$0xff] %v10351_v7  ;;  %v10355_v46 = vadd.f32 %v2430_v36, %v13430_v31  ;;  %7609 = vmatprep.subr.bf16.mxu0 %v8598_v58  ;;  %v2527_v21 = vmax.f32 %v2495_v40, 0.0  ;;  %v13432_v36 = vld [vmem:[#allocation9_spill] sm:$0xff]  ;;  %v2496_v58 = vsub.f32 0.0, %v10335_v0  ;;  %v1656_v13 = vpop.f32.mrf.mxu0  ;;  %v8603_v18 = vld [vmem:[%s13050_s4] sm:$0xff]  }
 0x169   : > { %v10362_v60 = vadd.f32 %v2526_v41, %v13431_v62  ;;  %v13433_v8 = vunpack.c.l.bf16 %v13432_v36  ;;  %v10377_v40 = vld [vmem:[%s9396_s15 + $0x118] sm:$0xff]   ;;  %v13437_v62 = vunpack.c.h.bf16 %v13432_v36  ;;  %v3569_v25 = vsub.f32 0.0, %v10342_v34 }
 0x16a   : > { %13427 = vst [vmem:[#allocation34_spill] sm:$0xff] %v10349_v54  ;;  %v1845_v54 = vpop.f32.mrf.mxu1  ;;  %2796 = vmatmul.mubr.bf16.gmra.mxu0 %v13435_v52  ;;  %13436 = vst [vmem:[#allocation9_spill] sm:$0xff] %v10377_v40  ;;  %v1657_v1 = vadd.f32 %v1656_v13, %v9434_v56  ;;  %v13441_v24 = vpack.c.bf16 %v10047_v28, %v10024_v59  ;;  %v3504_v36 = vmax.f32 %v1836_v50, 0.0  ;;  %v3568_v52 = vsub.f32 0.0, %v1836_v50  ;;  %v1658_v28 = vpop.f32.mrf.mxu0 }
 0x16b   : > { %v10369_v45 = vadd.f32 %v3503_v16, %v13433_v8  ;;  %v10381_v31 = vadd.f32 %v3599_v42, %v13437_v62  ;;  %v13440_v16 = vunpack.c.l.bf16 %v13439_v48  ;;  %7610 = vmatpush3.bf16.msra.mxu0 %v8599_v12  ;;  %v8612_v42 = vld [vmem:[%s13052_s6 + $0x58] sm:$0xff]   ;;  %v2432_v13 = vmax.f32 %v10335_v0, 0.0 }
 0x16c   : > { %2803 = vmatprep.mubr.bf16.mxu0 %v13441_v24  ;;  %v1653_v59 = vadd.f32 %v1652_v20, %v9437_v61  ;;  %v1849_v12 = vpop.f32.mrf.mxu1  ;;  %7611 = vmatprep.subr.bf16.mxu0 %v8602_v30  ;;  %v8606_v62 = vld [vmem:[%s13050_s4 + $0x78] sm:$0xff]   ;;  %v2497_v41 = vsub.f32 0.0, %v1844_v32  ;;  %v2528_v50 = vmax.f32 %v2496_v58, 0.0  ;;  %v3505_v0 = vmax.f32 %v10342_v34, 0.0  ;;  %v1660_v7 = vpop.f32.mrf.mxu0 }
 0x16d   : > { %13434 = vst [vmem:[#allocation8_spill] sm:$0xff] %v10369_v45  ;;  %13438 = vst [vmem:[#allocation74_spill] sm:$0xff] %v10381_v31  ;;  %v10385_v8 = vadd.f32 %v2431_v29, %v13440_v16  ;;  %v8613_v29 = vld [vmem:[%s13052_s6 + $0x18] sm:$0xff]   ;;  %v13442_v16 = vunpack.c.h.bf16 %v13439_v48  ;;  %v1659_v31 = vadd.f32 %v1658_v28, %v9437_v61  ;;  %v1850_v45 = vadd.f32 %v1849_v12, %v1657_v1  ;;  %v13443_v1 = vld [vmem:[#allocation11_spill] sm:$0xff] }
 0x16e   : > { %7493 = vmatprep.subr.bf16.mxu1 %v8612_v42  ;;  %v2433_v20 = vmax.f32 %v1844_v32, 0.0  ;;  %v1851_v30 = vpop.f32.mrf.mxu1  ;;  %v13444_v42 = vunpack.c.l.bf16 %v13443_v1  ;;  %v10420_v34 = vmax.f32 %v3568_v52, 0.0  ;;  %v13447_v32 = vld [vmem:[#allocation12_spill] sm:$0xff]  ;;  %v1846_v63 = vadd.f32 %v1845_v54, %v1653_v59  ;;  %v13453_v54 = vld [vmem:[#allocation14_spill] sm:$0xff] }
 0x16f   : > { %v10408_v24 = vadd.f32 %v2527_v21, %v13442_v16  ;;  %7494 = vmatpush3.bf16.msra.mxu1 %v8613_v29  ;;  %v3601_v21 = vmax.f32 %v3569_v25, 0.0  ;;  %v1661_v16 = vadd.f32 %v1660_v7, %v9434_v56  ;;  %v1852_v38 = vadd.f32 %v1851_v30, %v1659_v31  ;;  %7612 = vmatpush3.bf16.msra.mxu0 %v8603_v18  ;;  %v1662_v29 = vpop.f32.mrf.mxu0  ;;  %v13450_v30 = vld [vmem:[#allocation13_spill] sm:$0xff] }
 0x170   : > { %v10418_v58 = vadd.f32 %v3504_v36, %v13444_v42  ;;  %13446 = vst [vmem:[#allocation11_spill] sm:$0xff] %v10420_v34  ;;  %v13448_v28 = vunpack.c.l.bf16 %v13447_v32  ;;  %v1853_v14 = vpop.f32.mrf.mxu1  ;;  %7821 = vmatprep.subr.bf16.mxu0 %v8606_v62  ;;  %v2529_v25 = vmax.f32 %v2497_v41, 0.0  ;;  %v2498_v7 = vsub.f32 0.0, %v1850_v45 }
 0x171   : > { %v13449_v36 = vunpack.c.h.bf16 %v13447_v32  ;;  %v13454_v59 = vunpack.c.l.bf16 %v13453_v54  ;;  %v1854_v62 = vadd.f32 %v1853_v14, %v1661_v16  ;;  %v1666_v41 = vpop.f32.mrf.mxu0  ;;  %v13455_v48 = vpack.c.bf16 %v10032_v47, %v10013_v53 }
 0x172   : > { %13445 = vst [vmem:[#allocation10_spill] sm:$0xff] %v10418_v58  ;;  %v10424_v12 = vadd.f32 %v2432_v13, %v13448_v28  ;;  %v13451_v13 = vunpack.c.l.bf16 %v13450_v30  ;;  %v1855_v28 = vpop.f32.mrf.mxu1  ;;  %v13456_v18 = vunpack.c.h.bf16 %v13450_v30  ;;  %v3570_v16 = vsub.f32 0.0, %v1846_v63 }
 0x173   : > { %v10434_v52 = vadd.f32 %v2528_v50, %v13449_v36  ;;  %v10442_v42 = vadd.f32 %v2433_v20, %v13454_v59  ;;  %2804 = vmatmul.mubr.bf16.gmra.mxu0 %v13455_v48  ;;  %v1663_v50 = vadd.f32 %v1662_v29, %v9437_v61  ;;  %v13458_v36 = vpack.c.bf16 %v10113_v19, %v10074_v6  ;;  %v1668_v53 = vpop.f32.mrf.mxu0  ;;  %v13465_v6 = vld [vmem:[#allocation16_spill] sm:$0xff] }
 0x174   : > { %v10438_v1 = vadd.f32 %v3505_v0, %v13451_v13  ;;  %v10449_v32 = vadd.f32 %v3601_v21, %v13456_v18  ;;  %v1667_v0 = vadd.f32 %v1666_v41, %v9434_v56  ;;  %v3506_v20 = vmax.f32 %v1846_v63, 0.0  ;;  %v1859_v47 = vpop.f32.mrf.mxu1 }
 0x175   : > { %2811 = vmatprep.mubr.bf16.mxu0 %v13458_v36  ;;  %v2434_v13 = vmax.f32 %v1850_v45, 0.0  ;;  %v2499_v59 = vsub.f32 0.0, %v1854_v62  ;;  %v13459_v48 = vunpack.c.h.bf16 %v13453_v54  ;;  %v2530_v29 = vmax.f32 %v2498_v7, 0.0  ;;  %v1670_v36 = vpop.f32.mrf.mxu0  ;;  %v13461_v7 = vld [vmem:[#allocation15_spill] sm:$0xff] }
 0x176   : > { %13452 = vst [vmem:[#allocation12_spill] sm:$0xff] %v10438_v1  ;;  %13457 = vst [vmem:[#allocation13_spill] sm:$0xff] %v10449_v32  ;;  %v1669_v18 = vadd.f32 %v1668_v53, %v9437_v61  ;;  %v1860_v30 = vadd.f32 %v1859_v47, %v1667_v0  ;;  %v3507_v19 = vmax.f32 %v1852_v38, 0.0  ;;  %v3571_v41 = vsub.f32 0.0, %v1852_v38  ;;  %v1861_v63 = vpop.f32.mrf.mxu1 }
 0x177   : > { %v10459_v21 = vadd.f32 %v2529_v25, %v13459_v48  ;;  %v2435_v14 = vmax.f32 %v1854_v62, 0.0  ;;  %v1856_v31 = vadd.f32 %v1855_v28, %v1663_v50  ;;  %v1671_v54 = vadd.f32 %v1670_v36, %v9434_v56  ;;  %v10467_v48 = vld [vmem:[%s9396_s15 + $0x150] sm:$0xff]   ;;  %v1672_v58 = vpop.f32.mrf.mxu0  ;;  %v10486_v36 = vld [vmem:[%s9396_s15 + $0x2c] ss:$268 sps:$4 sm:$0xff]  }
 0x178   : > { %v1862_v25 = vadd.f32 %v1861_v63, %v1669_v18  ;;  %13460 = vst [vmem:[#allocation14_spill] sm:$0xff] %v10467_v48  ;;  %v13462_v53 = vunpack.c.l.bf16 %v13461_v7  ;;  %v10473_v47 = vmax.f32 %v3570_v16, 0.0  ;;  %v13466_v38 = vunpack.c.l.bf16 %v13465_v6  ;;  %v1863_v45 = vpop.f32.mrf.mxu1  ;;  %13468 = vst [vmem:[#allocation16_spill] sm:$0xff] %v10486_v36  ;;  %v13469_v16 = vld [vmem:[#allocation17_spill] sm:$0xff] }
 0x179   : > { %v2531_v1 = vmax.f32 %v2499_v59, 0.0  ;;  %v13467_v62 = vunpack.c.h.bf16 %v13465_v6  ;;  %v2500_v50 = vsub.f32 0.0, %v1860_v30  ;;  %v13470_v63 = vunpack.c.l.bf16 %v13469_v16  ;;  %v10520_v36 = vld [vmem:[%s9396_s15 + $0x158] sm:$0xff]  }
 0x17a   : > { %v10471_v0 = vadd.f32 %v3506_v20, %v13462_v53  ;;  %13464 = vst [vmem:[#allocation75_spill] sm:$0xff] %v10473_v47  ;;  %v10477_v32 = vadd.f32 %v2434_v13, %v13466_v38  ;;  %v3603_v13 = vmax.f32 %v3571_v41, 0.0  ;;  %v1864_v59 = vadd.f32 %v1863_v45, %v1671_v54  ;;  %v1676_v53 = vpop.f32.mrf.mxu0  ;;  %v1865_v38 = vpop.f32.mrf.mxu1  ;;  %13479 = vst [vmem:[#allocation76_spill] sm:$0xff] %v10520_v36 }
 0x17b   : > { %v10481_v28 = vadd.f32 %v2530_v29, %v13467_v62  ;;  %v10491_v7 = vadd.f32 %v3507_v19, %v13470_v63  ;;  %v13472_v29 = vpack.c.bf16 %v10092_v2, %v10070_v26  ;;  %v13473_v62 = vld [vmem:[#allocation18_spill] sm:$0xff]  ;;  %v3573_v20 = vsub.f32 0.0, %v1862_v25 }
 0x17c   : > { %13463 = vst [vmem:[#allocation15_spill] sm:$0xff] %v10471_v0  ;;  %v13474_v18 = vunpack.c.l.bf16 %v13473_v62  ;;  %v3508_v0 = vmax.f32 %v1856_v31, 0.0  ;;  %v1677_v34 = vadd.f32 %v1676_v53, %v9434_v56  ;;  %v13475_v19 = vpack.c.bf16 %v10183_v4, %v10147_v10  ;;  %v1678_v63 = vpop.f32.mrf.mxu0 }
 0x17d   : > { %13471 = vst [vmem:[#allocation17_spill] sm:$0xff] %v10491_v7  ;;  %2812 = vmatmul.mubr.bf16.gmra.mxu0 %v13472_v29  ;;  %v13476_v41 = vunpack.c.h.bf16 %v13473_v62  ;;  %v3572_v26 = vsub.f32 0.0, %v1856_v31  ;;  %v2436_v2 = vmax.f32 %v1860_v30, 0.0  ;;  %v1673_v54 = vadd.f32 %v1672_v58, %v9437_v61 }
 0x17e   : > { %v10499_v47 = vadd.f32 %v2435_v14, %v13474_v18  ;;  %2819 = vmatprep.mubr.bf16.mxu0 %v13475_v19  ;;  %v1869_v14 = vpop.f32.mrf.mxu1  ;;  %v2532_v18 = vmax.f32 %v2500_v50, 0.0  ;;  %v2501_v29 = vsub.f32 0.0, %v1864_v59  ;;  %v1679_v6 = vadd.f32 %v1678_v63, %v9437_v61 }
 0x17f   : > { %v10507_v45 = vadd.f32 %v2531_v1, %v13476_v41  ;;  %v1870_v53 = vadd.f32 %v1869_v14, %v1677_v34  ;;  %v13477_v7 = vunpack.c.h.bf16 %v13469_v16  ;;  %v3509_v4 = vmax.f32 %v1862_v25, 0.0  ;;  %v1680_v1 = vpop.f32.mrf.mxu0  ;;  %v8616_v34 = vld [vmem:[%s13052_s6 + $0x50] sm:$0xff]   ;;  %v13480_v16 = vld [vmem:[#allocation19_spill] sm:$0xff] }
 0x180   : > { %v2437_v62 = vmax.f32 %v1864_v59, 0.0  ;;  %v1871_v19 = vpop.f32.mrf.mxu1  ;;  %v3605_v30 = vmax.f32 %v3573_v20, 0.0  ;;  %v1681_v50 = vadd.f32 %v1680_v1, %v9434_v56  ;;  %v8617_v25 = vld [vmem:[%s13052_s6 + $0x10] sm:$0xff]   ;;  %v10532_v59 = vmax.f32 %v3572_v26, 0.0  ;;  %7495 = vmatprep.subr.bf16.mxu1 %v8616_v34  ;;  %v13487_v26 = vld [vmem:[#allocation21_spill] sm:$0xff] }
 0x181   : > { %v10513_v10 = vadd.f32 %v3603_v13, %v13477_v7  ;;  %v1872_v41 = vadd.f32 %v1871_v19, %v1679_v6  ;;  %v13481_v7 = vunpack.c.l.bf16 %v13480_v16  ;;  %v13484_v20 = vld [vmem:[#allocation20_spill] sm:$0xff]  ;;  %v1866_v6 = vadd.f32 %v1865_v38, %v1673_v54  ;;  %v1682_v1 = vpop.f32.mrf.mxu0  ;;  %7496 = vmatpush3.bf16.msra.mxu1 %v8617_v25 }
 0x182   : > { %13483 = vst [vmem:[#allocation77_spill] sm:$0xff] %v10532_v59  ;;  %v13485_v63 = vunpack.c.l.bf16 %v13484_v20  ;;  %v1873_v19 = vpop.f32.mrf.mxu1  ;;  %v13486_v31 = vunpack.c.h.bf16 %v13484_v20  ;;  %v2502_v48 = vsub.f32 0.0, %v1870_v53  ;;  %v13488_v16 = vunpack.c.l.bf16 %v13487_v26 }
 0x183   : > { %13478 = vst [vmem:[#allocation18_spill] sm:$0xff] %v10513_v10  ;;  %v10530_v13 = vadd.f32 %v3508_v0, %v13481_v7  ;;  %v2533_v10 = vmax.f32 %v2501_v29, 0.0  ;;  %v1874_v54 = vadd.f32 %v1873_v19, %v1681_v50  ;;  %v10566_v19 = vld [vmem:[%s9396_s15 + $0x170] sm:$0xff]   ;;  %v1683_v25 = vadd.f32 %v1682_v1, %v9437_v61 }
 0x184   : > { %v10536_v14 = vadd.f32 %v2436_v2, %v13485_v63  ;;  %v10540_v58 = vadd.f32 %v2532_v18, %v13486_v31  ;;  %v10546_v7 = vadd.f32 %v3509_v4, %v13488_v16  ;;  %v13490_v2 = vld [vmem:[#allocation22_spill] sm:$0xff]  ;;  %v1875_v20 = vpop.f32.mrf.mxu1  ;;  %v13492_v18 = vpack.c.bf16 %v10155_v55, %v10136_v39 }
 0x185   : > { %13482 = vst [vmem:[#allocation19_spill] sm:$0xff] %v10530_v13  ;;  %v13491_v63 = vunpack.c.l.bf16 %v13490_v2  ;;  %v1686_v13 = vpop.f32.mrf.mxu0  ;;  %v13493_v31 = vunpack.c.h.bf16 %v13487_v26  ;;  %v3575_v4 = vsub.f32 0.0, %v1872_v41  ;;  %13496 = vst [vmem:[#allocation22_spill] sm:$0xff] %v10566_v19  ;;  %v3510_v39 = vmax.f32 %v1866_v6, 0.0 }
 0x186   : > { %13489 = vst [vmem:[#allocation20_spill] sm:$0xff] %v10546_v7  ;;  %2820 = vmatmul.mubr.bf16.gmra.mxu0 %v13492_v18  ;;  %v1687_v16 = vadd.f32 %v1686_v13, %v9434_v56  ;;  %v3574_v55 = vsub.f32 0.0, %v1866_v6  ;;  %v1879_v26 = vpop.f32.mrf.mxu1  ;;  %v2534_v13 = vmax.f32 %v2502_v48, 0.0  ;;  %v2503_v29 = vsub.f32 0.0, %v1874_v54 }
 0x187   : > { %v10550_v38 = vadd.f32 %v2437_v62, %v13491_v63  ;;  %v10558_v34 = vadd.f32 %v3605_v30, %v13493_v31  ;;  %v13495_v62 = vpack.c.bf16 %v10259_v33, %v10216_v35  ;;  %v2438_v63 = vmax.f32 %v1870_v53, 0.0  ;;  %v1688_v18 = vpop.f32.mrf.mxu0 }
 0x188   : > { %v13497_v30 = vunpack.c.h.bf16 %v13490_v2  ;;  %v1689_v35 = vadd.f32 %v1688_v18, %v9437_v61  ;;  %v1880_v50 = vadd.f32 %v1879_v26, %v1687_v16  ;;  %v1881_v6 = vpop.f32.mrf.mxu1  ;;  %v3607_v1 = vmax.f32 %v3575_v4, 0.0  ;;  %v13502_v18 = vld [vmem:[#allocation24_spill] sm:$0xff] }
 0x189   : > { %13494 = vst [vmem:[#allocation21_spill] sm:$0xff] %v10558_v34  ;;  %2827 = vmatprep.mubr.bf16.mxu0 %v13495_v62  ;;  %v3511_v62 = vmax.f32 %v1872_v41, 0.0  ;;  %v1690_v0 = vpop.f32.mrf.mxu0  ;;  %v2439_v34 = vmax.f32 %v1874_v54, 0.0  ;;  %v10582_v59 = vmax.f32 %v3574_v55, 0.0  ;;  %v13503_v36 = vunpack.c.l.bf16 %v13502_v18  ;;  %v13505_v55 = vld [vmem:[#allocation25_spill] sm:$0xff] }
 0x18a   : > { %v10571_v31 = vadd.f32 %v2533_v10, %v13497_v30  ;;  %v1691_v7 = vadd.f32 %v1690_v0, %v9434_v56  ;;  %v1882_v2 = vadd.f32 %v1881_v6, %v1689_v35  ;;  %v13498_v10 = vld [vmem:[#allocation23_spill] sm:$0xff]  ;;  %v1876_v16 = vadd.f32 %v1875_v20, %v1683_v25  ;;  %v1883_v33 = vpop.f32.mrf.mxu1 }
 0x18b   : > { %v13499_v30 = vunpack.c.h.bf16 %v13498_v10  ;;  %13501 = vst [vmem:[#allocation78_spill] sm:$0xff] %v10582_v59  ;;  %v10586_v41 = vadd.f32 %v2438_v63, %v13503_v36  ;;  %v1692_v26 = vpop.f32.mrf.mxu0  ;;  %v13504_v4 = vunpack.c.h.bf16 %v13502_v18  ;;  %v2535_v0 = vmax.f32 %v2503_v29, 0.0  ;;  %v10604_v29 = vld [vmem:[%s9396_s15 + $0x6c] ss:$268 sps:$4 sm:$0xff]  }
 0x18c   : > { %v13506_v6 = vunpack.c.l.bf16 %v13505_v55  ;;  %v2504_v53 = vsub.f32 0.0, %v1880_v50  ;;  %v1693_v36 = vadd.f32 %v1692_v26, %v9437_v61  ;;  %v1884_v20 = vadd.f32 %v1883_v33, %v1691_v7  ;;  %v1885_v25 = vpop.f32.mrf.mxu1 }
 0x18d   : > { %v10580_v48 = vadd.f32 %v3510_v39, %v13499_v30  ;;  %v10590_v54 = vadd.f32 %v2534_v13, %v13504_v4  ;;  %v1696_v63 = vpop.f32.mrf.mxu0  ;;  %v13508_v13 = vpack.c.bf16 %v10236_v44, %v10209_v3  ;;  %v13509_v18 = vunpack.c.h.bf16 %v13505_v55  ;;  %v13511_v39 = vld [vmem:[#allocation26_spill] sm:$0xff] }
 0x18e   : > { %v10597_v30 = vadd.f32 %v3511_v62, %v13506_v6  ;;  %v13512_v62 = vunpack.c.l.bf16 %v13511_v39  ;;  %v1697_v26 = vadd.f32 %v1696_v63, %v9434_v56  ;;  %v13513_v7 = vpack.c.bf16 %v10329_v17, %v10296_v9  ;;  %v1889_v55 = vpop.f32.mrf.mxu1 }
 0x18f   : > { %13500 = vst [vmem:[#allocation23_spill] sm:$0xff] %v10580_v48  ;;  %2828 = vmatmul.mubr.bf16.gmra.mxu0 %v13508_v13  ;;  %v10608_v4 = vadd.f32 %v3607_v1, %v13509_v18  ;;  %v3512_v3 = vmax.f32 %v1876_v16, 0.0  ;;  %v3576_v44 = vsub.f32 0.0, %v1876_v16  ;;  %v3577_v13 = vsub.f32 0.0, %v1882_v2  ;;  %v10620_v1 = vld [vmem:[%s9396_s15 + $0x190] sm:$0xff]  }
 0x190   : > { %13507 = vst [vmem:[#allocation24_spill] sm:$0xff] %v10597_v30  ;;  %v10612_v6 = vadd.f32 %v2439_v34, %v13512_v62  ;;  %2835 = vmatprep.mubr.bf16.mxu0 %v13513_v7  ;;  %v2505_v35 = vsub.f32 0.0, %v1884_v20  ;;  %v1698_v30 = vpop.f32.mrf.mxu0  ;;  %13514 = vst [vmem:[#allocation26_spill] sm:$0xff] %v10620_v1  ;;  %v13515_v18 = vunpack.c.h.bf16 %v13511_v39  ;;  %v2440_v62 = vmax.f32 %v1880_v50, 0.0  ;;  %v1891_v59 = vpop.f32.mrf.mxu1 }
 0x191   : > { %13510 = vst [vmem:[#allocation25_spill] sm:$0xff] %v10608_v4  ;;  %v1699_v63 = vadd.f32 %v1698_v30, %v9437_v61  ;;  %v1890_v4 = vadd.f32 %v1889_v55, %v1697_v26  ;;  %v2536_v9 = vmax.f32 %v2504_v53, 0.0  ;;  %v3513_v17 = vmax.f32 %v1882_v2, 0.0  ;;  %v13520_v55 = vld [vmem:[#allocation27_spill] sm:$0xff] }
 0x192   : > { %v10624_v34 = vadd.f32 %v2535_v0, %v13515_v18  ;;  %v2441_v7 = vmax.f32 %v1884_v20, 0.0  ;;  %v1886_v33 = vadd.f32 %v1885_v25, %v1693_v36  ;;  %v1700_v16 = vpop.f32.mrf.mxu0  ;;  %v13516_v50 = vunpack.c.h.bf16 %v9687_v57  ;;  %v1893_v20 = vpop.f32.mrf.mxu1  ;;  %v10636_v36 = vld [vmem:[%s9396_s15 + $0x198] sm:$0xff]  }
 0x193   : > { %v1701_v19 = vadd.f32 %v1700_v16, %v9434_v56  ;;  %v1892_v40 = vadd.f32 %v1891_v59, %v1699_v63  ;;  %v3609_v30 = vmax.f32 %v3577_v13, 0.0  ;;  %v2537_v53 = vmax.f32 %v2505_v35, 0.0  ;;  %13518 = vst [vmem:[#allocation80_spill] sm:$0xff] %v10636_v36  ;;  %v13524_v35 = vld [vmem:[#allocation28_spill] sm:$0xff] }
 0x194   : > { %v10633_v39 = vadd.f32 %v3512_v3, %v13516_v50  ;;  %v2506_v26 = vsub.f32 0.0, %v1890_v4  ;;  %v1702_v2 = vpop.f32.mrf.mxu0  ;;  %v10638_v25 = vmax.f32 %v3576_v44, 0.0  ;;  %v13521_v18 = vunpack.c.l.bf16 %v13520_v55  ;;  %v13527_v50 = vld [vmem:[#allocation29_spill] sm:$0xff] }
 0x195   : > { %v13523_v3 = vunpack.c.h.bf16 %v13520_v55  ;;  %v13525_v63 = vunpack.c.l.bf16 %v13524_v35  ;;  %v13528_v44 = vunpack.c.l.bf16 %v13527_v50  ;;  %v13529_v56 = vpack.c.bf16 %v10304_v37, %v10285_v43  ;;  %v10684_v43 = vld [vmem:[%s9396_s15 + $0x1b0] sm:$0xff]  }
 0x196   : > { %13517 = vst [vmem:[#allocation79_spill] sm:$0xff] %v10633_v39  ;;  %13519 = vst [vmem:[#allocation81_spill] sm:$0xff] %v10638_v25  ;;  %v10642_v48 = vadd.f32 %v2440_v62, %v13521_v18  ;;  %v3514_v25 = vmax.f32 %v1886_v33, 0.0  ;;  %v1895_v62 = vpop.f32.mrf.mxu1  ;;  %v1932_v18 = vpop.f32.mrf.mxu0  ;;  %v3578_v55 = vsub.f32 0.0, %v1886_v33  ;;  %v13532_v37 = vunpack.c.h.bf16 %v13524_v35 }
 0x197   : > { %v10649_v13 = vadd.f32 %v2536_v9, %v13523_v3  ;;  %v10653_v16 = vadd.f32 %v3513_v17, %v13525_v63  ;;  %v10657_v0 = vadd.f32 %v2441_v7, %v13528_v44  ;;  %2836 = vmatmul.mubr.bf16.gmra.mxu0 %v13529_v56  ;;  %v8620_v9 = vld [vmem:[%s13052_s6 + $0x48] sm:$0xff]   ;;  %v1894_v3 = vadd.f32 %v1893_v20, %v1701_v19  ;;  %v13530_v7 = vld [vmem:[#allocation33_spill] sm:$0xff] }
 0x198   : > { %13522 = vst [vmem:[#allocation27_spill] sm:$0xff] %v10642_v48  ;;  %v8621_v17 = vld [vmem:[%s13052_s6 + $0x8] sm:$0xff]   ;;  %v1933_v63 = vadd.f32 %v1932_v18, %v13530_v7  ;;  %v13531_v44 = vpack.c.bf16 %v10408_v24, %v10362_v60  ;;  %v10675_v56 = vadd.f32 %v3609_v30, %v13532_v37  ;;  %v13534_v59 = vunpack.c.h.bf16 %v13527_v50  ;;  %v1934_v1 = vpop.f32.mrf.mxu0  ;;  %v2125_v19 = vpop.f32.mrf.mxu1  ;;  %7497 = vmatprep.subr.bf16.mxu1 %v8620_v9  ;;  %v13535_v24 = vld [vmem:[#allocation36_spill] sm:$0xff]  ;;  %v13540_v9 = vld [vmem:[#allocation30_spill] sm:$0xff] }
 0x199   : > { %13526 = vst [vmem:[#allocation28_spill] sm:$0xff] %v10653_v16  ;;  %v2442_v39 = vmax.f32 %v1890_v4, 0.0  ;;  %v2538_v33 = vmax.f32 %v2506_v26, 0.0  ;;  %v3515_v20 = vmax.f32 %v1892_v40, 0.0  ;;  %v3579_v18 = vsub.f32 0.0, %v1892_v40  ;;  %13536 = vst [vmem:[#allocation33_spill] sm:$0xff] %v10684_v43  ;;  %7498 = vmatpush3.bf16.msra.mxu1 %v8621_v17 }
 0x19a   : > { %2843 = vmatprep.mubr.bf16.mxu0 %v13531_v44  ;;  %13533 = vst [vmem:[#allocation29_spill] sm:$0xff] %v10675_v56  ;;  %v10679_v16 = vadd.f32 %v2537_v53, %v13534_v59  ;;  %v1703_v60 = vadd.f32 %v1702_v2, %v9437_v61  ;;  %v1935_v44 = vadd.f32 %v1934_v1, %v13535_v24  ;;  %v13537_v53 = vunpack.c.h.bf16 %v9708_v15  ;;  %v1936_v26 = vpop.f32.mrf.mxu0  ;;  %v2127_v35 = vpop.f32.mrf.mxu1  ;;  %v13543_v50 = vld [vmem:[#allocation31_spill] sm:$0xff] }
 0x19b   : > { %v2126_v4 = vadd.f32 %v2125_v19, %v1933_v63  ;;  %v10693_v40 = vmax.f32 %v3578_v55, 0.0  ;;  %v2507_v61 = vsub.f32 0.0, %v1894_v3  ;;  %v1937_v1 = vadd.f32 %v1936_v26, %v13530_v7  ;;  %v13549_v55 = vld [vmem:[#allocation42_spill] sm:$0xff] }
 0x19c   : > { %v10690_v59 = vadd.f32 %v3514_v25, %v13537_v53  ;;  %v10696_v2 = vadd.f32 %v2127_v35, %v1935_v44  ;;  %v13541_v17 = vunpack.c.l.bf16 %v13540_v9  ;;  %v13542_v30 = vunpack.c.h.bf16 %v13540_v9  ;;  %v1938_v63 = vpop.f32.mrf.mxu0  ;;  %v2129_v19 = vpop.f32.mrf.mxu1  ;;  %v13547_v53 = vld [vmem:[#allocation2_spill] sm:$0xff] }
 0x19d   : > { %13539 = vst [vmem:[#allocation82_spill] sm:$0xff] %v10693_v40  ;;  %v13544_v56 = vunpack.c.l.bf16 %v13543_v50  ;;  %v3611_v44 = vmax.f32 %v3579_v18, 0.0  ;;  %v2443_v35 = vmax.f32 %v1894_v3, 0.0  ;;  %v1896_v40 = vadd.f32 %v1895_v62, %v1703_v60 }
 0x19e   : > { %13538 = vst [vmem:[#allocation36_spill] sm:$0xff] %v10690_v59  ;;  %v10700_v37 = vadd.f32 %v2442_v39, %v13541_v17  ;;  %v10704_v25 = vadd.f32 %v2538_v33, %v13542_v30  ;;  %v4686_v39 = vmax.f32 %v2126_v4, 0.0  ;;  %v1939_v17 = vadd.f32 %v1938_v63, %v13535_v24  ;;  %v1942_v33 = vpop.f32.mrf.mxu0  ;;  %v2131_v30 = vpop.f32.mrf.mxu1 }
 0x19f   : > { %v10711_v26 = vadd.f32 %v3515_v20, %v13544_v56  ;;  %v2130_v9 = vadd.f32 %v2129_v19, %v1937_v1  ;;  %v13546_v59 = vpack.c.bf16 %v10385_v8, %v10355_v46  ;;  %v13548_v36 = vunpack.c.l.bf16 %v13547_v53  ;;  %v13555_v19 = vld [vmem:[#allocation32_spill] sm:$0xff] }
 0x1a0   : > { %v2539_v56 = vmax.f32 %v2507_v61, 0.0  ;;  %v4750_v20 = vsub.f32 0.0, %v2126_v4  ;;  %v1943_v3 = vadd.f32 %v1942_v33, %v13530_v7  ;;  %v13551_v62 = vpack.c.bf16 %v10459_v21, %v10434_v52  ;;  %v1944_v8 = vpop.f32.mrf.mxu0  ;;  %v13557_v33 = vld [vmem:[#allocation35_spill] sm:$0xff] }
 0x1a1   : > { %13545 = vst [vmem:[#allocation30_spill] sm:$0xff] %v10711_v26  ;;  %2844 = vmatmul.mubr.bf16.gmra.mxu0 %v13546_v59  ;;  %v10720_v48 = vadd.f32 %v13549_v55, %v13548_v36  ;;  %v5887_v60 = vmax.f32 %v10696_v2, 0.0  ;;  %v4687_v1 = vmax.f32 %v2130_v9, 0.0  ;;  %v10728_v46 = vadd.f32 %v2131_v30, %v1939_v17  ;;  %v2135_v59 = vpop.f32.mrf.mxu1  ;;  %v13560_v30 = vld [vmem:[#allocation40_spill] sm:$0xff] }
 0x1a2   : > { %2851 = vmatprep.mubr.bf16.mxu0 %v13551_v62  ;;  %v13553_v4 = vunpack.c.h.bf16 %v13543_v50  ;;  %v13556_v53 = vunpack.c.l.bf16 %v13555_v19  ;;  %v3516_v21 = vmax.f32 %v1896_v40, 0.0  ;;  %v1945_v55 = vadd.f32 %v1944_v8, %v13535_v24 }
 0x1a3   : > { %13550 = vst [vmem:[#allocation31_spill] sm:$0xff] %v10720_v48  ;;  %v13558_v62 = vunpack.c.l.bf16 %v13557_v33  ;;  %v13561_v18 = vunpack.c.l.bf16 %v13560_v30  ;;  %v5888_v50 = vmax.f32 %v10728_v46, 0.0  ;;  %v2137_v36 = vpop.f32.mrf.mxu1 }
 0x1a4   : > { %v10734_v61 = vadd.f32 %v3611_v44, %v13553_v4  ;;  %v10738_v52 = vadd.f32 %v2443_v35, %v13556_v53  ;;  %v2136_v44 = vadd.f32 %v2135_v59, %v1943_v3  ;;  %v1946_v4 = vpop.f32.mrf.mxu0  ;;  %v13563_v35 = vunpack.c.h.bf16 %v13555_v19  ;;  %v10768_v19 = vld [vmem:[%s9396_s15 + $0xac] ss:$268 sps:$4 sm:$0xff]  }
 0x1a5   : > { %v10743_v17 = vadd.f32 %v4686_v39, %v13558_v62  ;;  %v10747_v26 = vadd.f32 %v4687_v1, %v13561_v18  ;;  %v1947_v8 = vadd.f32 %v1946_v4, %v13530_v7  ;;  %v10755_v43 = vadd.f32 %v2137_v36, %v1945_v55  ;;  %v13564_v62 = vld [vmem:[#allocation39_spill] sm:$0xff] }
 0x1a6   : > { %13554 = vst [vmem:[#allocation2_spill] sm:$0xff] %v10734_v61  ;;  %v10752_v53 = vadd.f32 %v2539_v56, %v13563_v35  ;;  %v3580_v61 = vsub.f32 0.0, %v1896_v40  ;;  %v4782_v39 = vmax.f32 %v4750_v20, 0.0  ;;  %v13565_v63 = vunpack.c.l.bf16 %v13564_v62  ;;  %v1948_v59 = vpop.f32.mrf.mxu0  ;;  %v2139_v56 = vpop.f32.mrf.mxu1 }
 0x1a7   : > { %13559 = vst [vmem:[#allocation42_spill] sm:$0xff] %v10743_v17  ;;  %13562 = vst [vmem:[#allocation32_spill] sm:$0xff] %v10747_v26  ;;  %v13567_v3 = vunpack.c.l.bf16 %v13498_v10  ;;  %v5951_v20 = vsub.f32 0.0, %v10696_v2  ;;  %v4751_v36 = vsub.f32 0.0, %v2130_v9  ;;  %v4688_v55 = vmax.f32 %v2136_v44, 0.0 }
 0x1a8   : > { %v10759_v48 = vadd.f32 %v5887_v60, %v13565_v63  ;;  %v1949_v10 = vadd.f32 %v1948_v59, %v13535_v24  ;;  %v1952_v4 = vpop.f32.mrf.mxu0  ;;  %v2141_v35 = vpop.f32.mrf.mxu1  ;;  %v13570_v18 = vunpack.c.h.bf16 %v13423_v22  ;;  %v10784_v2 = vmax.f32 %v3580_v61, 0.0 }
 0x1a9   : > { %v10765_v1 = vadd.f32 %v5888_v50, %v13567_v3  ;;  %v2140_v50 = vadd.f32 %v2139_v56, %v1947_v8  ;;  %v13569_v3 = vpack.c.bf16 %v10442_v42, %v10424_v12  ;;  %v4752_v9 = vsub.f32 0.0, %v2136_v44 }
 0x1aa   : > { %13566 = vst [vmem:[#allocation35_spill] sm:$0xff] %v10759_v48  ;;  %v10782_v40 = vadd.f32 %v3516_v21, %v13570_v18  ;;  %v1953_v60 = vadd.f32 %v1952_v4, %v13530_v7  ;;  %v13571_v63 = vpack.c.bf16 %v10507_v45, %v10481_v28  ;;  %v13572_v8 = vunpack.c.h.bf16 %v13557_v33  ;;  %v1954_v42 = vpop.f32.mrf.mxu0  ;;  %v2145_v21 = vpop.f32.mrf.mxu1  ;;  %v8624_v28 = vld [vmem:[%s13052_s6 + $0x40] sm:$0xff]  }
 0x1ab   : > { %13568 = vst [vmem:[#allocation40_spill] sm:$0xff] %v10765_v1  ;;  %2852 = vmatmul.mubr.bf16.gmra.mxu0 %v13569_v3  ;;  %v4689_v56 = vmax.f32 %v2140_v50, 0.0  ;;  %v10794_v12 = vadd.f32 %v2141_v35, %v1949_v10  ;;  %v5983_v44 = vmax.f32 %v5951_v20, 0.0  ;;  %v4783_v18 = vmax.f32 %v4751_v36, 0.0  ;;  %v8625_v45 = vld [vmem:[%s13052_s6] sm:$0xff]   ;;  %7499 = vmatprep.subr.bf16.mxu1 %v8624_v28 }
 0x1ac   : > { %2859 = vmatprep.mubr.bf16.mxu0 %v13571_v63  ;;  %v10792_v59 = vadd.f32 %v4782_v39, %v13572_v8  ;;  %v1955_v4 = vadd.f32 %v1954_v42, %v13535_v24  ;;  %v2146_v3 = vadd.f32 %v2145_v21, %v1953_v60  ;;  %v5952_v33 = vsub.f32 0.0, %v10728_v46  ;;  %v13573_v39 = vld [vmem:[#allocation45_spill] sm:$0xff]  ;;  %v1956_v35 = vpop.f32.mrf.mxu0  ;;  %v2147_v8 = vpop.f32.mrf.mxu1  ;;  %v10816_v42 = vld [vmem:[%s9396_s15 + $0x1d0] sm:$0xff]   ;;  %7500 = vmatpush3.bf16.msra.mxu1 %v8625_v45 }
 0x1ad   : > { %v13574_v63 = vunpack.c.l.bf16 %v13573_v39  ;;  %v13576_v20 = vunpack.c.l.bf16 %v9942_v49  ;;  %v5890_v60 = vmax.f32 %v10794_v12, 0.0  ;;  %v4784_v21 = vmax.f32 %v4752_v9, 0.0 }
 0x1ae   : > { %v5953_v61 = vsub.f32 0.0, %v10755_v43  ;;  %v1957_v48 = vadd.f32 %v1956_v35, %v13530_v7  ;;  %v10820_v46 = vadd.f32 %v2147_v8, %v1955_v4  ;;  %v1958_v17 = vpop.f32.mrf.mxu0  ;;  %v2149_v9 = vpop.f32.mrf.mxu1  ;;  %v13580_v26 = vunpack.c.h.bf16 %v13564_v62 }
 0x1af   : > { %v10808_v10 = vadd.f32 %v4688_v55, %v13574_v63  ;;  %v10812_v36 = vadd.f32 %v4689_v56, %v13576_v20  ;;  %v5889_v55 = vmax.f32 %v10755_v43, 0.0  ;;  %v4753_v63 = vsub.f32 0.0, %v2140_v50 }
 0x1b0   : > { %v13578_v20 = vunpack.c.l.bf16 %v9687_v57  ;;  %v10831_v35 = vadd.f32 %v5983_v44, %v13580_v26  ;;  %v13582_v4 = vunpack.c.h.bf16 %v13560_v30  ;;  %v4690_v43 = vmax.f32 %v2146_v3, 0.0  ;;  %v2151_v56 = vpop.f32.mrf.mxu1  ;;  %v10848_v30 = vld [vmem:[%s9396_s15 + $0x1d8] sm:$0xff]  }
 0x1b1   : > { %13575 = vst [vmem:[#allocation39_spill] sm:$0xff] %v10808_v10  ;;  %13577 = vst [vmem:[#allocation45_spill] sm:$0xff] %v10812_v36  ;;  %v10838_v8 = vmax.f32 %v5952_v33, 0.0  ;;  %v1959_v57 = vadd.f32 %v1958_v17, %v13535_v24  ;;  %v13584_v62 = vpack.c.bf16 %v10499_v47, %v10477_v32  ;;  %v13585_v44 = vunpack.c.h.bf16 %v13573_v39 }
 0x1b2   : > { %v10827_v1 = vadd.f32 %v5890_v60, %v13578_v20  ;;  %13581 = vst [vmem:[#allocation84_spill] sm:$0xff] %v10831_v35  ;;  %v10835_v28 = vadd.f32 %v4783_v18, %v13582_v4  ;;  %v10841_v60 = vadd.f32 %v2149_v9, %v1957_v48  ;;  %v1962_v20 = vpop.f32.mrf.mxu0  ;;  %v5985_v45 = vmax.f32 %v5953_v61, 0.0  ;;  %v13587_v9 = vld [vmem:[#allocation49_spill] sm:$0xff] }
 0x1b3   : > { %13583 = vst [vmem:[#allocation85_spill] sm:$0xff] %v10838_v8  ;;  %2860 = vmatmul.mubr.bf16.gmra.mxu0 %v13584_v62  ;;  %v10852_v18 = vadd.f32 %v4784_v21, %v13585_v44  ;;  %v4754_v33 = vsub.f32 0.0, %v2146_v3  ;;  %v1963_v17 = vadd.f32 %v1962_v20, %v13530_v7  ;;  %v13586_v48 = vpack.c.bf16 %v10571_v31, %v10540_v58  ;;  %v2155_v21 = vpop.f32.mrf.mxu1  ;;  %v13590_v3 = vld [vmem:[#allocation57_spill] sm:$0xff]  ;;  %v10886_v31 = vld [vmem:[%s9396_s15 + $0x1f0] sm:$0xff]  }
 0x1b4   : > { %13579 = vst [vmem:[#allocation83_spill] sm:$0xff] %v10827_v1  ;;  %v13588_v4 = vunpack.c.l.bf16 %v13587_v9  ;;  %v4785_v47 = vmax.f32 %v4753_v63, 0.0  ;;  %v4691_v62 = vmax.f32 %v10841_v60, 0.0  ;;  %v10863_v26 = vadd.f32 %v2151_v56, %v1959_v57  ;;  %v1964_v39 = vpop.f32.mrf.mxu0  ;;  %v10948_v35 = vld [vmem:[%s9396_s15 + $0xec] ss:$268 sps:$4 sm:$0xff]   ;;  %v13770_v8 = vld [vmem:[#allocation64_spill] sm:$0xff] }
 0x1b5   : > { %2867 = vmatprep.mubr.bf16.mxu0 %v13586_v48  ;;  %v5954_v61 = vsub.f32 0.0, %v10794_v12  ;;  %v13591_v20 = vunpack.c.l.bf16 %v13590_v3  ;;  %v1965_v58 = vadd.f32 %v1964_v39, %v13535_v24  ;;  %v2156_v57 = vadd.f32 %v2155_v21, %v1963_v17  ;;  %v13602_v17 = vld [vmem:[#allocation47_spill] sm:$0xff] }
 0x1b6   : > { %v10860_v32 = vadd.f32 %v5889_v55, %v13588_v4  ;;  %v13593_v55 = vunpack.c.l.bf16 %v10100_v51  ;;  %v5892_v56 = vmax.f32 %v10863_v26, 0.0  ;;  %v1966_v48 = vpop.f32.mrf.mxu0  ;;  %v2157_v4 = vpop.f32.mrf.mxu1  ;;  %v3456_v50 = vunpack.c.l.bf16 %v10604_v29 }
 0x1b7   : > { %v10868_v44 = vadd.f32 %v4690_v43, %v13591_v20  ;;  %v13595_v12 = vunpack.c.h.bf16 %v13587_v9  ;;  %v4786_v43 = vmax.f32 %v4754_v33, 0.0  ;;  %v1967_v39 = vadd.f32 %v1966_v48, %v13530_v7 }
 0x1b8   : > { %13589 = vst [vmem:[#allocation49_spill] sm:$0xff] %v10860_v32  ;;  %v10874_v63 = vadd.f32 %v4691_v62, %v13593_v55  ;;  %v10883_v20 = vadd.f32 %v2157_v4, %v1965_v58  ;;  %v13597_v62 = vunpack.c.h.bf16 %v9942_v49  ;;  %v13598_v21 = vunpack.c.l.bf16 %v9708_v15  ;;  %v2159_v9 = vpop.f32.mrf.mxu1 }
 0x1b9   : > { %13592 = vst [vmem:[#allocation57_spill] sm:$0xff] %v10868_v44  ;;  %v10880_v10 = vadd.f32 %v5985_v45, %v13595_v12  ;;  %v1968_v45 = vpop.f32.mrf.mxu0  ;;  %v10899_v48 = vmax.f32 %v5954_v61, 0.0  ;;  %v5891_v58 = vmax.f32 %v10820_v46, 0.0  ;;  %v5955_v4 = vsub.f32 0.0, %v10820_v46 }
 0x1ba   : > { %13594 = vst [vmem:[#allocation86_spill] sm:$0xff] %v10874_v63  ;;  %v10890_v55 = vadd.f32 %v4785_v47, %v13597_v62  ;;  %v10896_v36 = vadd.f32 %v5892_v56, %v13598_v21  ;;  %v4755_v49 = vsub.f32 0.0, %v10841_v60  ;;  %v8628_v47 = vld [vmem:[%s13052_s6 + $0x78] sm:$0xff]   ;;  %v4692_v12 = vmax.f32 %v2156_v57, 0.0  ;;  %v2161_v62 = vpop.f32.mrf.mxu1 }
 0x1bb   : > { %13596 = vst [vmem:[#allocation87_spill] sm:$0xff] %v10880_v10  ;;  %13600 = vst [vmem:[#allocation89_spill] sm:$0xff] %v10899_v48  ;;  %v2160_v15 = vadd.f32 %v2159_v9, %v1967_v39  ;;  %v1972_v56 = vpop.f32.mrf.mxu0  ;;  %v13601_v21 = vpack.c.bf16 %v10550_v38, %v10536_v14  ;;  %v10912_v33 = vadd.f32 %v13602_v17, %v3456_v50  ;;  %v13603_v46 = vunpack.c.h.bf16 %v13590_v3  ;;  %v13605_v3 = vld [vmem:[#allocation44_spill] sm:$0xff] }
 0x1bc   : > { %13599 = vst [vmem:[#allocation88_spill] sm:$0xff] %v10896_v36  ;;  %v4756_v44 = vsub.f32 0.0, %v2156_v57  ;;  %v1973_v63 = vadd.f32 %v1972_v56, %v13530_v7  ;;  %v13604_v39 = vpack.c.bf16 %v10624_v34, %v10590_v54  ;;  %7709 = vmatprep.subr.bf16.mxu1 %v8628_v47  ;;  %v5957_v14 = vsub.f32 0.0, %v10883_v20 }
 0x1bd   : > { %2868 = vmatmul.mubr.bf16.gmra.mxu0 %v13601_v21  ;;  %v10916_v60 = vadd.f32 %v4786_v43, %v13603_v46  ;;  %v1969_v38 = vadd.f32 %v1968_v45, %v13535_v24  ;;  %v4693_v50 = vmax.f32 %v2160_v15, 0.0  ;;  %v1974_v17 = vpop.f32.mrf.mxu0  ;;  %v2165_v21 = vpop.f32.mrf.mxu1  ;;  %v5987_v57 = vmax.f32 %v5955_v4, 0.0 }
 0x1be   : > { %2875 = vmatprep.mubr.bf16.mxu0 %v13604_v39  ;;  %v4787_v46 = vmax.f32 %v4755_v49, 0.0  ;;  %v1975_v56 = vadd.f32 %v1974_v17, %v13535_v24  ;;  %v2166_v61 = vadd.f32 %v2165_v21, %v1973_v63  ;;  %v5956_v54 = vsub.f32 0.0, %v10863_v26 }
 0x1bf   : > { %v13606_v34 = vunpack.c.l.bf16 %v10174_v11  ;;  %v13608_v45 = vunpack.c.l.bf16 %v10267_v5  ;;  %v4757_v9 = vsub.f32 0.0, %v2160_v15  ;;  %v1976_v10 = vpop.f32.mrf.mxu0  ;;  %v2167_v43 = vpop.f32.mrf.mxu1  ;;  %v4788_v4 = vmax.f32 %v4756_v44, 0.0  ;;  %v10951_v44 = vld [vmem:[%s9396_s15 + $0x210] sm:$0xff]  }
 0x1c0   : > { %v5893_v49 = vmax.f32 %v10883_v20, 0.0  ;;  %v1977_v63 = vadd.f32 %v1976_v10, %v13530_v7  ;;  %v10939_v17 = vadd.f32 %v2167_v43, %v1975_v56  ;;  %v13610_v26 = vunpack.c.l.bf16 %v10057_v27 }
 0x1c1   : > { %v10931_v47 = vadd.f32 %v4692_v12, %v13606_v34  ;;  %v10935_v39 = vadd.f32 %v4693_v50, %v13608_v45  ;;  %v5989_v12 = vmax.f32 %v5957_v14, 0.0  ;;  %v2162_v50 = vadd.f32 %v2161_v62, %v1969_v38  ;;  %v1978_v45 = vpop.f32.mrf.mxu0  ;;  %v2169_v15 = vpop.f32.mrf.mxu1 }
 0x1c2   : > { %v10943_v21 = vadd.f32 %v5891_v58, %v13610_v26  ;;  %v13612_v20 = vunpack.c.h.bf16 %v10057_v27  ;;  %v13614_v43 = vunpack.c.h.bf16 %v10100_v51  ;;  %v4758_v58 = vsub.f32 0.0, %v2166_v61  ;;  %v13618_v51 = vld [vmem:[#allocation68_spill] sm:$0xff] }
 0x1c3   : > { %13607 = vst [vmem:[#allocation47_spill] sm:$0xff] %v10931_v47  ;;  %13609 = vst [vmem:[#allocation44_spill] sm:$0xff] %v10935_v39  ;;  %v10962_v26 = vmax.f32 %v5956_v54, 0.0  ;;  %v4789_v62 = vmax.f32 %v4757_v9, 0.0  ;;  %v4694_v38 = vmax.f32 %v2166_v61, 0.0  ;;  %v2170_v34 = vadd.f32 %v2169_v15, %v1977_v63  ;;  %v1982_v47 = vpop.f32.mrf.mxu0  ;;  %v2171_v39 = vpop.f32.mrf.mxu1 }
 0x1c4   : > { %13611 = vst [vmem:[#allocation90_spill] sm:$0xff] %v10943_v21  ;;  %v10955_v10 = vadd.f32 %v5987_v57, %v13612_v20  ;;  %v10959_v56 = vadd.f32 %v4787_v46, %v13614_v43  ;;  %v13616_v36 = vpack.c.bf16 %v10612_v6, %v10586_v41  ;;  %v13617_v27 = vunpack.c.h.bf16 %v10174_v11 }
 0x1c5   : > { %13615 = vst [vmem:[#allocation92_spill] sm:$0xff] %v10962_v26  ;;  %v13619_v46 = vunpack.c.l.bf16 %v13618_v51  ;;  %v1983_v54 = vadd.f32 %v1982_v47, %v13530_v7  ;;  %v13621_v61 = vpack.c.bf16 %v10679_v16, %v10649_v13  ;;  %v13622_v63 = vunpack.c.h.bf16 %v13618_v51  ;;  %v2175_v15 = vpop.f32.mrf.mxu1  ;;  %v13625_v51 = vld [vmem:[#allocation6_spill] sm:$0xff] }
 0x1c6   : > { %13613 = vst [vmem:[#allocation91_spill] sm:$0xff] %v10955_v10  ;;  %2876 = vmatmul.mubr.bf16.gmra.mxu0 %v13616_v36  ;;  %v10969_v57 = vadd.f32 %v4788_v4, %v13617_v27  ;;  %v5894_v11 = vmax.f32 %v2162_v50, 0.0  ;;  %v5958_v6 = vsub.f32 0.0, %v2162_v50  ;;  %v4695_v36 = vmax.f32 %v2170_v34, 0.0  ;;  %v1984_v4 = vpop.f32.mrf.mxu0 }
 0x1c7   : > { %v10973_v20 = vadd.f32 %v5893_v49, %v13619_v46  ;;  %2883 = vmatprep.mubr.bf16.mxu0 %v13621_v61  ;;  %v10982_v41 = vadd.f32 %v5989_v12, %v13622_v63  ;;  %v4790_v49 = vmax.f32 %v4758_v58, 0.0  ;;  %v1979_v43 = vadd.f32 %v1978_v45, %v13535_v24  ;;  %v2177_v9 = vpop.f32.mrf.mxu1  ;;  %v11000_v45 = vld [vmem:[%s9396_s15 + $0x218] sm:$0xff]  }
 0x1c8   : > { %v1985_v47 = vadd.f32 %v1984_v4, %v13535_v24  ;;  %v13624_v16 = vunpack.c.h.bf16 %v10267_v5  ;;  %v13626_v12 = vunpack.c.l.bf16 %v13625_v51  ;;  %v13628_v50 = vunpack.c.l.bf16 %v10427_v23  ;;  %v1986_v58 = vpop.f32.mrf.mxu0 }
 0x1c9   : > { %13620 = vst [vmem:[#allocation68_spill] sm:$0xff] %v10973_v20  ;;  %13623 = vst [vmem:[#allocation93_spill] sm:$0xff] %v10982_v41  ;;  %v2176_v63 = vadd.f32 %v2175_v15, %v1983_v54  ;;  %v5895_v4 = vmax.f32 %v10939_v17, 0.0  ;;  %v5959_v5 = vsub.f32 0.0, %v10939_v17  ;;  %v4759_v54 = vsub.f32 0.0, %v2170_v34  ;;  %v2179_v13 = vpop.f32.mrf.mxu1  ;;  %v13635_v15 = vld [vmem:[#allocation27_spill] sm:$0xff] }
 0x1ca   : > { %v10989_v27 = vadd.f32 %v4789_v62, %v13624_v16  ;;  %v10993_v46 = vadd.f32 %v4694_v38, %v13626_v12  ;;  %v10997_v61 = vadd.f32 %v4695_v36, %v13628_v50  ;;  %v1987_v62 = vadd.f32 %v1986_v58, %v13530_v7  ;;  %v1988_v50 = vpop.f32.mrf.mxu0 }
 0x1cb   : > { %v11005_v16 = vadd.f32 %v2177_v9, %v1985_v47  ;;  %v13630_v38 = vunpack.c.l.bf16 %v13423_v22  ;;  %v11011_v36 = vmax.f32 %v5958_v6, 0.0  ;;  %v13633_v14 = vunpack.c.h.bf16 %v13625_v51  ;;  %v11022_v22 = vld [vmem:[%s9396_s15 + $0x230] sm:$0xff]   ;;  %v13637_v51 = vld [vmem:[#allocation43_spill] sm:$0xff] }
 0x1cc   : > { %13627 = vst [vmem:[#allocation6_spill] sm:$0xff] %v10993_v46  ;;  %13629 = vst [vmem:[#allocation94_spill] sm:$0xff] %v10997_v61  ;;  %v2172_v17 = vadd.f32 %v2171_v39, %v1979_v43  ;;  %v1989_v6 = vadd.f32 %v1988_v50, %v13535_v24  ;;  %v2180_v34 = vadd.f32 %v2179_v13, %v1987_v62  ;;  %v1992_v58 = vpop.f32.mrf.mxu0  ;;  %v13639_v39 = vld [vmem:[#allocation9_spill] sm:$0xff]  ;;  %v5991_v47 = vmax.f32 %v5959_v5, 0.0 }
 0x1cd   : > { %v11009_v12 = vadd.f32 %v5894_v11, %v13630_v38  ;;  %13632 = vst [vmem:[#allocation96_spill] sm:$0xff] %v11011_v36  ;;  %v11017_v41 = vadd.f32 %v4790_v49, %v13633_v14  ;;  %v4696_v11 = vmax.f32 %v2176_v63, 0.0  ;;  %v2181_v38 = vpop.f32.mrf.mxu1  ;;  %v13636_v46 = vpack.c.bf16 %v10657_v0, %v13635_v15  ;;  %v13638_v14 = vld [vmem:[#allocation46_spill] sm:$0xff] }
 0x1ce   : > { %v13640_v43 = vunpack.c.l.bf16 %v13639_v39  ;;  %v4760_v61 = vsub.f32 0.0, %v2176_v63  ;;  %v1993_v10 = vadd.f32 %v1992_v58, %v13530_v7  ;;  %v13642_v13 = vpack.c.bf16 %v10752_v53, %v10704_v25  ;;  %v1994_v0 = vpop.f32.mrf.mxu0  ;;  %v13643_v63 = vld [vmem:[#allocation14_spill] sm:$0xff] }
 0x1cf   : > { %13631 = vst [vmem:[#allocation95_spill] sm:$0xff] %v11009_v12  ;;  %13634 = vst [vmem:[#allocation97_spill] sm:$0xff] %v11017_v41  ;;  %2884 = vmatmul.mubr.bf16.gmra.mxu0 %v13636_v46  ;;  %v4791_v62 = vmax.f32 %v4759_v54, 0.0  ;;  %v4697_v50 = vmax.f32 %v2180_v34, 0.0  ;;  %v11038_v12 = vadd.f32 %v2181_v38, %v1989_v6  ;;  %v2185_v46 = vpop.f32.mrf.mxu1  ;;  %v5896_v49 = vmax.f32 %v2172_v17, 0.0 }
 0x1d0   : > { %v11032_v9 = vadd.f32 %v5895_v4, %v13640_v43  ;;  %2891 = vmatprep.mubr.bf16.mxu0 %v13642_v13  ;;  %v5960_v20 = vsub.f32 0.0, %v2172_v17  ;;  %v1995_v4 = vadd.f32 %v1994_v0, %v13535_v24  ;;  %v2186_v5 = vadd.f32 %v2185_v46, %v1993_v10  ;;  %v1996_v6 = vpop.f32.mrf.mxu0 }
 0x1d1   : > { %v13644_v43 = vunpack.c.l.bf16 %v13643_v63  ;;  %v5898_v54 = vmax.f32 %v11038_v12, 0.0  ;;  %v2187_v38 = vpop.f32.mrf.mxu1  ;;  %v3458_v13 = vunpack.c.l.bf16 %v10768_v19  ;;  %v13649_v15 = vunpack.c.h.bf16 %v13639_v39 }
 0x1d2   : > { %13641 = vst [vmem:[#allocation27_spill] sm:$0xff] %v11032_v9  ;;  %v13646_v9 = vld [vmem:[#allocation22_spill] sm:$0xff]  ;;  %v4792_v0 = vmax.f32 %v4760_v61, 0.0  ;;  %v1997_v10 = vadd.f32 %v1996_v6, %v13530_v7  ;;  %v11057_v46 = vadd.f32 %v2187_v38, %v1995_v4  ;;  %v1998_v39 = vpop.f32.mrf.mxu0  ;;  %v4698_v38 = vmax.f32 %v2186_v5, 0.0  ;;  %v11082_v61 = vld [vmem:[%s9396_s15 + $0x12c] ss:$268 sps:$4 sm:$0xff]  }
 0x1d3   : > { %v11044_v58 = vadd.f32 %v4696_v11, %v13644_v43  ;;  %v13647_v25 = vunpack.c.l.bf16 %v13646_v9  ;;  %v11054_v17 = vadd.f32 %v5991_v47, %v13649_v15  ;;  %v13651_v11 = vunpack.c.h.bf16 %v10427_v23  ;;  %v2189_v47 = vpop.f32.mrf.mxu1  ;;  %v13654_v15 = vld [vmem:[#allocation16_spill] sm:$0xff] }
 0x1d4   : > { %v13655_v6 = vunpack.c.h.bf16 %v13654_v15  ;;  %v5961_v23 = vsub.f32 0.0, %v11005_v16  ;;  %v13659_v15 = vld [vmem:[#allocation52_spill] sm:$0xff]  ;;  %v13675_v1 = vunpack.c.h.bf16 %v10768_v19 }
 0x1d5   : > { %13645 = vst [vmem:[#allocation43_spill] sm:$0xff] %v11044_v58  ;;  %v11048_v53 = vadd.f32 %v4697_v50, %v13647_v25  ;;  %13650 = vst [vmem:[#allocation9_spill] sm:$0xff] %v11054_v17  ;;  %v11061_v43 = vadd.f32 %v4791_v62, %v13651_v11  ;;  %v13652_v25 = vunpack.c.h.bf16 %v10604_v29  ;;  %v4761_v62 = vsub.f32 0.0, %v2180_v34  ;;  %v2002_v29 = vpop.f32.mrf.mxu0  ;;  %v13666_v17 = vld [vmem:[#allocation26_spill] sm:$0xff] }
 0x1d6   : > { %v11072_v4 = vadd.f32 %v5896_v49, %v13655_v6  ;;  %v11075_v11 = vmax.f32 %v5960_v20, 0.0  ;;  %v1999_v50 = vadd.f32 %v1998_v39, %v13535_v24  ;;  %v2190_v58 = vadd.f32 %v2189_v47, %v1997_v10  ;;  %v13662_v10 = vld [vmem:[#allocation31_spill] sm:$0xff]  ;;  %v13663_v47 = vld [vmem:[#allocation41_spill] sm:$0xff] }
 0x1d7   : > { %13648 = vst [vmem:[#allocation46_spill] sm:$0xff] %v11048_v53  ;;  %v11067_v36 = vadd.f32 %v5898_v54, %v13652_v25  ;;  %v2191_v54 = vpop.f32.mrf.mxu1  ;;  %v13658_v25 = vpack.c.bf16 %v10738_v52, %v10700_v37  ;;  %v11085_v49 = vadd.f32 %v13659_v15, %v3458_v13  ;;  %v13660_v6 = vunpack.c.h.bf16 %v13643_v63  ;;  %v2004_v13 = vpop.f32.mrf.mxu0  ;;  %v13665_v63 = vld [vmem:[#allocation50_spill] sm:$0xff] }
 0x1d8   : > { %13656 = vst [vmem:[#allocation22_spill] sm:$0xff] %v11072_v4  ;;  %13657 = vst [vmem:[#allocation16_spill] sm:$0xff] %v11075_v11  ;;  %v5897_v20 = vmax.f32 %v11005_v16, 0.0  ;;  %v2003_v39 = vadd.f32 %v2002_v29, %v13530_v7  ;;  %v13664_v53 = vpack.c.bf16 %v13662_v10, %v13663_v47  ;;  %v4762_v52 = vsub.f32 0.0, %v2186_v5  ;;  %v13669_v5 = vld [vmem:[#allocation33_spill] sm:$0xff] }
 0x1d9   : > { %13653 = vst [vmem:[#allocation14_spill] sm:$0xff] %v11067_v36  ;;  %2892 = vmatmul.mubr.bf16.gmra.mxu0 %v13658_v25  ;;  %v11089_v34 = vadd.f32 %v4792_v0, %v13660_v6  ;;  %v4699_v25 = vmax.f32 %v2190_v58, 0.0  ;;  %v11097_v36 = vadd.f32 %v2191_v54, %v1999_v50  ;;  %v2195_v15 = vpop.f32.mrf.mxu1  ;;  %v5993_v6 = vmax.f32 %v5961_v23, 0.0  ;;  %v2006_v4 = vpop.f32.mrf.mxu0  ;;  %v11113_v0 = vld [vmem:[%s9396_s15 + $0x250] sm:$0xff]  }
 0x1da   : > { %3844 = vmatprep.mubr.bf16.mxu0 %v13664_v53  ;;  %v4793_v16 = vmax.f32 %v4761_v62, 0.0  ;;  %v13667_v29 = vunpack.c.l.bf16 %v13666_v17  ;;  %v2005_v53 = vadd.f32 %v2004_v13, %v13535_v24  ;;  %v5963_v10 = vsub.f32 0.0, %v11057_v46  ;;  %v13672_v23 = vld [vmem:[#allocation76_spill] sm:$0xff] }
 0x1db   : > { %13661 = vst [vmem:[#allocation52_spill] sm:$0xff] %v11089_v34  ;;  %v13670_v47 = vunpack.c.l.bf16 %v13669_v5  ;;  %v5900_v50 = vmax.f32 %v11097_v36, 0.0  ;;  %v2196_v54 = vadd.f32 %v2195_v15, %v2003_v39  ;;  %v2197_v26 = vpop.f32.mrf.mxu1  ;;  %v13673_v62 = vunpack.c.l.bf16 %v13672_v23 }
 0x1dc   : > { %v11103_v11 = vadd.f32 %v4698_v38, %v13667_v29  ;;  %v5962_v38 = vsub.f32 0.0, %v11038_v12  ;;  %v2007_v13 = vadd.f32 %v2006_v4, %v13530_v7  ;;  %v11121_v29 = vadd.f32 %v2197_v26, %v2005_v53  ;;  %v8610_v26 = vld [vmem:[%s13050_s4 + $0x70] sm:$0xff]  }
 0x1dd   : > { %v11109_v37 = vadd.f32 %v4699_v25, %v13670_v47  ;;  %v11117_v21 = vadd.f32 %v5897_v20, %v13673_v62  ;;  %v8607_v25 = vld [vmem:[%s13050_s4 + $0x38] sm:$0xff]   ;;  %v4794_v47 = vmax.f32 %v4762_v52, 0.0  ;;  %v4763_v39 = vsub.f32 0.0, %v2190_v58  ;;  %v2008_v20 = vpop.f32.mrf.mxu0  ;;  %v2199_v62 = vpop.f32.mrf.mxu1 }
 0x1de   : > { %13668 = vst [vmem:[#allocation31_spill] sm:$0xff] %v11103_v11  ;;  %v11130_v32 = vadd.f32 %v5900_v50, %v13675_v1  ;;  %v13677_v12 = vunpack.c.h.bf16 %v13672_v23  ;;  %v13679_v52 = vunpack.c.h.bf16 %v13646_v9  ;;  %v5899_v53 = vmax.f32 %v11057_v46, 0.0  ;;  %v13681_v23 = vld [vmem:[#allocation38_spill] sm:$0xff] }
 0x1df   : > { %13671 = vst [vmem:[#allocation41_spill] sm:$0xff] %v11109_v37  ;;  %13674 = vst [vmem:[#allocation50_spill] sm:$0xff] %v11117_v21  ;;  %v5995_v1 = vmax.f32 %v5963_v10, 0.0  ;;  %v4700_v50 = vmax.f32 %v2196_v54, 0.0  ;;  %v2009_v15 = vadd.f32 %v2008_v20, %v13535_v24  ;;  %v11146_v11 = vadd.f32 %v2199_v62, %v2007_v13  ;;  %v2012_v37 = vpop.f32.mrf.mxu0  ;;  %v8611_v20 = vld [vmem:[%s13050_s4 + $0x30] sm:$0xff]  }
 0x1e0   : > { %13676 = vst [vmem:[#allocation26_spill] sm:$0xff] %v11130_v32  ;;  %v11137_v4 = vadd.f32 %v5993_v6, %v13677_v12  ;;  %v11141_v58 = vadd.f32 %v4793_v16, %v13679_v52  ;;  %v2201_v32 = vpop.f32.mrf.mxu1  ;;  %v13682_v6 = vld [vmem:[#allocation37_spill] sm:$0xff]  ;;  %v11151_v9 = vmax.f32 %v5962_v38, 0.0  ;;  %v4764_v16 = vsub.f32 0.0, %v2196_v54  ;;  %v11424_v21 = vld [vmem:[%s9396_s15 + $0x2d0] sm:$0xff]  }
 0x1e1   : > { %v13683_v12 = vpack.c.bf16 %v13681_v23, %v13682_v6  ;;  %v2013_v46 = vadd.f32 %v2012_v37, %v13530_v7  ;;  %v13685_v10 = vpack.c.bf16 %v10912_v33, %v13605_v3  ;;  %v13686_v62 = vunpack.c.h.bf16 %v13666_v17  ;;  %v2014_v37 = vpop.f32.mrf.mxu0  ;;  %v11169_v33 = vld [vmem:[%s9396_s15 + $0x258] sm:$0xff]   ;;  %v8614_v3 = vld [vmem:[%s13050_s4 + $0x68] sm:$0xff]  }
 0x1e2   : > { %13678 = vst [vmem:[#allocation33_spill] sm:$0xff] %v11137_v4  ;;  %13680 = vst [vmem:[#allocation76_spill] sm:$0xff] %v11141_v58  ;;  %v4795_v38 = vmax.f32 %v4763_v39, 0.0  ;;  %v4701_v54 = vmax.f32 %v11146_v11, 0.0  ;;  %v11166_v23 = vadd.f32 %v2201_v32, %v2009_v15  ;;  %v2205_v6 = vpop.f32.mrf.mxu1  ;;  %v5964_v17 = vsub.f32 0.0, %v11097_v36 }
 0x1e3   : > { %3845 = vmatmul.mubr.bf16.vlgmr.msra.gmra.mxu0 %v13683_v12  ;;  %13684 = vst [vmem:[#allocation38_spill] sm:$0xff] %v11151_v9  ;;  %v11163_v52 = vadd.f32 %v4794_v47, %v13686_v62  ;;  %v2015_v47 = vadd.f32 %v2014_v37, %v13535_v24  ;;  %v11180_v39 = vadd.f32 %v2205_v6, %v2013_v46  ;;  %v13695_v13 = vunpack.c.l.bf16 %v10886_v31  ;;  %v2016_v36 = vpop.f32.mrf.mxu0 }
 0x1e4   : > { %3852 = vmatprep.mubr.bf16.mxu0 %v13685_v10  ;;  %7822 = vmatpush3.bf16.msra.mxu0 %v8607_v25  ;;  %v13688_v25 = vld [vmem:[#allocation80_spill] sm:$0xff]  ;;  %v4796_v37 = vmax.f32 %v4764_v16, 0.0  ;;  %v2017_v46 = vadd.f32 %v2016_v36, %v13530_v7  ;;  %v4765_v16 = vsub.f32 0.0, %v11146_v11 }
 0x1e5   : > { %13687 = vst [vmem:[#allocation37_spill] sm:$0xff] %v11163_v52  ;;  %7823 = vmatprep.subr.bf16.mxu0 %v8610_v26  ;;  %v13689_v12 = vunpack.c.l.bf16 %v13688_v25  ;;  %v13691_v32 = vunpack.c.h.bf16 %v13688_v25  ;;  %v13693_v26 = vunpack.c.l.bf16 %v10816_v42  ;;  %v11192_v19 = vadd.f32 %v4701_v54, %v13695_v13 }
 0x1e6   : > { %v13697_v13 = vunpack.c.h.bf16 %v13669_v5  ;;  %v5901_v25 = vmax.f32 %v11121_v29, 0.0  ;;  %v8618_v5 = vld [vmem:[%s13050_s4 + $0x60] sm:$0xff]  }
 0x1e7   : > { %v11176_v10 = vadd.f32 %v5899_v53, %v13689_v12  ;;  %v11184_v15 = vadd.f32 %v5995_v1, %v13691_v32  ;;  %v11188_v62 = vadd.f32 %v4700_v50, %v13693_v26  ;;  %13696 = vst [vmem:[#allocation100_spill] sm:$0xff] %v11192_v19  ;;  %v5902_v53 = vmax.f32 %v11166_v23, 0.0  ;;  %v2207_v12 = vpop.f32.mrf.mxu1  ;;  %v8615_v50 = vld [vmem:[%s13050_s4 + $0x28] sm:$0xff]   ;;  %v2018_v26 = vpop.f32.mrf.mxu0  ;;  %v13703_v19 = vld [vmem:[#allocation48_spill] sm:$0xff] }
 0x1e8   : > { %v11196_v6 = vadd.f32 %v2207_v12, %v2015_v47  ;;  %7824 = vmatpush3.bf16.msra.mxu0 %v8611_v20  ;;  %v11204_v54 = vadd.f32 %v4795_v38, %v13697_v13  ;;  %v13699_v32 = vunpack.c.h.bf16 %v10948_v35  ;;  %v11214_v20 = vld [vmem:[%s9396_s15 + $0x270] sm:$0xff]   ;;  %v11219_v38 = vmax.f32 %v5964_v17, 0.0 }
 0x1e9   : > { %13690 = vst [vmem:[#allocation80_spill] sm:$0xff] %v11176_v10  ;;  %13692 = vst [vmem:[#allocation98_spill] sm:$0xff] %v11184_v15  ;;  %v2209_v36 = vpop.f32.mrf.mxu1  ;;  %7825 = vmatprep.subr.bf16.mxu0 %v8614_v3  ;;  %v5965_v12 = vsub.f32 0.0, %v11121_v29  ;;  %v4702_v13 = vmax.f32 %v11180_v39, 0.0  ;;  %v2022_v1 = vpop.f32.mrf.mxu0  ;;  %v13702_v3 = vpack.c.bf16 %v13638_v14, %v13637_v51  ;;  %v3460_v15 = vunpack.c.l.bf16 %v10948_v35  ;;  %v8619_v14 = vld [vmem:[%s13050_s4 + $0x20] sm:$0xff]   ;;  %v13747_v10 = vld [vmem:[#allocation61_spill] sm:$0xff] }
 0x1ea   : > { %13694 = vst [vmem:[#allocation99_spill] sm:$0xff] %v11188_v62  ;;  %13698 = vst [vmem:[#allocation101_spill] sm:$0xff] %v11204_v54  ;;  %v11211_v47 = vadd.f32 %v5902_v53, %v13699_v32  ;;  %v2019_v53 = vadd.f32 %v2018_v26, %v13535_v24  ;;  %v11225_v32 = vadd.f32 %v2209_v36, %v2017_v46  ;;  %v13705_v29 = vunpack.c.h.bf16 %v10816_v42 }
 0x1eb   : > { %13701 = vst [vmem:[#allocation103_spill] sm:$0xff] %v11219_v38  ;;  %v2211_v62 = vpop.f32.mrf.mxu1  ;;  %3853 = vmatmul.mubr.bf16.gmra.mxu0 %v13702_v3  ;;  %v2023_v46 = vadd.f32 %v2022_v1, %v13530_v7  ;;  %v13707_v26 = vpack.c.bf16 %v11085_v49, %v13665_v63  ;;  %v13708_v35 = vunpack.c.l.bf16 %v10848_v30  ;;  %v2024_v1 = vpop.f32.mrf.mxu0  ;;  %v8622_v63 = vld [vmem:[%s13050_s4 + $0x58] sm:$0xff]   ;;  %v13712_v3 = vunpack.c.l.bf16 %v11022_v22 }
 0x1ec   : > { %13700 = vst [vmem:[#allocation102_spill] sm:$0xff] %v11211_v47  ;;  %v13704_v47 = vld [vmem:[#allocation51_spill] sm:$0xff]  ;;  %v11235_v4 = vadd.f32 %v4796_v37, %v13705_v29  ;;  %7826 = vmatpush3.bf16.msra.mxu0 %v8615_v50  ;;  %v4703_v11 = vmax.f32 %v11225_v32, 0.0  ;;  %v11252_v37 = vadd.f32 %v2211_v62, %v2019_v53  ;;  %v5997_v50 = vmax.f32 %v5965_v12, 0.0 }
 0x1ed   : > { %v3649_v17 = vpack.c.bf16 %v13704_v47, %v13703_v19  ;;  %3860 = vmatprep.mubr.bf16.mxu0 %v13707_v26  ;;  %v11248_v42 = vadd.f32 %v5901_v25, %v13708_v35  ;;  %v4766_v19 = vsub.f32 0.0, %v11180_v39  ;;  %v2215_v49 = vpop.f32.mrf.mxu1  ;;  %7827 = vmatprep.subr.bf16.mxu0 %v8618_v5  ;;  %v13710_v47 = vunpack.c.l.bf16 %v10951_v44  ;;  %v2026_v29 = vpop.f32.mrf.mxu0  ;;  %v13714_v35 = vld [vmem:[#allocation56_spill] sm:$0xff] }
 0x1ee   : > { %13706 = vst [vmem:[#allocation48_spill] sm:$0xff] %v11235_v4  ;;  %v2025_v25 = vadd.f32 %v2024_v1, %v13535_v24  ;;  %v11265_v62 = vadd.f32 %v4703_v11, %v13712_v3  ;;  %v5904_v53 = vmax.f32 %v11252_v37, 0.0  ;;  %v2216_v5 = vadd.f32 %v2215_v49, %v2023_v46  ;;  %v8623_v11 = vld [vmem:[%s13050_s4 + $0x18] sm:$0xff]  }
 0x1ef   : > { %13709 = vst [vmem:[#allocation51_spill] sm:$0xff] %v11248_v42  ;;  %v11259_v36 = vadd.f32 %v4702_v13, %v13710_v47  ;;  %v2217_v26 = vpop.f32.mrf.mxu1  ;;  %v3620_v12 = vadd.f32 %v13714_v35, %v3460_v15  ;;  %v4797_v51 = vmax.f32 %v4765_v16, 0.0  ;;  %v5966_v13 = vsub.f32 0.0, %v11166_v23  ;;  %v2028_v23 = vpop.f32.mrf.mxu0  ;;  %v8644_v4 = vld [vmem:[%s13052_s6 + $0x58] sm:$0xff]  }
 0x1f0   : > { %13713 = vst [vmem:[#allocation105_spill] sm:$0xff] %v11265_v62  ;;  %v2027_v47 = vadd.f32 %v2026_v29, %v13530_v7  ;;  %v11271_v1 = vadd.f32 %v2217_v26, %v2025_v25  ;;  %7828 = vmatpush3.bf16.msra.mxu0 %v8619_v14  ;;  %v4798_v3 = vmax.f32 %v4766_v19, 0.0  ;;  %v5967_v46 = vsub.f32 0.0, %v11196_v6  ;;  %v11284_v29 = vld [vmem:[%s9396_s15 + $0x16c] ss:$268 sps:$4 sm:$0xff]   ;;  %v8626_v14 = vld [vmem:[%s13050_s4 + $0x50] sm:$0xff]  }
 0x1f1   : > { %13711 = vst [vmem:[#allocation104_spill] sm:$0xff] %v11259_v36  ;;  %v13715_v15 = vunpack.c.h.bf16 %v11082_v61  ;;  %v2219_v35 = vpop.f32.mrf.mxu1  ;;  %7829 = vmatprep.subr.bf16.mxu0 %v8622_v63  ;;  %v13717_v19 = vunpack.c.h.bf16 %v10848_v30  ;;  %v5903_v26 = vmax.f32 %v11196_v6, 0.0  ;;  %v4767_v49 = vsub.f32 0.0, %v11225_v32  ;;  %v2032_v63 = vpop.f32.mrf.mxu0 }
 0x1f2   : > { %v2029_v39 = vadd.f32 %v2028_v23, %v13535_v24  ;;  %v11297_v36 = vadd.f32 %v2219_v35, %v2027_v47  ;;  %v13720_v30 = vunpack.c.h.bf16 %v10886_v31  ;;  %v4768_v6 = vsub.f32 0.0, %v2216_v5  ;;  %v8627_v47 = vld [vmem:[%s13050_s4 + $0x10] sm:$0xff]  }
 0x1f3   : > { %v11281_v16 = vadd.f32 %v5904_v53, %v13715_v15  ;;  %v11291_v25 = vadd.f32 %v5997_v50, %v13717_v19  ;;  %v5810_v53 = vunpack.c.h.bf16 %v11284_v29  ;;  %v4704_v15 = vmax.f32 %v2216_v5, 0.0  ;;  %v2221_v62 = vpop.f32.mrf.mxu1  ;;  %3861 = vmatmul.mubr.bf16.gmra.mxu0 %v3649_v17 }
 0x1f4   : > { %v11302_v50 = vadd.f32 %v4797_v51, %v13720_v30  ;;  %v11304_v19 = vmax.f32 %v5966_v13, 0.0  ;;  %v2033_v32 = vadd.f32 %v2032_v63, %v13530_v7  ;;  %7830 = vmatpush3.bf16.msra.mxu0 %v8623_v11  ;;  %v13723_v23 = vunpack.c.h.bf16 %v10951_v44  ;;  %v8630_v13 = vld [vmem:[%s13050_s4 + $0x48] sm:$0xff]  }
 0x1f5   : > { %13716 = vst [vmem:[#allocation56_spill] sm:$0xff] %v11281_v16  ;;  %13718 = vst [vmem:[#allocation106_spill] sm:$0xff] %v11291_v25  ;;  %v13719_v16 = vld [vmem:[#allocation54_spill] sm:$0xff]  ;;  %v5999_v17 = vmax.f32 %v5967_v46, 0.0  ;;  %v4705_v31 = vmax.f32 %v11297_v36, 0.0  ;;  %v11315_v51 = vadd.f32 %v2221_v62, %v2029_v39  ;;  %v2225_v5 = vpop.f32.mrf.mxu1  ;;  %7831 = vmatprep.subr.bf16.mxu0 %v8626_v14  ;;  %v13725_v11 = vunpack.c.l.bf16 %v11000_v45 }
 0x1f6   : > { %v3652_v42 = vpack.c.bf16 %v3620_v12, %v13719_v16  ;;  %13721 = vst [vmem:[#allocation54_spill] sm:$0xff] %v11302_v50  ;;  %13722 = vst [vmem:[#allocation107_spill] sm:$0xff] %v11304_v19  ;;  %v11312_v35 = vadd.f32 %v4798_v3, %v13723_v23  ;;  %v2034_v12 = vpop.f32.mrf.mxu0  ;;  %v4799_v3 = vmax.f32 %v4767_v49, 0.0  ;;  %v5968_v46 = vsub.f32 0.0, %v11252_v37  ;;  %v11338_v23 = vld [vmem:[%s9396_s15 + $0x290] sm:$0xff]  }
 0x1f7   : > { %v11322_v44 = vadd.f32 %v5903_v26, %v13725_v11  ;;  %v2035_v16 = vadd.f32 %v2034_v12, %v13535_v24  ;;  %v13727_v39 = vunpack.c.l.bf16 %v11113_v0  ;;  %v13729_v62 = vunpack.c.l.bf16 %v11214_v20  ;;  %v2227_v49 = vpop.f32.mrf.mxu1 }
 0x1f8   : > { %13724 = vst [vmem:[#allocation108_spill] sm:$0xff] %v11312_v35  ;;  %3868 = vmatprep.mubr.bf16.mxu0 %v3652_v42  ;;  %v5906_v63 = vmax.f32 %v11315_v51, 0.0  ;;  %v11335_v30 = vadd.f32 %v2225_v5, %v2033_v32  ;;  %v2036_v26 = vpop.f32.mrf.mxu0  ;;  %v4800_v11 = vmax.f32 %v4768_v6, 0.0  ;;  %v5969_v37 = vsub.f32 0.0, %v11271_v1  ;;  %7832 = vmatpush3.bf16.msra.mxu0 %v8627_v47  ;;  %v8634_v47 = vld [vmem:[%s13050_s4 + $0x40] sm:$0xff]  }
 0x1f9   : > { %13726 = vst [vmem:[#allocation109_spill] sm:$0xff] %v11322_v44  ;;  %v11328_v42 = vadd.f32 %v4704_v15, %v13727_v39  ;;  %v11332_v14 = vadd.f32 %v4705_v31, %v13729_v62  ;;  %v2037_v12 = vadd.f32 %v2036_v26, %v13530_v7  ;;  %v11342_v25 = vadd.f32 %v2227_v49, %v2035_v16  ;;  %v11345_v15 = vld [vmem:[%s9396_s15 + $0x2b0] sm:$0xff]   ;;  %v8631_v31 = vld [vmem:[%s13050_s4 + $0x8] sm:$0xff]   ;;  %v2229_v26 = vpop.f32.mrf.mxu1 }
 0x1fa   : > { %v13731_v32 = vunpack.c.h.bf16 %v11000_v45  ;;  %v5905_v39 = vmax.f32 %v11271_v1, 0.0  ;;  %v11357_v62 = vadd.f32 %v5906_v63, %v5810_v53  ;;  %v2038_v16 = vpop.f32.mrf.mxu0  ;;  %7833 = vmatprep.subr.bf16.mxu0 %v8630_v13  ;;  %v13734_v49 = vunpack.c.h.bf16 %v11022_v22 }
 0x1fb   : > { %13728 = vst [vmem:[#allocation110_spill] sm:$0xff] %v11328_v42  ;;  %13730 = vst [vmem:[#allocation111_spill] sm:$0xff] %v11332_v14  ;;  %v4769_v1 = vsub.f32 0.0, %v11297_v36  ;;  %v4610_v53 = vunpack.c.l.bf16 %v11338_v23  ;;  %v4706_v63 = vmax.f32 %v11335_v30, 0.0  ;;  %v2039_v13 = vadd.f32 %v2038_v16, %v13535_v24  ;;  %v2231_v14 = vpop.f32.mrf.mxu1 }
 0x1fc   : > { %v11352_v5 = vadd.f32 %v5999_v17, %v13731_v32  ;;  %13733 = vst [vmem:[#allocation113_spill] sm:$0xff] %v11357_v62  ;;  %v11364_v45 = vadd.f32 %v4799_v3, %v13734_v49  ;;  %v11366_v17 = vmax.f32 %v5968_v46, 0.0  ;;  %v11372_v32 = vadd.f32 %v2229_v26, %v2037_v12  ;;  %v2042_v42 = vpop.f32.mrf.mxu0  ;;  %7834 = vmatpush3.bf16.msra.mxu0 %v8631_v31  ;;  %v11389_v26 = vld [vmem:[%s9396_s15 + $0x298] sm:$0xff]  }
 0x1fd   : > { %v4611_v6 = vunpack.c.l.bf16 %v11345_v15  ;;  %v13737_v22 = vunpack.c.h.bf16 %v11113_v0  ;;  %v6001_v46 = vmax.f32 %v5969_v37, 0.0  ;;  %v2043_v36 = vadd.f32 %v2042_v42, %v13530_v7  ;;  %v2235_v37 = vpop.f32.mrf.mxu1  ;;  %7835 = vmatprep.subr.bf16.mxu0 %v8634_v47  ;;  %v8635_v42 = vld [vmem:[%s13050_s4] sm:$0xff]  }
 0x1fe   : > { %13732 = vst [vmem:[#allocation112_spill] sm:$0xff] %v11352_v5  ;;  %13735 = vst [vmem:[#allocation114_spill] sm:$0xff] %v11364_v45  ;;  %v11382_v5 = vld [vmem:[%s9396_s15 + $0x1ac] ss:$268 sps:$4 sm:$0xff]   ;;  %v13739_v16 = vunpack.c.l.bf16 %v11169_v33  ;;  %v11392_v62 = vadd.f32 %v2231_v14, %v2039_v13  ;;  %v4801_v31 = vmax.f32 %v4769_v1, 0.0  ;;  %v11405_v13 = vadd.f32 %v4706_v63, %v4610_v53 }
 0x1ff   : > { %13736 = vst [vmem:[#allocation115_spill] sm:$0xff] %v11366_v17  ;;  %v11377_v3 = vadd.f32 %v4800_v11, %v13737_v22  ;;  %v4707_v17 = vmax.f32 %v11372_v32, 0.0  ;;  %v5812_v0 = vunpack.c.h.bf16 %v11382_v5  ;;  %v2044_v11 = vpop.f32.mrf.mxu0  ;;  %v4770_v22 = vsub.f32 0.0, %v11335_v30  ;;  %v8638_v14 = vld [vmem:[%s13050_s4 + $0x78] sm:$0xff]   ;;  %v2237_v19 = vpop.f32.mrf.mxu1 }
 0x200   : > { %v11386_v12 = vadd.f32 %v5905_v39, %v13739_v16  ;;  %v13741_v39 = vld [vmem:[#allocation53_spill] sm:$0xff]  ;;  %v13742_v16 = vld [vmem:[#allocation55_spill] sm:$0xff]  ;;  %v5908_v44 = vmax.f32 %v11392_v62, 0.0  ;;  %v2045_v1 = vadd.f32 %v2044_v11, %v13535_v24  ;;  %v2236_v53 = vadd.f32 %v2235_v37, %v2043_v36  ;;  %7836 = vmatpush3.bf16.msra.mxu0 %v8635_v42 }
 0x201   : > { %13738 = vst [vmem:[#allocation116_spill] sm:$0xff] %v11377_v3  ;;  %v3651_v49 = vpack.c.bf16 %v13742_v16, %v13741_v39  ;;  %13743 = vst [vmem:[#allocation53_spill] sm:$0xff] %v11405_v13  ;;  %v11407_v47 = vadd.f32 %v4707_v17, %v4611_v6  ;;  %v2046_v30 = vpop.f32.mrf.mxu0  ;;  %v13745_v39 = vunpack.c.h.bf16 %v11169_v33  ;;  %v5970_v6 = vsub.f32 0.0, %v11315_v51  ;;  %v13749_v36 = vld [vmem:[#allocation59_spill] sm:$0xff]  ;;  %8045 = vmatprep.subr.bf16.mxu0 %v8638_v14  ;;  %v11540_v3 = vld [vmem:[%s9396_s15 + $0x350] sm:$0xff]  }
 0x202   : > { %13740 = vst [vmem:[#allocation117_spill] sm:$0xff] %v11386_v12  ;;  %v3462_v12 = vunpack.c.l.bf16 %v11082_v61  ;;  %v5811_v61 = vunpack.c.l.bf16 %v11389_v26  ;;  %v5971_v17 = vsub.f32 0.0, %v11342_v25  ;;  %v11421_v11 = vadd.f32 %v5908_v44, %v5812_v0 }
 0x203   : > { %13744 = vst [vmem:[#allocation55_spill] sm:$0xff] %v11407_v47  ;;  %v11413_v16 = vadd.f32 %v6001_v46, %v13745_v39  ;;  %3869 = vmatmul.mubr.bf16.gmra.mxu0 %v3651_v49  ;;  %v2048_v33 = vpop.f32.mrf.mxu0  ;;  %v2239_v46 = vpop.f32.mrf.mxu1  ;;  %v11427_v39 = vld [vmem:[%s9396_s15 + $0x2f0] sm:$0xff]   ;;  %v5875_v49 = vunpack.c.h.bf16 %v11389_v26  ;;  %v13750_v37 = vunpack.c.h.bf16 %v11214_v20  ;;  %v4802_v0 = vmax.f32 %v4770_v22, 0.0 }
 0x204   : > { %v3622_v38 = vadd.f32 %v13747_v10, %v3462_v12  ;;  %13748 = vst [vmem:[#allocation61_spill] sm:$0xff] %v11421_v11  ;;  %v4771_v10 = vsub.f32 0.0, %v11372_v32  ;;  %v2047_v12 = vadd.f32 %v2046_v30, %v13530_v7  ;;  %v11437_v63 = vadd.f32 %v2237_v19, %v2045_v1 }
 0x205   : > { %13746 = vst [vmem:[#allocation118_spill] sm:$0xff] %v11413_v16  ;;  %v11435_v44 = vadd.f32 %v4801_v31, %v13750_v37  ;;  %v2049_v13 = vadd.f32 %v2048_v33, %v13535_v24  ;;  %v2052_v47 = vpop.f32.mrf.mxu0  ;;  %v2241_v42 = vpop.f32.mrf.mxu1  ;;  %v4612_v32 = vunpack.c.l.bf16 %v11424_v21  ;;  %v4708_v26 = vmax.f32 %v2236_v53, 0.0 }
 0x206   : > { %v3654_v51 = vpack.c.bf16 %v3622_v38, %v13749_v36  ;;  %v11441_v38 = vadd.f32 %v2239_v46, %v2047_v12  ;;  %v4613_v14 = vunpack.c.l.bf16 %v11427_v39  ;;  %v11444_v30 = vmax.f32 %v5970_v6, 0.0  ;;  %v11453_v46 = vld [vmem:[%s9396_s15 + $0x1ec] ss:$268 sps:$4 sm:$0xff]  }
 0x207   : > { %13751 = vst [vmem:[#allocation59_spill] sm:$0xff] %v11435_v44  ;;  %v5907_v20 = vmax.f32 %v11342_v25, 0.0  ;;  %v6003_v31 = vmax.f32 %v5971_v17, 0.0  ;;  %v4675_v19 = vunpack.c.h.bf16 %v11345_v15  ;;  %v2054_v22 = vpop.f32.mrf.mxu0  ;;  %v2245_v1 = vpop.f32.mrf.mxu1  ;;  %v4803_v33 = vmax.f32 %v4771_v10, 0.0  ;;  %v13753_v25 = vld [vmem:[#allocation58_spill] sm:$0xff]  ;;  %v13754_v17 = vld [vmem:[#allocation60_spill] sm:$0xff] }
 0x208   : > { %3876 = vmatprep.mubr.bf16.mxu0 %v3654_v51  ;;  %13752 = vst [vmem:[#allocation119_spill] sm:$0xff] %v11444_v30  ;;  %v4709_v36 = vmax.f32 %v11441_v38, 0.0  ;;  %v2053_v51 = vadd.f32 %v2052_v47, %v13530_v7  ;;  %v11450_v37 = vadd.f32 %v2241_v42, %v2049_v13  ;;  %v5972_v12 = vsub.f32 0.0, %v11392_v62 }
 0x209   : > { %v4772_v6 = vsub.f32 0.0, %v2236_v53  ;;  %v5814_v11 = vunpack.c.h.bf16 %v11453_v46  ;;  %v3653_v15 = vpack.c.bf16 %v13754_v17, %v13753_v25  ;;  %v2056_v16 = vpop.f32.mrf.mxu0  ;;  %v2247_v30 = vpop.f32.mrf.mxu1  ;;  %v13755_v10 = vunpack.c.h.bf16 %v11338_v23 }
 0x20a   : > { %v11463_v47 = vadd.f32 %v4708_v26, %v4612_v32  ;;  %v11465_v13 = vadd.f32 %v4709_v36, %v4613_v14  ;;  %v5910_v42 = vmax.f32 %v11450_v37, 0.0  ;;  %v11468_v62 = vadd.f32 %v5907_v20, %v5811_v61  ;;  %v11476_v32 = vld [vmem:[%s9396_s15 + $0x2d8] sm:$0xff]   ;;  %v11488_v36 = vld [vmem:[%s9396_s15 + $0x310] sm:$0xff]  }
 0x20b   : > { %v11461_v9 = vadd.f32 %v4802_v0, %v13755_v10  ;;  %v11470_v53 = vadd.f32 %v6003_v31, %v5875_v49  ;;  %3877 = vmatmul.mubr.bf16.gmra.mxu0 %v3653_v15  ;;  %v3464_v25 = vunpack.c.l.bf16 %v11284_v29  ;;  %v2055_v17 = vadd.f32 %v2054_v22, %v13535_v24  ;;  %v2058_v48 = vpop.f32.mrf.mxu0  ;;  %v2249_v23 = vpop.f32.mrf.mxu1  ;;  %v13764_v31 = vld [vmem:[#allocation65_spill] sm:$0xff] }
 0x20c   : > { %13757 = vst [vmem:[#allocation60_spill] sm:$0xff] %v11463_v47  ;;  %13758 = vst [vmem:[#allocation120_spill] sm:$0xff] %v11465_v13  ;;  %v4676_v0 = vunpack.c.h.bf16 %v11424_v21  ;;  %v11480_v61 = vadd.f32 %v5910_v42, %v5814_v11  ;;  %v2246_v14 = vadd.f32 %v2245_v1, %v2053_v51  ;;  %v11482_v49 = vadd.f32 %v4803_v33, %v4675_v19  ;;  %v11496_v1 = vld [vmem:[%s9396_s15 + $0x330] sm:$0xff]   ;;  %v13765_v51 = vld [vmem:[#allocation63_spill] sm:$0xff] }
 0x20d   : > { %13756 = vst [vmem:[#allocation58_spill] sm:$0xff] %v11461_v9  ;;  %13759 = vst [vmem:[#allocation121_spill] sm:$0xff] %v11468_v62  ;;  %v11484_v20 = vmax.f32 %v5972_v12, 0.0  ;;  %v4804_v29 = vmax.f32 %v4772_v6, 0.0  ;;  %v3624_v22 = vadd.f32 %v13764_v31, %v3464_v25  ;;  %v2062_v15 = vpop.f32.mrf.mxu0  ;;  %v2251_v21 = vpop.f32.mrf.mxu1  ;;  %v5973_v10 = vsub.f32 0.0, %v11437_v63 }
 0x20e   : > { %13760 = vst [vmem:[#allocation122_spill] sm:$0xff] %v11470_v53  ;;  %13761 = vst [vmem:[#allocation123_spill] sm:$0xff] %v11480_v61  ;;  %v4773_v53 = vsub.f32 0.0, %v11441_v38  ;;  %v2057_v26 = vadd.f32 %v2056_v16, %v13530_v7  ;;  %v11493_v11 = vadd.f32 %v2247_v30, %v2055_v17  ;;  %v5813_v19 = vunpack.c.l.bf16 %v11476_v32 }
 0x20f   : > { %13762 = vst [vmem:[#allocation124_spill] sm:$0xff] %v11482_v49  ;;  %13763 = vst [vmem:[#allocation125_spill] sm:$0xff] %v11484_v20  ;;  %v5877_v33 = vunpack.c.h.bf16 %v11476_v32  ;;  %v3656_v12 = vpack.c.bf16 %v3624_v22, %v13765_v51  ;;  %v2059_v6 = vadd.f32 %v2058_v48, %v13535_v24  ;;  %v2064_v42 = vpop.f32.mrf.mxu0  ;;  %v2255_v25 = vpop.f32.mrf.mxu1  ;;  %v5909_v31 = vmax.f32 %v11437_v63, 0.0  ;;  %v11515_v20 = vld [vmem:[%s9396_s15 + $0x22c] ss:$268 sps:$4 sm:$0xff]  }
 0x210   : > { %v4614_v38 = vunpack.c.l.bf16 %v11488_v36  ;;  %v4710_v16 = vmax.f32 %v2246_v14, 0.0  ;;  %v11504_v30 = vadd.f32 %v2249_v23, %v2057_v26  ;;  %v11506_v17 = vadd.f32 %v4804_v29, %v4676_v0  ;;  %v5783_v26 = vld [vmem:[%s9396_s15 + $0x318] sm:$0xff]  }
 0x211   : > { %v4677_v47 = vunpack.c.h.bf16 %v11427_v39  ;;  %3884 = vmatprep.mubr.bf16.mxu0 %v3656_v12  ;;  %v4615_v32 = vunpack.c.l.bf16 %v11496_v1  ;;  %v11510_v22 = vadd.f32 %v2251_v21, %v2059_v6  ;;  %v2066_v48 = vpop.f32.mrf.mxu0  ;;  %v2257_v51 = vpop.f32.mrf.mxu1  ;;  %v6005_v13 = vmax.f32 %v5973_v10, 0.0 }
 0x212   : > { %13766 = vst [vmem:[#allocation65_spill] sm:$0xff] %v11506_v17  ;;  %v4805_v61 = vmax.f32 %v4773_v53, 0.0  ;;  %v4711_v63 = vmax.f32 %v11504_v30, 0.0  ;;  %v2063_v62 = vadd.f32 %v2062_v15, %v13530_v7  ;;  %v5974_v23 = vsub.f32 0.0, %v11450_v37  ;;  %v13769_v53 = vld [vmem:[#allocation62_spill] sm:$0xff] }
 0x213   : > { %v4774_v0 = vsub.f32 0.0, %v2246_v14  ;;  %v5816_v39 = vunpack.c.h.bf16 %v11515_v20  ;;  %v5912_v29 = vmax.f32 %v11510_v22, 0.0  ;;  %v2068_v21 = vpop.f32.mrf.mxu0  ;;  %v2259_v12 = vpop.f32.mrf.mxu1  ;;  %v11521_v6 = vadd.f32 %v4710_v16, %v4614_v38 }
 0x214   : > { %v11523_v10 = vadd.f32 %v4711_v63, %v4615_v32  ;;  %v3655_v15 = vpack.c.bf16 %v13770_v8, %v13769_v53  ;;  %v3466_v17 = vunpack.c.l.bf16 %v11382_v5  ;;  %v4678_v37 = vunpack.c.h.bf16 %v11488_v36  ;;  %v13772_v63 = vld [vmem:[#allocation70_spill] sm:$0xff] }
 0x215   : > { %13767 = vst [vmem:[#allocation63_spill] sm:$0xff] %v11521_v6  ;;  %v5975_v14 = vsub.f32 0.0, %v11493_v11  ;;  %v11530_v49 = vadd.f32 %v5912_v29, %v5816_v39  ;;  %v2065_v9 = vadd.f32 %v2064_v42, %v13535_v24  ;;  %v2072_v44 = vpop.f32.mrf.mxu0  ;;  %v2261_v38 = vpop.f32.mrf.mxu1  ;;  %v5815_v16 = vunpack.c.l.bf16 %v5783_v26  ;;  %v11546_v42 = vld [vmem:[%s9396_s15 + $0x370] sm:$0xff]  }
 0x216   : > { %13768 = vst [vmem:[#allocation126_spill] sm:$0xff] %v11523_v10  ;;  %3885 = vmatmul.mubr.bf16.gmra.mxu0 %v3655_v15  ;;  %v3626_v8 = vadd.f32 %v13772_v63, %v3466_v17  ;;  %v11536_v53 = vadd.f32 %v2255_v25, %v2063_v62  ;;  %v4806_v5 = vmax.f32 %v4774_v0, 0.0  ;;  %v5911_v36 = vmax.f32 %v11493_v11, 0.0  ;;  %v13776_v62 = vld [vmem:[#allocation67_spill] sm:$0xff] }
 0x217   : > { %13771 = vst [vmem:[#allocation62_spill] sm:$0xff] %v11530_v49  ;;  %v2067_v39 = vadd.f32 %v2066_v48, %v13530_v7  ;;  %v11543_v29 = vadd.f32 %v2257_v51, %v2065_v9  ;;  %v2074_v49 = vpop.f32.mrf.mxu0  ;;  %v2265_v45 = vpop.f32.mrf.mxu1  ;;  %v11548_v35 = vadd.f32 %v5909_v31, %v5813_v19  ;;  %v11550_v15 = vadd.f32 %v6005_v13, %v5877_v33 }
 0x218   : > { %v11552_v17 = vadd.f32 %v4805_v61, %v4677_v47  ;;  %v3658_v25 = vpack.c.bf16 %v3626_v8, %v13776_v62  ;;  %v11555_v0 = vmax.f32 %v5974_v23, 0.0  ;;  %v5879_v11 = vunpack.c.h.bf16 %v5783_v26  ;;  %v11575_v62 = vld [vmem:[%s9396_s15 + $0x26c] ss:$268 sps:$4 sm:$0xff]  }
 0x219   : > { %13773 = vst [vmem:[#allocation64_spill] sm:$0xff] %v11548_v35  ;;  %13774 = vst [vmem:[#allocation70_spill] sm:$0xff] %v11550_v15  ;;  %v6007_v63 = vmax.f32 %v5975_v14, 0.0  ;;  %v2069_v48 = vadd.f32 %v2068_v21, %v13535_v24  ;;  %v2076_v9 = vpop.f32.mrf.mxu0  ;;  %v2267_v51 = vpop.f32.mrf.mxu1  ;;  %v4616_v32 = vunpack.c.l.bf16 %v11540_v3  ;;  %v4712_v19 = vmax.f32 %v11536_v53, 0.0 }
 0x21a   : > { %13775 = vst [vmem:[#allocation127_spill] sm:$0xff] %v11552_v17  ;;  %13777 = vst [vmem:[#allocation67_spill] sm:$0xff] %v11555_v0  ;;  %3892 = vmatprep.mubr.bf16.mxu0 %v3658_v25  ;;  %v11560_v13 = vadd.f32 %v2259_v12, %v2067_v39  ;;  %v4617_v47 = vunpack.c.l.bf16 %v11546_v42  ;;  %v11563_v61 = vadd.f32 %v4806_v5, %v4678_v37  ;;  %v4679_v31 = vunpack.c.h.bf16 %v11496_v1  ;;  %v13780_v1 = vld [vmem:[#allocation66_spill] sm:$0xff]  ;;  %v13781_v5 = vld [vmem:[#allocation69_spill] sm:$0xff] }
 0x21b   : > { %v11565_v33 = vadd.f32 %v5911_v36, %v5815_v16  ;;  %v4775_v23 = vsub.f32 0.0, %v11504_v30  ;;  %v2078_v26 = vpop.f32.mrf.mxu0  ;;  %v2269_v21 = vpop.f32.mrf.mxu1  ;;  %v5976_v14 = vsub.f32 0.0, %v11510_v22  ;;  %v2073_v12 = vadd.f32 %v2072_v44, %v13530_v7  ;;  %v5785_v44 = vld [vmem:[%s9396_s15 + $0x358] sm:$0xff]  }
 0x21c   : > { %v4713_v8 = vmax.f32 %v11560_v13, 0.0  ;;  %v11572_v39 = vadd.f32 %v2261_v38, %v2069_v48  ;;  %v11577_v37 = vadd.f32 %v6007_v63, %v5879_v11  ;;  %v5818_v16 = vunpack.c.h.bf16 %v11575_v62  ;;  %v5832_v17 = vld [vmem:[%s9396_s15 + $0x13c] sm:$0xf] }
 0x21d   : > { %13778 = vst [vmem:[#allocation128_spill] sm:$0xff] %v11565_v33  ;;  %v3657_v30 = vpack.c.bf16 %v13781_v5, %v13780_v1  ;;  %v3468_v36 = vunpack.c.l.bf16 %v11453_v46  ;;  %v2082_v25 = vpop.f32.mrf.mxu0  ;;  %v2271_v6 = vpop.f32.mrf.mxu1  ;;  %v11583_v22 = vadd.f32 %v4712_v19, %v4616_v32  ;;  %v4776_v10 = vsub.f32 0.0, %v11536_v53  ;;  %v13784_v1 = vld [vmem:[#allocation73_spill] sm:$0xff] }
 0x21e   : > { %13779 = vst [vmem:[#allocation129_spill] sm:$0xff] %v11577_v37  ;;  %v11587_v38 = vadd.f32 %v4713_v8, %v4617_v47  ;;  %v5914_v48 = vmax.f32 %v11572_v39, 0.0  ;;  %v4807_v11 = vmax.f32 %v4775_v23, 0.0  ;;  %v5977_v63 = vsub.f32 0.0, %v11543_v29 }
 0x21f   : > { %13782 = vst [vmem:[#allocation66_spill] sm:$0xff] %v11583_v22  ;;  %3893 = vmatmul.mubr.bf16.gmra.mxu0 %v3657_v30  ;;  %v3628_v5 = vadd.f32 %v13784_v1, %v3468_v36  ;;  %v2075_v46 = vadd.f32 %v2074_v49, %v13535_v24  ;;  %v2084_v37 = vpop.f32.mrf.mxu0  ;;  %v2275_v32 = vpop.f32.mrf.mxu1  ;;  %v11593_v19 = vmax.f32 %v5976_v14, 0.0  ;;  %v2266_v8 = vadd.f32 %v2265_v45, %v2073_v12  ;;  %v13787_v30 = vld [vmem:[#allocation72_spill] sm:$0xff] }
 0x220   : > { %13783 = vst [vmem:[#allocation69_spill] sm:$0xff] %v11587_v38  ;;  %v11597_v47 = vadd.f32 %v5914_v48, %v5818_v16  ;;  %v4680_v23 = vunpack.c.h.bf16 %v11540_v3  ;;  %v5817_v33 = vunpack.c.l.bf16 %v5785_v44  ;;  %v5913_v35 = vmax.f32 %v11543_v29, 0.0  ;;  %v11603_v36 = vld [vmem:[%s9396_s15 + $0x390] sm:$0xff]  }
 0x221   : > { %13785 = vst [vmem:[#allocation73_spill] sm:$0xff] %v11593_v19  ;;  %v3660_v15 = vpack.c.bf16 %v3628_v5, %v13787_v30  ;;  %v11606_v49 = vld [vmem:[%s9396_s15 + $0x3b0] sm:$0xff]   ;;  %v2086_v1 = vpop.f32.mrf.mxu0  ;;  %v4808_v14 = vmax.f32 %v4776_v10, 0.0  ;;  %v4777_v19 = vsub.f32 0.0, %v11560_v13  ;;  %v2077_v16 = vadd.f32 %v2076_v9, %v13530_v7  ;;  %v2277_v5 = vpop.f32.mrf.mxu1  ;;  %v11618_v13 = vld [vmem:[%s9396_s15 + $0x2ac] ss:$268 sps:$4 sm:$0xff]  }
 0x222   : > { %13786 = vst [vmem:[#allocation130_spill] sm:$0xff] %v11597_v47  ;;  %v11610_v48 = vadd.f32 %v2267_v51, %v2075_v46  ;;  %v11612_v45 = vadd.f32 %v4807_v11, %v4679_v31  ;;  %v5881_v3 = vunpack.c.h.bf16 %v5785_v44  ;;  %v6009_v12 = vmax.f32 %v5977_v63, 0.0 }
 0x223   : > { %3900 = vmatprep.mubr.bf16.mxu0 %v3660_v15  ;;  %v2079_v29 = vadd.f32 %v2078_v26, %v13535_v24  ;;  %v2088_v30 = vpop.f32.mrf.mxu0  ;;  %v4618_v53 = vunpack.c.l.bf16 %v11603_v36  ;;  %v4714_v22 = vmax.f32 %v2266_v8, 0.0  ;;  %v2270_v38 = vadd.f32 %v2269_v21, %v2077_v16 }
 0x224   : > { %v4619_v10 = vunpack.c.l.bf16 %v11606_v49  ;;  %v11620_v9 = vadd.f32 %v5913_v35, %v5817_v33  ;;  %v2083_v51 = vadd.f32 %v2082_v25, %v13530_v7  ;;  %v5820_v15 = vunpack.c.h.bf16 %v11618_v13  ;;  %v13789_v35 = vld [vmem:[#allocation71_spill] sm:$0xff] }
 0x225   : > { %v11623_v31 = vadd.f32 %v2271_v6, %v2079_v29  ;;  %v11626_v26 = vpop.f32.mrf.mxu0  ;;  %v11628_v44 = vadd.f32 %v4808_v14, %v4680_v23  ;;  %v4681_v11 = vunpack.c.h.bf16 %v11546_v42  ;;  %v4809_v21 = vmax.f32 %v4777_v19, 0.0  ;;  %v13790_v33 = vld [vmem:[#allocation3_spill] sm:$0xff]  ;;  %v2279_v6 = vpop.f32.mrf.mxu1  ;;  %v11640_v14 = vld [vmem:[%s9396_s15 + $0x398] sm:$0xff]  }
 0x226   : > { %13788 = vst [vmem:[#allocation72_spill] sm:$0xff] %v11620_v9  ;;  %v4715_v63 = vmax.f32 %v2270_v38, 0.0  ;;  %v4778_v46 = vsub.f32 0.0, %v2266_v8  ;;  %v3659_v47 = vpack.c.bf16 %v13790_v33, %v13789_v35  ;;  %v3470_v25 = vunpack.c.l.bf16 %v11515_v20  ;;  %13793 = vst [vmem:[#allocation131_spill] sm:$0xff] %v11640_v14  ;;  %v13796_v20 = vld [vmem:[#allocation7_spill] sm:$0xff] }
 0x227   : > { %v5916_v16 = vmax.f32 %v11623_v31, 0.0  ;;  %v7390_v29 = vpop.f32.mrf.mxu0  ;;  %v11635_v9 = vadd.f32 %v6009_v12, %v5881_v3  ;;  %v11637_v23 = vadd.f32 %v4714_v22, %v4618_v53  ;;  %v2085_v19 = vadd.f32 %v2084_v37, %v13535_v24  ;;  %v11660_v37 = vld [vmem:[%s9396_s15 + $0x3f0] sm:$0xff]  }
 0x228   : > { %v11642_v42 = vadd.f32 %v4715_v63, %v4619_v10  ;;  %v5978_v8 = vsub.f32 0.0, %v11572_v39  ;;  %3901 = vmatmul.mubr.bf16.gmra.mxu0 %v3659_v47  ;;  %v3630_v35 = vadd.f32 %v13796_v20, %v3470_v25  ;;  %v11649_v33 = vadd.f32 %v2275_v32, %v2083_v51  ;;  %v11657_v63 = vld [vmem:[%s9396_s15 + $0x3d0] sm:$0xff]   ;;  %v2281_v51 = vpop.f32.mrf.mxu1 }
 0x229   : > { %13791 = vst [vmem:[#allocation71_spill] sm:$0xff] %v11635_v9  ;;  %13792 = vst [vmem:[#allocation3_spill] sm:$0xff] %v11637_v23  ;;  %v11646_v0 = vadd.f32 %v5916_v16, %v5820_v15  ;;  %v7392_v3 = vpop.f32.mrf.mxu0  ;;  %v11651_v12 = vadd.f32 %v4809_v21, %v4681_v11  ;;  %v4682_v22 = vunpack.c.h.bf16 %v11603_v36  ;;  %v4779_v53 = vsub.f32 0.0, %v2270_v38  ;;  %v13799_v15 = vld [vmem:[#allocation5_spill] sm:$0xff] }
 0x22a   : > { %13794 = vst [vmem:[#allocation132_spill] sm:$0xff] %v11642_v42  ;;  %13797 = vst [vmem:[#allocation7_spill] sm:$0xff] %v11649_v33  ;;  %v4810_v39 = vmax.f32 %v4778_v46, 0.0  ;;  %v5819_v47 = vunpack.c.l.bf16 %v11640_v14  ;;  %v3662_v16 = vpack.c.bf16 %v3630_v35, %v13799_v15  ;;  %v2087_v32 = vadd.f32 %v2086_v1, %v13530_v7  ;;  %v13821_v9 = vld [vmem:[#allocation17_spill] sm:$0xff] }
 0x22b   : > { %13795 = vst [vmem:[#allocation133_spill] sm:$0xff] %v11646_v0  ;;  %13798 = vst [vmem:[#allocation134_spill] sm:$0xff] %v11657_v63  ;;  %v7393_v11 = vpop.f32.mrf.mxu0  ;;  %v5915_v36 = vmax.f32 %v11610_v48, 0.0  ;;  %v5979_v38 = vsub.f32 0.0, %v11610_v48  ;;  %v11667_v21 = vadd.f32 %v2277_v5, %v2085_v19  ;;  %v2089_v25 = vadd.f32 %v2088_v30, %v13535_v24  ;;  %v5790_v5 = vld [vmem:[%s9396_s15 + $0x2ec] ss:$268 sps:$4 sm:$0xff]  }
 0x22c   : > { %3908 = vmatprep.mubr.bf16.mxu0 %v3662_v16  ;;  %v4620_v46 = vunpack.c.l.bf16 %v11657_v63  ;;  %v4716_v20 = vmax.f32 %v11649_v33, 0.0  ;;  %v11672_v10 = vadd.f32 %v2279_v6, %v2087_v32  ;;  %v4621_v7 = vunpack.c.l.bf16 %v11660_v37  ;;  %v13825_v63 = vld [vmem:[#allocation23_spill] sm:$0xff]  ;;  %v13834_v33 = vld [vmem:[#allocation82_spill] sm:$0xff] }
 0x22d   : > { %13800 = vst [vmem:[#allocation5_spill] sm:$0xff] %v11667_v21  ;;  %v7395_v1 = vpop.f32.mrf.mxu0  ;;  %v4683_v35 = vunpack.c.h.bf16 %v11606_v49  ;;  %v4811_v15 = vmax.f32 %v4779_v53, 0.0  ;;  %v5980_v23 = vsub.f32 0.0, %v11623_v31  ;;  %v11677_v48 = vadd.f32 %v2281_v51, %v2089_v25  ;;  %v13808_v51 = vld [vmem:[#allocation34_spill] sm:$0xff] }
 0x22e   : > { %v11680_v19 = vmax.f32 %v5978_v8, 0.0  ;;  %v4717_v30 = vmax.f32 %v11672_v10, 0.0  ;;  %v5822_v16 = vunpack.c.h.bf16 %v5790_v5  ;;  %v11684_v32 = vadd.f32 %v4810_v39, %v4682_v22  ;;  %v13807_v8 = vld [vmem:[#allocation4_spill] sm:$0xff]  ;;  %v11701_v22 = vld [vmem:[%s13051_s5] ss:$0 sm:$0xff] }
 0x22f   : > { %13801 = vst [vmem:[#allocation135_spill] sm:$0xff] %v11677_v48  ;;  %v7396_v6 = vpop.f32.mrf.mxu0  ;;  %v11686_v42 = vadd.f32 %v5915_v36, %v5819_v47  ;;  %v11688_v0 = vmax.f32 %v5979_v38, 0.0  ;;  %v5918_v49 = vmax.f32 %v11677_v48, 0.0  ;;  %v11691_v31 = vadd.f32 %v4716_v20, %v4620_v46  ;;  %v13822_v48 = vld [vmem:[#allocation19_spill] sm:$0xff] }
 0x230   : > { %13802 = vst [vmem:[#allocation136_spill] sm:$0xff] %v11680_v19  ;;  %v11693_v53 = vadd.f32 %v4717_v30, %v4621_v7  ;;  %v3661_v25 = vpack.c.bf16 %v13808_v51, %v13807_v8  ;;  %v3472_v24 = vunpack.c.l.bf16 %v11575_v62  ;;  %v11703_v47 = vadd.f32 %v4811_v15, %v4683_v35  ;;  %v13812_v62 = vld [vmem:[#allocation11_spill] sm:$0xff]  ;;  %v13813_v35 = vld [vmem:[#allocation8_spill] sm:$0xff]  ;;  %v13814_v15 = vld [vmem:[#allocation10_spill] sm:$0xff] }
 0x231   : > { %13803 = vst [vmem:[#allocation137_spill] sm:$0xff] %v11686_v42  ;;  %13804 = vst [vmem:[#allocation138_spill] sm:$0xff] %v11688_v0  ;;  %v7398_v39 = vpop.f32.mrf.mxu0  ;;  %v11705_v36 = vmax.f32 %v5980_v23, 0.0  ;;  %v11707_v38 = vadd.f32 %v5918_v49, %v5822_v16  ;;  %v7391_v46 = vadd.f32 %v7390_v29, %v11626_v26  ;;  %v7394_v8 = vadd.f32 %v7393_v11, %v7392_v3  ;;  %v13816_v7 = vld [vmem:[#allocation12_spill] sm:$0xff] }
 0x232   : > { %13805 = vst [vmem:[#allocation139_spill] sm:$0xff] %v11691_v31  ;;  %13806 = vst [vmem:[#allocation140_spill] sm:$0xff] %v11693_v53  ;;  %3909 = vmatmul.mubr.bf16.gmra.mxu0 %v3661_v25  ;;  %v3632_v30 = vadd.f32 %v13812_v62, %v3472_v24  ;;  %v3663_v23 = vpack.c.bf16 %v13814_v15, %v13813_v35  ;;  %v3474_v16 = vunpack.c.l.bf16 %v11618_v13  ;;  %v13817_v25 = vld [vmem:[#allocation15_spill] sm:$0xff]  ;;  %v13820_v53 = vld [vmem:[#allocation77_spill] sm:$0xff]  ;;  %v13836_v14 = vsub.f32 0.0, %v11672_v10 }
 0x233   : > { %13809 = vst [vmem:[#allocation4_spill] sm:$0xff] %v11703_v47  ;;  %13810 = vst [vmem:[#allocation34_spill] sm:$0xff] %v11705_v36  ;;  %v7399_v51 = vpop.f32.mrf.mxu0  ;;  %v2774_v42 = vadd.f32 %v7391_v46, %v11701_v22  ;;  %v7397_v49 = vadd.f32 %v7396_v6, %v7395_v1  ;;  %v2777_v29 = vadd.f32 %v7394_v8, %v11701_v22  ;;  %v13818_v62 = vld [vmem:[#allocation75_spill] sm:$0xff]  ;;  %v3476_v6 = vunpack.c.l.bf16 %v5790_v5  ;;  %v13819_v8 = vld [vmem:[#allocation13_spill] sm:$0xff] }
 0x234   : > { %13811 = vst [vmem:[#allocation141_spill] sm:$0xff] %v11707_v38  ;;  %v13815_v38 = vld [vmem:[#allocation74_spill] sm:$0xff]  ;;  %v7400_v20 = vadd.f32 %v7399_v51, %v7398_v39  ;;  %v3634_v46 = vadd.f32 %v13818_v62, %v3474_v16  ;;  %v3448_v39 = vld [vmem:[%s9396_s15 + $0x36c] sm:$0xf] }
 0x235   : > { %v3664_v26 = vpack.c.bf16 %v3632_v30, %v13815_v38  ;;  %v7401_v36 = vpop.f32.mrf.mxu0  ;;  %v2900_v3 = vmax.f32 %v2774_v42, 0.0  ;;  %v2932_v11 = vsub.f32 0.0, %v2774_v42  ;;  %v2782_v31 = vadd.f32 %v7397_v49, %v11701_v22  ;;  %v3446_v42 = vld [vmem:[%s9396_s15 + $0x32c] sm:$0xf] }
 0x236   : > { %v2901_v35 = vmax.f32 %v2777_v29, 0.0  ;;  %v2933_v13 = vsub.f32 0.0, %v2777_v29  ;;  %v2785_v1 = vadd.f32 %v7400_v20, %v11701_v22  ;;  %v3666_v51 = vpack.c.bf16 %v3634_v46, %v13819_v8  ;;  %v3450_v8 = vld [vmem:[%s9396_s15 + $0x3ac] sm:$0xf] }
 0x237   : > { %3916 = vmatprep.mubr.bf16.mxu0 %v3664_v26  ;;  %v7402_v38 = vpop.f32.mrf.mxu0  ;;  %v2934_v15 = vsub.f32 0.0, %v2782_v31  ;;  %v2964_v24 = vmax.f32 %v2932_v11, 0.0  ;;  %v3636_v20 = vadd.f32 %v13820_v53, %v3476_v6  ;;  %v2902_v21 = vmax.f32 %v2782_v31, 0.0  ;;  %v8633_v31 = vld [vmem:[%s13052_s6 + $0x30] sm:$0xff]  }
 0x238   : > { %v2996_v16 = vpack.c.bf16 %v2901_v35, %v2900_v3  ;;  %v2935_v49 = vsub.f32 0.0, %v2785_v1  ;;  %v2965_v26 = vmax.f32 %v2933_v13, 0.0  ;;  %v2903_v29 = vmax.f32 %v2785_v1, 0.0  ;;  %v8629_v3 = vld [vmem:[%s13052_s6 + $0x38] sm:$0xff]   ;;  %v13823_v1 = vld [vmem:[#allocation18_spill] sm:$0xff] }
 0x239   : > { %v7404_v62 = vpop.f32.mrf.mxu0  ;;  %v7403_v5 = vadd.f32 %v7402_v38, %v7401_v36  ;;  %v2966_v30 = vmax.f32 %v2934_v15, 0.0  ;;  %v3478_v13 = vunpack.c.l.bf16 %v3446_v42  ;;  %v3668_v53 = vpack.c.bf16 %v3636_v20, %v13823_v1  ;;  %v13824_v38 = vld [vmem:[#allocation20_spill] sm:$0xff]  ;;  %v3452_v15 = vld [vmem:[%s9396_s15 + $0x3ec] sm:$0xf]  ;;  %v13826_v42 = vld [vmem:[#allocation78_spill] sm:$0xff] }
 0x23a   : > { %3917 = vmatmul.mubr.bf16.gmra.mxu0 %v3663_v23  ;;  %v2997_v46 = vpack.c.bf16 %v2965_v26, %v2964_v24  ;;  %v2967_v35 = vmax.f32 %v2935_v49, 0.0  ;;  %v8632_v24 = vld [vmem:[%s13052_s6 + $0x70] sm:$0xff]   ;;  %v13828_v1 = vld [vmem:[#allocation79_spill] sm:$0xff]  ;;  %v3482_v23 = vunpack.c.l.bf16 %v3450_v8  ;;  %v2998_v0 = vpack.c.bf16 %v2903_v29, %v2902_v21  ;;  %v5826_v8 = vld [vmem:[%s9396_s15 + $0x7c] sm:$0xf] }
 0x23b   : > { %v7405_v11 = vpop.f32.mrf.mxu0  ;;  %3924 = vmatprep.mubr.bf16.mxu0 %v3666_v51  ;;  %v11739_v36 = vadd.f32 %v7403_v5, %v11701_v22  ;;  %v11748_v19 = vadd.f32 %v13826_v42, %v3478_v13  ;;  %v3480_v51 = vunpack.c.l.bf16 %v3448_v39  ;;  %v13827_v20 = vld [vmem:[#allocation24_spill] sm:$0xff]  ;;  %v13830_v13 = vld [vmem:[#allocation81_spill] sm:$0xff]  ;;  %v13835_v5 = vld [vmem:[#allocation30_spill] sm:$0xff]  ;;  %v5858_v54 = vunpack.c.l.bf16 %v5826_v8 }
 0x23c   : > { %v7406_v6 = vadd.f32 %v7405_v11, %v7404_v62  ;;  %3195 = vmatprep.mubr.bf16.mxu1 %v2997_v46  ;;  %v2999_v49 = vpack.c.bf16 %v2967_v35, %v2966_v30  ;;  %v13829_v46 = vld [vmem:[#allocation21_spill] sm:$0xff]  ;;  %v13831_v42 = vld [vmem:[#allocation28_spill] sm:$0xff]  ;;  %v11774_v47 = vadd.f32 %v13834_v33, %v3482_v23  ;;  %v11789_v33 = vmax.f32 %v13836_v14, 0.0 }
 0x23d   : > { %v7407_v26 = vpop.f32.mrf.mxu0  ;;  %v2936_v62 = vsub.f32 0.0, %v11739_v36  ;;  %3196 = vmatmul.mubr.bf16.vlgmr.msra.gmra.mxu1 %v2996_v16  ;;  %v11759_v39 = vadd.f32 %v13830_v13, %v3480_v51  ;;  %v13832_v16 = vld [vmem:[#allocation36_spill] sm:$0xff]  ;;  %v8636_v51 = vld [vmem:[%s13052_s6 + $0x68] sm:$0xff]   ;;  %v13833_v30 = vld [vmem:[#allocation25_spill] sm:$0xff]  ;;  %v2904_v10 = vmax.f32 %v11739_v36, 0.0 }
 0x23e   : > { %v11754_v11 = vadd.f32 %v7406_v6, %v11701_v22  ;;  %7710 = vmatpush3.bf16.msra.mxu1 %v8629_v3  ;;  %3203 = vmatprep.mubr.bf16.mxu1 %v2999_v49  ;;  %v3484_v6 = vunpack.c.l.bf16 %v3452_v15  ;;  %v8641_v36 = vld [vmem:[%s13052_s6 + $0x20] sm:$0xff]   ;;  %v13848_v8 = vld [vmem:[#allocation89_spill] sm:$0xff] }
 0x23f   : > { %v7408_v35 = vpop.f32.mrf.mxu0  ;;  %7711 = vmatprep.subr.bf16.mxu1 %v8632_v24  ;;  %v2968_v21 = vmax.f32 %v2936_v62, 0.0  ;;  %v11846_v52 = vadd.f32 %v13848_v8, %v5858_v54 }
 0x240   : > { %v2937_v3 = vsub.f32 0.0, %v11754_v11  ;;  %v7409_v49 = vadd.f32 %v7408_v35, %v7407_v26  ;;  %v11777_v15 = vadd.f32 %v10784_v2, %v3484_v6  ;;  %v5824_v26 = vld [vmem:[%s9396_s15 + $0x3c] sm:$0xf]  ;;  %v13837_v2 = vpack.c.bf16 %v13817_v25, %v13816_v7  ;;  %v8637_v35 = vld [vmem:[%s13052_s6 + $0x28] sm:$0xff]  }
 0x241   : > { %v7410_v13 = vpop.f32.mrf.mxu0  ;;  %v13838_v6 = vld [vmem:[#allocation29_spill] sm:$0xff] }
 0x242   : > { %v11783_v29 = vadd.f32 %v7409_v49, %v11701_v22  ;;  %v2969_v24 = vmax.f32 %v2937_v3, 0.0  ;;  %3925 = vmatmul.mubr.bf16.gmra.mxu0 %v13837_v2  ;;  %7712 = vmatpush3.bf16.msra.mxu1 %v8633_v31  ;;  %v13839_v49 = vld [vmem:[#allocation2_spill] sm:$0xff]  ;;  %v5856_v2 = vunpack.c.l.bf16 %v5824_v26 }
 0x243   : > { %v7411_v23 = vpop.f32.mrf.mxu0  ;;  %3932 = vmatprep.mubr.bf16.mxu0 %v3668_v53  ;;  %7713 = vmatprep.subr.bf16.mxu1 %v8636_v51  ;;  %v8640_v31 = vld [vmem:[%s13052_s6 + $0x60] sm:$0xff]   ;;  %v5830_v53 = vld [vmem:[%s9396_s15 + $0xfc] sm:$0xf] }
 0x244   : > { %v7412_v7 = vadd.f32 %v7411_v23, %v7410_v13  ;;  %v3001_v25 = vpack.c.bf16 %v2969_v24, %v2968_v21  ;;  %v2938_v51 = vsub.f32 0.0, %v11783_v29  ;;  %v5828_v24 = vld [vmem:[%s9396_s15 + $0xbc] sm:$0xf]  ;;  %v2905_v21 = vmax.f32 %v11754_v11, 0.0  ;;  %v13857_v11 = vld [vmem:[#allocation92_spill] sm:$0xff] }
 0x245   : > { %v7413_v3 = vpop.f32.mrf.mxu0  ;;  %3204 = vmatmul.mubr.bf16.gmra.mxu1 %v2998_v0  ;;  %v5862_v50 = vunpack.c.l.bf16 %v5830_v53  ;;  %v13859_v53 = vld [vmem:[#allocation96_spill] sm:$0xff] }
 0x246   : > { %v11818_v13 = vadd.f32 %v7412_v7, %v11701_v22  ;;  %3211 = vmatprep.mubr.bf16.mxu1 %v3001_v25  ;;  %7714 = vmatpush3.bf16.msra.mxu1 %v8637_v35  ;;  %v13847_v7 = vld [vmem:[#allocation85_spill] sm:$0xff] }
 0x247   : > { %v7414_v23 = vpop.f32.mrf.mxu0  ;;  %7715 = vmatprep.subr.bf16.mxu1 %v8640_v31  ;;  %v11843_v62 = vadd.f32 %v13847_v7, %v5856_v2  ;;  %v5860_v31 = vunpack.c.l.bf16 %v5828_v24  ;;  %v13853_v2 = vpack.c.bf16 %v13822_v48, %v13821_v9  ;;  %v8645_v24 = vld [vmem:[%s13052_s6 + $0x18] sm:$0xff]   ;;  %v13854_v7 = vld [vmem:[#allocation84_spill] sm:$0xff]  ;;  %v13856_v9 = vpack.c.bf16 %v11748_v19, %v13829_v46  ;;  %v13872_v46 = vld [vmem:[#allocation103_spill] sm:$0xff] }
 0x248   : > { %v2939_v25 = vsub.f32 0.0, %v11818_v13  ;;  %v7415_v35 = vadd.f32 %v7414_v23, %v7413_v3  ;;  %v2970_v23 = vmax.f32 %v2938_v51, 0.0  ;;  %v5834_v3 = vld [vmem:[%s9396_s15 + $0x17c] sm:$0xf]  ;;  %v2906_v48 = vmax.f32 %v11783_v29, 0.0  ;;  %v8648_v51 = vld [vmem:[%s13052_s6 + $0x50] sm:$0xff]  }
 0x249   : > { %v7416_v34 = vpop.f32.mrf.mxu0  ;;  %v11878_v8 = vadd.f32 %v13857_v11, %v5860_v31  ;;  %v11881_v58 = vadd.f32 %v13859_v53, %v5862_v50  ;;  %v5864_v29 = vunpack.c.l.bf16 %v5832_v17  ;;  %v8649_v50 = vld [vmem:[%s13052_s6 + $0x10] sm:$0xff]   ;;  %v13868_v17 = vld [vmem:[#allocation38_spill] sm:$0xff]  ;;  %v13877_v19 = vpack.c.bf16 %v13825_v63, %v13824_v38 }
 0x24a   : > { %v11851_v26 = vadd.f32 %v7415_v35, %v11701_v22  ;;  %v2971_v0 = vmax.f32 %v2939_v25, 0.0  ;;  %3933 = vmatmul.mubr.bf16.gmra.mxu0 %v13853_v2  ;;  %7716 = vmatpush3.bf16.msra.mxu1 %v8641_v36  ;;  %v3000_v36 = vpack.c.bf16 %v2905_v21, %v2904_v10  ;;  %v5836_v25 = vld [vmem:[%s9396_s15 + $0x1bc] sm:$0xf]  ;;  %v13881_v63 = vpack.c.bf16 %v11759_v39, %v13833_v30 }
 0x24b   : > { %v7417_v54 = vpop.f32.mrf.mxu0  ;;  %3940 = vmatprep.mubr.bf16.mxu0 %v13856_v9  ;;  %7717 = vmatprep.subr.bf16.mxu1 %v8644_v4  ;;  %13858 = vst [vmem:[#allocation11_spill] sm:$0xff] %v11878_v8  ;;  %13860 = vst [vmem:[#allocation8_spill] sm:$0xff] %v11881_v58  ;;  %v5868_v9 = vunpack.c.l.bf16 %v5836_v25  ;;  %v5840_v35 = vld [vmem:[%s9396_s15 + $0x23c] sm:$0xf]  ;;  %v13901_v8 = vld [vmem:[#allocation4_spill] sm:$0xff] }
 0x24c   : > { %v7418_v2 = vadd.f32 %v7417_v54, %v7416_v34  ;;  %v3003_v41 = vpack.c.bf16 %v2971_v0, %v2970_v23  ;;  %v2940_v34 = vsub.f32 0.0, %v11851_v26  ;;  %v5866_v23 = vunpack.c.l.bf16 %v5834_v3  ;;  %v5842_v25 = vld [vmem:[%s9396_s15 + $0x27c] sm:$0xf] }
 0x24d   : > { %v7419_v14 = vpop.f32.mrf.mxu0  ;;  %3212 = vmatmul.mubr.bf16.gmra.mxu1 %v3000_v36  ;;  %v2907_v0 = vmax.f32 %v11818_v13, 0.0  ;;  %v5838_v36 = vld [vmem:[%s9396_s15 + $0x1fc] sm:$0xf]  ;;  %v11915_v54 = vadd.f32 %v13872_v46, %v5868_v9  ;;  %v8653_v9 = vld [vmem:[%s13052_s6 + $0x8] sm:$0xff]   ;;  %v2908_v38 = vmax.f32 %v11851_v26, 0.0  ;;  %v5874_v39 = vunpack.c.l.bf16 %v5842_v25 }
 0x24e   : > { %v11887_v4 = vadd.f32 %v7418_v2, %v11701_v22  ;;  %3219 = vmatprep.mubr.bf16.mxu1 %v3003_v41  ;;  %7718 = vmatpush3.bf16.msra.mxu1 %v8645_v24  ;;  %v13867_v2 = vld [vmem:[#allocation16_spill] sm:$0xff]  ;;  %v8652_v24 = vld [vmem:[%s13052_s6 + $0x48] sm:$0xff]   ;;  %v11907_v10 = vadd.f32 %v13868_v17, %v5866_v23  ;;  %v2972_v58 = vmax.f32 %v2940_v34, 0.0  ;;  %v13876_v17 = vld [vmem:[#allocation33_spill] sm:$0xff] }
 0x24f   : > { %v7420_v11 = vpop.f32.mrf.mxu0  ;;  %v11899_v53 = vadd.f32 %v13867_v2, %v5864_v29  ;;  %7719 = vmatprep.subr.bf16.mxu1 %v8648_v51  ;;  %v13869_v29 = vld [vmem:[#allocation9_spill] sm:$0xff]  ;;  %13873 = vst [vmem:[#allocation10_spill] sm:$0xff] %v11915_v54  ;;  %v8656_v34 = vld [vmem:[%s13052_s6 + $0x40] sm:$0xff]   ;;  %v5872_v51 = vunpack.c.l.bf16 %v5840_v35 }
 0x250   : > { %v2941_v41 = vsub.f32 0.0, %v11887_v4  ;;  %v7421_v3 = vadd.f32 %v7420_v11, %v7419_v14  ;;  %v5870_v11 = vunpack.c.l.bf16 %v5838_v36  ;;  %v5844_v2 = vld [vmem:[%s9396_s15 + $0x2bc] sm:$0xf]  ;;  %v8657_v35 = vld [vmem:[%s13052_s6] sm:$0xff]  }
 0x251   : > { %v7422_v21 = vpop.f32.mrf.mxu0  ;;  %v13892_v30 = vld [vmem:[#allocation125_spill] sm:$0xff] }
 0x252   : > { %v11920_v31 = vadd.f32 %v7421_v3, %v11701_v22  ;;  %v2973_v23 = vmax.f32 %v2941_v41, 0.0  ;;  %3941 = vmatmul.mubr.bf16.gmra.mxu0 %v13877_v19  ;;  %7720 = vmatpush3.bf16.msra.mxu1 %v8649_v50  ;;  %v3002_v19 = vpack.c.bf16 %v2907_v0, %v2906_v48  ;;  %v5846_v3 = vld [vmem:[%s9396_s15 + $0x2fc] sm:$0xf]  ;;  %v13882_v41 = vld [vmem:[#allocation107_spill] sm:$0xff]  ;;  %v2909_v0 = vmax.f32 %v11887_v4, 0.0  ;;  %v13894_v48 = vld [vmem:[#allocation112_spill] sm:$0xff] }
 0x253   : > { %v7423_v46 = vpop.f32.mrf.mxu0  ;;  %3948 = vmatprep.mubr.bf16.mxu0 %v13881_v63  ;;  %7721 = vmatprep.subr.bf16.mxu1 %v8652_v24  ;;  %v11948_v54 = vadd.f32 %v13882_v41, %v5870_v11  ;;  %v5876_v24 = vunpack.c.l.bf16 %v5844_v2  ;;  %v13890_v63 = vld [vmem:[#allocation119_spill] sm:$0xff] }
 0x254   : > { %v7424_v50 = vadd.f32 %v7423_v46, %v7422_v21  ;;  %v3005_v13 = vpack.c.bf16 %v2973_v23, %v2972_v58  ;;  %v2942_v26 = vsub.f32 0.0, %v11920_v31  ;;  %v13889_v46 = vld [vmem:[#allocation115_spill] sm:$0xff] }
 0x255   : > { %v7425_v36 = vpop.f32.mrf.mxu0  ;;  %13883 = vst [vmem:[#allocation74_spill] sm:$0xff] %v11948_v54  ;;  %3220 = vmatmul.mubr.bf16.gmra.mxu1 %v3002_v19  ;;  %v11964_v41 = vadd.f32 %v13889_v46, %v5872_v51  ;;  %v11967_v19 = vadd.f32 %v13890_v63, %v5874_v39  ;;  %v11975_v25 = vadd.f32 %v13892_v30, %v5876_v24  ;;  %v5848_v51 = vld [vmem:[%s9396_s15 + $0x33c] sm:$0xf] }
 0x256   : > { %v11954_v58 = vadd.f32 %v7424_v50, %v11701_v22  ;;  %3227 = vmatprep.mubr.bf16.mxu1 %v3005_v13  ;;  %7722 = vmatpush3.bf16.msra.mxu1 %v8653_v9  ;;  %v5878_v50 = vunpack.c.l.bf16 %v5846_v3  ;;  %v8660_v9 = vld [vmem:[%s13052_s6 + $0x78] sm:$0xff]   ;;  %v13900_v39 = vpack.c.bf16 %v13828_v1, %v13827_v20  ;;  %v13905_v3 = vld [vmem:[#allocation7_spill] sm:$0xff]  ;;  %v13907_v24 = vpack.c.bf16 %v11774_v47, %v13838_v6  ;;  %v13915_v6 = vld [vmem:[#allocation138_spill] sm:$0xff] }
 0x257   : > { %v7426_v23 = vpop.f32.mrf.mxu0  ;;  %13891 = vst [vmem:[#allocation12_spill] sm:$0xff] %v11967_v19  ;;  %7723 = vmatprep.subr.bf16.mxu1 %v8656_v34  ;;  %13893 = vst [vmem:[#allocation15_spill] sm:$0xff] %v11975_v25  ;;  %v5850_v54 = vld [vmem:[%s9396_s15 + $0x37c] sm:$0xf]  ;;  %v13906_v19 = vsub.f32 0.0, %v13905_v3  ;;  %v3004_v20 = vpack.c.bf16 %v2909_v0, %v2908_v38 }
 0x258   : > { %v2943_v2 = vsub.f32 0.0, %v11954_v58  ;;  %v7427_v13 = vadd.f32 %v7426_v23, %v7425_v36  ;;  %v13898_v36 = vld [vmem:[#allocation67_spill] sm:$0xff]  ;;  %v2974_v23 = vmax.f32 %v2942_v26, 0.0  ;;  %v13908_v63 = vld [vmem:[#allocation73_spill] sm:$0xff]  ;;  %v2911_v3 = vmax.f32 %v11954_v58, 0.0 }
 0x259   : > { %v7428_v46 = vpop.f32.mrf.mxu0  ;;  %v11985_v34 = vadd.f32 %v13898_v36, %v5878_v50  ;;  %v4812_v11 = vmax.f32 %v13906_v19, 0.0  ;;  %v13917_v38 = vld [vmem:[#allocation5_spill] sm:$0xff]  ;;  %v13921_v36 = vld [vmem:[#allocation134_spill] sm:$0xff]  ;;  %v13924_v26 = vld [vmem:[#allocation71_spill] sm:$0xff] }
 0x25a   : > { %v11988_v14 = vadd.f32 %v7427_v13, %v11701_v22  ;;  %v2975_v30 = vmax.f32 %v2943_v2, 0.0  ;;  %3949 = vmatmul.mubr.bf16.gmra.mxu0 %v13900_v39  ;;  %7724 = vmatpush3.bf16.msra.mxu1 %v8657_v35  ;;  %v5880_v2 = vunpack.c.l.bf16 %v5848_v51  ;;  %v5882_v51 = vunpack.c.l.bf16 %v5850_v54  ;;  %v13913_v13 = vld [vmem:[#allocation131_spill] sm:$0xff] }
 0x25b   : > { %v7429_v4 = vpop.f32.mrf.mxu0  ;;  %3956 = vmatprep.mubr.bf16.mxu0 %v13907_v24  ;;  %7933 = vmatprep.subr.bf16.mxu1 %v8660_v9  ;;  %v13914_v47 = vunpack.c.h.bf16 %v13913_v13  ;;  %v5981_v0 = vsub.f32 0.0, %v13917_v38  ;;  %v13922_v21 = vunpack.c.h.bf16 %v13921_v36  ;;  %v13925_v13 = vld [vmem:[#allocation34_spill] sm:$0xff] }
 0x25c   : > { %v7430_v1 = vadd.f32 %v7429_v4, %v7428_v46  ;;  %v3007_v35 = vpack.c.bf16 %v2975_v30, %v2974_v23  ;;  %v12008_v25 = vadd.f32 %v13908_v63, %v5880_v2  ;;  %v2944_v9 = vsub.f32 0.0, %v11988_v14  ;;  %v5852_v4 = vld [vmem:[%s9396_s15 + $0x3bc] sm:$0xf]  ;;  %v13920_v2 = vld [vmem:[#allocation136_spill] sm:$0xff] }
 0x25d   : > { %v7431_v39 = vpop.f32.mrf.mxu0  ;;  %v12017_v24 = vadd.f32 %v13915_v6, %v13914_v47  ;;  %3228 = vmatmul.mubr.bf16.gmra.mxu1 %v3004_v20  ;;  %v13918_v63 = vunpack.c.h.bf16 %v11660_v37  ;;  %v12031_v47 = vadd.f32 %v13920_v2, %v5882_v51  ;;  %v5884_v6 = vunpack.c.l.bf16 %v5852_v4 }
 0x25e   : > { %v2825_v46 = vadd.f32 %v7430_v1, %v11701_v22  ;;  %3235 = vmatprep.mubr.bf16.mxu1 %v3007_v35  ;;  %v12035_v20 = vadd.f32 %v4812_v11, %v13922_v21  ;;  %v5789_v1 = vld [vmem:[%s9396_s15 + $0x3d8] sm:$0xff]   ;;  %v2910_v21 = vmax.f32 %v11920_v31, 0.0  ;;  %v2976_v11 = vmax.f32 %v2944_v9, 0.0 }
 0x25f   : > { %13916 = vst [vmem:[#allocation75_spill] sm:$0xff] %v12017_v24  ;;  %v12026_v54 = vadd.f32 %v11789_v33, %v13918_v63  ;;  %v7432_v23 = vpop.f32.mrf.mxu0  ;;  %v13923_v33 = vld [vmem:[#allocation135_spill] sm:$0xff]  ;;  %v12043_v30 = vadd.f32 %v13925_v13, %v5884_v6  ;;  %v6013_v50 = vmax.f32 %v5981_v0, 0.0  ;;  %v5854_v6 = vld [vmem:[%s9396_s15 + $0x3fc] sm:$0xf] }
 0x260   : > { %v2945_v37 = vsub.f32 0.0, %v2825_v46  ;;  %v7433_v19 = vadd.f32 %v7432_v23, %v7431_v39  ;;  %v5982_v63 = vsub.f32 0.0, %v13923_v33  ;;  %v5821_v39 = vunpack.c.l.bf16 %v5789_v1 }
 0x261   : > { %v7434_v35 = vpop.f32.mrf.mxu0  ;;  %v5917_v23 = vmax.f32 %v13917_v38, 0.0  ;;  %v13928_v33 = vpack.c.bf16 %v13832_v16, %v13831_v42  ;;  %v3006_v9 = vpack.c.bf16 %v2911_v3, %v2910_v21  ;;  %v5885_v38 = vunpack.c.h.bf16 %v5789_v1 }
 0x262   : > { %v12049_v36 = vadd.f32 %v7433_v19, %v11701_v22  ;;  %v2977_v58 = vmax.f32 %v2945_v37, 0.0  ;;  %v13929_v19 = vpack.c.bf16 %v11777_v15, %v13839_v49  ;;  %v6014_v51 = vmax.f32 %v5982_v63, 0.0  ;;  %v13930_v63 = vld [vmem:[#allocation141_spill] sm:$0xff] }
 0x263   : > { %3957 = vmatmul.mubr.bf16.gmra.mxu0 %v13928_v33  ;;  %v7435_v13 = vpop.f32.mrf.mxu0  ;;  %v12065_v4 = vadd.f32 %v5917_v23, %v5821_v39  ;;  %v5886_v24 = vunpack.c.l.bf16 %v5854_v6  ;;  %v2913_v15 = vmax.f32 %v2825_v46, 0.0 }
 0x264   : > { %3964 = vmatprep.mubr.bf16.mxu0 %v13929_v19  ;;  %v7436_v37 = vadd.f32 %v7435_v13, %v7434_v35  ;;  %v3009_v2 = vpack.c.bf16 %v2977_v58, %v2976_v11  ;;  %v2946_v16 = vsub.f32 0.0, %v12049_v36  ;;  %v12067_v35 = vadd.f32 %v6013_v50, %v5885_v38 }
 0x265   : > { %v7437_v42 = vpop.f32.mrf.mxu0  ;;  %3236 = vmatmul.mubr.bf16.gmra.mxu1 %v3006_v9  ;;  %v12069_v0 = vadd.f32 %v6014_v51, %v5886_v24  ;;  %v6077_v21 = vpack.c.bf16 %v13930_v63, %v12065_v4  ;;  %v2912_v11 = vmax.f32 %v11988_v14, 0.0  ;;  %v13932_v24 = vpack.c.bf16 %v10835_v28, %v10792_v59  ;;  %v8642_v59 = vld [vmem:[%s13050_s4 + $0x70] sm:$0xff]  }
 0x266   : > { %v2833_v33 = vadd.f32 %v7436_v37, %v11701_v22  ;;  %3243 = vmatprep.mubr.bf16.mxu1 %v3009_v2  ;;  %v2978_v58 = vmax.f32 %v2946_v16, 0.0  ;;  %v13931_v2 = vpack.c.bf16 %v10782_v40, %v13835_v5  ;;  %v8639_v5 = vld [vmem:[%s13050_s4 + $0x38] sm:$0xff]   ;;  %v2914_v28 = vmax.f32 %v12049_v36, 0.0  ;;  %v8643_v36 = vld [vmem:[%s13050_s4 + $0x30] sm:$0xff]  }
 0x267   : > { %v7438_v31 = vpop.f32.mrf.mxu0  ;;  %v6078_v50 = vpack.c.bf16 %v12069_v0, %v12067_v35  ;;  %v3008_v51 = vpack.c.bf16 %v2913_v15, %v2912_v11 }
 0x268   : > { %v2947_v49 = vsub.f32 0.0, %v2833_v33  ;;  %v7439_v3 = vadd.f32 %v7438_v31, %v7437_v42  ;;  %v2915_v40 = vmax.f32 %v2833_v33, 0.0 }
 0x269   : > { %v7440_v1 = vpop.f32.mrf.mxu0 }
 0x26a   : > { %v2838_v39 = vadd.f32 %v7439_v3, %v11701_v22  ;;  %v2979_v23 = vmax.f32 %v2947_v49, 0.0  ;;  %v13933_v3 = vld [vmem:[#allocation32_spill] sm:$0xff] }
 0x26b   : > { %3965 = vmatmul.mubr.bf16.gmra.mxu0 %v13931_v2  ;;  %v7441_v46 = vpop.f32.mrf.mxu0 }
 0x26c   : > { %5045 = vmatprep.mubr.bf16.mxu0 %v13932_v24  ;;  %v7442_v13 = vadd.f32 %v7441_v46, %v7440_v1  ;;  %v3011_v6 = vpack.c.bf16 %v2979_v23, %v2978_v58  ;;  %v2948_v31 = vsub.f32 0.0, %v2838_v39  ;;  %v13934_v1 = vld [vmem:[#allocation42_spill] sm:$0xff]  ;;  %v13936_v58 = vpack.c.bf16 %v10890_v55, %v10852_v18 }
 0x26d   : > { %v7443_v14 = vpop.f32.mrf.mxu0  ;;  %3244 = vmatmul.mubr.bf16.gmra.mxu1 %v3008_v51  ;;  %v13935_v33 = vpack.c.bf16 %v13933_v3, %v13934_v1  ;;  %v3010_v23 = vpack.c.bf16 %v2915_v40, %v2914_v28  ;;  %v8646_v51 = vld [vmem:[%s13050_s4 + $0x68] sm:$0xff]   ;;  %v13937_v28 = vld [vmem:[#allocation45_spill] sm:$0xff]  ;;  %v13940_v3 = vpack.c.bf16 %v10959_v56, %v10916_v60 }
 0x26e   : > { %v2841_v19 = vadd.f32 %v7442_v13, %v11701_v22  ;;  %3251 = vmatprep.mubr.bf16.mxu1 %v3011_v6  ;;  %v2980_v16 = vmax.f32 %v2948_v31, 0.0 }
 0x26f   : > { %v7444_v9 = vpop.f32.mrf.mxu0 }
 0x270   : > { %v2949_v37 = vsub.f32 0.0, %v2841_v19  ;;  %v7445_v38 = vadd.f32 %v7444_v9, %v7443_v14  ;;  %v2917_v55 = vmax.f32 %v2841_v19, 0.0  ;;  %v8647_v9 = vld [vmem:[%s13050_s4 + $0x28] sm:$0xff]  }
 0x271   : > { %v7446_v42 = vpop.f32.mrf.mxu0  ;;  %v13938_v19 = vld [vmem:[#allocation39_spill] sm:$0xff] }
 0x272   : > { %v2846_v15 = vadd.f32 %v7445_v38, %v11701_v22  ;;  %v2981_v49 = vmax.f32 %v2949_v37, 0.0  ;;  %v2916_v37 = vmax.f32 %v2838_v39, 0.0  ;;  %v8651_v39 = vld [vmem:[%s13050_s4 + $0x20] sm:$0xff]  }
 0x273   : > { %5046 = vmatmul.mubr.bf16.vlgmr.msra.gmra.mxu0 %v13935_v33  ;;  %v7447_v11 = vpop.f32.mrf.mxu0 }
 0x274   : > { %5053 = vmatprep.mubr.bf16.mxu0 %v13936_v58  ;;  %8046 = vmatpush3.bf16.msra.mxu0 %v8639_v5  ;;  %v7448_v2 = vadd.f32 %v7447_v11, %v7446_v42  ;;  %v3013_v46 = vpack.c.bf16 %v2981_v49, %v2980_v16  ;;  %v2950_v13 = vsub.f32 0.0, %v2846_v15  ;;  %v8650_v5 = vld [vmem:[%s13050_s4 + $0x60] sm:$0xff]   ;;  %v13939_v16 = vpack.c.bf16 %v13937_v28, %v13938_v19 }
 0x275   : > { %v7449_v24 = vpop.f32.mrf.mxu0  ;;  %8047 = vmatprep.subr.bf16.mxu0 %v8642_v59  ;;  %3252 = vmatmul.mubr.bf16.gmra.mxu1 %v3010_v23  ;;  %v3012_v1 = vpack.c.bf16 %v2917_v55, %v2916_v37  ;;  %v8654_v23 = vld [vmem:[%s13050_s4 + $0x58] sm:$0xff]   ;;  %v2918_v55 = vmax.f32 %v2846_v15, 0.0  ;;  %v8659_v15 = vld [vmem:[%s13050_s4 + $0x10] sm:$0xff]  }
 0x276   : > { %v2849_v6 = vadd.f32 %v7448_v2, %v11701_v22  ;;  %3259 = vmatprep.mubr.bf16.mxu1 %v3013_v46  ;;  %v2982_v38 = vmax.f32 %v2950_v13, 0.0 }
 0x277   : > { %v7450_v18 = vpop.f32.mrf.mxu0 }
 0x278   : > { %v2951_v14 = vsub.f32 0.0, %v2849_v6  ;;  %8048 = vmatpush3.bf16.msra.mxu0 %v8643_v36  ;;  %v7451_v31 = vadd.f32 %v7450_v18, %v7449_v24  ;;  %v2919_v56 = vmax.f32 %v2849_v6, 0.0  ;;  %v8658_v18 = vld [vmem:[%s13050_s4 + $0x50] sm:$0xff]   ;;  %v13942_v6 = vld [vmem:[#allocation57_spill] sm:$0xff] }
 0x279   : > { %v7452_v40 = vpop.f32.mrf.mxu0  ;;  %8049 = vmatprep.subr.bf16.mxu0 %v8646_v51  ;;  %v8655_v51 = vld [vmem:[%s13050_s4 + $0x18] sm:$0xff]  }
 0x27a   : > { %v2854_v42 = vadd.f32 %v7451_v31, %v11701_v22  ;;  %v2983_v59 = vmax.f32 %v2951_v14, 0.0 }
 0x27b   : > { %5054 = vmatmul.mubr.bf16.gmra.mxu0 %v13939_v16  ;;  %v7453_v49 = vpop.f32.mrf.mxu0 }
 0x27c   : > { %5061 = vmatprep.mubr.bf16.mxu0 %v13940_v3  ;;  %v7454_v33 = vadd.f32 %v7453_v49, %v7452_v40  ;;  %v3015_v11 = vpack.c.bf16 %v2983_v59, %v2982_v38  ;;  %8050 = vmatpush3.bf16.msra.mxu0 %v8647_v9  ;;  %v2952_v2 = vsub.f32 0.0, %v2854_v42  ;;  %v13941_v40 = vld [vmem:[#allocation86_spill] sm:$0xff]  ;;  %v13944_v38 = vpack.c.bf16 %v10989_v27, %v10969_v57  ;;  %v8662_v49 = vld [vmem:[%s13050_s4 + $0x48] sm:$0xff]  }
 0x27d   : > { %v7455_v58 = vpop.f32.mrf.mxu0  ;;  %8051 = vmatprep.subr.bf16.mxu0 %v8650_v5  ;;  %3260 = vmatmul.mubr.bf16.gmra.mxu1 %v3012_v1  ;;  %v13943_v5 = vpack.c.bf16 %v13941_v40, %v13942_v6  ;;  %v3014_v59 = vpack.c.bf16 %v2919_v56, %v2918_v55 }
 0x27e   : > { %v2857_v46 = vadd.f32 %v7454_v33, %v11701_v22  ;;  %3267 = vmatprep.mubr.bf16.mxu1 %v3015_v11  ;;  %v2984_v14 = vmax.f32 %v2952_v2, 0.0  ;;  %v2920_v2 = vmax.f32 %v2854_v42, 0.0  ;;  %v8667_v42 = vld [vmem:[%s13050_s4] sm:$0xff]  }
 0x27f   : > { %v7456_v60 = vpop.f32.mrf.mxu0 }
 0x280   : > { %v2953_v36 = vsub.f32 0.0, %v2857_v46  ;;  %v7457_v24 = vadd.f32 %v7456_v60, %v7455_v58  ;;  %8052 = vmatpush3.bf16.msra.mxu0 %v8651_v39  ;;  %v2921_v27 = vmax.f32 %v2857_v46, 0.0  ;;  %v8663_v39 = vld [vmem:[%s13050_s4 + $0x8] sm:$0xff]  }
 0x281   : > { %v7458_v13 = vpop.f32.mrf.mxu0  ;;  %8053 = vmatprep.subr.bf16.mxu0 %v8654_v23  ;;  %v8666_v23 = vld [vmem:[%s13050_s4 + $0x40] sm:$0xff]   ;;  %v13946_v46 = vld [vmem:[#allocation47_spill] sm:$0xff] }
 0x282   : > { %v2862_v31 = vadd.f32 %v7457_v24, %v11701_v22  ;;  %v2985_v9 = vmax.f32 %v2953_v36, 0.0  ;;  %v13945_v24 = vld [vmem:[#allocation44_spill] sm:$0xff] }
 0x283   : > { %5062 = vmatmul.mubr.bf16.gmra.mxu0 %v13943_v5  ;;  %v7459_v37 = vpop.f32.mrf.mxu0 }
 0x284   : > { %5069 = vmatprep.mubr.bf16.mxu0 %v13944_v38  ;;  %v7460_v28 = vadd.f32 %v7459_v37, %v7458_v13  ;;  %v3017_v19 = vpack.c.bf16 %v2985_v9, %v2984_v14  ;;  %8054 = vmatpush3.bf16.msra.mxu0 %v8655_v51  ;;  %v2954_v3 = vsub.f32 0.0, %v2862_v31  ;;  %v13947_v51 = vpack.c.bf16 %v13945_v24, %v13946_v46 }
 0x285   : > { %v7461_v16 = vpop.f32.mrf.mxu0  ;;  %8055 = vmatprep.subr.bf16.mxu0 %v8658_v18  ;;  %3268 = vmatmul.mubr.bf16.gmra.mxu1 %v3014_v59  ;;  %v13948_v18 = vld [vmem:[#allocation97_spill] sm:$0xff]  ;;  %v3016_v14 = vpack.c.bf16 %v2921_v27, %v2920_v2  ;;  %v13951_v27 = vld [vmem:[#allocation6_spill] sm:$0xff] }
 0x286   : > { %v2865_v1 = vadd.f32 %v7460_v28, %v11701_v22  ;;  %3275 = vmatprep.mubr.bf16.mxu1 %v3017_v19  ;;  %v2986_v60 = vmax.f32 %v2954_v3, 0.0  ;;  %v13949_v55 = vpack.c.bf16 %v11061_v43, %v13948_v18 }
 0x287   : > { %v7462_v57 = vpop.f32.mrf.mxu0 }
 0x288   : > { %v2955_v33 = vsub.f32 0.0, %v2865_v1  ;;  %v7463_v11 = vadd.f32 %v7462_v57, %v7461_v16  ;;  %8056 = vmatpush3.bf16.msra.mxu0 %v8659_v15  ;;  %v2923_v59 = vmax.f32 %v2865_v1, 0.0  ;;  %v2922_v15 = vmax.f32 %v2862_v31, 0.0  ;;  %v13950_v57 = vld [vmem:[#allocation94_spill] sm:$0xff] }
 0x289   : > { %v7464_v58 = vpop.f32.mrf.mxu0  ;;  %8057 = vmatprep.subr.bf16.mxu0 %v8662_v49 }
 0x28a   : > { %v2870_v56 = vadd.f32 %v7463_v11, %v11701_v22  ;;  %v2987_v36 = vmax.f32 %v2955_v33, 0.0  ;;  %v13952_v33 = vpack.c.bf16 %v13950_v57, %v13951_v27  ;;  %v3018_v2 = vpack.c.bf16 %v2923_v59, %v2922_v15 }
 0x28b   : > { %5070 = vmatmul.mubr.bf16.gmra.mxu0 %v13947_v51  ;;  %v7465_v13 = vpop.f32.mrf.mxu0 }
 0x28c   : > { %5077 = vmatprep.mubr.bf16.mxu0 %v13949_v55  ;;  %v7466_v9 = vadd.f32 %v7465_v13, %v7464_v58  ;;  %v3019_v40 = vpack.c.bf16 %v2987_v36, %v2986_v60  ;;  %8058 = vmatpush3.bf16.msra.mxu0 %v8663_v39  ;;  %v2956_v5 = vsub.f32 0.0, %v2870_v56  ;;  %v13953_v39 = vld [vmem:[#allocation76_spill] sm:$0xff] }
 0x28d   : > { %v7467_v6 = vpop.f32.mrf.mxu0  ;;  %8059 = vmatprep.subr.bf16.mxu0 %v8666_v23  ;;  %3276 = vmatmul.mubr.bf16.gmra.mxu1 %v3016_v14  ;;  %v13954_v58 = vld [vmem:[#allocation52_spill] sm:$0xff]  ;;  %v2924_v14 = vmax.f32 %v2870_v56, 0.0 }
 0x28e   : > { %v2873_v37 = vadd.f32 %v7466_v9, %v11701_v22  ;;  %3283 = vmatprep.mubr.bf16.mxu1 %v3019_v40  ;;  %v2988_v16 = vmax.f32 %v2956_v5, 0.0  ;;  %v13955_v23 = vpack.c.bf16 %v13953_v39, %v13954_v58  ;;  %v13957_v5 = vld [vmem:[#allocation43_spill] sm:$0xff] }
 0x28f   : > { %v7468_v38 = vpop.f32.mrf.mxu0 }
 0x290   : > { %v2957_v28 = vsub.f32 0.0, %v2873_v37  ;;  %v7469_v43 = vadd.f32 %v7468_v38, %v7467_v6  ;;  %8060 = vmatpush3.bf16.msra.mxu0 %v8667_v42  ;;  %v2925_v51 = vmax.f32 %v2873_v37, 0.0  ;;  %v13956_v6 = vld [vmem:[#allocation46_spill] sm:$0xff] }
 0x291   : > { %v7470_v19 = vpop.f32.mrf.mxu0  ;;  %v13958_v38 = vpack.c.bf16 %v13956_v6, %v13957_v5 }
 0x292   : > { %v2878_v49 = vadd.f32 %v7469_v43, %v11701_v22  ;;  %v2989_v3 = vmax.f32 %v2957_v28, 0.0  ;;  %v13959_v28 = vld [vmem:[#allocation101_spill] sm:$0xff]  ;;  %v3020_v15 = vpack.c.bf16 %v2925_v51, %v2924_v14 }
 0x293   : > { %5078 = vmatmul.mubr.bf16.gmra.mxu0 %v13952_v33  ;;  %v7471_v11 = vpop.f32.mrf.mxu0  ;;  %v13960_v43 = vld [vmem:[#allocation37_spill] sm:$0xff] }
 0x294   : > { %5085 = vmatprep.mubr.bf16.mxu0 %v13955_v23  ;;  %v7472_v1 = vadd.f32 %v7471_v11, %v7470_v19  ;;  %v3021_v60 = vpack.c.bf16 %v2989_v3, %v2988_v16  ;;  %v2958_v24 = vsub.f32 0.0, %v2878_v49  ;;  %v13961_v19 = vpack.c.bf16 %v13959_v28, %v13960_v43 }
 0x295   : > { %v7473_v36 = vpop.f32.mrf.mxu0  ;;  %3284 = vmatmul.mubr.bf16.gmra.mxu1 %v3018_v2  ;;  %v2926_v23 = vmax.f32 %v2878_v49, 0.0 }
 0x296   : > { %v2881_v31 = vadd.f32 %v7472_v1, %v11701_v22  ;;  %3291 = vmatprep.mubr.bf16.mxu1 %v3021_v60  ;;  %v2990_v9 = vmax.f32 %v2958_v24, 0.0  ;;  %v13963_v24 = vld [vmem:[#allocation31_spill] sm:$0xff] }
 0x297   : > { %v7474_v46 = vpop.f32.mrf.mxu0 }
 0x298   : > { %v2959_v13 = vsub.f32 0.0, %v2881_v31  ;;  %v7475_v18 = vadd.f32 %v7474_v46, %v7473_v36  ;;  %v2927_v33 = vmax.f32 %v2881_v31, 0.0  ;;  %v13962_v36 = vld [vmem:[#allocation41_spill] sm:$0xff] }
 0x299   : > { %v7476_v55 = vpop.f32.mrf.mxu0  ;;  %v13964_v46 = vpack.c.bf16 %v13962_v36, %v13963_v24 }
 0x29a   : > { %v2886_v40 = vadd.f32 %v7475_v18, %v11701_v22  ;;  %v2991_v42 = vmax.f32 %v2959_v13, 0.0  ;;  %v13965_v13 = vld [vmem:[#allocation54_spill] sm:$0xff]  ;;  %v13966_v18 = vld [vmem:[#allocation48_spill] sm:$0xff]  ;;  %v3022_v14 = vpack.c.bf16 %v2927_v33, %v2926_v23 }
 0x29b   : > { %5086 = vmatmul.mubr.bf16.gmra.mxu0 %v13958_v38  ;;  %v7477_v59 = vpop.f32.mrf.mxu0 }
 0x29c   : > { %5093 = vmatprep.mubr.bf16.mxu0 %v13961_v19  ;;  %v7478_v16 = vadd.f32 %v7477_v59, %v7476_v55  ;;  %v3023_v37 = vpack.c.bf16 %v2991_v42, %v2990_v9  ;;  %v2960_v57 = vsub.f32 0.0, %v2886_v40  ;;  %v13967_v55 = vpack.c.bf16 %v13965_v13, %v13966_v18 }
 0x29d   : > { %v7479_v3 = vpop.f32.mrf.mxu0  ;;  %3292 = vmatmul.mubr.bf16.gmra.mxu1 %v3020_v15  ;;  %v2928_v19 = vmax.f32 %v2886_v40, 0.0 }
 0x29e   : > { %v2889_v56 = vadd.f32 %v7478_v16, %v11701_v22  ;;  %3299 = vmatprep.mubr.bf16.mxu1 %v3023_v37  ;;  %v2992_v2 = vmax.f32 %v2960_v57, 0.0  ;;  %v12189_v16 = vld [vmem:[%s13051_s5] ss:$0 sm:$0xff]  ;;  %v13968_v57 = vld [vmem:[#allocation100_spill] sm:$0xff] }
 0x29f   : > { %v7480_v27 = vpop.f32.mrf.mxu0 }
 0x2a0   : > { %v2961_v11 = vsub.f32 0.0, %v2889_v56  ;;  %v7481_v39 = vadd.f32 %v7480_v27, %v7479_v3  ;;  %v2929_v38 = vmax.f32 %v2889_v56, 0.0  ;;  %v13969_v27 = vld [vmem:[#allocation99_spill] sm:$0xff]  ;;  %v13972_v56 = vld [vmem:[#allocation108_spill] sm:$0xff] }
 0x2a1   : > { %v7482_v58 = vpop.f32.mrf.mxu0  ;;  %v13970_v33 = vpack.c.bf16 %v13968_v57, %v13969_v27 }
 0x2a2   : > { %v2894_v1 = vadd.f32 %v7481_v39, %v11701_v22  ;;  %v2993_v60 = vmax.f32 %v2961_v11, 0.0  ;;  %v13971_v11 = vld [vmem:[#allocation114_spill] sm:$0xff] }
 0x2a3   : > { %5094 = vmatmul.mubr.bf16.gmra.mxu0 %v13964_v46  ;;  %v7483_v51 = vpop.f32.mrf.mxu0  ;;  %v13973_v39 = vpack.c.bf16 %v13971_v11, %v13972_v56 }
 0x2a4   : > { %5101 = vmatprep.mubr.bf16.mxu0 %v13967_v55  ;;  %v7484_v9 = vadd.f32 %v7483_v51, %v7482_v58  ;;  %v3025_v31 = vpack.c.bf16 %v2993_v60, %v2992_v2  ;;  %v2962_v6 = vsub.f32 0.0, %v2894_v1  ;;  %v3024_v58 = vpack.c.bf16 %v2929_v38, %v2928_v19 }
 0x2a5   : > { %v7613_v42 = vpop.f32.mrf.mxu0  ;;  %3300 = vmatmul.mubr.bf16.gmra.mxu1 %v3022_v14  ;;  %v2930_v55 = vmax.f32 %v2894_v1, 0.0 }
 0x2a6   : > { %v2897_v49 = vadd.f32 %v7484_v9, %v11701_v22  ;;  %3307 = vmatprep.mubr.bf16.mxu1 %v3025_v31  ;;  %v2994_v15 = vmax.f32 %v2962_v6, 0.0  ;;  %v13975_v6 = vld [vmem:[#allocation104_spill] sm:$0xff] }
 0x2a7   : > { %v7614_v5 = vpop.f32.mrf.mxu0 }
 0x2a8   : > { %v2963_v59 = vsub.f32 0.0, %v2897_v49  ;;  %v7615_v28 = vadd.f32 %v7614_v5, %v7613_v42  ;;  %v2931_v46 = vmax.f32 %v2897_v49, 0.0  ;;  %v13974_v42 = vld [vmem:[#allocation105_spill] sm:$0xff] }
 0x2a9   : > { %v7616_v43 = vpop.f32.mrf.mxu0  ;;  %v13976_v5 = vpack.c.bf16 %v13974_v42, %v13975_v6 }
 0x2aa   : > { %v3847_v37 = vadd.f32 %v12189_v16, %v7615_v28  ;;  %v2995_v3 = vmax.f32 %v2963_v59, 0.0  ;;  %v13977_v59 = vld [vmem:[#allocation59_spill] sm:$0xff]  ;;  %v13978_v28 = vld [vmem:[#allocation116_spill] sm:$0xff]  ;;  %v3026_v19 = vpack.c.bf16 %v2931_v46, %v2930_v55  ;;  %v8661_v46 = vld [vmem:[%s13052_s6 + $0x38] sm:$0xff]  }
 0x2ab   : > { %5102 = vmatmul.mubr.bf16.gmra.mxu0 %v13970_v33  ;;  %v7617_v22 = vpop.f32.mrf.mxu0 }
 0x2ac   : > { %5109 = vmatprep.mubr.bf16.mxu0 %v13973_v39  ;;  %v7618_v40 = vadd.f32 %v7617_v22, %v7616_v43  ;;  %v3027_v23 = vpack.c.bf16 %v2995_v3, %v2994_v15  ;;  %v4005_v60 = vsub.f32 0.0, %v3847_v37  ;;  %v13979_v43 = vpack.c.bf16 %v13977_v59, %v13978_v28  ;;  %v8668_v28 = vld [vmem:[%s13052_s6 + $0x68] sm:$0xff]  }
 0x2ad   : > { %v7619_v2 = vpop.f32.mrf.mxu0  ;;  %3308 = vmatmul.mubr.bf16.gmra.mxu1 %v3024_v58  ;;  %v3973_v39 = vmax.f32 %v3847_v37, 0.0 }
 0x2ae   : > { %v3850_v36 = vadd.f32 %v12189_v16, %v7618_v40  ;;  %3315 = vmatprep.mubr.bf16.mxu1 %v3027_v23  ;;  %v4037_v14 = vmax.f32 %v4005_v60, 0.0  ;;  %v13981_v60 = vld [vmem:[#allocation110_spill] sm:$0xff] }
 0x2af   : > { %v7620_v24 = vpop.f32.mrf.mxu0 }
 0x2b0   : > { %v4006_v51 = vsub.f32 0.0, %v3850_v36  ;;  %v7621_v13 = vadd.f32 %v7620_v24, %v7619_v2  ;;  %v3974_v33 = vmax.f32 %v3850_v36, 0.0  ;;  %v13980_v2 = vld [vmem:[#allocation111_spill] sm:$0xff]  ;;  %v13984_v36 = vld [vmem:[#allocation58_spill] sm:$0xff] }
 0x2b1   : > { %v7622_v18 = vpop.f32.mrf.mxu0  ;;  %v13982_v24 = vpack.c.bf16 %v13980_v2, %v13981_v60 }
 0x2b2   : > { %v3855_v9 = vadd.f32 %v12189_v16, %v7621_v13  ;;  %v4038_v31 = vmax.f32 %v4006_v51, 0.0  ;;  %v4069_v13 = vpack.c.bf16 %v3974_v33, %v3973_v39  ;;  %v8669_v33 = vld [vmem:[%s13052_s6 + $0x28] sm:$0xff]  }
 0x2b3   : > { %5110 = vmatmul.mubr.bf16.gmra.mxu0 %v13976_v5  ;;  %v7623_v38 = vpop.f32.mrf.mxu0  ;;  %v8665_v5 = vld [vmem:[%s13052_s6 + $0x30] sm:$0xff]  }
 0x2b4   : > { %5117 = vmatprep.mubr.bf16.mxu0 %v13979_v43  ;;  %v7624_v15 = vadd.f32 %v7623_v38, %v7622_v18  ;;  %v4070_v49 = vpack.c.bf16 %v4038_v31, %v4037_v14  ;;  %v4007_v57 = vsub.f32 0.0, %v3855_v9  ;;  %v13983_v18 = vld [vmem:[#allocation124_spill] sm:$0xff]  ;;  %v3975_v43 = vmax.f32 %v3855_v9, 0.0  ;;  %v8670_v9 = vld [vmem:[%s13052_s6 + $0x60] sm:$0xff]  }
 0x2b5   : > { %v7625_v3 = vpop.f32.mrf.mxu0  ;;  %3316 = vmatmul.mubr.bf16.gmra.mxu1 %v3026_v19  ;;  %v13985_v55 = vpack.c.bf16 %v13983_v18, %v13984_v36  ;;  %v8664_v31 = vld [vmem:[%s13052_s6 + $0x70] sm:$0xff]  }
 0x2b6   : > { %v3858_v1 = vadd.f32 %v12189_v16, %v7624_v15  ;;  %4268 = vmatprep.mubr.bf16.mxu1 %v4070_v49  ;;  %v4039_v58 = vmax.f32 %v4007_v57, 0.0  ;;  %v13987_v57 = vld [vmem:[#allocation53_spill] sm:$0xff] }
 0x2b7   : > { %v7626_v27 = vpop.f32.mrf.mxu0 }
 0x2b8   : > { %v4008_v22 = vsub.f32 0.0, %v3858_v1  ;;  %v7627_v11 = vadd.f32 %v7626_v27, %v7625_v3  ;;  %v3976_v38 = vmax.f32 %v3858_v1, 0.0  ;;  %v13986_v3 = vld [vmem:[#allocation55_spill] sm:$0xff] }
 0x2b9   : > { %v7628_v56 = vpop.f32.mrf.mxu0  ;;  %v13988_v27 = vpack.c.bf16 %v13986_v3, %v13987_v57  ;;  %v13989_v1 = vld [vmem:[#allocation127_spill] sm:$0xff] }
 0x2ba   : > { %v3863_v40 = vadd.f32 %v12189_v16, %v7627_v11  ;;  %v4040_v23 = vmax.f32 %v4008_v22, 0.0  ;;  %v13990_v22 = vld [vmem:[#allocation65_spill] sm:$0xff]  ;;  %v4071_v39 = vpack.c.bf16 %v3976_v38, %v3975_v43  ;;  %v13995_v38 = vpack.c.bf16 %v11612_v45, %v11563_v61  ;;  %v8675_v61 = vld [vmem:[%s13052_s6 + $0x10] sm:$0xff]  }
 0x2bb   : > { %5118 = vmatmul.mubr.bf16.gmra.mxu0 %v13982_v24  ;;  %v7629_v51 = vpop.f32.mrf.mxu0  ;;  %v13991_v11 = vpack.c.bf16 %v13989_v1, %v13990_v22  ;;  %v8671_v24 = vld [vmem:[%s13052_s6 + $0x20] sm:$0xff]   ;;  %v8676_v1 = vld [vmem:[%s13052_s6 + $0x48] sm:$0xff]  }
 0x2bc   : > { %5125 = vmatprep.mubr.bf16.mxu0 %v13985_v55  ;;  %v7630_v14 = vadd.f32 %v7629_v51, %v7628_v56  ;;  %v4072_v37 = vpack.c.bf16 %v4040_v23, %v4039_v58  ;;  %v4009_v42 = vsub.f32 0.0, %v3863_v40  ;;  %v3977_v36 = vmax.f32 %v3863_v40, 0.0  ;;  %v13992_v55 = vld [vmem:[#allocation120_spill] sm:$0xff] }
 0x2bd   : > { %4269 = vmatmul.mubr.bf16.vlgmr.msra.gmra.mxu1 %v4069_v13  ;;  %v8672_v13 = vld [vmem:[%s13052_s6 + $0x58] sm:$0xff]   ;;  %v8674_v40 = vld [vmem:[%s13052_s6 + $0x50] sm:$0xff]  }
 0x2be   : > { %v3866_v6 = vadd.f32 %v12189_v16, %v7630_v14  ;;  %7934 = vmatpush3.bf16.msra.mxu1 %v8661_v46  ;;  %4276 = vmatprep.mubr.bf16.mxu1 %v4072_v37  ;;  %v4041_v19 = vmax.f32 %v4009_v42, 0.0  ;;  %v13993_v14 = vld [vmem:[#allocation60_spill] sm:$0xff] }
 0x2bf   : > { %7935 = vmatprep.subr.bf16.mxu1 %v8664_v31  ;;  %v13994_v37 = vpack.c.bf16 %v13992_v55, %v13993_v14  ;;  %v8679_v14 = vld [vmem:[%s13052_s6] sm:$0xff]  }
 0x2c0   : > { %v4010_v59 = vsub.f32 0.0, %v3866_v6  ;;  %v3978_v46 = vmax.f32 %v3866_v6, 0.0  ;;  %v8673_v6 = vld [vmem:[%s13052_s6 + $0x18] sm:$0xff]  }
 0x2c2   : > { %v4042_v49 = vmax.f32 %v4010_v59, 0.0  ;;  %7936 = vmatpush3.bf16.msra.mxu1 %v8665_v5  ;;  %v4073_v59 = vpack.c.bf16 %v3978_v46, %v3977_v36  ;;  %v8677_v46 = vld [vmem:[%s13052_s6 + $0x8] sm:$0xff]  }
 0x2c3   : > { %v7631_v15 = vpop.f32.mrf.mxu0  ;;  %5126 = vmatmul.mubr.bf16.gmra.mxu0 %v13988_v27  ;;  %7937 = vmatprep.subr.bf16.mxu1 %v8668_v28 }
 0x2c4   : > { %5133 = vmatprep.mubr.bf16.mxu0 %v13991_v11  ;;  %v4074_v58 = vpack.c.bf16 %v4042_v49, %v4041_v19 }
 0x2c5   : > { %v7632_v56 = vpop.f32.mrf.mxu0  ;;  %4277 = vmatmul.mubr.bf16.gmra.mxu1 %v4071_v39  ;;  %v13997_v39 = vld [vmem:[#allocation63_spill] sm:$0xff] }
 0x2c6   : > { %v7633_v23 = vadd.f32 %v7632_v56, %v7631_v15  ;;  %4284 = vmatprep.mubr.bf16.mxu1 %v4074_v58  ;;  %7938 = vmatpush3.bf16.msra.mxu1 %v8669_v33  ;;  %v13996_v56 = vld [vmem:[#allocation126_spill] sm:$0xff] }
 0x2c7   : > { %v7634_v2 = vpop.f32.mrf.mxu0  ;;  %7939 = vmatprep.subr.bf16.mxu1 %v8670_v9  ;;  %v13998_v58 = vpack.c.bf16 %v13996_v56, %v13997_v39  ;;  %v13999_v9 = vpack.c.bf16 %v11651_v12, %v11628_v44 }
 0x2c8   : > { %v3871_v60 = vadd.f32 %v12189_v16, %v7633_v23 }
 0x2c9   : > { %v7635_v51 = vpop.f32.mrf.mxu0 }
 0x2ca   : > { %v7636_v18 = vadd.f32 %v7635_v51, %v7634_v2  ;;  %v4011_v31 = vsub.f32 0.0, %v3871_v60  ;;  %7940 = vmatpush3.bf16.msra.mxu1 %v8671_v24  ;;  %v3979_v22 = vmax.f32 %v3871_v60, 0.0  ;;  %v8678_v60 = vld [vmem:[%s13052_s6 + $0x40] sm:$0xff]  }
 0x2cb   : > { %5134 = vmatmul.mubr.bf16.gmra.mxu0 %v13994_v37  ;;  %v7637_v5 = vpop.f32.mrf.mxu0  ;;  %7941 = vmatprep.subr.bf16.mxu1 %v8672_v13 }
 0x2cc   : > { %v3874_v42 = vadd.f32 %v12189_v16, %v7636_v18  ;;  %5141 = vmatprep.mubr.bf16.mxu0 %v13995_v38  ;;  %v4043_v15 = vmax.f32 %v4011_v31, 0.0  ;;  %v14001_v38 = vld [vmem:[#allocation66_spill] sm:$0xff] }
 0x2cd   : > { %v7638_v43 = vpop.f32.mrf.mxu0  ;;  %4285 = vmatmul.mubr.bf16.gmra.mxu1 %v4073_v59 }
 0x2ce   : > { %v4012_v28 = vsub.f32 0.0, %v3874_v42  ;;  %v7639_v19 = vadd.f32 %v7638_v43, %v7637_v5  ;;  %7942 = vmatpush3.bf16.msra.mxu1 %v8673_v6  ;;  %v3980_v57 = vmax.f32 %v3874_v42, 0.0  ;;  %v8680_v5 = vld [vmem:[%s13052_s6 + $0x78] sm:$0xff]  }
 0x2cf   : > { %v7640_v49 = vpop.f32.mrf.mxu0  ;;  %7943 = vmatprep.subr.bf16.mxu1 %v8674_v40  ;;  %v14000_v6 = vld [vmem:[#allocation69_spill] sm:$0xff] }
 0x2d0   : > { %v4044_v3 = vmax.f32 %v4012_v28, 0.0  ;;  %v3879_v27 = vadd.f32 %v12189_v16, %v7639_v19  ;;  %v4075_v24 = vpack.c.bf16 %v3980_v57, %v3979_v22  ;;  %v14002_v59 = vpack.c.bf16 %v14000_v6, %v14001_v38  ;;  %v14004_v22 = vld [vmem:[#allocation132_spill] sm:$0xff] }
 0x2d1   : > { %v7641_v45 = vpop.f32.mrf.mxu0  ;;  %v14003_v28 = vpack.c.bf16 %v13901_v8, %v11684_v32 }
 0x2d2   : > { %v4076_v33 = vpack.c.bf16 %v4044_v3, %v4043_v15  ;;  %v7642_v11 = vadd.f32 %v7641_v45, %v7640_v49  ;;  %v4013_v23 = vsub.f32 0.0, %v3879_v27  ;;  %7944 = vmatpush3.bf16.msra.mxu1 %v8675_v61  ;;  %v3981_v37 = vmax.f32 %v3879_v27, 0.0 }
 0x2d3   : > { %5142 = vmatmul.mubr.bf16.gmra.mxu0 %v13998_v58  ;;  %7945 = vmatprep.subr.bf16.mxu1 %v8676_v1  ;;  %v14007_v58 = vpack.c.bf16 %v12026_v54, %v12035_v20 }
 0x2d4   : > { %4292 = vmatprep.mubr.bf16.mxu1 %v4076_v33  ;;  %5149 = vmatprep.mubr.bf16.mxu0 %v13999_v9  ;;  %v3882_v2 = vadd.f32 %v12189_v16, %v7642_v11  ;;  %v4045_v18 = vmax.f32 %v4013_v23, 0.0  ;;  %v14005_v11 = vld [vmem:[#allocation3_spill] sm:$0xff] }
 0x2d5   : > { %4293 = vmatmul.mubr.bf16.gmra.mxu1 %v4075_v24  ;;  %v14006_v32 = vpack.c.bf16 %v14004_v22, %v14005_v11 }
 0x2d6   : > { %v4014_v51 = vsub.f32 0.0, %v3882_v2  ;;  %v7643_v13 = vpop.f32.mrf.mxu0  ;;  %v3982_v44 = vmax.f32 %v3882_v2, 0.0  ;;  %7946 = vmatpush3.bf16.msra.mxu1 %v8677_v46 }
 0x2d7   : > { %7947 = vmatprep.subr.bf16.mxu1 %v8678_v60 }
 0x2d8   : > { %v7644_v12 = vpop.f32.mrf.mxu0  ;;  %v4046_v36 = vmax.f32 %v4014_v51, 0.0  ;;  %v4077_v19 = vpack.c.bf16 %v3982_v44, %v3981_v37 }
 0x2d9   : > { %v7645_v55 = vadd.f32 %v7644_v12, %v7643_v13  ;;  %v14008_v12 = vld [vmem:[#allocation140_spill] sm:$0xff] }
 0x2da   : > { %v7646_v31 = vpop.f32.mrf.mxu0  ;;  %v4078_v42 = vpack.c.bf16 %v4046_v36, %v4045_v18  ;;  %7948 = vmatpush3.bf16.msra.mxu1 %v8679_v14  ;;  %v14009_v36 = vld [vmem:[#allocation139_spill] sm:$0xff]  ;;  %v14011_v14 = vpack.c.bf16 %v11843_v62, %v13854_v7 }
 0x2db   : > { %5150 = vmatmul.mubr.bf16.gmra.mxu0 %v14002_v59  ;;  %v3887_v40 = vadd.f32 %v12189_v16, %v7645_v55  ;;  %8157 = vmatprep.subr.bf16.mxu1 %v8680_v5  ;;  %v14010_v55 = vpack.c.bf16 %v14008_v12, %v14009_v36 }
 0x2dc   : > { %5157 = vmatprep.mubr.bf16.mxu0 %v14003_v28  ;;  %v7647_v43 = vpop.f32.mrf.mxu0  ;;  %4300 = vmatprep.mubr.bf16.mxu1 %v4078_v42 }
 0x2dd   : > { %v7648_v15 = vadd.f32 %v7647_v43, %v7646_v31  ;;  %4301 = vmatmul.mubr.bf16.gmra.mxu1 %v4077_v19  ;;  %v4015_v49 = vsub.f32 0.0, %v3887_v40  ;;  %v3983_v39 = vmax.f32 %v3887_v40, 0.0 }
 0x2df   : > { %v3890_v3 = vadd.f32 %v12189_v16, %v7648_v15  ;;  %v7649_v57 = vpop.f32.mrf.mxu0  ;;  %v4047_v1 = vmax.f32 %v4015_v49, 0.0  ;;  %v14012_v49 = vld [vmem:[#allocation40_spill] sm:$0xff] }
 0x2e1   : > { %v4016_v27 = vsub.f32 0.0, %v3890_v3  ;;  %v7650_v61 = vpop.f32.mrf.mxu0  ;;  %v3984_v45 = vmax.f32 %v3890_v3, 0.0  ;;  %v14013_v3 = vld [vmem:[#allocation35_spill] sm:$0xff] }
 0x2e2   : > { %v7651_v33 = vadd.f32 %v7650_v61, %v7649_v57  ;;  %v14014_v62 = vpack.c.bf16 %v14012_v49, %v14013_v3  ;;  %v14015_v57 = vld [vmem:[#allocation87_spill] sm:$0xff]  ;;  %v14024_v49 = vld [vmem:[#allocation90_spill] sm:$0xff] }
 0x2e3   : > { %5158 = vmatmul.mubr.bf16.gmra.mxu0 %v14006_v32  ;;  %v7652_v8 = vpop.f32.mrf.mxu0  ;;  %v4048_v56 = vmax.f32 %v4016_v27, 0.0  ;;  %v4079_v46 = vpack.c.bf16 %v3984_v45, %v3983_v39  ;;  %v14016_v27 = vpack.c.bf16 %v11846_v52, %v14015_v57 }
 0x2e4   : > { %5165 = vmatprep.mubr.bf16.mxu0 %v14007_v58  ;;  %v3895_v9 = vadd.f32 %v12189_v16, %v7651_v33 }
 0x2e5   : > { %v7653_v23 = vpop.f32.mrf.mxu0  ;;  %v4080_v2 = vpack.c.bf16 %v4048_v56, %v4047_v1 }
 0x2e6   : > { %v7654_v24 = vadd.f32 %v7653_v23, %v7652_v8  ;;  %v4017_v60 = vsub.f32 0.0, %v3895_v9  ;;  %v3985_v42 = vmax.f32 %v3895_v9, 0.0 }
 0x2e7   : > { %4308 = vmatprep.mubr.bf16.mxu1 %v4080_v2  ;;  %v14017_v2 = vld [vmem:[#allocation83_spill] sm:$0xff] }
 0x2e8   : > { %v3898_v51 = vadd.f32 %v12189_v16, %v7654_v24  ;;  %4309 = vmatmul.mubr.bf16.gmra.mxu1 %v4079_v46  ;;  %v7655_v13 = vpop.f32.mrf.mxu0  ;;  %v4049_v20 = vmax.f32 %v4017_v60, 0.0  ;;  %v14018_v24 = vld [vmem:[#allocation49_spill] sm:$0xff] }
 0x2e9   : > { %v14019_v52 = vpack.c.bf16 %v14017_v2, %v14018_v24 }
 0x2ea   : > { %v4018_v18 = vsub.f32 0.0, %v3898_v51  ;;  %v3986_v44 = vmax.f32 %v3898_v51, 0.0  ;;  %v7656_v54 = vpop.f32.mrf.mxu0  ;;  %v14020_v51 = vld [vmem:[#allocation11_spill] sm:$0xff] }
 0x2eb   : > { %5166 = vmatmul.mubr.bf16.gmra.mxu0 %v14010_v55  ;;  %v7657_v37 = vadd.f32 %v7656_v54, %v7655_v13  ;;  %v14021_v13 = vld [vmem:[#allocation91_spill] sm:$0xff] }
 0x2ec   : > { %6246 = vmatprep.mubr.bf16.mxu0 %v14011_v14  ;;  %v4050_v31 = vmax.f32 %v4018_v18, 0.0  ;;  %v7658_v5 = vpop.f32.mrf.mxu0  ;;  %v4081_v40 = vpack.c.bf16 %v3986_v44, %v3985_v42  ;;  %v14022_v18 = vpack.c.bf16 %v14020_v51, %v14021_v13  ;;  %v12328_v42 = vld [vmem:[%s13053_s7] ss:$0 sm:$0xff] }
 0x2ed   : > { %v3903_v6 = vadd.f32 %v12189_v16, %v7657_v37 }
 0x2ee   : > { %v4082_v38 = vpack.c.bf16 %v4050_v31, %v4049_v20  ;;  %v7659_v59 = vpop.f32.mrf.mxu0 }
 0x2ef   : > { %v7660_v28 = vadd.f32 %v7659_v59, %v7658_v5  ;;  %v4019_v43 = vsub.f32 0.0, %v3903_v6  ;;  %v3987_v11 = vmax.f32 %v3903_v6, 0.0 }
 0x2f0   : > { %4316 = vmatprep.mubr.bf16.mxu1 %v4082_v38 }
 0x2f1   : > { %4317 = vmatmul.mubr.bf16.gmra.mxu1 %v4081_v40  ;;  %v3906_v19 = vadd.f32 %v12189_v16, %v7660_v28  ;;  %v4051_v33 = vmax.f32 %v4019_v43, 0.0 }
 0x2f2   : > { %v7661_v15 = vpop.f32.mrf.mxu0 }
 0x2f3   : > { %6247 = vmatmul.mubr.bf16.vlgmr.msra.gmra.mxu0 %v14014_v62  ;;  %v4020_v7 = vsub.f32 0.0, %v3906_v19  ;;  %v3988_v61 = vmax.f32 %v3906_v19, 0.0 }
 0x2f4   : > { %6254 = vmatprep.mubr.bf16.mxu0 %v14016_v27  ;;  %v7662_v45 = vpop.f32.mrf.mxu0 }
 0x2f5   : > { %v7663_v1 = vadd.f32 %v7662_v45, %v7661_v15  ;;  %v4052_v22 = vmax.f32 %v4020_v7, 0.0  ;;  %v4083_v58 = vpack.c.bf16 %v3988_v61, %v3987_v11  ;;  %v14023_v15 = vld [vmem:[#allocation88_spill] sm:$0xff]  ;;  %v14027_v45 = vld [vmem:[#allocation93_spill] sm:$0xff] }
 0x2f6   : > { %v7664_v32 = vpop.f32.mrf.mxu0  ;;  %v14025_v3 = vpack.c.bf16 %v14023_v15, %v14024_v49  ;;  %v14026_v61 = vld [vmem:[#allocation8_spill] sm:$0xff] }
 0x2f7   : > { %v3911_v8 = vadd.f32 %v12189_v16, %v7663_v1  ;;  %v4084_v56 = vpack.c.bf16 %v4052_v22, %v4051_v33  ;;  %v14028_v33 = vpack.c.bf16 %v14026_v61, %v14027_v45 }
 0x2f8   : > { %v7665_v39 = vpop.f32.mrf.mxu0 }
 0x2f9   : > { %v7666_v9 = vadd.f32 %v7665_v39, %v7664_v32  ;;  %4324 = vmatprep.mubr.bf16.mxu1 %v4084_v56  ;;  %v4021_v46 = vsub.f32 0.0, %v3911_v8  ;;  %v3989_v6 = vmax.f32 %v3911_v8, 0.0 }
 0x2fa   : > { %v7667_v23 = vpop.f32.mrf.mxu0  ;;  %4325 = vmatmul.mubr.bf16.gmra.mxu1 %v4083_v58 }
 0x2fb   : > { %6255 = vmatmul.mubr.bf16.gmra.mxu0 %v14019_v52  ;;  %v3914_v60 = vadd.f32 %v12189_v16, %v7666_v9  ;;  %v4053_v14 = vmax.f32 %v4021_v46, 0.0 }
 0x2fc   : > { %6262 = vmatprep.mubr.bf16.mxu0 %v14022_v18  ;;  %v7668_v44 = vpop.f32.mrf.mxu0 }
 0x2fd   : > { %v4022_v12 = vsub.f32 0.0, %v3914_v60  ;;  %v7669_v36 = vadd.f32 %v7668_v44, %v7667_v23  ;;  %v7501_v55 = vpop.f32.mrf.mxu1  ;;  %v3990_v54 = vmax.f32 %v3914_v60, 0.0 }
 0x2fe   : > { %v7670_v20 = vpop.f32.mrf.mxu0 }
 0x2ff   : > { %v3919_v37 = vadd.f32 %v12189_v16, %v7669_v36  ;;  %v4054_v31 = vmax.f32 %v4022_v12, 0.0  ;;  %v7502_v5 = vpop.f32.mrf.mxu1  ;;  %v4085_v62 = vpack.c.bf16 %v3990_v54, %v3989_v6  ;;  %v14029_v36 = vld [vmem:[#allocation95_spill] sm:$0xff] }
 0x300   : > { %v7671_v38 = vpop.f32.mrf.mxu0  ;;  %v7503_v59 = vadd.f32 %v7502_v5, %v7501_v55  ;;  %v14030_v55 = vld [vmem:[#allocation68_spill] sm:$0xff] }
 0x301   : > { %v7672_v40 = vadd.f32 %v7671_v38, %v7670_v20  ;;  %v4086_v28 = vpack.c.bf16 %v4054_v31, %v4053_v14  ;;  %v7504_v43 = vpop.f32.mrf.mxu1  ;;  %v4023_v57 = vsub.f32 0.0, %v3919_v37  ;;  %v3991_v46 = vmax.f32 %v3919_v37, 0.0 }
 0x302   : > { %v7673_v19 = vpop.f32.mrf.mxu0  ;;  %v3198_v7 = vadd.f32 %v7503_v59, %v12328_v42  ;;  %v14031_v54 = vpack.c.bf16 %v14029_v36, %v14030_v55  ;;  %v14032_v37 = vpack.c.bf16 %v11899_v53, %v13869_v29 }
 0x303   : > { %6263 = vmatmul.mubr.bf16.gmra.mxu0 %v14025_v3  ;;  %v3922_v27 = vadd.f32 %v12189_v16, %v7672_v40  ;;  %4332 = vmatprep.mubr.bf16.mxu1 %v4086_v28  ;;  %v7505_v1 = vpop.f32.mrf.mxu1  ;;  %v4055_v23 = vmax.f32 %v4023_v57, 0.0 }
 0x304   : > { %6270 = vmatprep.mubr.bf16.mxu0 %v14028_v33  ;;  %v7674_v22 = vpop.f32.mrf.mxu0  ;;  %4333 = vmatmul.mubr.bf16.gmra.mxu1 %v4085_v62  ;;  %3325 = vst.msk [vmem:[%s12333_s25] sm:$0xff] %vm3324_vm0, %v3198_v7  ;;  %v7506_v11 = vadd.f32 %v7505_v1, %v7504_v43 }
 0x305   : > { %v4024_v32 = vsub.f32 0.0, %v3922_v27  ;;  %v7675_v8 = vadd.f32 %v7674_v22, %v7673_v19  ;;  %v7507_v56 = vpop.f32.mrf.mxu1  ;;  %v3992_v39 = vmax.f32 %v3922_v27, 0.0  ;;  %v14033_v22 = vld [vmem:[#allocation22_spill] sm:$0xff] }
 0x306   : > { %v7676_v58 = vpop.f32.mrf.mxu0  ;;  %v3201_v9 = vadd.f32 %v7506_v11, %v12328_v42  ;;  %v14034_v11 = vld [vmem:[#allocation27_spill] sm:$0xff] }
 0x307   : > { %v3927_v2 = vadd.f32 %v12189_v16, %v7675_v8  ;;  %v4056_v24 = vmax.f32 %v4024_v32, 0.0  ;;  %v7508_v52 = vpop.f32.mrf.mxu1  ;;  %v4087_v20 = vpack.c.bf16 %v3992_v39, %v3991_v46  ;;  %v14035_v32 = vpack.c.bf16 %v14033_v22, %v14034_v11 }
 0x308   : > { %v7677_v60 = vpop.f32.mrf.mxu0  ;;  %3326 = vst.msk [vmem:[%s12333_s25 + $0x8] sm:$0xff] %vm3324_vm0, %v3201_v9  ;;  %v7509_v51 = vadd.f32 %v7508_v52, %v7507_v56  ;;  %v14036_v9 = vpack.c.bf16 %v11907_v10, %v13876_v17 }
 0x309   : > { %v7678_v13 = vadd.f32 %v7677_v60, %v7676_v58  ;;  %v4088_v18 = vpack.c.bf16 %v4056_v24, %v4055_v23  ;;  %v7510_v44 = vpop.f32.mrf.mxu1  ;;  %v4025_v31 = vsub.f32 0.0, %v3927_v2  ;;  %v3993_v29 = vmax.f32 %v3927_v2, 0.0 }
 0x30a   : > { %v7679_v12 = vpop.f32.mrf.mxu0  ;;  %v3206_v14 = vadd.f32 %v7509_v51, %v12328_v42 }
 0x30b   : > { %6271 = vmatmul.mubr.bf16.gmra.mxu0 %v14031_v54  ;;  %v3930_v5 = vadd.f32 %v12189_v16, %v7678_v13  ;;  %4340 = vmatprep.mubr.bf16.mxu1 %v4088_v18  ;;  %v7511_v6 = vpop.f32.mrf.mxu1  ;;  %v4057_v3 = vmax.f32 %v4025_v31, 0.0 }
 0x30c   : > { %6278 = vmatprep.mubr.bf16.mxu0 %v14032_v37  ;;  %v7680_v38 = vpop.f32.mrf.mxu0  ;;  %4341 = vmatmul.mubr.bf16.gmra.mxu1 %v4087_v20  ;;  %3327 = vst.msk [vmem:[%s12333_s25 + $0x10] sm:$0xff] %vm3324_vm0, %v3206_v14  ;;  %v7512_v59 = vadd.f32 %v7511_v6, %v7510_v44  ;;  %v14037_v37 = vld [vmem:[#allocation14_spill] sm:$0xff] }
 0x30d   : > { %v4026_v40 = vsub.f32 0.0, %v3930_v5  ;;  %v7681_v28 = vadd.f32 %v7680_v38, %v7679_v12  ;;  %v7513_v43 = vpop.f32.mrf.mxu1  ;;  %v3994_v19 = vmax.f32 %v3930_v5, 0.0  ;;  %v14038_v6 = vld [vmem:[#allocation50_spill] sm:$0xff] }
 0x30e   : > { %v7682_v15 = vpop.f32.mrf.mxu0  ;;  %v3209_v49 = vadd.f32 %v7512_v59, %v12328_v42  ;;  %v14039_v38 = vpack.c.bf16 %v14037_v37, %v14038_v6 }
 0x30f   : > { %v3935_v62 = vadd.f32 %v12189_v16, %v7681_v28  ;;  %v4058_v7 = vmax.f32 %v4026_v40, 0.0  ;;  %v7514_v53 = vpop.f32.mrf.mxu1  ;;  %v4089_v8 = vpack.c.bf16 %v3994_v19, %v3993_v29  ;;  %v14040_v19 = vld [vmem:[#allocation10_spill] sm:$0xff] }
 0x310   : > { %v7683_v57 = vpop.f32.mrf.mxu0  ;;  %3328 = vst.msk [vmem:[%s12333_s25 + $0x18] sm:$0xff] %vm3324_vm0, %v3209_v49  ;;  %v7515_v27 = vadd.f32 %v7514_v53, %v7513_v43 }
 0x311   : > { %v7684_v61 = vadd.f32 %v7683_v57, %v7682_v15  ;;  %v4090_v45 = vpack.c.bf16 %v4058_v7, %v4057_v3  ;;  %v7516_v33 = vpop.f32.mrf.mxu1  ;;  %v4027_v39 = vsub.f32 0.0, %v3935_v62  ;;  %v3995_v17 = vmax.f32 %v3935_v62, 0.0  ;;  %v14041_v15 = vld [vmem:[#allocation98_spill] sm:$0xff] }
 0x312   : > { %v7685_v1 = vpop.f32.mrf.mxu0  ;;  %v3214_v56 = vadd.f32 %v7515_v27, %v12328_v42  ;;  %v14042_v49 = vpack.c.bf16 %v14040_v19, %v14041_v15 }
 0x313   : > { %6279 = vmatmul.mubr.bf16.gmra.mxu0 %v14035_v32  ;;  %v3938_v58 = vadd.f32 %v12189_v16, %v7684_v61  ;;  %4348 = vmatprep.mubr.bf16.mxu1 %v4090_v45  ;;  %v7517_v23 = vpop.f32.mrf.mxu1  ;;  %v4059_v44 = vmax.f32 %v4027_v39, 0.0 }
 0x314   : > { %6286 = vmatprep.mubr.bf16.mxu0 %v14036_v9  ;;  %v7686_v2 = vpop.f32.mrf.mxu0  ;;  %4349 = vmatmul.mubr.bf16.gmra.mxu1 %v4089_v8  ;;  %3329 = vst.msk [vmem:[%s12333_s25 + $0x20] sm:$0xff] %vm3324_vm0, %v3214_v56  ;;  %v7518_v24 = vadd.f32 %v7517_v23, %v7516_v33 }
 0x315   : > { %v4028_v52 = vsub.f32 0.0, %v3938_v58  ;;  %v7687_v46 = vadd.f32 %v7686_v2, %v7685_v1  ;;  %v7519_v60 = vpop.f32.mrf.mxu1  ;;  %v3996_v51 = vmax.f32 %v3938_v58, 0.0  ;;  %v14043_v2 = vld [vmem:[#allocation26_spill] sm:$0xff] }
 0x316   : > { %v7688_v13 = vpop.f32.mrf.mxu0  ;;  %v3217_v18 = vadd.f32 %v7518_v24, %v12328_v42  ;;  %v14044_v24 = vld [vmem:[#allocation80_spill] sm:$0xff] }
 0x317   : > { %v3943_v12 = vadd.f32 %v12189_v16, %v7687_v46  ;;  %v4060_v36 = vmax.f32 %v4028_v52, 0.0  ;;  %v7520_v10 = vpop.f32.mrf.mxu1  ;;  %v4091_v59 = vpack.c.bf16 %v3996_v51, %v3995_v17  ;;  %v14045_v52 = vpack.c.bf16 %v14043_v2, %v14044_v24 }
 0x318   : > { %v7689_v55 = vpop.f32.mrf.mxu0  ;;  %3330 = vst.msk [vmem:[%s12333_s25 + $0x28] sm:$0xff] %vm3324_vm0, %v3217_v18  ;;  %v7521_v54 = vadd.f32 %v7520_v10, %v7519_v60  ;;  %v14046_v18 = vld [vmem:[#allocation74_spill] sm:$0xff] }
 0x319   : > { %v7690_v20 = vadd.f32 %v7689_v55, %v7688_v13  ;;  %v4092_v14 = vpack.c.bf16 %v4060_v36, %v4059_v44  ;;  %v7522_v31 = vpop.f32.mrf.mxu1  ;;  %v4029_v28 = vsub.f32 0.0, %v3943_v12  ;;  %v3997_v32 = vmax.f32 %v3943_v12, 0.0  ;;  %v14047_v44 = vld [vmem:[#allocation106_spill] sm:$0xff] }
 0x31a   : > { %v7691_v5 = vpop.f32.mrf.mxu0  ;;  %v3222_v40 = vadd.f32 %v7521_v54, %v12328_v42  ;;  %v14048_v12 = vpack.c.bf16 %v14046_v18, %v14047_v44  ;;  %v14053_v18 = vld [vmem:[#allocation56_spill] sm:$0xff]  ;;  %v14054_v44 = vld [vmem:[#allocation109_spill] sm:$0xff] }
 0x31b   : > { %6287 = vmatmul.mubr.bf16.gmra.mxu0 %v14039_v38  ;;  %v3946_v43 = vadd.f32 %v12189_v16, %v7690_v20  ;;  %4356 = vmatprep.mubr.bf16.mxu1 %v4092_v14  ;;  %v7523_v3 = vpop.f32.mrf.mxu1  ;;  %v4061_v33 = vmax.f32 %v4029_v28, 0.0 }
 0x31c   : > { %6294 = vmatprep.mubr.bf16.mxu0 %v14042_v49  ;;  %v7692_v62 = vpop.f32.mrf.mxu0  ;;  %4357 = vmatmul.mubr.bf16.gmra.mxu1 %v4091_v59  ;;  %3331 = vst.msk [vmem:[%s12333_s25 + $0x30] sm:$0xff] %vm3324_vm0, %v3222_v40  ;;  %v7524_v7 = vadd.f32 %v7523_v3, %v7522_v31 }
 0x31d   : > { %v4030_v53 = vsub.f32 0.0, %v3946_v43  ;;  %v7693_v29 = vadd.f32 %v7692_v62, %v7691_v5  ;;  %v7525_v57 = vpop.f32.mrf.mxu1  ;;  %v3998_v27 = vmax.f32 %v3946_v43, 0.0  ;;  %v14049_v62 = vld [vmem:[#allocation102_spill] sm:$0xff] }
 0x31e   : > { %v7694_v61 = vpop.f32.mrf.mxu0  ;;  %v3225_v45 = vadd.f32 %v7524_v7, %v12328_v42  ;;  %v14050_v7 = vld [vmem:[#allocation51_spill] sm:$0xff] }
 0x31f   : > { %v3951_v1 = vadd.f32 %v12189_v16, %v7693_v29  ;;  %v4062_v22 = vmax.f32 %v4030_v53, 0.0  ;;  %v7526_v11 = vpop.f32.mrf.mxu1  ;;  %v4093_v46 = vpack.c.bf16 %v3998_v27, %v3997_v32  ;;  %v14051_v53 = vpack.c.bf16 %v14049_v62, %v14050_v7 }
 0x320   : > { %v7695_v8 = vpop.f32.mrf.mxu0  ;;  %3332 = vst.msk [vmem:[%s12333_s25 + $0x38] sm:$0xff] %vm3324_vm0, %v3225_v45  ;;  %v7527_v56 = vadd.f32 %v7526_v11, %v7525_v57  ;;  %v14052_v45 = vpack.c.bf16 %v11964_v41, %v13894_v48 }
 0x321   : > { %v7696_v39 = vadd.f32 %v7695_v8, %v7694_v61  ;;  %v4094_v58 = vpack.c.bf16 %v4062_v22, %v4061_v33  ;;  %v7528_v9 = vpop.f32.mrf.mxu1  ;;  %v4031_v51 = vsub.f32 0.0, %v3951_v1  ;;  %v3999_v40 = vmax.f32 %v3951_v1, 0.0 }
 0x322   : > { %v3230_v60 = vadd.f32 %v7527_v56, %v12328_v42 }
 0x323   : > { %v7697_v23 = vpop.f32.mrf.mxu0  ;;  %6295 = vmatmul.mubr.bf16.gmra.mxu0 %v14045_v52  ;;  %v3954_v13 = vadd.f32 %v12189_v16, %v7696_v39  ;;  %4364 = vmatprep.mubr.bf16.mxu1 %v4094_v58  ;;  %v7529_v36 = vpop.f32.mrf.mxu1  ;;  %v4063_v37 = vmax.f32 %v4031_v51, 0.0 }
 0x324   : > { %6302 = vmatprep.mubr.bf16.mxu0 %v14048_v12  ;;  %4365 = vmatmul.mubr.bf16.gmra.mxu1 %v4093_v46  ;;  %3333 = vst.msk [vmem:[%s12333_s25 + $0x40] sm:$0xff] %vm3324_vm0, %v3230_v60  ;;  %v7530_v17 = vadd.f32 %v7529_v36, %v7528_v9  ;;  %v14055_v12 = vpack.c.bf16 %v14053_v18, %v14054_v44 }
 0x325   : > { %v7698_v10 = vpop.f32.mrf.mxu0  ;;  %v4032_v55 = vsub.f32 0.0, %v3954_v13  ;;  %v7531_v20 = vpop.f32.mrf.mxu1  ;;  %v4000_v14 = vmax.f32 %v3954_v13, 0.0 }
 0x326   : > { %v7699_v54 = vadd.f32 %v7698_v10, %v7697_v23  ;;  %v3233_v5 = vadd.f32 %v7530_v17, %v12328_v42 }
 0x327   : > { %v7700_v31 = vpop.f32.mrf.mxu0  ;;  %v4064_v38 = vmax.f32 %v4032_v55, 0.0  ;;  %v7532_v59 = vpop.f32.mrf.mxu1  ;;  %v4095_v29 = vpack.c.bf16 %v4000_v14, %v3999_v40 }
 0x328   : > { %v3959_v6 = vadd.f32 %v12189_v16, %v7699_v54  ;;  %3334 = vst.msk [vmem:[%s12333_s25 + $0x48] sm:$0xff] %vm3324_vm0, %v3233_v5  ;;  %v7533_v43 = vadd.f32 %v7532_v59, %v7531_v20  ;;  %v14056_v54 = vld [vmem:[#allocation12_spill] sm:$0xff]  ;;  %v14057_v20 = vld [vmem:[#allocation118_spill] sm:$0xff] }
 0x329   : > { %v7701_v28 = vpop.f32.mrf.mxu0  ;;  %v4096_v15 = vpack.c.bf16 %v4064_v38, %v4063_v37  ;;  %v7534_v49 = vpop.f32.mrf.mxu1  ;;  %v14058_v14 = vpack.c.bf16 %v14056_v54, %v14057_v20  ;;  %v12430_v5 = vld [vmem:[%s13051_s5] ss:$0 sm:$0xff]  ;;  %v8681_v54 = vld [vmem:[%s13052_s6 + $0x38] sm:$0xff]  }
 0x32a   : > { %v7702_v19 = vadd.f32 %v7701_v28, %v7700_v31  ;;  %v3238_v57 = vadd.f32 %v7533_v43, %v12328_v42  ;;  %v4033_v27 = vsub.f32 0.0, %v3959_v6  ;;  %v4001_v41 = vmax.f32 %v3959_v6, 0.0 }
 0x32b   : > { %v7703_v3 = vpop.f32.mrf.mxu0  ;;  %6303 = vmatmul.mubr.bf16.gmra.mxu0 %v14051_v53  ;;  %4372 = vmatprep.mubr.bf16.mxu1 %v4096_v15  ;;  %v7535_v33 = vpop.f32.mrf.mxu1 }
 0x32c   : > { %v3962_v61 = vadd.f32 %v12189_v16, %v7702_v19  ;;  %6310 = vmatprep.mubr.bf16.mxu0 %v14052_v45  ;;  %4373 = vmatmul.mubr.bf16.gmra.mxu1 %v4095_v29  ;;  %3335 = vst.msk [vmem:[%s12333_s25 + $0x50] sm:$0xff] %vm3324_vm0, %v3238_v57  ;;  %v7536_v22 = vadd.f32 %v7535_v33, %v7534_v49  ;;  %v4065_v9 = vmax.f32 %v4033_v27, 0.0  ;;  %v14059_v45 = vld [vmem:[#allocation113_spill] sm:$0xff] }
 0x32d   : > { %v7704_v1 = vpop.f32.mrf.mxu0  ;;  %v7537_v8 = vpop.f32.mrf.mxu1  ;;  %v14060_v33 = vld [vmem:[#allocation117_spill] sm:$0xff] }
 0x32e   : > { %v4034_v11 = vsub.f32 0.0, %v3962_v61  ;;  %v7705_v32 = vadd.f32 %v7704_v1, %v7703_v3  ;;  %v4002_v56 = vmax.f32 %v3962_v61, 0.0  ;;  %v3241_v58 = vadd.f32 %v7536_v22, %v12328_v42 }
 0x32f   : > { %v7706_v39 = vpop.f32.mrf.mxu0  ;;  %v7538_v48 = vpop.f32.mrf.mxu1  ;;  %v14061_v1 = vpack.c.bf16 %v14059_v45, %v14060_v33 }
 0x330   : > { %v3967_v23 = vadd.f32 %v12189_v16, %v7705_v32  ;;  %v4066_v2 = vmax.f32 %v4034_v11, 0.0  ;;  %3336 = vst.msk [vmem:[%s12333_s25 + $0x58] sm:$0xff] %vm3324_vm0, %v3241_v58  ;;  %v7539_v52 = vadd.f32 %v7538_v48, %v7537_v8  ;;  %v4097_v36 = vpack.c.bf16 %v4002_v56, %v4001_v41  ;;  %v14062_v56 = vld [vmem:[#allocation15_spill] sm:$0xff] }
 0x331   : > { %v7707_v24 = vpop.f32.mrf.mxu0  ;;  %v7540_v51 = vpop.f32.mrf.mxu1 }
 0x332   : > { %v7708_v46 = vadd.f32 %v7707_v24, %v7706_v39  ;;  %v4098_v60 = vpack.c.bf16 %v4066_v2, %v4065_v9  ;;  %v3246_v10 = vadd.f32 %v7539_v52, %v12328_v42  ;;  %v4035_v17 = vsub.f32 0.0, %v3967_v23  ;;  %v14063_v39 = vld [vmem:[#allocation122_spill] sm:$0xff] }
 0x333   : > { %v7837_v13 = vpop.f32.mrf.mxu0  ;;  %6311 = vmatmul.mubr.bf16.gmra.mxu0 %v14055_v12  ;;  %v7541_v31 = vpop.f32.mrf.mxu1  ;;  %v4003_v62 = vmax.f32 %v3967_v23, 0.0  ;;  %v14064_v58 = vpack.c.bf16 %v14062_v56, %v14063_v39 }
 0x334   : > { %v3970_v55 = vadd.f32 %v12189_v16, %v7708_v46  ;;  %4380 = vmatprep.mubr.bf16.mxu1 %v4098_v60  ;;  %6318 = vmatprep.mubr.bf16.mxu0 %v14058_v14  ;;  %3337 = vst.msk [vmem:[%s12333_s25 + $0x60] sm:$0xff] %vm3324_vm0, %v3246_v10  ;;  %v7542_v6 = vadd.f32 %v7541_v31, %v7540_v51  ;;  %v4067_v19 = vmax.f32 %v4035_v17, 0.0 }
 0x335   : > { %4381 = vmatmul.mubr.bf16.gmra.mxu1 %v4097_v36  ;;  %v7838_v37 = vpop.f32.mrf.mxu0  ;;  %v7543_v16 = vpop.f32.mrf.mxu1 }
 0x336   : > { %v4036_v38 = vsub.f32 0.0, %v3970_v55  ;;  %v7839_v59 = vadd.f32 %v7838_v37, %v7837_v13  ;;  %v4004_v40 = vmax.f32 %v3970_v55, 0.0  ;;  %v3249_v43 = vadd.f32 %v7542_v6, %v12328_v42  ;;  %v14065_v37 = vld [vmem:[#allocation61_spill] sm:$0xff] }
 0x337   : > { %v7840_v28 = vpop.f32.mrf.mxu0  ;;  %v7544_v3 = vpop.f32.mrf.mxu1  ;;  %v14066_v6 = vld [vmem:[#allocation121_spill] sm:$0xff] }
 0x338   : > { %v5048_v15 = vadd.f32 %v7839_v59, %v12430_v5  ;;  %v4068_v49 = vmax.f32 %v4036_v38, 0.0  ;;  %3338 = vst.msk [vmem:[%s12333_s25 + $0x68] sm:$0xff] %vm3324_vm0, %v3249_v43  ;;  %v7545_v53 = vadd.f32 %v7544_v3, %v7543_v16  ;;  %v4099_v22 = vpack.c.bf16 %v4004_v40, %v4003_v62  ;;  %v8682_v16 = vld [vmem:[%s13052_s6 + $0x70] sm:$0xff]   ;;  %v14068_v43 = vld [vmem:[#allocation70_spill] sm:$0xff] }
 0x339   : > { %v7841_v7 = vpop.f32.mrf.mxu0  ;;  %v7546_v27 = vpop.f32.mrf.mxu1  ;;  %v14067_v38 = vpack.c.bf16 %v14065_v37, %v14066_v6 }
 0x33a   : > { %v7842_v29 = vadd.f32 %v7841_v7, %v7840_v28  ;;  %v4100_v57 = vpack.c.bf16 %v4068_v49, %v4067_v19  ;;  %v3254_v11 = vadd.f32 %v7545_v53, %v12328_v42  ;;  %v5206_v32 = vsub.f32 0.0, %v5048_v15 }
 0x33b   : > { %v7843_v61 = vpop.f32.mrf.mxu0  ;;  %6319 = vmatmul.mubr.bf16.gmra.mxu0 %v14061_v1  ;;  %v7547_v9 = vpop.f32.mrf.mxu1  ;;  %v5174_v12 = vmax.f32 %v5048_v15, 0.0  ;;  %v14069_v19 = vpack.c.bf16 %v11985_v34, %v14068_v43 }
 0x33c   : > { %v5051_v8 = vadd.f32 %v7842_v29, %v12430_v5  ;;  %4388 = vmatprep.mubr.bf16.mxu1 %v4100_v57  ;;  %6326 = vmatprep.mubr.bf16.mxu0 %v14064_v58  ;;  %3339 = vst.msk [vmem:[%s12333_s25 + $0x70] sm:$0xff] %vm3324_vm0, %v3254_v11  ;;  %v7548_v2 = vadd.f32 %v7547_v9, %v7546_v27  ;;  %v5238_v51 = vmax.f32 %v5206_v32, 0.0  ;;  %v8683_v29 = vld [vmem:[%s13052_s6 + $0x30] sm:$0xff]   ;;  %v8685_v9 = vld [vmem:[%s13052_s6 + $0x28] sm:$0xff]  }
 0x33d   : > { %4389 = vmatmul.mubr.bf16.gmra.mxu1 %v4099_v22  ;;  %v7844_v23 = vpop.f32.mrf.mxu0  ;;  %v7549_v24 = vpop.f32.mrf.mxu1 }
 0x33e   : > { %v5207_v48 = vsub.f32 0.0, %v5051_v8  ;;  %v7845_v41 = vadd.f32 %v7844_v23, %v7843_v61  ;;  %v5175_v52 = vmax.f32 %v5051_v8, 0.0  ;;  %v3257_v60 = vadd.f32 %v7548_v2, %v12328_v42  ;;  %v8684_v61 = vld [vmem:[%s13052_s6 + $0x68] sm:$0xff]  }
 0x33f   : > { %v7846_v46 = vpop.f32.mrf.mxu0  ;;  %v7550_v44 = vpop.f32.mrf.mxu1  ;;  %v14070_v2 = vld [vmem:[#allocation123_spill] sm:$0xff] }
 0x340   : > { %v5056_v13 = vadd.f32 %v7845_v41, %v12430_v5  ;;  %v5239_v18 = vmax.f32 %v5207_v48, 0.0  ;;  %3340 = vst.msk [vmem:[%s12333_s25 + $0x78] sm:$0xff] %vm3324_vm0, %v3257_v60  ;;  %v7551_v10 = vadd.f32 %v7550_v44, %v7549_v24  ;;  %v5270_v14 = vpack.c.bf16 %v5175_v52, %v5174_v12  ;;  %v14071_v48 = vld [vmem:[#allocation64_spill] sm:$0xff] }
 0x341   : > { %v7847_v36 = vpop.f32.mrf.mxu0  ;;  %v7552_v20 = vpop.f32.mrf.mxu1  ;;  %v14072_v41 = vpack.c.bf16 %v14070_v2, %v14071_v48 }
 0x342   : > { %v7848_v17 = vadd.f32 %v7847_v36, %v7846_v46  ;;  %v5271_v55 = vpack.c.bf16 %v5239_v18, %v5238_v51  ;;  %v3262_v59 = vadd.f32 %v7551_v10, %v12328_v42  ;;  %v5208_v40 = vsub.f32 0.0, %v5056_v13  ;;  %v8686_v46 = vld [vmem:[%s13052_s6 + $0x60] sm:$0xff]  }
 0x343   : > { %v7849_v31 = vpop.f32.mrf.mxu0  ;;  %6327 = vmatmul.mubr.bf16.gmra.mxu0 %v14067_v38  ;;  %v7553_v15 = vpop.f32.mrf.mxu1  ;;  %v5176_v11 = vmax.f32 %v5056_v13, 0.0  ;;  %v14073_v13 = vld [vmem:[#allocation129_spill] sm:$0xff] }
 0x344   : > { %v5059_v28 = vadd.f32 %v7848_v17, %v12430_v5  ;;  %5469 = vmatprep.mubr.bf16.mxu1 %v5271_v55  ;;  %6334 = vmatprep.mubr.bf16.mxu0 %v14069_v19  ;;  %3341 = vst.msk [vmem:[%s12333_s25 + $0x80] sm:$0xff] %vm3324_vm0, %v3262_v59  ;;  %v7554_v3 = vadd.f32 %v7553_v15, %v7552_v20  ;;  %v5240_v45 = vmax.f32 %v5208_v40, 0.0 }
 0x345   : > { %v7850_v49 = vpop.f32.mrf.mxu0  ;;  %5470 = vmatmul.mubr.bf16.vlgmr.msra.gmra.mxu1 %v5270_v14  ;;  %v7555_v53 = vpop.f32.mrf.mxu1  ;;  %v14074_v18 = vpack.c.bf16 %v12008_v25, %v14073_v13  ;;  %v8693_v13 = vld [vmem:[%s13052_s6 + $0x8] sm:$0xff]  }
 0x346   : > { %v5209_v62 = vsub.f32 0.0, %v5059_v28  ;;  %v7851_v7 = vadd.f32 %v7850_v49, %v7849_v31  ;;  %8158 = vmatpush3.bf16.msra.mxu1 %v8681_v54  ;;  %v5177_v57 = vmax.f32 %v5059_v28, 0.0  ;;  %v3265_v34 = vadd.f32 %v7554_v3, %v12328_v42  ;;  %v8687_v54 = vld [vmem:[%s13052_s6 + $0x20] sm:$0xff]   ;;  %v8688_v31 = vld [vmem:[%s13052_s6 + $0x58] sm:$0xff]  }
 0x347   : > { %v7852_v27 = vpop.f32.mrf.mxu0  ;;  %8159 = vmatprep.subr.bf16.mxu1 %v8682_v16  ;;  %v7556_v22 = vpop.f32.mrf.mxu1  ;;  %v8689_v49 = vld [vmem:[%s13052_s6 + $0x18] sm:$0xff]  }
 0x348   : > { %v5064_v33 = vadd.f32 %v7851_v7, %v12430_v5  ;;  %v5241_v1 = vmax.f32 %v5209_v62, 0.0  ;;  %3342 = vst.msk [vmem:[%s12333_s25 + $0x88] sm:$0xff] %vm3324_vm0, %v3265_v34  ;;  %v7557_v8 = vadd.f32 %v7556_v22, %v7555_v53  ;;  %v5272_v24 = vpack.c.bf16 %v5177_v57, %v5176_v11  ;;  %v14075_v62 = vld [vmem:[#allocation62_spill] sm:$0xff]  ;;  %v14076_v7 = vld [vmem:[#allocation128_spill] sm:$0xff] }
 0x349   : > { %v7853_v32 = vpop.f32.mrf.mxu0  ;;  %v7558_v58 = vpop.f32.mrf.mxu1  ;;  %v14077_v53 = vpack.c.bf16 %v14075_v62, %v14076_v7 }
 0x34a   : > { %v7854_v56 = vadd.f32 %v7853_v32, %v7852_v27  ;;  %v5273_v39 = vpack.c.bf16 %v5241_v1, %v5240_v45  ;;  %8160 = vmatpush3.bf16.msra.mxu1 %v8683_v29  ;;  %v3270_v52 = vadd.f32 %v7557_v8, %v12328_v42  ;;  %v5210_v60 = vsub.f32 0.0, %v5064_v33  ;;  %v8690_v27 = vld [vmem:[%s13052_s6 + $0x50] sm:$0xff]  }
 0x34b   : > { %v7855_v23 = vpop.f32.mrf.mxu0  ;;  %6335 = vmatmul.mubr.bf16.gmra.mxu0 %v14072_v41  ;;  %8161 = vmatprep.subr.bf16.mxu1 %v8684_v61  ;;  %v7559_v44 = vpop.f32.mrf.mxu1  ;;  %v5178_v16 = vmax.f32 %v5064_v33, 0.0  ;;  %v14078_v45 = vpack.c.bf16 %v12031_v47, %v13924_v26  ;;  %v8692_v47 = vld [vmem:[%s13052_s6 + $0x48] sm:$0xff]  }
 0x34c   : > { %v5067_v51 = vadd.f32 %v7854_v56, %v12430_v5  ;;  %5477 = vmatprep.mubr.bf16.mxu1 %v5273_v39  ;;  %6342 = vmatprep.mubr.bf16.mxu0 %v14074_v18  ;;  %3343 = vst.msk [vmem:[%s12333_s25 + $0x90] sm:$0xff] %vm3324_vm0, %v3270_v52  ;;  %v7560_v36 = vadd.f32 %v7559_v44, %v7558_v58  ;;  %v5242_v37 = vmax.f32 %v5210_v60, 0.0  ;;  %v8691_v56 = vld [vmem:[%s13052_s6 + $0x10] sm:$0xff]   ;;  %v14079_v44 = vld [vmem:[#allocation130_spill] sm:$0xff] }
 0x34d   : > { %v7856_v12 = vpop.f32.mrf.mxu0  ;;  %5478 = vmatmul.mubr.bf16.gmra.mxu1 %v5272_v24  ;;  %v7561_v55 = vpop.f32.mrf.mxu1 }
 0x34e   : > { %v5211_v10 = vsub.f32 0.0, %v5067_v51  ;;  %v7857_v17 = vadd.f32 %v7856_v12, %v7855_v23  ;;  %8162 = vmatpush3.bf16.msra.mxu1 %v8685_v9  ;;  %v5179_v20 = vmax.f32 %v5067_v51, 0.0  ;;  %v3273_v25 = vadd.f32 %v7560_v36, %v12328_v42  ;;  %v14080_v12 = vld [vmem:[#allocation72_spill] sm:$0xff] }
 0x34f   : > { %v7858_v14 = vpop.f32.mrf.mxu0  ;;  %8163 = vmatprep.subr.bf16.mxu1 %v8686_v46  ;;  %v7562_v59 = vpop.f32.mrf.mxu1  ;;  %v14081_v36 = vpack.c.bf16 %v14079_v44, %v14080_v12 }
 0x350   : > { %v5072_v6 = vadd.f32 %v7857_v17, %v12430_v5  ;;  %v5243_v38 = vmax.f32 %v5211_v10, 0.0  ;;  %3344 = vst.msk [vmem:[%s12333_s25 + $0x98] sm:$0xff] %vm3324_vm0, %v3273_v25  ;;  %v7563_v28 = vadd.f32 %v7562_v59, %v7561_v55  ;;  %v5274_v29 = vpack.c.bf16 %v5179_v20, %v5178_v16  ;;  %v8694_v55 = vld [vmem:[%s13052_s6 + $0x40] sm:$0xff]  }
 0x351   : > { %v7859_v40 = vpop.f32.mrf.mxu0  ;;  %v7564_v15 = vpop.f32.mrf.mxu1 }
 0x352   : > { %v7860_v43 = vadd.f32 %v7859_v40, %v7858_v14  ;;  %v5275_v19 = vpack.c.bf16 %v5243_v38, %v5242_v37  ;;  %8164 = vmatpush3.bf16.msra.mxu1 %v8687_v54  ;;  %v3278_v57 = vadd.f32 %v7563_v28, %v12328_v42  ;;  %v5212_v34 = vsub.f32 0.0, %v5072_v6  ;;  %v14082_v14 = vld [vmem:[#allocation75_spill] sm:$0xff]  ;;  %v8695_v40 = vld [vmem:[%s13052_s6] sm:$0xff]  }
 0x353   : > { %v7861_v3 = vpop.f32.mrf.mxu0  ;;  %6343 = vmatmul.mubr.bf16.gmra.mxu0 %v14077_v53  ;;  %8165 = vmatprep.subr.bf16.mxu1 %v8688_v31  ;;  %v7565_v33 = vpop.f32.mrf.mxu1  ;;  %v5180_v41 = vmax.f32 %v5072_v6, 0.0  ;;  %v14083_v25 = vpack.c.bf16 %v12043_v30, %v14082_v14 }
 0x354   : > { %v5075_v61 = vadd.f32 %v7860_v43, %v12430_v5  ;;  %5485 = vmatprep.mubr.bf16.mxu1 %v5275_v19  ;;  %6350 = vmatprep.mubr.bf16.mxu0 %v14078_v45  ;;  %3345 = vst.msk [vmem:[%s12333_s25 + $0xa0] sm:$0xff] %vm3324_vm0, %v3278_v57  ;;  %v7566_v22 = vadd.f32 %v7565_v33, %v7564_v15  ;;  %v5244_v9 = vmax.f32 %v5212_v34, 0.0  ;;  %v14084_v45 = vld [vmem:[#allocation133_spill] sm:$0xff] }
 0x355   : > { %v7862_v1 = vpop.f32.mrf.mxu0  ;;  %5486 = vmatmul.mubr.bf16.gmra.mxu1 %v5274_v29  ;;  %v7567_v8 = vpop.f32.mrf.mxu1  ;;  %v14085_v33 = vld [vmem:[#allocation137_spill] sm:$0xff] }
 0x356   : > { %v5213_v11 = vsub.f32 0.0, %v5075_v61  ;;  %v7863_v32 = vadd.f32 %v7862_v1, %v7861_v3  ;;  %8166 = vmatpush3.bf16.msra.mxu1 %v8689_v49  ;;  %v5181_v39 = vmax.f32 %v5075_v61, 0.0  ;;  %v3281_v26 = vadd.f32 %v7566_v22, %v12328_v42 }
 0x357   : > { %v7864_v58 = vpop.f32.mrf.mxu0  ;;  %8167 = vmatprep.subr.bf16.mxu1 %v8690_v27  ;;  %v7568_v48 = vpop.f32.mrf.mxu1  ;;  %v14086_v1 = vpack.c.bf16 %v14084_v45, %v14085_v33 }
 0x358   : > { %v5080_v23 = vadd.f32 %v7863_v32, %v12430_v5  ;;  %v5245_v2 = vmax.f32 %v5213_v11, 0.0  ;;  %3346 = vst.msk [vmem:[%s12333_s25 + $0xa8] sm:$0xff] %vm3324_vm0, %v3281_v26  ;;  %v7569_v52 = vadd.f32 %v7568_v48, %v7567_v8  ;;  %v5276_v10 = vpack.c.bf16 %v5181_v39, %v5180_v41 }
 0x359   : > { %v7865_v24 = vpop.f32.mrf.mxu0  ;;  %v7570_v51 = vpop.f32.mrf.mxu1 }
 0x35a   : > { %v7866_v46 = vadd.f32 %v7865_v24, %v7864_v58  ;;  %v5277_v60 = vpack.c.bf16 %v5245_v2, %v5244_v9  ;;  %8168 = vmatpush3.bf16.msra.mxu1 %v8691_v56  ;;  %v3286_v17 = vadd.f32 %v7569_v52, %v12328_v42  ;;  %v5214_v54 = vsub.f32 0.0, %v5080_v23 }
 0x35b   : > { %v7867_v18 = vpop.f32.mrf.mxu0  ;;  %6351 = vmatmul.mubr.bf16.gmra.mxu0 %v14081_v36  ;;  %8169 = vmatprep.subr.bf16.mxu1 %v8692_v47  ;;  %v7571_v31 = vpop.f32.mrf.mxu1  ;;  %v5182_v62 = vmax.f32 %v5080_v23, 0.0 }
 0x35c   : > { %v5083_v20 = vadd.f32 %v7866_v46, %v12430_v5  ;;  %5493 = vmatprep.mubr.bf16.mxu1 %v5277_v60  ;;  %6358 = vmatprep.mubr.bf16.mxu0 %v14083_v25  ;;  %3347 = vst.msk [vmem:[%s12333_s25 + $0xb0] sm:$0xff] %vm3324_vm0, %v3286_v17  ;;  %v7572_v6 = vadd.f32 %v7571_v31, %v7570_v51  ;;  %v5246_v19 = vmax.f32 %v5214_v54, 0.0 }
 0x35d   : > { %v7868_v37 = vpop.f32.mrf.mxu0  ;;  %5494 = vmatmul.mubr.bf16.gmra.mxu1 %v5276_v10  ;;  %v7573_v16 = vpop.f32.mrf.mxu1 }
 0x35e   : > { %v5215_v38 = vsub.f32 0.0, %v5083_v20  ;;  %v7869_v59 = vadd.f32 %v7868_v37, %v7867_v18  ;;  %8170 = vmatpush3.bf16.msra.mxu1 %v8693_v13  ;;  %v5183_v28 = vmax.f32 %v5083_v20, 0.0  ;;  %v3289_v30 = vadd.f32 %v7572_v6, %v12328_v42 }
 0x35f   : > { %v7870_v43 = vpop.f32.mrf.mxu0  ;;  %8171 = vmatprep.subr.bf16.mxu1 %v8694_v55  ;;  %v7574_v3 = vpop.f32.mrf.mxu1 }
 0x360   : > { %v5247_v15 = vmax.f32 %v5215_v38, 0.0  ;;  %v5088_v49 = vadd.f32 %v7869_v59, %v12430_v5  ;;  %3348 = vst.msk [vmem:[%s12333_s25 + $0xb8] sm:$0xff] %vm3324_vm0, %v3289_v30  ;;  %v7575_v53 = vadd.f32 %v7574_v3, %v7573_v16  ;;  %v5278_v34 = vpack.c.bf16 %v5183_v28, %v5182_v62 }
 0x361   : > { %v7871_v7 = vpop.f32.mrf.mxu0  ;;  %v7576_v27 = vpop.f32.mrf.mxu1 }
 0x362   : > { %v7872_v29 = vadd.f32 %v7871_v7, %v7870_v43  ;;  %v5279_v57 = vpack.c.bf16 %v5247_v15, %v5246_v19  ;;  %8172 = vmatpush3.bf16.msra.mxu1 %v8695_v40  ;;  %v3294_v22 = vadd.f32 %v7575_v53, %v12328_v42  ;;  %v5216_v11 = vsub.f32 0.0, %v5088_v49 }
 0x363   : > { %v7873_v61 = vpop.f32.mrf.mxu0  ;;  %6359 = vmatmul.mubr.bf16.gmra.mxu0 %v14086_v1  ;;  %v7577_v8 = vpop.f32.mrf.mxu1  ;;  %v5184_v0 = vmax.f32 %v5088_v49, 0.0 }
 0x364   : > { %v5091_v32 = vadd.f32 %v7872_v29, %v12430_v5  ;;  %5501 = vmatprep.mubr.bf16.mxu1 %v5279_v57  ;;  %6366 = vmatprep.mubr.bf16.mxu0 %v6078_v50  ;;  %3349 = vst.msk [vmem:[%s12333_s25 + $0xc0] sm:$0xff] %vm3324_vm0, %v3294_v22  ;;  %v7578_v39 = vadd.f32 %v7577_v8, %v7576_v27  ;;  %v5248_v48 = vmax.f32 %v5216_v11, 0.0 }
 0x365   : > { %v7874_v56 = vpop.f32.mrf.mxu0  ;;  %5502 = vmatmul.mubr.bf16.gmra.mxu1 %v5278_v34  ;;  %v7579_v47 = vpop.f32.mrf.mxu1 }
 0x366   : > { %v5217_v58 = vsub.f32 0.0, %v5091_v32  ;;  %v7875_v26 = vadd.f32 %v7874_v56, %v7873_v61  ;;  %v5185_v9 = vmax.f32 %v5091_v32, 0.0  ;;  %v3297_v2 = vadd.f32 %v7578_v39, %v12328_v42 }
 0x367   : > { %v7876_v23 = vpop.f32.mrf.mxu0  ;;  %v7580_v35 = vpop.f32.mrf.mxu1 }
 0x368   : > { %v5249_v41 = vmax.f32 %v5217_v58, 0.0  ;;  %v5096_v24 = vadd.f32 %v7875_v26, %v12430_v5  ;;  %3350 = vst.msk [vmem:[%s12333_s25 + $0xc8] sm:$0xff] %vm3324_vm0, %v3297_v2  ;;  %v7581_v52 = vadd.f32 %v7580_v35, %v7579_v47  ;;  %v5280_v13 = vpack.c.bf16 %v5185_v9, %v5184_v0 }
 0x369   : > { %v7877_v50 = vpop.f32.mrf.mxu0  ;;  %v7582_v51 = vpop.f32.mrf.mxu1 }
 0x36a   : > { %v7878_v46 = vadd.f32 %v7877_v50, %v7876_v23  ;;  %v5281_v60 = vpack.c.bf16 %v5249_v41, %v5248_v48  ;;  %v3302_v44 = vadd.f32 %v7581_v52, %v12328_v42  ;;  %v5218_v12 = vsub.f32 0.0, %v5096_v24 }
 0x36b   : > { %v7879_v18 = vpop.f32.mrf.mxu0  ;;  %6367 = vmatmul.mubr.bf16.gmra.mxu0 %v6077_v21  ;;  %v7583_v10 = vpop.f32.mrf.mxu1  ;;  %v5186_v38 = vmax.f32 %v5096_v24, 0.0 }
 0x36c   : > { %v5099_v36 = vadd.f32 %v7878_v46, %v12430_v5  ;;  %5509 = vmatprep.mubr.bf16.mxu1 %v5281_v60  ;;  %3351 = vst.msk [vmem:[%s12333_s25 + $0xd0] sm:$0xff] %vm3324_vm0, %v3302_v44  ;;  %v7584_v55 = vadd.f32 %v7583_v10, %v7582_v51  ;;  %v5250_v63 = vmax.f32 %v5218_v12, 0.0 }
 0x36d   : > { %v7880_v17 = vpop.f32.mrf.mxu0  ;;  %5510 = vmatmul.mubr.bf16.gmra.mxu1 %v5280_v13  ;;  %v7585_v14 = vpop.f32.mrf.mxu1 }
 0x36e   : > { %v5219_v54 = vsub.f32 0.0, %v5099_v36  ;;  %v7881_v20 = vadd.f32 %v7880_v17, %v7879_v18  ;;  %v5187_v25 = vmax.f32 %v5099_v36, 0.0  ;;  %v3305_v4 = vadd.f32 %v7584_v55, %v12328_v42  ;;  %v12595_v36 = vld [vmem:[%s13053_s7] ss:$0 sm:$0xff] }
 0x36f   : > { %v7882_v31 = vpop.f32.mrf.mxu0  ;;  %v7586_v6 = vpop.f32.mrf.mxu1 }
 0x370   : > { %v5251_v21 = vmax.f32 %v5219_v54, 0.0  ;;  %v5104_v37 = vadd.f32 %v7881_v20, %v12430_v5  ;;  %3352 = vst.msk [vmem:[%s12333_s25 + $0xd8] sm:$0xff] %vm3324_vm0, %v3305_v4  ;;  %v7587_v16 = vadd.f32 %v7586_v6, %v7585_v14  ;;  %v5282_v30 = vpack.c.bf16 %v5187_v25, %v5186_v38 }
 0x371   : > { %v7883_v59 = vpop.f32.mrf.mxu0  ;;  %v7588_v43 = vpop.f32.mrf.mxu1 }
 0x372   : > { %v7884_v40 = vadd.f32 %v7883_v59, %v7882_v31  ;;  %v5283_v28 = vpack.c.bf16 %v5251_v21, %v5250_v63  ;;  %v3310_v15 = vadd.f32 %v7587_v16, %v12328_v42  ;;  %v5220_v49 = vsub.f32 0.0, %v5104_v37 }
 0x373   : > { %v7885_v19 = vpop.f32.mrf.mxu0  ;;  %v7589_v62 = vpop.f32.mrf.mxu1  ;;  %v5188_v32 = vmax.f32 %v5104_v37, 0.0 }
 0x374   : > { %v5107_v3 = vadd.f32 %v7884_v40, %v12430_v5  ;;  %5517 = vmatprep.mubr.bf16.mxu1 %v5283_v28  ;;  %3353 = vst.msk [vmem:[%s12333_s25 + $0xe0] sm:$0xff] %vm3324_vm0, %v3310_v15  ;;  %v7590_v53 = vadd.f32 %v7589_v62, %v7588_v43  ;;  %v5252_v33 = vmax.f32 %v5220_v49, 0.0 }
 0x375   : > { %v7886_v7 = vpop.f32.mrf.mxu0  ;;  %5518 = vmatmul.mubr.bf16.gmra.mxu1 %v5282_v30  ;;  %v7591_v27 = vpop.f32.mrf.mxu1 }
 0x376   : > { %v5221_v29 = vsub.f32 0.0, %v5107_v3  ;;  %v7887_v57 = vadd.f32 %v7886_v7, %v7885_v19  ;;  %v5189_v34 = vmax.f32 %v5107_v3, 0.0  ;;  %v3313_v45 = vadd.f32 %v7590_v53, %v12328_v42 }
 0x377   : > { %v7888_v61 = vpop.f32.mrf.mxu0  ;;  %v7592_v11 = vpop.f32.mrf.mxu1 }
 0x378   : > { %v5253_v1 = vmax.f32 %v5221_v29, 0.0  ;;  %v5112_v22 = vadd.f32 %v7887_v57, %v12430_v5  ;;  %3354 = vst.msk [vmem:[%s12333_s25 + $0xe8] sm:$0xff] %vm3324_vm0, %v3313_v45  ;;  %v7593_v56 = vadd.f32 %v7592_v11, %v7591_v27  ;;  %v5284_v47 = vpack.c.bf16 %v5189_v34, %v5188_v32 }
 0x379   : > { %v7889_v8 = vpop.f32.mrf.mxu0  ;;  %v7594_v26 = vpop.f32.mrf.mxu1 }
 0x37a   : > { %v7890_v39 = vadd.f32 %v7889_v8, %v7888_v61  ;;  %v5285_v58 = vpack.c.bf16 %v5253_v1, %v5252_v33  ;;  %v3318_v23 = vadd.f32 %v7593_v56, %v12328_v42  ;;  %v5222_v2 = vsub.f32 0.0, %v5112_v22 }
 0x37b   : > { %v7891_v9 = vpop.f32.mrf.mxu0  ;;  %v7595_v41 = vpop.f32.mrf.mxu1  ;;  %v5190_v10 = vmax.f32 %v5112_v22, 0.0 }
 0x37c   : > { %v5115_v48 = vadd.f32 %v7890_v39, %v12430_v5  ;;  %5525 = vmatprep.mubr.bf16.mxu1 %v5285_v58  ;;  %3355 = vst.msk [vmem:[%s12333_s25 + $0xf0] sm:$0xff] %vm3324_vm0, %v3318_v23  ;;  %v7596_v35 = vadd.f32 %v7595_v41, %v7594_v26  ;;  %v5254_v13 = vmax.f32 %v5222_v2, 0.0 }
 0x37d   : > { %v7892_v24 = vpop.f32.mrf.mxu0  ;;  %5526 = vmatmul.mubr.bf16.gmra.mxu1 %v5284_v47  ;;  %v7725_v52 = vpop.f32.mrf.mxu1 }
 0x37e   : > { %v5223_v0 = vsub.f32 0.0, %v5115_v48  ;;  %v7893_v50 = vadd.f32 %v7892_v24, %v7891_v9  ;;  %v5191_v46 = vmax.f32 %v5115_v48, 0.0  ;;  %v3321_v51 = vadd.f32 %v7596_v35, %v12328_v42 }
 0x37f   : > { %v7894_v60 = vpop.f32.mrf.mxu0  ;;  %v7726_v12 = vpop.f32.mrf.mxu1 }
 0x380   : > { %v5255_v18 = vmax.f32 %v5223_v0, 0.0  ;;  %v5120_v44 = vadd.f32 %v7893_v50, %v12430_v5  ;;  %3356 = vst.msk [vmem:[%s12333_s25 + $0xf8] sm:$0xff] %vm3324_vm0, %v3321_v51  ;;  %v7727_v55 = vadd.f32 %v7726_v12, %v7725_v52  ;;  %v5286_v25 = vpack.c.bf16 %v5191_v46, %v5190_v10 }
 0x381   : > { %v7895_v17 = vpop.f32.mrf.mxu0  ;;  %v7728_v14 = vpop.f32.mrf.mxu1 }
 0x382   : > { %v7896_v54 = vadd.f32 %v7895_v17, %v7894_v60  ;;  %v5287_v20 = vpack.c.bf16 %v5255_v18, %v5254_v13  ;;  %v4271_v31 = vadd.f32 %v7727_v55, %v12595_v36  ;;  %v5224_v4 = vsub.f32 0.0, %v5120_v44 }
 0x383   : > { %v7897_v42 = vpop.f32.mrf.mxu0  ;;  %v7729_v21 = vpop.f32.mrf.mxu1  ;;  %v5192_v3 = vmax.f32 %v5120_v44, 0.0 }
 0x384   : > { %v5123_v63 = vadd.f32 %v7896_v54, %v12430_v5  ;;  %5533 = vmatprep.mubr.bf16.mxu1 %v5287_v20  ;;  %v7730_v6 = vadd.f32 %v7729_v21, %v7728_v14  ;;  %4429 = vrot.lane.b32.xlu0 %v4271_v31, %s8755_s19  ;;  %v5256_v30 = vmax.f32 %v5224_v4, 0.0 }
 0x385   : > { %v7898_v37 = vpop.f32.mrf.mxu0  ;;  %5534 = vmatmul.mubr.bf16.gmra.mxu1 %v5286_v25  ;;  %v7731_v16 = vpop.f32.mrf.mxu1 }
 0x386   : > { %v5225_v38 = vsub.f32 0.0, %v5123_v63  ;;  %v7899_v59 = vadd.f32 %v7898_v37, %v7897_v42  ;;  %v5193_v40 = vmax.f32 %v5123_v63, 0.0  ;;  %v4274_v43 = vadd.f32 %v7730_v6, %v12595_v36 }
 0x387   : > { %v7900_v28 = vpop.f32.mrf.mxu0  ;;  %v7732_v49 = vpop.f32.mrf.mxu1 }
 0x388   : > { %v5257_v19 = vmax.f32 %v5225_v38, 0.0  ;;  %v5128_v15 = vadd.f32 %v7899_v59, %v12430_v5  ;;  %v7733_v7 = vadd.f32 %v7732_v49, %v7731_v16  ;;  %4431 = vrot.lane.b32.xlu0 %v4274_v43, %s8755_s19  ;;  %v5288_v27 = vpack.c.bf16 %v5193_v40, %v5192_v3 }
 0x389   : > { %v7901_v62 = vpop.f32.mrf.mxu0  ;;  %v7734_v57 = vpop.f32.mrf.mxu1 }
 0x38a   : > { %v7902_v53 = vadd.f32 %v7901_v62, %v7900_v28  ;;  %v5289_v29 = vpack.c.bf16 %v5257_v19, %v5256_v30  ;;  %v4279_v61 = vadd.f32 %v7733_v7, %v12595_v36  ;;  %v5226_v45 = vsub.f32 0.0, %v5128_v15 }
 0x38b   : > { %v7903_v34 = vpop.f32.mrf.mxu0  ;;  %v7735_v1 = vpop.f32.mrf.mxu1  ;;  %v5194_v48 = vmax.f32 %v5128_v15, 0.0 }
 0x38c   : > { %v5131_v33 = vadd.f32 %v7902_v53, %v12430_v5  ;;  %5541 = vmatprep.mubr.bf16.mxu1 %v5289_v29  ;;  %v7736_v11 = vadd.f32 %v7735_v1, %v7734_v57  ;;  %4433 = vrot.lane.b32.xlu1 %v4279_v61, %s8755_s19  ;;  %v5258_v47 = vmax.f32 %v5226_v45, 0.0 }
 0x38d   : > { %v7904_v22 = vpop.f32.mrf.mxu0  ;;  %5542 = vmatmul.mubr.bf16.gmra.mxu1 %v5288_v27  ;;  %v7737_v56 = vpop.f32.mrf.mxu1 }
 0x38e   : > { %v5227_v32 = vsub.f32 0.0, %v5131_v33  ;;  %v7905_v8 = vadd.f32 %v7904_v22, %v7903_v34  ;;  %v5195_v39 = vmax.f32 %v5131_v33, 0.0  ;;  %v4282_v26 = vadd.f32 %v7736_v11, %v12595_v36 }
 0x38f   : > { %v7906_v58 = vpop.f32.mrf.mxu0  ;;  %v7738_v2 = vpop.f32.mrf.mxu1 }
 0x390   : > { %v5259_v9 = vmax.f32 %v5227_v32, 0.0  ;;  %v5136_v23 = vadd.f32 %v7905_v8, %v12430_v5  ;;  %v7739_v24 = vadd.f32 %v7738_v2, %v7737_v56  ;;  %4435 = vrot.lane.b32.xlu1 %v4282_v26, %s8755_s19  ;;  %v5290_v52 = vpack.c.bf16 %v5195_v39, %v5194_v48 }
 0x391   : > { %v7907_v41 = vpop.f32.mrf.mxu0  ;;  %v7740_v50 = vpop.f32.mrf.mxu1 }
 0x392   : > { %v7908_v35 = vadd.f32 %v7907_v41, %v7906_v58  ;;  %v5291_v0 = vpack.c.bf16 %v5259_v9, %v5258_v47  ;;  %v4287_v60 = vadd.f32 %v7739_v24, %v12595_v36  ;;  %v5228_v51 = vsub.f32 0.0, %v5136_v23 }
 0x393   : > { %v7909_v46 = vpop.f32.mrf.mxu0  ;;  %v7741_v18 = vpop.f32.mrf.mxu1  ;;  %v5196_v63 = vmax.f32 %v5136_v23, 0.0 }
 0x394   : > { %v5139_v13 = vadd.f32 %v7908_v35, %v12430_v5  ;;  %5549 = vmatprep.mubr.bf16.mxu1 %v5291_v0  ;;  %v7742_v12 = vadd.f32 %v7741_v18, %v7740_v50  ;;  %4437 = vrot.lane.b32.xlu0 %v4287_v60, %s8755_s19  ;;  %v5260_v25 = vmax.f32 %v5228_v51, 0.0 }
 0x395   : > { %v7910_v44 = vpop.f32.mrf.mxu0  ;;  %5550 = vmatmul.mubr.bf16.gmra.mxu1 %v5290_v52  ;;  %v7743_v55 = vpop.f32.mrf.mxu1 }
 0x396   : > { %v5229_v10 = vsub.f32 0.0, %v5139_v13  ;;  %v7911_v17 = vadd.f32 %v7910_v44, %v7909_v46  ;;  %v5197_v54 = vmax.f32 %v5139_v13, 0.0  ;;  %v4290_v14 = vadd.f32 %v7742_v12, %v12595_v36 }
 0x397   : > { %v7912_v20 = vpop.f32.mrf.mxu0  ;;  %v7744_v4 = vpop.f32.mrf.mxu1 }
 0x398   : > { %v5261_v42 = vmax.f32 %v5229_v10, 0.0  ;;  %v5144_v31 = vadd.f32 %v7911_v17, %v12430_v5  ;;  %v7745_v37 = vadd.f32 %v7744_v4, %v7743_v55  ;;  %4439 = vrot.lane.b32.xlu1 %v4290_v14, %s8755_s19  ;;  %v5292_v16 = vpack.c.bf16 %v5197_v54, %v5196_v63 }
 0x399   : > { %v7913_v21 = vpop.f32.mrf.mxu0  ;;  %v7746_v59 = vpop.f32.mrf.mxu1 }
 0x39a   : > { %v7914_v6 = vadd.f32 %v7913_v21, %v7912_v20  ;;  %v5293_v38 = vpack.c.bf16 %v5261_v42, %v5260_v25  ;;  %v4295_v28 = vadd.f32 %v7745_v37, %v12595_v36  ;;  %v5230_v43 = vsub.f32 0.0, %v5144_v31 }
 0x39b   : > { %v7915_v40 = vpop.f32.mrf.mxu0  ;;  %v7747_v19 = vpop.f32.mrf.mxu1  ;;  %v5198_v33 = vmax.f32 %v5144_v31, 0.0 }
 0x39c   : > { %v5147_v30 = vadd.f32 %v7914_v6, %v12430_v5  ;;  %5557 = vmatprep.mubr.bf16.mxu1 %v5293_v38  ;;  %v7748_v49 = vadd.f32 %v7747_v19, %v7746_v59  ;;  %4441 = vrot.lane.b32.xlu0 %v4295_v28, %s8755_s19  ;;  %v5262_v27 = vmax.f32 %v5230_v43, 0.0 }
 0x39d   : > { %v7916_v15 = vpop.f32.mrf.mxu0  ;;  %5558 = vmatmul.mubr.bf16.gmra.mxu1 %v5292_v16  ;;  %v7749_v7 = vpop.f32.mrf.mxu1 }
 0x39e   : > { %v5231_v3 = vsub.f32 0.0, %v5147_v30  ;;  %v7917_v62 = vadd.f32 %v7916_v15, %v7915_v40  ;;  %v5199_v53 = vmax.f32 %v5147_v30, 0.0  ;;  %v4298_v57 = vadd.f32 %v7748_v49, %v12595_v36 }
 0x39f   : > { %v7918_v29 = vpop.f32.mrf.mxu0  ;;  %v7750_v45 = vpop.f32.mrf.mxu1 }
 0x3a0   : > { %v5263_v34 = vmax.f32 %v5231_v3, 0.0  ;;  %v5152_v61 = vadd.f32 %v7917_v62, %v12430_v5  ;;  %v7751_v22 = vadd.f32 %v7750_v45, %v7749_v7  ;;  %4443 = vrot.lane.b32.xlu1 %v4298_v57, %s8755_s19  ;;  %v5294_v56 = vpack.c.bf16 %v5199_v53, %v5198_v33 }
 0x3a1   : > { %v7919_v1 = vpop.f32.mrf.mxu0  ;;  %v7752_v8 = vpop.f32.mrf.mxu1 }
 0x3a2   : > { %v7920_v11 = vadd.f32 %v7919_v1, %v7918_v29  ;;  %v5295_v32 = vpack.c.bf16 %v5263_v34, %v5262_v27  ;;  %v4303_v58 = vadd.f32 %v7751_v22, %v12595_v36  ;;  %v5232_v26 = vsub.f32 0.0, %v5152_v61 }
 0x3a3   : > { %v7921_v39 = vpop.f32.mrf.mxu0  ;;  %v7753_v9 = vpop.f32.mrf.mxu1  ;;  %v5200_v51 = vmax.f32 %v5152_v61, 0.0  ;;  %v12639_v61 = vld [vmem:[%s13051_s5] ss:$0 sm:$0xff] }
 0x3a4   : > { %v5155_v47 = vadd.f32 %v7920_v11, %v12430_v5  ;;  %5565 = vmatprep.mubr.bf16.mxu1 %v5295_v32  ;;  %v7754_v2 = vadd.f32 %v7753_v9, %v7752_v8  ;;  %4445 = vrot.lane.b32.xlu0 %v4303_v58, %s8755_s19  ;;  %v5264_v50 = vmax.f32 %v5232_v26, 0.0 }
 0x3a5   : > { %v7922_v23 = vpop.f32.mrf.mxu0  ;;  %5566 = vmatmul.mubr.bf16.gmra.mxu1 %v5294_v56 }
 0x3a6   : > { %v5233_v48 = vsub.f32 0.0, %v5155_v47  ;;  %v7923_v41 = vadd.f32 %v7922_v23, %v7921_v39  ;;  %v5201_v24 = vmax.f32 %v5155_v47, 0.0  ;;  %v4306_v0 = vadd.f32 %v7754_v2, %v12595_v36 }
 0x3a7   : > { %v7924_v35 = vpop.f32.mrf.mxu0 }
 0x3a8   : > { %v5265_v52 = vmax.f32 %v5233_v48, 0.0  ;;  %v5160_v46 = vadd.f32 %v7923_v41, %v12430_v5  ;;  %v7755_v60 = vpop.f32.mrf.mxu1  ;;  %4447 = vrot.lane.b32.xlu1 %v4306_v0, %s8755_s19  ;;  %v5296_v10 = vpack.c.bf16 %v5201_v24, %v5200_v51 }
 0x3a9   : > { %v7925_v13 = vpop.f32.mrf.mxu0 }
 0x3aa   : > { %v7926_v18 = vadd.f32 %v7925_v13, %v7924_v35  ;;  %v5297_v44 = vpack.c.bf16 %v5265_v52, %v5264_v50  ;;  %v7756_v12 = vpop.f32.mrf.mxu1  ;;  %v5234_v54 = vsub.f32 0.0, %v5160_v46  ;;  %v5202_v16 = vmax.f32 %v5160_v46, 0.0 }
 0x3ab   : > { %v7927_v17 = vpop.f32.mrf.mxu0  ;;  %v7757_v55 = vadd.f32 %v7756_v12, %v7755_v60 }
 0x3ac   : > { %v5163_v20 = vadd.f32 %v7926_v18, %v12430_v5  ;;  %5573 = vmatprep.mubr.bf16.mxu1 %v5297_v44  ;;  %v7758_v14 = vpop.f32.mrf.mxu1  ;;  %v5266_v38 = vmax.f32 %v5234_v54, 0.0 }
 0x3ad   : > { %v7928_v25 = vpop.f32.mrf.mxu0  ;;  %5574 = vmatmul.mubr.bf16.gmra.mxu1 %v5296_v10  ;;  %v4311_v42 = vadd.f32 %v7757_v55, %v12595_v36 }
 0x3ae   : > { %v5235_v31 = vsub.f32 0.0, %v5163_v20  ;;  %v7929_v4 = vadd.f32 %v7928_v25, %v7927_v17  ;;  %v7759_v63 = vpop.f32.mrf.mxu1  ;;  %v5203_v21 = vmax.f32 %v5163_v20, 0.0 }
 0x3af   : > { %v7930_v37 = vpop.f32.mrf.mxu0  ;;  %v7760_v6 = vadd.f32 %v7759_v63, %v7758_v14  ;;  %4449 = vrot.lane.b32.xlu0 %v4311_v42, %s8755_s19 }
 0x3b0   : > { %v5267_v59 = vmax.f32 %v5235_v31, 0.0  ;;  %v5168_v40 = vadd.f32 %v7929_v4, %v12430_v5  ;;  %v5298_v49 = vpack.c.bf16 %v5203_v21, %v5202_v16 }
 0x3b1   : > { %v7931_v28 = vpop.f32.mrf.mxu0  ;;  %v4314_v43 = vadd.f32 %v7760_v6, %v12595_v36  ;;  %v7761_v30 = vpop.f32.mrf.mxu1 }
 0x3b2   : > { %v7932_v19 = vadd.f32 %v7931_v28, %v7930_v37  ;;  %v5299_v15 = vpack.c.bf16 %v5267_v59, %v5266_v38  ;;  %v5236_v29 = vsub.f32 0.0, %v5168_v40  ;;  %v5204_v58 = vmax.f32 %v5168_v40, 0.0 }
 0x3b3   : > { %v8061_v3 = vpop.f32.mrf.mxu0  ;;  %v7762_v62 = vpop.f32.mrf.mxu1  ;;  %4451 = vrot.lane.b32.xlu1 %v4314_v43, %s8755_s19 }
 0x3b4   : > { %v5171_v7 = vadd.f32 %v7932_v19, %v12430_v5  ;;  %5581 = vmatprep.mubr.bf16.mxu1 %v5299_v15  ;;  %v7763_v53 = vadd.f32 %v7762_v62, %v7761_v30  ;;  %v5268_v8 = vmax.f32 %v5236_v29, 0.0 }
 0x3b5   : > { %5582 = vmatmul.mubr.bf16.gmra.mxu1 %v5298_v49  ;;  %v8062_v57 = vpop.f32.mrf.mxu0  ;;  %v7764_v27 = vpop.f32.mrf.mxu1 }
 0x3b6   : > { %v5237_v34 = vsub.f32 0.0, %v5171_v7  ;;  %v8063_v45 = vadd.f32 %v8062_v57, %v8061_v3  ;;  %v4319_v33 = vadd.f32 %v7763_v53, %v12595_v36  ;;  %v5205_v11 = vmax.f32 %v5171_v7, 0.0 }
 0x3b7   : > { %v8064_v1 = vpop.f32.mrf.mxu0  ;;  %v7765_v22 = vpop.f32.mrf.mxu1 }
 0x3b8   : > { %v5269_v32 = vmax.f32 %v5237_v34, 0.0  ;;  %v7766_v5 = vadd.f32 %v7765_v22, %v7764_v27  ;;  %4453 = vrot.lane.b32.xlu0 %v4319_v33, %s8755_s19  ;;  %v6249_v56 = vadd.f32 %v8063_v45, %v12639_v61  ;;  %v5300_v48 = vpack.c.bf16 %v5205_v11, %v5204_v58 }
 0x3b9   : > { %v8065_v39 = vpop.f32.mrf.mxu0 }
 0x3ba   : > { %v8066_v26 = vadd.f32 %v8065_v39, %v8064_v1  ;;  %v4322_v47 = vadd.f32 %v7766_v5, %v12595_v36  ;;  %v5301_v23 = vpack.c.bf16 %v5269_v32, %v5268_v8  ;;  %v7767_v2 = vpop.f32.mrf.mxu1  ;;  %v6407_v24 = vsub.f32 0.0, %v6249_v56 }
 0x3bb   : > { %v8067_v9 = vpop.f32.mrf.mxu0  ;;  %v6375_v54 = vmax.f32 %v6249_v56, 0.0 }
 0x3bc   : > { %v6252_v41 = vadd.f32 %v8066_v26, %v12639_v61  ;;  %4455 = vrot.lane.b32.xlu1 %v4322_v47, %s8755_s19  ;;  %5589 = vmatprep.mubr.bf16.mxu1 %v5301_v23  ;;  %v7768_v0 = vpop.f32.mrf.mxu1  ;;  %v6439_v12 = vmax.f32 %v6407_v24, 0.0 }
 0x3bd   : > { %v8068_v35 = vpop.f32.mrf.mxu0  ;;  %5590 = vmatmul.mubr.bf16.gmra.mxu1 %v5300_v48  ;;  %v7769_v46 = vadd.f32 %v7768_v0, %v7767_v2 }
 0x3be   : > { %v6408_v50 = vsub.f32 0.0, %v6252_v41  ;;  %v8069_v52 = vadd.f32 %v8068_v35, %v8067_v9  ;;  %v7770_v51 = vpop.f32.mrf.mxu1  ;;  %v6376_v13 = vmax.f32 %v6252_v41, 0.0 }
 0x3bf   : > { %v8070_v60 = vpop.f32.mrf.mxu0  ;;  %v4327_v44 = vadd.f32 %v7769_v46, %v12595_v36 }
 0x3c0   : > { %v6440_v18 = vmax.f32 %v6408_v50, 0.0  ;;  %v6257_v10 = vadd.f32 %v8069_v52, %v12639_v61  ;;  %v7771_v55 = vpop.f32.mrf.mxu1  ;;  %v6471_v31 = vpack.c.bf16 %v6376_v13, %v6375_v54 }
 0x3c1   : > { %v8071_v17 = vpop.f32.mrf.mxu0  ;;  %v7772_v14 = vadd.f32 %v7771_v55, %v7770_v51  ;;  %4457 = vrot.lane.b32.xlu0 %v4327_v44, %s8755_s19 }
 0x3c2   : > { %v8072_v20 = vadd.f32 %v8071_v17, %v8070_v60  ;;  %v6472_v42 = vpack.c.bf16 %v6440_v18, %v6439_v12  ;;  %v6409_v21 = vsub.f32 0.0, %v6257_v10  ;;  %v6377_v62 = vmax.f32 %v6257_v10, 0.0 }
 0x3c3   : > { %v8073_v25 = vpop.f32.mrf.mxu0  ;;  %v4330_v63 = vadd.f32 %v7772_v14, %v12595_v36 }
 0x3c4   : > { %v6260_v4 = vadd.f32 %v8072_v20, %v12639_v61  ;;  %6670 = vmatprep.mubr.bf16.mxu1 %v6472_v42  ;;  %v7773_v37 = vpop.f32.mrf.mxu1  ;;  %v6441_v19 = vmax.f32 %v6409_v21, 0.0 }
 0x3c5   : > { %v8074_v6 = vpop.f32.mrf.mxu0  ;;  %6671 = vmatmul.mubr.bf16.vlgmr.msra.gmra.mxu1 %v6471_v31  ;;  %4459 = vrot.lane.b32.xlu1 %v4330_v63, %s8755_s19 }
 0x3c6   : > { %v6410_v38 = vsub.f32 0.0, %v6260_v4  ;;  %v8075_v59 = vadd.f32 %v8074_v6, %v8073_v25  ;;  %v7774_v16 = vpop.f32.mrf.mxu1  ;;  %v6378_v28 = vmax.f32 %v6260_v4, 0.0 }
 0x3c7   : > { %v8076_v40 = vpop.f32.mrf.mxu0  ;;  %v7775_v30 = vadd.f32 %v7774_v16, %v7773_v37 }
 0x3c8   : > { %v6442_v43 = vmax.f32 %v6410_v38, 0.0  ;;  %v6265_v15 = vadd.f32 %v8075_v59, %v12639_v61  ;;  %v7776_v49 = vpop.f32.mrf.mxu1  ;;  %v6473_v34 = vpack.c.bf16 %v6378_v28, %v6377_v62 }
 0x3c9   : > { %v8077_v3 = vpop.f32.mrf.mxu0  ;;  %v4335_v7 = vadd.f32 %v7775_v30, %v12595_v36 }
 0x3ca   : > { %v8078_v53 = vadd.f32 %v8077_v3, %v8076_v40  ;;  %v7777_v29 = vpop.f32.mrf.mxu1  ;;  %v6474_v27 = vpack.c.bf16 %v6442_v43, %v6441_v19  ;;  %v6411_v1 = vsub.f32 0.0, %v6265_v15  ;;  %v6379_v41 = vmax.f32 %v6265_v15, 0.0 }
 0x3cb   : > { %v8079_v57 = vpop.f32.mrf.mxu0  ;;  %v7778_v33 = vadd.f32 %v7777_v29, %v7776_v49  ;;  %4461 = vrot.lane.b32.xlu0 %v4335_v7, %s8755_s19 }
 0x3cc   : > { %v6268_v45 = vadd.f32 %v8078_v53, %v12639_v61  ;;  %6678 = vmatprep.mubr.bf16.mxu1 %v6474_v27  ;;  %v7779_v22 = vpop.f32.mrf.mxu1  ;;  %v6443_v9 = vmax.f32 %v6411_v1, 0.0 }
 0x3cd   : > { %v8080_v11 = vpop.f32.mrf.mxu0  ;;  %v4338_v5 = vadd.f32 %v7778_v33, %v12595_v36  ;;  %6679 = vmatmul.mubr.bf16.gmra.mxu1 %v6473_v34 }
 0x3ce   : > { %v6412_v32 = vsub.f32 0.0, %v6268_v45  ;;  %v8081_v8 = vadd.f32 %v8080_v11, %v8079_v57  ;;  %v7780_v56 = vpop.f32.mrf.mxu1  ;;  %v6380_v58 = vmax.f32 %v6268_v45, 0.0 }
 0x3cf   : > { %v8082_v39 = vpop.f32.mrf.mxu0  ;;  %v7781_v47 = vadd.f32 %v7780_v56, %v7779_v22  ;;  %4463 = vrot.lane.b32.xlu1 %v4338_v5, %s8755_s19 }
 0x3d0   : > { %v6444_v26 = vmax.f32 %v6412_v32, 0.0  ;;  %v6273_v23 = vadd.f32 %v8081_v8, %v12639_v61  ;;  %v7782_v2 = vpop.f32.mrf.mxu1  ;;  %v6475_v46 = vpack.c.bf16 %v6380_v58, %v6379_v41 }
 0x3d1   : > { %v8083_v48 = vpop.f32.mrf.mxu0  ;;  %v4343_v24 = vadd.f32 %v7781_v47, %v12595_v36 }
 0x3d2   : > { %v8084_v35 = vadd.f32 %v8083_v48, %v8082_v39  ;;  %v7783_v0 = vpop.f32.mrf.mxu1  ;;  %v6476_v52 = vpack.c.bf16 %v6444_v26, %v6443_v9  ;;  %v6413_v13 = vsub.f32 0.0, %v6273_v23  ;;  %v6381_v21 = vmax.f32 %v6273_v23, 0.0 }
 0x3d3   : > { %v8085_v50 = vpop.f32.mrf.mxu0  ;;  %v7784_v51 = vadd.f32 %v7783_v0, %v7782_v2  ;;  %4465 = vrot.lane.b32.xlu0 %v4343_v24, %s8755_s19 }
 0x3d4   : > { %v6276_v60 = vadd.f32 %v8084_v35, %v12639_v61  ;;  %6686 = vmatprep.mubr.bf16.mxu1 %v6476_v52  ;;  %v7785_v18 = vpop.f32.mrf.mxu1  ;;  %v6445_v42 = vmax.f32 %v6413_v13, 0.0 }
 0x3d5   : > { %v8086_v44 = vpop.f32.mrf.mxu0  ;;  %v4346_v10 = vadd.f32 %v7784_v51, %v12595_v36  ;;  %6687 = vmatmul.mubr.bf16.gmra.mxu1 %v6475_v46 }
 0x3d6   : > { %v6414_v12 = vsub.f32 0.0, %v6276_v60  ;;  %v8087_v17 = vadd.f32 %v8086_v44, %v8085_v50  ;;  %v7786_v55 = vpop.f32.mrf.mxu1  ;;  %v6382_v20 = vmax.f32 %v6276_v60, 0.0 }
 0x3d7   : > { %v8088_v54 = vpop.f32.mrf.mxu0  ;;  %v7787_v25 = vadd.f32 %v7786_v55, %v7785_v18  ;;  %4467 = vrot.lane.b32.xlu1 %v4346_v10, %s8755_s19 }
 0x3d8   : > { %v6446_v14 = vmax.f32 %v6414_v12, 0.0  ;;  %v6281_v31 = vadd.f32 %v8087_v17, %v12639_v61  ;;  %v7788_v4 = vpop.f32.mrf.mxu1  ;;  %v6477_v40 = vpack.c.bf16 %v6382_v20, %v6381_v21 }
 0x3d9   : > { %v8089_v63 = vpop.f32.mrf.mxu0  ;;  %v4351_v37 = vadd.f32 %v7787_v25, %v12595_v36 }
 0x3da   : > { %v8090_v6 = vadd.f32 %v8089_v63, %v8088_v54  ;;  %v7789_v38 = vpop.f32.mrf.mxu1  ;;  %v6478_v16 = vpack.c.bf16 %v6446_v14, %v6445_v42  ;;  %v6415_v30 = vsub.f32 0.0, %v6281_v31  ;;  %v6383_v22 = vmax.f32 %v6281_v31, 0.0 }
 0x3db   : > { %v8091_v59 = vpop.f32.mrf.mxu0  ;;  %v7790_v43 = vadd.f32 %v7789_v38, %v7788_v4  ;;  %4469 = vrot.lane.b32.xlu0 %v4351_v37, %s8755_s19 }
 0x3dc   : > { %v6284_v28 = vadd.f32 %v8090_v6, %v12639_v61  ;;  %6694 = vmatprep.mubr.bf16.mxu1 %v6478_v16  ;;  %v7791_v19 = vpop.f32.mrf.mxu1  ;;  %v6447_v34 = vmax.f32 %v6415_v30, 0.0 }
 0x3dd   : > { %v8092_v15 = vpop.f32.mrf.mxu0  ;;  %v4354_v3 = vadd.f32 %v7790_v43, %v12595_v36  ;;  %6695 = vmatmul.mubr.bf16.gmra.mxu1 %v6477_v40 }
 0x3de   : > { %v6416_v49 = vsub.f32 0.0, %v6284_v28  ;;  %v8093_v62 = vadd.f32 %v8092_v15, %v8091_v59  ;;  %v7792_v7 = vpop.f32.mrf.mxu1  ;;  %v6384_v29 = vmax.f32 %v6284_v28, 0.0 }
 0x3df   : > { %v8094_v53 = vpop.f32.mrf.mxu0  ;;  %v7793_v27 = vadd.f32 %v7792_v7, %v7791_v19  ;;  %4471 = vrot.lane.b32.xlu1 %v4354_v3, %s8755_s19 }
 0x3e0   : > { %v6448_v57 = vmax.f32 %v6416_v49, 0.0  ;;  %v6289_v45 = vadd.f32 %v8093_v62, %v12639_v61  ;;  %v7794_v33 = vpop.f32.mrf.mxu1  ;;  %v6479_v39 = vpack.c.bf16 %v6384_v29, %v6383_v22 }
 0x3e1   : > { %v8095_v1 = vpop.f32.mrf.mxu0  ;;  %v4359_v11 = vadd.f32 %v7793_v27, %v12595_v36 }
 0x3e2   : > { %v8096_v32 = vadd.f32 %v8095_v1, %v8094_v53  ;;  %v7795_v5 = vpop.f32.mrf.mxu1  ;;  %v6480_v56 = vpack.c.bf16 %v6448_v57, %v6447_v34  ;;  %v6417_v47 = vsub.f32 0.0, %v6289_v45  ;;  %v6385_v18 = vmax.f32 %v6289_v45, 0.0 }
 0x3e3   : > { %v8097_v8 = vpop.f32.mrf.mxu0  ;;  %v7796_v26 = vadd.f32 %v7795_v5, %v7794_v33  ;;  %4473 = vrot.lane.b32.xlu0 %v4359_v11, %s8755_s19 }
 0x3e4   : > { %v6292_v58 = vadd.f32 %v8096_v32, %v12639_v61  ;;  %6702 = vmatprep.mubr.bf16.mxu1 %v6480_v56  ;;  %v7797_v9 = vpop.f32.mrf.mxu1  ;;  %v6449_v46 = vmax.f32 %v6417_v47, 0.0 }
 0x3e5   : > { %v8098_v23 = vpop.f32.mrf.mxu0  ;;  %v4362_v48 = vadd.f32 %v7796_v26, %v12595_v36  ;;  %6703 = vmatmul.mubr.bf16.gmra.mxu1 %v6479_v39 }
 0x3e6   : > { %v6418_v2 = vsub.f32 0.0, %v6292_v58  ;;  %v8099_v41 = vadd.f32 %v8098_v23, %v8097_v8  ;;  %v7798_v24 = vpop.f32.mrf.mxu1  ;;  %v6386_v0 = vmax.f32 %v6292_v58, 0.0 }
 0x3e7   : > { %v8100_v35 = vpop.f32.mrf.mxu0  ;;  %v7799_v52 = vadd.f32 %v7798_v24, %v7797_v9  ;;  %4475 = vrot.lane.b32.xlu1 %v4362_v48, %s8755_s19 }
 0x3e8   : > { %v6450_v50 = vmax.f32 %v6418_v2, 0.0  ;;  %v6297_v60 = vadd.f32 %v8099_v41, %v12639_v61  ;;  %v7800_v51 = vpop.f32.mrf.mxu1  ;;  %v6481_v54 = vpack.c.bf16 %v6386_v0, %v6385_v18 }
 0x3e9   : > { %v8101_v13 = vpop.f32.mrf.mxu0  ;;  %v4367_v44 = vadd.f32 %v7799_v52, %v12595_v36 }
 0x3ea   : > { %v8102_v12 = vadd.f32 %v8101_v13, %v8100_v35  ;;  %v7801_v10 = vpop.f32.mrf.mxu1  ;;  %v6482_v55 = vpack.c.bf16 %v6450_v50, %v6449_v46  ;;  %v6419_v25 = vsub.f32 0.0, %v6297_v60  ;;  %v6387_v19 = vmax.f32 %v6297_v60, 0.0 }
 0x3eb   : > { %v8103_v17 = vpop.f32.mrf.mxu0  ;;  %v7802_v14 = vadd.f32 %v7801_v10, %v7800_v51  ;;  %4477 = vrot.lane.b32.xlu0 %v4367_v44, %s8755_s19 }
 0x3ec   : > { %v6300_v20 = vadd.f32 %v8102_v12, %v12639_v61  ;;  %6710 = vmatprep.mubr.bf16.mxu1 %v6482_v55  ;;  %v7803_v42 = vpop.f32.mrf.mxu1  ;;  %v6451_v40 = vmax.f32 %v6419_v25, 0.0 }
 0x3ed   : > { %v8104_v31 = vpop.f32.mrf.mxu0  ;;  %v4370_v63 = vadd.f32 %v7802_v14, %v12595_v36  ;;  %6711 = vmatmul.mubr.bf16.gmra.mxu1 %v6481_v54 }
 0x3ee   : > { %v6420_v4 = vsub.f32 0.0, %v6300_v20  ;;  %v8105_v21 = vadd.f32 %v8104_v31, %v8103_v17  ;;  %v7804_v37 = vpop.f32.mrf.mxu1  ;;  %v6388_v38 = vmax.f32 %v6300_v20, 0.0 }
 0x3ef   : > { %v8106_v6 = vpop.f32.mrf.mxu0  ;;  %v7805_v16 = vadd.f32 %v7804_v37, %v7803_v42  ;;  %4479 = vrot.lane.b32.xlu1 %v4370_v63, %s8755_s19 }
 0x3f0   : > { %v6452_v59 = vmax.f32 %v6420_v4, 0.0  ;;  %v6305_v28 = vadd.f32 %v8105_v21, %v12639_v61  ;;  %v7806_v43 = vpop.f32.mrf.mxu1  ;;  %v6483_v53 = vpack.c.bf16 %v6388_v38, %v6387_v19 }
 0x3f1   : > { %v8107_v30 = vpop.f32.mrf.mxu0  ;;  %v4375_v15 = vadd.f32 %v7805_v16, %v12595_v36 }
 0x3f2   : > { %v8108_v49 = vadd.f32 %v8107_v30, %v8106_v6  ;;  %v7807_v3 = vpop.f32.mrf.mxu1  ;;  %v6484_v7 = vpack.c.bf16 %v6452_v59, %v6451_v40  ;;  %v6421_v27 = vsub.f32 0.0, %v6305_v28  ;;  %v6389_v23 = vmax.f32 %v6305_v28, 0.0 }
 0x3f3   : > { %v8109_v62 = vpop.f32.mrf.mxu0  ;;  %v7808_v57 = vadd.f32 %v7807_v3, %v7806_v43  ;;  %4481 = vrot.lane.b32.xlu0 %v4375_v15, %s8755_s19 }
 0x3f4   : > { %v6308_v29 = vadd.f32 %v8108_v49, %v12639_v61  ;;  %6718 = vmatprep.mubr.bf16.mxu1 %v6484_v7  ;;  %v6453_v58 = vmax.f32 %v6421_v27, 0.0 }
 0x3f5   : > { %v7809_v34 = vpop.f32.mrf.mxu1  ;;  %v8110_v45 = vpop.f32.mrf.mxu0  ;;  %v4378_v1 = vadd.f32 %v7808_v57, %v12595_v36  ;;  %6719 = vmatmul.mubr.bf16.gmra.mxu1 %v6483_v53 }
 0x3f6   : > { %v6422_v33 = vsub.f32 0.0, %v6308_v29  ;;  %v8111_v22 = vadd.f32 %v8110_v45, %v8109_v62  ;;  %v6390_v5 = vmax.f32 %v6308_v29, 0.0  ;;  %v4430_v39 = vpop.permute.xlu0 %4429 }
 0x3f7   : > { %v7810_v11 = vpop.f32.mrf.mxu1  ;;  %v8112_v32 = vpop.f32.mrf.mxu0  ;;  %4483 = vrot.lane.b32.xlu1 %v4378_v1, %s8755_s19  ;;  %4526 = vst.msk [vmem:[%s12333_s25] sm:$0xff] %vm4525_vm1, %v4430_v39 }
 0x3f8   : > { %v6454_v8 = vmax.f32 %v6422_v33, 0.0  ;;  %v7811_v56 = vadd.f32 %v7810_v11, %v7809_v34  ;;  %v6313_v26 = vadd.f32 %v8111_v22, %v12639_v61  ;;  %v6485_v0 = vpack.c.bf16 %v6390_v5, %v6389_v23 }
 0x3f9   : > { %v7812_v47 = vpop.f32.mrf.mxu1  ;;  %v8113_v9 = vpop.f32.mrf.mxu0 }
 0x3fa   : > { %v4383_v2 = vadd.f32 %v7811_v56, %v12595_v36  ;;  %v8114_v48 = vadd.f32 %v8113_v9, %v8112_v32  ;;  %v6486_v35 = vpack.c.bf16 %v6454_v8, %v6453_v58  ;;  %v4432_v46 = vpop.permute.xlu0 %4431  ;;  %v6423_v60 = vsub.f32 0.0, %v6313_v26 }
 0x3fb   : > { %v7813_v41 = vpop.f32.mrf.mxu1  ;;  %v8115_v24 = vpop.f32.mrf.mxu0  ;;  %4527 = vst.msk [vmem:[%s12333_s25 + $0x8] sm:$0xff] %vm4525_vm1, %v4432_v46  ;;  %v6391_v63 = vmax.f32 %v6313_v26, 0.0 }
 0x3fc   : > { %v6316_v50 = vadd.f32 %v8114_v48, %v12639_v61  ;;  %v7814_v52 = vadd.f32 %v7813_v41, %v7812_v47  ;;  %4485 = vrot.lane.b32.xlu0 %v4383_v2, %s8755_s19  ;;  %6726 = vmatprep.mubr.bf16.mxu1 %v6486_v35  ;;  %v6455_v25 = vmax.f32 %v6423_v60, 0.0 }
 0x3fd   : > { %v7815_v51 = vpop.f32.mrf.mxu1  ;;  %v8116_v13 = vpop.f32.mrf.mxu0  ;;  %6727 = vmatmul.mubr.bf16.gmra.mxu1 %v6485_v0 }
 0x3fe   : > { %v6424_v18 = vsub.f32 0.0, %v6316_v50  ;;  %v4386_v44 = vadd.f32 %v7814_v52, %v12595_v36  ;;  %v8117_v12 = vadd.f32 %v8116_v13, %v8115_v24  ;;  %v6392_v55 = vmax.f32 %v6316_v50, 0.0  ;;  %v4434_v14 = vpop.permute.xlu1 %4433 }
 0x3ff   : > { %v7816_v10 = vpop.f32.mrf.mxu1  ;;  %v8118_v17 = vpop.f32.mrf.mxu0  ;;  %4528 = vst.msk [vmem:[%s12333_s25 + $0x10] sm:$0xff] %vm4525_vm1, %v4434_v14 }
 0x400   : > { %v6456_v54 = vmax.f32 %v6424_v18, 0.0  ;;  %v7817_v20 = vadd.f32 %v7816_v10, %v7815_v51  ;;  %4487 = vrot.lane.b32.xlu1 %v4386_v44, %s8755_s19  ;;  %v6321_v42 = vadd.f32 %v8117_v12, %v12639_v61  ;;  %v6487_v16 = vpack.c.bf16 %v6392_v55, %v6391_v63 }
 0x401   : > { %v7818_v31 = vpop.f32.mrf.mxu1  ;;  %v8119_v4 = vpop.f32.mrf.mxu0 }
 0x402   : > { %v4391_v21 = vadd.f32 %v7817_v20, %v12595_v36  ;;  %v8120_v37 = vadd.f32 %v8119_v4, %v8118_v17  ;;  %v6488_v59 = vpack.c.bf16 %v6456_v54, %v6455_v25  ;;  %v4436_v43 = vpop.permute.xlu1 %4435  ;;  %v6425_v30 = vsub.f32 0.0, %v6321_v42 }
 0x403   : > { %v7819_v6 = vpop.f32.mrf.mxu1  ;;  %v8121_v38 = vpop.f32.mrf.mxu0  ;;  %4529 = vst.msk [vmem:[%s12333_s25 + $0x18] sm:$0xff] %vm4525_vm1, %v4436_v43  ;;  %v6393_v11 = vmax.f32 %v6321_v42, 0.0 }
 0x404   : > { %v6324_v40 = vadd.f32 %v8120_v37, %v12639_v61  ;;  %v7820_v28 = vadd.f32 %v7819_v6, %v7818_v31  ;;  %4489 = vrot.lane.b32.xlu0 %v4391_v21, %s8755_s19  ;;  %6734 = vmatprep.mubr.bf16.mxu1 %v6488_v59  ;;  %v6457_v45 = vmax.f32 %v6425_v30, 0.0 }
 0x405   : > { %v7949_v19 = vpop.f32.mrf.mxu1  ;;  %v8122_v15 = vpop.f32.mrf.mxu0  ;;  %6735 = vmatmul.mubr.bf16.gmra.mxu1 %v6487_v16 }
 0x406   : > { %v6426_v49 = vsub.f32 0.0, %v6324_v40  ;;  %v4394_v3 = vadd.f32 %v7820_v28, %v12595_v36  ;;  %v8123_v62 = vadd.f32 %v8122_v15, %v8121_v38  ;;  %v6394_v29 = vmax.f32 %v6324_v40, 0.0  ;;  %v4438_v34 = vpop.permute.xlu0 %4437 }
 0x407   : > { %v7950_v7 = vpop.f32.mrf.mxu1  ;;  %v8124_v53 = vpop.f32.mrf.mxu0  ;;  %4530 = vst.msk [vmem:[%s12333_s25 + $0x20] sm:$0xff] %vm4525_vm1, %v4438_v34 }
 0x408   : > { %v6458_v57 = vmax.f32 %v6426_v49, 0.0  ;;  %v7951_v27 = vadd.f32 %v7950_v7, %v7949_v19  ;;  %4491 = vrot.lane.b32.xlu1 %v4394_v3, %s8755_s19  ;;  %v6329_v33 = vadd.f32 %v8123_v62, %v12639_v61  ;;  %v6489_v58 = vpack.c.bf16 %v6394_v29, %v6393_v11 }
 0x409   : > { %v7952_v1 = vpop.f32.mrf.mxu1  ;;  %v8125_v22 = vpop.f32.mrf.mxu0 }
 0x40a   : > { %v5472_v32 = vadd.f32 %v7951_v27, %v12595_v36  ;;  %v8126_v5 = vadd.f32 %v8125_v22, %v8124_v53  ;;  %v6490_v39 = vpack.c.bf16 %v6458_v57, %v6457_v45  ;;  %v4440_v9 = vpop.permute.xlu1 %4439  ;;  %v6427_v23 = vsub.f32 0.0, %v6329_v33 }
 0x40b   : > { %v7953_v8 = vpop.f32.mrf.mxu1  ;;  %v8127_v56 = vpop.f32.mrf.mxu0  ;;  %4531 = vst.msk [vmem:[%s12333_s25 + $0x28] sm:$0xff] %vm4525_vm1, %v4440_v9  ;;  %v6395_v10 = vmax.f32 %v6329_v33, 0.0 }
 0x40c   : > { %v6332_v26 = vadd.f32 %v8126_v5, %v12639_v61  ;;  %v7954_v47 = vadd.f32 %v7953_v8, %v7952_v1  ;;  %5630 = vrot.lane.b32.xlu0 %v5472_v32, %s8756_s22  ;;  %6742 = vmatprep.mubr.bf16.mxu1 %v6490_v39  ;;  %v6459_v13 = vmax.f32 %v6427_v23, 0.0 }
 0x40d   : > { %v7955_v2 = vpop.f32.mrf.mxu1  ;;  %v8128_v48 = vpop.f32.mrf.mxu0  ;;  %6743 = vmatmul.mubr.bf16.gmra.mxu1 %v6489_v58 }
 0x40e   : > { %v6428_v41 = vsub.f32 0.0, %v6332_v26  ;;  %v5475_v24 = vadd.f32 %v7954_v47, %v12595_v36  ;;  %v8129_v35 = vadd.f32 %v8128_v48, %v8127_v56  ;;  %v6396_v52 = vmax.f32 %v6332_v26, 0.0  ;;  %v4442_v51 = vpop.permute.xlu0 %4441  ;;  %v12725_v36 = vld [vmem:[%s13053_s7] ss:$0 sm:$0xff] }
 0x40f   : > { %v7956_v0 = vpop.f32.mrf.mxu1  ;;  %v8130_v50 = vpop.f32.mrf.mxu0  ;;  %4532 = vst.msk [vmem:[%s12333_s25 + $0x30] sm:$0xff] %vm4525_vm1, %v4442_v51 }
 0x410   : > { %v6460_v46 = vmax.f32 %v6428_v41, 0.0  ;;  %v7957_v60 = vadd.f32 %v7956_v0, %v7955_v2  ;;  %5632 = vrot.lane.b32.xlu1 %v5475_v24, %s8756_s22  ;;  %v6337_v18 = vadd.f32 %v8129_v35, %v12639_v61  ;;  %v6491_v25 = vpack.c.bf16 %v6396_v52, %v6395_v10 }
 0x411   : > { %v7958_v44 = vpop.f32.mrf.mxu1  ;;  %v8131_v12 = vpop.f32.mrf.mxu0 }
 0x412   : > { %v5480_v17 = vadd.f32 %v12725_v36, %v7957_v60  ;;  %v8132_v55 = vadd.f32 %v8131_v12, %v8130_v50  ;;  %v6492_v14 = vpack.c.bf16 %v6460_v46, %v6459_v13  ;;  %v4444_v4 = vpop.permute.xlu1 %4443  ;;  %v6429_v63 = vsub.f32 0.0, %v6337_v18 }
 0x413   : > { %v7959_v54 = vpop.f32.mrf.mxu1  ;;  %v8133_v20 = vpop.f32.mrf.mxu0  ;;  %4533 = vst.msk [vmem:[%s12333_s25 + $0x38] sm:$0xff] %vm4525_vm1, %v4444_v4  ;;  %v6397_v7 = vmax.f32 %v6337_v18, 0.0 }
 0x414   : > { %v6340_v42 = vadd.f32 %v8132_v55, %v12639_v61  ;;  %v7960_v31 = vadd.f32 %v7959_v54, %v7958_v44  ;;  %5634 = vrot.lane.b32.xlu0 %v5480_v17, %s8756_s22  ;;  %6750 = vmatprep.mubr.bf16.mxu1 %v6492_v14  ;;  %v6461_v15 = vmax.f32 %v6429_v63, 0.0 }
 0x415   : > { %v7961_v21 = vpop.f32.mrf.mxu1  ;;  %v8134_v37 = vpop.f32.mrf.mxu0  ;;  %6751 = vmatmul.mubr.bf16.gmra.mxu1 %v6491_v25 }
 0x416   : > { %v6430_v6 = vsub.f32 0.0, %v6340_v42  ;;  %v5483_v38 = vadd.f32 %v12725_v36, %v7960_v31  ;;  %v8135_v59 = vadd.f32 %v8134_v37, %v8133_v20  ;;  %v6398_v28 = vmax.f32 %v6340_v42, 0.0  ;;  %v4446_v19 = vpop.permute.xlu0 %4445 }
 0x417   : > { %v7962_v16 = vpop.f32.mrf.mxu1  ;;  %v8136_v40 = vpop.f32.mrf.mxu0  ;;  %4534 = vst.msk [vmem:[%s12333_s25 + $0x40] sm:$0xff] %vm4525_vm1, %v4446_v19 }
 0x418   : > { %v6462_v43 = vmax.f32 %v6430_v6, 0.0  ;;  %v7963_v30 = vadd.f32 %v7962_v16, %v7961_v21  ;;  %5636 = vrot.lane.b32.xlu1 %v5483_v38, %s8756_s22  ;;  %v6345_v49 = vadd.f32 %v8135_v59, %v12639_v61  ;;  %v6493_v45 = vpack.c.bf16 %v6398_v28, %v6397_v7 }
 0x419   : > { %v7964_v3 = vpop.f32.mrf.mxu1  ;;  %v8137_v62 = vpop.f32.mrf.mxu0 }
 0x41a   : > { %v5488_v53 = vadd.f32 %v12725_v36, %v7963_v30  ;;  %v8138_v29 = vadd.f32 %v8137_v62, %v8136_v40  ;;  %v6494_v34 = vpack.c.bf16 %v6462_v43, %v6461_v15  ;;  %v4448_v22 = vpop.permute.xlu1 %4447  ;;  %v6431_v11 = vsub.f32 0.0, %v6345_v49 }
 0x41b   : > { %v7965_v57 = vpop.f32.mrf.mxu1  ;;  %v8139_v27 = vpop.f32.mrf.mxu0  ;;  %4535 = vst.msk [vmem:[%s12333_s25 + $0x48] sm:$0xff] %vm4525_vm1, %v4448_v22  ;;  %v6399_v35 = vmax.f32 %v6345_v49, 0.0 }
 0x41c   : > { %v6348_v33 = vadd.f32 %v8138_v29, %v12639_v61  ;;  %v7966_v1 = vadd.f32 %v7965_v57, %v7964_v3  ;;  %5638 = vrot.lane.b32.xlu0 %v5488_v53, %s8756_s22  ;;  %6758 = vmatprep.mubr.bf16.mxu1 %v6494_v34  ;;  %v6463_v2 = vmax.f32 %v6431_v11, 0.0 }
 0x41d   : > { %v7967_v32 = vpop.f32.mrf.mxu1  ;;  %v8140_v5 = vpop.f32.mrf.mxu0  ;;  %6759 = vmatmul.mubr.bf16.gmra.mxu1 %v6493_v45 }
 0x41e   : > { %v6432_v8 = vsub.f32 0.0, %v6348_v33  ;;  %v5491_v56 = vadd.f32 %v12725_v36, %v7966_v1  ;;  %v8141_v39 = vadd.f32 %v8140_v5, %v8139_v27  ;;  %v6400_v47 = vmax.f32 %v6348_v33, 0.0 }
 0x41f   : > { %v7968_v58 = vpop.f32.mrf.mxu1  ;;  %v8142_v26 = vpop.f32.mrf.mxu0 }
 0x420   : > { %v6464_v9 = vmax.f32 %v6432_v8, 0.0  ;;  %v7969_v23 = vadd.f32 %v7968_v58, %v7967_v32  ;;  %5640 = vrot.lane.b32.xlu1 %v5491_v56, %s8756_s22  ;;  %v6353_v48 = vadd.f32 %v8141_v39, %v12639_v61  ;;  %v6495_v13 = vpack.c.bf16 %v6400_v47, %v6399_v35 }
 0x421   : > { %v7970_v41 = vpop.f32.mrf.mxu1  ;;  %v8143_v24 = vpop.f32.mrf.mxu0 }
 0x422   : > { %v5496_v0 = vadd.f32 %v12725_v36, %v7969_v23  ;;  %v8144_v50 = vadd.f32 %v8143_v24, %v8142_v26  ;;  %v4450_v52 = vpop.permute.xlu0 %4449  ;;  %v6496_v51 = vpack.c.bf16 %v6464_v9, %v6463_v2  ;;  %v6433_v12 = vsub.f32 0.0, %v6353_v48 }
 0x423   : > { %v7971_v46 = vpop.f32.mrf.mxu1  ;;  %v8145_v60 = vpop.f32.mrf.mxu0  ;;  %4536 = vst.msk [vmem:[%s12333_s25 + $0x50] sm:$0xff] %vm4525_vm1, %v4450_v52  ;;  %v6401_v59 = vmax.f32 %v6353_v48, 0.0 }
 0x424   : > { %v6356_v18 = vadd.f32 %v8144_v50, %v12639_v61  ;;  %v7972_v44 = vadd.f32 %v7971_v46, %v7970_v41  ;;  %5642 = vrot.lane.b32.xlu0 %v5496_v0, %s8756_s22  ;;  %6766 = vmatprep.mubr.bf16.mxu1 %v6496_v51  ;;  %v6465_v21 = vmax.f32 %v6433_v12, 0.0 }
 0x425   : > { %v7973_v10 = vpop.f32.mrf.mxu1  ;;  %v8146_v17 = vpop.f32.mrf.mxu0  ;;  %6767 = vmatmul.mubr.bf16.gmra.mxu1 %v6495_v13 }
 0x426   : > { %v6434_v55 = vsub.f32 0.0, %v6356_v18  ;;  %v5499_v54 = vadd.f32 %v12725_v36, %v7972_v44  ;;  %v8147_v20 = vadd.f32 %v8146_v17, %v8145_v60  ;;  %v4452_v14 = vpop.permute.xlu1 %4451  ;;  %v6402_v31 = vmax.f32 %v6356_v18, 0.0 }
 0x427   : > { %v7974_v25 = vpop.f32.mrf.mxu1  ;;  %v8148_v42 = vpop.f32.mrf.mxu0  ;;  %4537 = vst.msk [vmem:[%s12333_s25 + $0x58] sm:$0xff] %vm4525_vm1, %v4452_v14 }
 0x428   : > { %v6466_v4 = vmax.f32 %v6434_v55, 0.0  ;;  %v7975_v63 = vadd.f32 %v7974_v25, %v7973_v10  ;;  %5644 = vrot.lane.b32.xlu1 %v5499_v54, %s8756_s22  ;;  %v6361_v37 = vadd.f32 %v8147_v20, %v12639_v61  ;;  %v6497_v15 = vpack.c.bf16 %v6402_v31, %v6401_v59 }
 0x429   : > { %v7976_v6 = vpop.f32.mrf.mxu1  ;;  %v8149_v38 = vpop.f32.mrf.mxu0 }
 0x42a   : > { %v5504_v16 = vadd.f32 %v12725_v36, %v7975_v63  ;;  %v8150_v40 = vadd.f32 %v8149_v38, %v8148_v42  ;;  %v4454_v28 = vpop.permute.xlu0 %4453  ;;  %v6498_v19 = vpack.c.bf16 %v6466_v4, %v6465_v21  ;;  %v6435_v62 = vsub.f32 0.0, %v6361_v37 }
 0x42b   : > { %v7977_v43 = vpop.f32.mrf.mxu1  ;;  %v8151_v30 = vpop.f32.mrf.mxu0  ;;  %4538 = vst.msk [vmem:[%s12333_s25 + $0x60] sm:$0xff] %vm4525_vm1, %v4454_v28  ;;  %v6403_v39 = vmax.f32 %v6361_v37, 0.0 }
 0x42c   : > { %v6364_v49 = vadd.f32 %v8150_v40, %v12639_v61  ;;  %v7978_v3 = vadd.f32 %v7977_v43, %v7976_v6  ;;  %5646 = vrot.lane.b32.xlu0 %v5504_v16, %s8756_s22  ;;  %6774 = vmatprep.mubr.bf16.mxu1 %v6498_v19  ;;  %v6467_v5 = vmax.f32 %v6435_v62, 0.0 }
 0x42d   : > { %v7979_v7 = vpop.f32.mrf.mxu1  ;;  %v8152_v53 = vpop.f32.mrf.mxu0  ;;  %6775 = vmatmul.mubr.bf16.gmra.mxu1 %v6497_v15 }
 0x42e   : > { %v6436_v29 = vsub.f32 0.0, %v6364_v49  ;;  %v5507_v57 = vadd.f32 %v12725_v36, %v7978_v3  ;;  %v8153_v27 = vadd.f32 %v8152_v53, %v8151_v30  ;;  %v4456_v34 = vpop.permute.xlu1 %4455  ;;  %v6404_v1 = vmax.f32 %v6364_v49, 0.0 }
 0x42f   : > { %v7980_v45 = vpop.f32.mrf.mxu1  ;;  %v8154_v33 = vpop.f32.mrf.mxu0  ;;  %4539 = vst.msk [vmem:[%s12333_s25 + $0x68] sm:$0xff] %vm4525_vm1, %v4456_v34 }
 0x430   : > { %v6468_v22 = vmax.f32 %v6436_v29, 0.0  ;;  %v6369_v11 = vadd.f32 %v8153_v27, %v12639_v61  ;;  %v7981_v32 = vadd.f32 %v7980_v45, %v7979_v7  ;;  %5648 = vrot.lane.b32.xlu1 %v5507_v57, %s8756_s22  ;;  %v6499_v23 = vpack.c.bf16 %v6404_v1, %v6403_v39 }
 0x431   : > { %v7982_v8 = vpop.f32.mrf.mxu1  ;;  %v8155_v56 = vpop.f32.mrf.mxu0 }
 0x432   : > { %v5512_v58 = vadd.f32 %v12725_v36, %v7981_v32  ;;  %v8156_v26 = vadd.f32 %v8155_v56, %v8154_v33  ;;  %v6500_v9 = vpack.c.bf16 %v6468_v22, %v6467_v5  ;;  %v6437_v2 = vsub.f32 0.0, %v6369_v11 }
 0x433   : > { %v7983_v47 = vpop.f32.mrf.mxu1  ;;  %v4458_v24 = vpop.permute.xlu0 %4457  ;;  %v6405_v44 = vmax.f32 %v6369_v11, 0.0 }
 0x434   : > { %v6372_v48 = vadd.f32 %v8156_v26, %v12639_v61  ;;  %v7984_v41 = vadd.f32 %v7983_v47, %v7982_v8  ;;  %5650 = vrot.lane.b32.xlu0 %v5512_v58, %s8756_s22  ;;  %6782 = vmatprep.mubr.bf16.mxu1 %v6500_v9  ;;  %4540 = vst.msk [vmem:[%s12333_s25 + $0x70] sm:$0xff] %vm4525_vm1, %v4458_v24  ;;  %v6469_v46 = vmax.f32 %v6437_v2, 0.0 }
 0x435   : > { %v7985_v35 = vpop.f32.mrf.mxu1  ;;  %6783 = vmatmul.mubr.bf16.gmra.mxu1 %v6499_v23 }
 0x436   : > { %v6438_v0 = vsub.f32 0.0, %v6372_v48  ;;  %v5515_v50 = vadd.f32 %v12725_v36, %v7984_v41  ;;  %v6406_v60 = vmax.f32 %v6372_v48, 0.0 }
 0x437   : > { %v7986_v52 = vpop.f32.mrf.mxu1  ;;  %v4460_v61 = vpop.permute.xlu1 %4459 }
 0x438   : > { %v6470_v51 = vmax.f32 %v6438_v0, 0.0  ;;  %v7987_v13 = vadd.f32 %v7986_v52, %v7985_v35  ;;  %5652 = vrot.lane.b32.xlu1 %v5515_v50, %s8756_s22  ;;  %4541 = vst.msk [vmem:[%s12333_s25 + $0x78] sm:$0xff] %vm4525_vm1, %v4460_v61  ;;  %v6501_v55 = vpack.c.bf16 %v6406_v60, %v6405_v44 }
 0x439   : > { %v7988_v18 = vpop.f32.mrf.mxu1 }
 0x43a   : > { %v5520_v12 = vadd.f32 %v12725_v36, %v7987_v13  ;;  %v6502_v10 = vpack.c.bf16 %v6470_v51, %v6469_v46 }
 0x43b   : > { %v7989_v17 = vpop.f32.mrf.mxu1 }
 0x43c   : > { %v7990_v54 = vadd.f32 %v7989_v17, %v7988_v18  ;;  %6790 = vmatprep.mubr.bf16.mxu1 %v6502_v10  ;;  %5654 = vrot.lane.b32.xlu0 %v5520_v12, %s8756_s22 }
 0x43d   : > { %v7991_v20 = vpop.f32.mrf.mxu1  ;;  %6791 = vmatmul.mubr.bf16.gmra.mxu1 %v6501_v55  ;;  %v4462_v25 = vpop.permute.xlu0 %4461 }
 0x43e   : > { %v5523_v14 = vadd.f32 %v12725_v36, %v7990_v54  ;;  %4542 = vst.msk [vmem:[%s12333_s25 + $0x80] sm:$0xff] %vm4525_vm1, %v4462_v25 }
 0x43f   : > { %v7992_v42 = vpop.f32.mrf.mxu1 }
 0x440   : > { %v7993_v31 = vadd.f32 %v7992_v42, %v7991_v20  ;;  %5656 = vrot.lane.b32.xlu1 %v5523_v14, %s8756_s22 }
 0x441   : > { %v7994_v4 = vpop.f32.mrf.mxu1  ;;  %v4464_v21 = vpop.permute.xlu1 %4463 }
 0x442   : > { %v5528_v63 = vadd.f32 %v12725_v36, %v7993_v31  ;;  %4543 = vst.msk [vmem:[%s12333_s25 + $0x88] sm:$0xff] %vm4525_vm1, %v4464_v21 }
 0x443   : > { %v7995_v37 = vpop.f32.mrf.mxu1 }
 0x444   : > { %v7996_v6 = vadd.f32 %v7995_v37, %v7994_v4  ;;  %5658 = vrot.lane.b32.xlu0 %v5528_v63, %s8756_s22 }
 0x445   : > { %v7997_v38 = vpop.f32.mrf.mxu1  ;;  %v4466_v16 = vpop.permute.xlu0 %4465 }
 0x446   : > { %v5531_v59 = vadd.f32 %v12725_v36, %v7996_v6  ;;  %4544 = vst.msk [vmem:[%s12333_s25 + $0x90] sm:$0xff] %vm4525_vm1, %v4466_v16 }
 0x447   : > { %v7998_v40 = vpop.f32.mrf.mxu1 }
 0x448   : > { %v7999_v28 = vadd.f32 %v7998_v40, %v7997_v38  ;;  %5660 = vrot.lane.b32.xlu1 %v5531_v59, %s8756_s22 }
 0x449   : > { %v8000_v43 = vpop.f32.mrf.mxu1  ;;  %v4468_v19 = vpop.permute.xlu1 %4467 }
 0x44a   : > { %v5536_v30 = vadd.f32 %v12725_v36, %v7999_v28  ;;  %4545 = vst.msk [vmem:[%s12333_s25 + $0x98] sm:$0xff] %vm4525_vm1, %v4468_v19 }
 0x44b   : > { %v8001_v15 = vpop.f32.mrf.mxu1 }
 0x44c   : > { %v8002_v49 = vadd.f32 %v8001_v15, %v8000_v43  ;;  %5662 = vrot.lane.b32.xlu0 %v5536_v30, %s8756_s22 }
 0x44d   : > { %v8003_v3 = vpop.f32.mrf.mxu1  ;;  %v4470_v7 = vpop.permute.xlu0 %4469 }
 0x44e   : > { %v5539_v62 = vadd.f32 %v12725_v36, %v8002_v49  ;;  %4546 = vst.msk [vmem:[%s12333_s25 + $0xa0] sm:$0xff] %vm4525_vm1, %v4470_v7 }
 0x44f   : > { %v8004_v53 = vpop.f32.mrf.mxu1 }
 0x450   : > { %v8005_v29 = vadd.f32 %v8004_v53, %v8003_v3  ;;  %5664 = vrot.lane.b32.xlu1 %v5539_v62, %s8756_s22 }
 0x451   : > { %v8006_v57 = vpop.f32.mrf.mxu1  ;;  %v4472_v34 = vpop.permute.xlu1 %4471 }
 0x452   : > { %v5544_v27 = vadd.f32 %v12725_v36, %v8005_v29  ;;  %4547 = vst.msk [vmem:[%s12333_s25 + $0xa8] sm:$0xff] %vm4525_vm1, %v4472_v34 }
 0x453   : > { %v8007_v45 = vpop.f32.mrf.mxu1 }
 0x454   : > { %v8008_v33 = vadd.f32 %v8007_v45, %v8006_v57  ;;  %5666 = vrot.lane.b32.xlu0 %v5544_v27, %s8756_s22 }
 0x455   : > { %v8009_v1 = vpop.f32.mrf.mxu1  ;;  %v4474_v11 = vpop.permute.xlu0 %4473 }
 0x456   : > { %v5547_v22 = vadd.f32 %v12725_v36, %v8008_v33  ;;  %4548 = vst.msk [vmem:[%s12333_s25 + $0xb0] sm:$0xff] %vm4525_vm1, %v4474_v11 }
 0x457   : > { %v8010_v32 = vpop.f32.mrf.mxu1 }
 0x458   : > { %v8011_v5 = vadd.f32 %v8010_v32, %v8009_v1  ;;  %5668 = vrot.lane.b32.xlu1 %v5547_v22, %s8756_s22  ;;  %v12854_v1 = vld [vmem:[%s13053_s7] ss:$0 sm:$0xff] }
 0x459   : > { %v8012_v8 = vpop.f32.mrf.mxu1  ;;  %v4476_v39 = vpop.permute.xlu1 %4475 }
 0x45a   : > { %v5552_v56 = vadd.f32 %v12725_v36, %v8011_v5  ;;  %4549 = vst.msk [vmem:[%s12333_s25 + $0xb8] sm:$0xff] %vm4525_vm1, %v4476_v39 }
 0x45b   : > { %v8013_v58 = vpop.f32.mrf.mxu1 }
 0x45c   : > { %v8014_v26 = vadd.f32 %v8013_v58, %v8012_v8  ;;  %5670 = vrot.lane.b32.xlu0 %v5552_v56, %s8756_s22 }
 0x45d   : > { %v8015_v47 = vpop.f32.mrf.mxu1  ;;  %v4478_v23 = vpop.permute.xlu0 %4477 }
 0x45e   : > { %v5555_v9 = vadd.f32 %v12725_v36, %v8014_v26  ;;  %4550 = vst.msk [vmem:[%s12333_s25 + $0xc0] sm:$0xff] %vm4525_vm1, %v4478_v23 }
 0x45f   : > { %v8016_v2 = vpop.f32.mrf.mxu1 }
 0x460   : > { %v8017_v48 = vadd.f32 %v8016_v2, %v8015_v47  ;;  %5672 = vrot.lane.b32.xlu1 %v5555_v9, %s8756_s22 }
 0x461   : > { %v8018_v41 = vpop.f32.mrf.mxu1  ;;  %v4480_v35 = vpop.permute.xlu1 %4479 }
 0x462   : > { %v5560_v24 = vadd.f32 %v12725_v36, %v8017_v48  ;;  %4551 = vst.msk [vmem:[%s12333_s25 + $0xc8] sm:$0xff] %vm4525_vm1, %v4480_v35 }
 0x463   : > { %v8019_v0 = vpop.f32.mrf.mxu1 }
 0x464   : > { %v8020_v50 = vadd.f32 %v8019_v0, %v8018_v41  ;;  %5674 = vrot.lane.b32.xlu0 %v5560_v24, %s8756_s22 }
 0x465   : > { %v8021_v52 = vpop.f32.mrf.mxu1  ;;  %v4482_v60 = vpop.permute.xlu0 %4481 }
 0x466   : > { %v5563_v46 = vadd.f32 %v12725_v36, %v8020_v50  ;;  %4552 = vst.msk [vmem:[%s12333_s25 + $0xd0] sm:$0xff] %vm4525_vm1, %v4482_v60 }
 0x467   : > { %v8022_v51 = vpop.f32.mrf.mxu1 }
 0x468   : > { %v8023_v13 = vadd.f32 %v8022_v51, %v8021_v52  ;;  %5676 = vrot.lane.b32.xlu1 %v5563_v46, %s8756_s22 }
 0x469   : > { %v8024_v61 = vpop.f32.mrf.mxu1  ;;  %v4484_v44 = vpop.permute.xlu1 %4483 }
 0x46a   : > { %v5568_v18 = vadd.f32 %v12725_v36, %v8023_v13  ;;  %4553 = vst.msk [vmem:[%s12333_s25 + $0xd8] sm:$0xff] %vm4525_vm1, %v4484_v44 }
 0x46b   : > { %v8025_v12 = vpop.f32.mrf.mxu1 }
 0x46c   : > { %v8026_v10 = vadd.f32 %v8025_v12, %v8024_v61  ;;  %5678 = vrot.lane.b32.xlu0 %v5568_v18, %s8756_s22 }
 0x46d   : > { %v8027_v17 = vpop.f32.mrf.mxu1 }
 0x46e   : > { %v5571_v55 = vadd.f32 %v12725_v36, %v8026_v10  ;;  %v4486_v54 = vpop.permute.xlu0 %4485 }
 0x46f   : > { %4554 = vst.msk [vmem:[%s12333_s25 + $0xe0] sm:$0xff] %vm4525_vm1, %v4486_v54  ;;  %v8028_v20 = vpop.f32.mrf.mxu1 }
 0x470   : > { %v8029_v14 = vadd.f32 %v8028_v20, %v8027_v17  ;;  %5680 = vrot.lane.b32.xlu1 %v5571_v55, %s8756_s22 }
 0x471   : > { %v8030_v25 = vpop.f32.mrf.mxu1 }
 0x472   : > { %v5576_v42 = vadd.f32 %v12725_v36, %v8029_v14  ;;  %v4488_v31 = vpop.permute.xlu1 %4487 }
 0x473   : > { %4555 = vst.msk [vmem:[%s12333_s25 + $0xe8] sm:$0xff] %vm4525_vm1, %v4488_v31  ;;  %v8031_v4 = vpop.f32.mrf.mxu1 }
 0x474   : > { %v8032_v63 = vadd.f32 %v8031_v4, %v8030_v25  ;;  %5682 = vrot.lane.b32.xlu0 %v5576_v42, %s8756_s22 }
 0x475   : > { %v8033_v21 = vpop.f32.mrf.mxu1 }
 0x476   : > { %v5579_v37 = vadd.f32 %v12725_v36, %v8032_v63  ;;  %v4490_v6 = vpop.permute.xlu0 %4489 }
 0x477   : > { %4556 = vst.msk [vmem:[%s12333_s25 + $0xf0] sm:$0xff] %vm4525_vm1, %v4490_v6  ;;  %v8034_v38 = vpop.f32.mrf.mxu1 }
 0x478   : > { %v8035_v59 = vadd.f32 %v8034_v38, %v8033_v21  ;;  %5684 = vrot.lane.b32.xlu1 %v5579_v37, %s8756_s22 }
 0x479   : > { %v8036_v16 = vpop.f32.mrf.mxu1 }
 0x47a   : > { %v5584_v40 = vadd.f32 %v12725_v36, %v8035_v59  ;;  %v4492_v28 = vpop.permute.xlu1 %4491 }
 0x47b   : > { %4557 = vst.msk [vmem:[%s12333_s25 + $0xf8] sm:$0xff] %vm4525_vm1, %v4492_v28  ;;  %v8037_v43 = vpop.f32.mrf.mxu1 }
 0x47c   : > { %v8038_v30 = vadd.f32 %v8037_v43, %v8036_v16  ;;  %5686 = vrot.lane.b32.xlu0 %v5584_v40, %s8756_s22 }
 0x47d   : > { %v8039_v15 = vpop.f32.mrf.mxu1 }
 0x47e   : > { %v5587_v19 = vadd.f32 %v12725_v36, %v8038_v30  ;;  %v5631_v49 = vpop.permute.xlu0 %5630 }
 0x47f   : > { %5727 = vst.msk [vmem:[%s12333_s25] sm:$0xff] %vm5726_vm2, %v5631_v49  ;;  %v8040_v3 = vpop.f32.mrf.mxu1 }
 0x480   : > { %5688 = vrot.lane.b32.xlu1 %v5587_v19, %s8756_s22  ;;  %v8041_v62 = vadd.f32 %v8040_v3, %v8039_v15 }
 0x481   : > { %v8042_v7 = vpop.f32.mrf.mxu1 }
 0x482   : > { %v5633_v53 = vpop.permute.xlu1 %5632  ;;  %v5592_v29 = vadd.f32 %v12725_v36, %v8041_v62 }
 0x483   : > { %5728 = vst.msk [vmem:[%s12333_s25 + $0x8] sm:$0xff] %vm5726_vm2, %v5633_v53  ;;  %v8043_v57 = vpop.f32.mrf.mxu1 }
 0x484   : > { %v8044_v27 = vadd.f32 %v8043_v57, %v8042_v7  ;;  %5690 = vrot.lane.b32.xlu0 %v5592_v29, %s8756_s22 }
 0x485   : > { %v8173_v34 = vpop.f32.mrf.mxu1 }
 0x486   : > { %v5635_v45 = vpop.permute.xlu0 %5634  ;;  %v5595_v33 = vadd.f32 %v12725_v36, %v8044_v27 }
 0x487   : > { %5729 = vst.msk [vmem:[%s12333_s25 + $0x10] sm:$0xff] %vm5726_vm2, %v5635_v45  ;;  %v8174_v22 = vpop.f32.mrf.mxu1 }
 0x488   : > { %v8175_v11 = vadd.f32 %v8174_v22, %v8173_v34  ;;  %5692 = vrot.lane.b32.xlu1 %v5595_v33, %s8756_s22 }
 0x489   : > { %v8176_v32 = vpop.f32.mrf.mxu1 }
 0x48a   : > { %v5637_v5 = vpop.permute.xlu1 %5636  ;;  %v6673_v8 = vadd.f32 %v8175_v11, %v12854_v1 }
 0x48b   : > { %5730 = vst.msk [vmem:[%s12333_s25 + $0x18] sm:$0xff] %vm5726_vm2, %v5637_v5  ;;  %v8177_v36 = vpop.f32.mrf.mxu1 }
 0x48c   : > { %v8178_v56 = vadd.f32 %v8177_v36, %v8176_v32  ;;  %6831 = vrot.lane.b32.xlu0 %v6673_v8, %s8757_s30 }
 0x48d   : > { %v8179_v39 = vpop.f32.mrf.mxu1 }
 0x48e   : > { %v5639_v58 = vpop.permute.xlu0 %5638  ;;  %v6676_v26 = vadd.f32 %v8178_v56, %v12854_v1 }
 0x48f   : > { %5731 = vst.msk [vmem:[%s12333_s25 + $0x20] sm:$0xff] %vm5726_vm2, %v5639_v58  ;;  %v8180_v47 = vpop.f32.mrf.mxu1 }
 0x490   : > { %v8181_v9 = vadd.f32 %v8180_v47, %v8179_v39  ;;  %6833 = vrot.lane.b32.xlu1 %v6676_v26, %s8757_s30 }
 0x491   : > { %v8182_v23 = vpop.f32.mrf.mxu1 }
 0x492   : > { %v5641_v2 = vpop.permute.xlu1 %5640  ;;  %v6681_v48 = vadd.f32 %v8181_v9, %v12854_v1 }
 0x493   : > { %5732 = vst.msk [vmem:[%s12333_s25 + $0x28] sm:$0xff] %vm5726_vm2, %v5641_v2  ;;  %v8183_v41 = vpop.f32.mrf.mxu1 }
 0x494   : > { %v8184_v24 = vadd.f32 %v8183_v41, %v8182_v23  ;;  %6835 = vrot.lane.b32.xlu0 %v6681_v48, %s8757_s30 }
 0x495   : > { %v8185_v35 = vpop.f32.mrf.mxu1 }
 0x496   : > { %v5643_v0 = vpop.permute.xlu0 %5642  ;;  %v6684_v50 = vadd.f32 %v8184_v24, %v12854_v1 }
 0x497   : > { %5733 = vst.msk [vmem:[%s12333_s25 + $0x30] sm:$0xff] %vm5726_vm2, %v5643_v0  ;;  %v8186_v52 = vpop.f32.mrf.mxu1 }
 0x498   : > { %v8187_v46 = vadd.f32 %v8186_v52, %v8185_v35  ;;  %6837 = vrot.lane.b32.xlu1 %v6684_v50, %s8757_s30 }
 0x499   : > { %v8188_v60 = vpop.f32.mrf.mxu1 }
 0x49a   : > { %v5645_v51 = vpop.permute.xlu1 %5644  ;;  %v6689_v13 = vadd.f32 %v8187_v46, %v12854_v1 }
 0x49b   : > { %5734 = vst.msk [vmem:[%s12333_s25 + $0x38] sm:$0xff] %vm5726_vm2, %v5645_v51  ;;  %v8189_v61 = vpop.f32.mrf.mxu1 }
 0x49c   : > { %v8190_v18 = vadd.f32 %v8189_v61, %v8188_v60  ;;  %6839 = vrot.lane.b32.xlu0 %v6689_v13, %s8757_s30 }
 0x49d   : > { %v8191_v44 = vpop.f32.mrf.mxu1 }
 0x49e   : > { %v5647_v12 = vpop.permute.xlu0 %5646  ;;  %v6692_v10 = vadd.f32 %v8190_v18, %v12854_v1 }
 0x49f   : > { %5735 = vst.msk [vmem:[%s12333_s25 + $0x40] sm:$0xff] %vm5726_vm2, %v5647_v12  ;;  %v8192_v17 = vpop.f32.mrf.mxu1 }
 0x4a0   : > { %v8193_v55 = vadd.f32 %v8192_v17, %v8191_v44  ;;  %6841 = vrot.lane.b32.xlu1 %v6692_v10, %s8757_s30 }
 0x4a1   : > { %v8194_v54 = vpop.f32.mrf.mxu1 }
 0x4a2   : > { %v5649_v20 = vpop.permute.xlu1 %5648  ;;  %v6697_v14 = vadd.f32 %v8193_v55, %v12854_v1 }
 0x4a3   : > { %5736 = vst.msk [vmem:[%s12333_s25 + $0x48] sm:$0xff] %vm5726_vm2, %v5649_v20  ;;  %v8195_v25 = vpop.f32.mrf.mxu1 }
 0x4a4   : > { %v8196_v42 = vadd.f32 %v8195_v25, %v8194_v54  ;;  %6843 = vrot.lane.b32.xlu0 %v6697_v14, %s8757_s30 }
 0x4a5   : > { %v8197_v31 = vpop.f32.mrf.mxu1 }
 0x4a6   : > { %v5651_v4 = vpop.permute.xlu0 %5650  ;;  %v6700_v63 = vadd.f32 %v8196_v42, %v12854_v1 }
 0x4a7   : > { %5737 = vst.msk [vmem:[%s12333_s25 + $0x50] sm:$0xff] %vm5726_vm2, %v5651_v4  ;;  %v8198_v21 = vpop.f32.mrf.mxu1 }
 0x4a8   : > { %v8199_v37 = vadd.f32 %v8198_v21, %v8197_v31  ;;  %6845 = vrot.lane.b32.xlu1 %v6700_v63, %s8757_s30 }
 0x4a9   : > { %v8200_v6 = vpop.f32.mrf.mxu1 }
 0x4aa   : > { %v5653_v38 = vpop.permute.xlu1 %5652  ;;  %v6705_v59 = vadd.f32 %v8199_v37, %v12854_v1 }
 0x4ab   : > { %5738 = vst.msk [vmem:[%s12333_s25 + $0x58] sm:$0xff] %vm5726_vm2, %v5653_v38  ;;  %v8201_v16 = vpop.f32.mrf.mxu1 }
 0x4ac   : > { %v8202_v40 = vadd.f32 %v8201_v16, %v8200_v6  ;;  %6847 = vrot.lane.b32.xlu0 %v6705_v59, %s8757_s30 }
 0x4ad   : > { %v8203_v28 = vpop.f32.mrf.mxu1 }
 0x4ae   : > { %v5655_v43 = vpop.permute.xlu0 %5654  ;;  %v6708_v30 = vadd.f32 %v8202_v40, %v12854_v1 }
 0x4af   : > { %5739 = vst.msk [vmem:[%s12333_s25 + $0x60] sm:$0xff] %vm5726_vm2, %v5655_v43  ;;  %v8204_v19 = vpop.f32.mrf.mxu1 }
 0x4b0   : > { %v8205_v15 = vadd.f32 %v8204_v19, %v8203_v28  ;;  %6849 = vrot.lane.b32.xlu1 %v6708_v30, %s8757_s30 }
 0x4b1   : > { %v8206_v49 = vpop.f32.mrf.mxu1 }
 0x4b2   : > { %v5657_v3 = vpop.permute.xlu1 %5656  ;;  %v6713_v62 = vadd.f32 %v8205_v15, %v12854_v1 }
 0x4b3   : > { %5740 = vst.msk [vmem:[%s12333_s25 + $0x68] sm:$0xff] %vm5726_vm2, %v5657_v3  ;;  %v8207_v7 = vpop.f32.mrf.mxu1 }
 0x4b4   : > { %v8208_v53 = vadd.f32 %v8207_v7, %v8206_v49  ;;  %6851 = vrot.lane.b32.xlu0 %v6713_v62, %s8757_s30 }
 0x4b5   : > { %v8209_v29 = vpop.f32.mrf.mxu1 }
 0x4b6   : > { %v5659_v57 = vpop.permute.xlu0 %5658  ;;  %v6716_v27 = vadd.f32 %v8208_v53, %v12854_v1 }
 0x4b7   : > { %5741 = vst.msk [vmem:[%s12333_s25 + $0x70] sm:$0xff] %vm5726_vm2, %v5659_v57  ;;  %v8210_v34 = vpop.f32.mrf.mxu1 }
 0x4b8   : > { %v8211_v45 = vadd.f32 %v8210_v34, %v8209_v29  ;;  %6853 = vrot.lane.b32.xlu1 %v6716_v27, %s8757_s30 }
 0x4b9   : > { %v8212_v33 = vpop.f32.mrf.mxu1 }
 0x4ba   : > { %v5661_v22 = vpop.permute.xlu1 %5660  ;;  %v6721_v11 = vadd.f32 %v8211_v45, %v12854_v1 }
 0x4bb   : > { %5742 = vst.msk [vmem:[%s12333_s25 + $0x78] sm:$0xff] %vm5726_vm2, %v5661_v22  ;;  %v8213_v32 = vpop.f32.mrf.mxu1 }
 0x4bc   : > { %v8214_v5 = vadd.f32 %v8213_v32, %v8212_v33  ;;  %6855 = vrot.lane.b32.xlu0 %v6721_v11, %s8757_s30 }
 0x4bd   : > { %v8215_v8 = vpop.f32.mrf.mxu1 }
 0x4be   : > { %v5663_v36 = vpop.permute.xlu0 %5662  ;;  %v6724_v56 = vadd.f32 %v8214_v5, %v12854_v1 }
 0x4bf   : > { %5743 = vst.msk [vmem:[%s12333_s25 + $0x80] sm:$0xff] %vm5726_vm2, %v5663_v36  ;;  %v8216_v39 = vpop.f32.mrf.mxu1 }
 0x4c0   : > { %v8217_v58 = vadd.f32 %v8216_v39, %v8215_v8  ;;  %6857 = vrot.lane.b32.xlu1 %v6724_v56, %s8757_s30 }
 0x4c1   : > { %v8218_v26 = vpop.f32.mrf.mxu1 }
 0x4c2   : > { %v5665_v47 = vpop.permute.xlu1 %5664  ;;  %v6729_v9 = vadd.f32 %v8217_v58, %v12854_v1 }
 0x4c3   : > { %5744 = vst.msk [vmem:[%s12333_s25 + $0x88] sm:$0xff] %vm5726_vm2, %v5665_v47  ;;  %v8219_v23 = vpop.f32.mrf.mxu1 }
 0x4c4   : > { %v8220_v2 = vadd.f32 %v8219_v23, %v8218_v26  ;;  %6859 = vrot.lane.b32.xlu0 %v6729_v9, %s8757_s30 }
 0x4c5   : > { %v8221_v48 = vpop.f32.mrf.mxu1 }
 0x4c6   : > { %v5667_v41 = vpop.permute.xlu0 %5666  ;;  %v6732_v24 = vadd.f32 %v8220_v2, %v12854_v1 }
 0x4c7   : > { %5745 = vst.msk [vmem:[%s12333_s25 + $0x90] sm:$0xff] %vm5726_vm2, %v5667_v41  ;;  %v8222_v35 = vpop.f32.mrf.mxu1 }
 0x4c8   : > { %v8223_v0 = vadd.f32 %v8222_v35, %v8221_v48  ;;  %6861 = vrot.lane.b32.xlu1 %v6732_v24, %s8757_s30 }
 0x4c9   : > { %v8224_v50 = vpop.f32.mrf.mxu1 }
 0x4ca   : > { %v5669_v52 = vpop.permute.xlu1 %5668  ;;  %v6737_v46 = vadd.f32 %v8223_v0, %v12854_v1 }
 0x4cb   : > { %5746 = vst.msk [vmem:[%s12333_s25 + $0x98] sm:$0xff] %vm5726_vm2, %v5669_v52  ;;  %v8225_v60 = vpop.f32.mrf.mxu1 }
 0x4cc   : > { %v8226_v51 = vadd.f32 %v8225_v60, %v8224_v50  ;;  %6863 = vrot.lane.b32.xlu0 %v6737_v46, %s8757_s30 }
 0x4cd   : > { %v8227_v13 = vpop.f32.mrf.mxu1 }
 0x4ce   : > { %v5671_v61 = vpop.permute.xlu0 %5670  ;;  %v6740_v18 = vadd.f32 %v8226_v51, %v12854_v1 }
 0x4cf   : > { %5747 = vst.msk [vmem:[%s12333_s25 + $0xa0] sm:$0xff] %vm5726_vm2, %v5671_v61  ;;  %v8228_v44 = vpop.f32.mrf.mxu1 }
 0x4d0   : > { %v8229_v12 = vadd.f32 %v8228_v44, %v8227_v13  ;;  %6865 = vrot.lane.b32.xlu1 %v6740_v18, %s8757_s30 }
 0x4d1   : > { %v8230_v10 = vpop.f32.mrf.mxu1 }
 0x4d2   : > { %v5673_v17 = vpop.permute.xlu1 %5672  ;;  %v6745_v55 = vadd.f32 %v8229_v12, %v12854_v1 }
 0x4d3   : > { %5748 = vst.msk [vmem:[%s12333_s25 + $0xa8] sm:$0xff] %vm5726_vm2, %v5673_v17  ;;  %v8231_v54 = vpop.f32.mrf.mxu1 }
 0x4d4   : > { %v8232_v20 = vadd.f32 %v8231_v54, %v8230_v10  ;;  %6867 = vrot.lane.b32.xlu0 %v6745_v55, %s8757_s30 }
 0x4d5   : > { %v8233_v14 = vpop.f32.mrf.mxu1 }
 0x4d6   : > { %v5675_v25 = vpop.permute.xlu0 %5674  ;;  %v6748_v42 = vadd.f32 %v8232_v20, %v12854_v1 }
 0x4d7   : > { %5749 = vst.msk [vmem:[%s12333_s25 + $0xb0] sm:$0xff] %vm5726_vm2, %v5675_v25  ;;  %v8234_v31 = vpop.f32.mrf.mxu1 }
 0x4d8   : > { %v8235_v4 = vadd.f32 %v8234_v31, %v8233_v14  ;;  %6869 = vrot.lane.b32.xlu1 %v6748_v42, %s8757_s30 }
 0x4d9   : > { %v8236_v63 = vpop.f32.mrf.mxu1 }
 0x4da   : > { %v5677_v21 = vpop.permute.xlu1 %5676  ;;  %v6753_v37 = vadd.f32 %v8235_v4, %v12854_v1 }
 0x4db   : > { %5750 = vst.msk [vmem:[%s12333_s25 + $0xb8] sm:$0xff] %vm5726_vm2, %v5677_v21  ;;  %v8237_v6 = vpop.f32.mrf.mxu1 }
 0x4dc   : > { %v8238_v38 = vadd.f32 %v8237_v6, %v8236_v63  ;;  %6871 = vrot.lane.b32.xlu0 %v6753_v37, %s8757_s30 }
 0x4dd   : > { %v8239_v59 = vpop.f32.mrf.mxu1 }
 0x4de   : > { %v5679_v16 = vpop.permute.xlu0 %5678  ;;  %v6756_v40 = vadd.f32 %v8238_v38, %v12854_v1 }
 0x4df   : > { %5751 = vst.msk [vmem:[%s12333_s25 + $0xc0] sm:$0xff] %vm5726_vm2, %v5679_v16  ;;  %v8240_v28 = vpop.f32.mrf.mxu1 }
 0x4e0   : > { %v8241_v43 = vadd.f32 %v8240_v28, %v8239_v59  ;;  %6873 = vrot.lane.b32.xlu1 %v6756_v40, %s8757_s30 }
 0x4e1   : > { %v8242_v30 = vpop.f32.mrf.mxu1 }
 0x4e2   : > { %v5681_v19 = vpop.permute.xlu1 %5680  ;;  %v6761_v15 = vadd.f32 %v8241_v43, %v12854_v1 }
 0x4e3   : > { %5752 = vst.msk [vmem:[%s12333_s25 + $0xc8] sm:$0xff] %vm5726_vm2, %v5681_v19  ;;  %v8243_v49 = vpop.f32.mrf.mxu1 }
 0x4e4   : > { %v8244_v3 = vadd.f32 %v8243_v49, %v8242_v30  ;;  %6875 = vrot.lane.b32.xlu0 %v6761_v15, %s8757_s30 }
 0x4e5   : > { %v8245_v62 = vpop.f32.mrf.mxu1 }
 0x4e6   : > { %v5683_v7 = vpop.permute.xlu0 %5682  ;;  %v6764_v53 = vadd.f32 %v8244_v3, %v12854_v1 }
 0x4e7   : > { %5753 = vst.msk [vmem:[%s12333_s25 + $0xd0] sm:$0xff] %vm5726_vm2, %v5683_v7  ;;  %v8246_v29 = vpop.f32.mrf.mxu1 }
 0x4e8   : > { %v8247_v57 = vadd.f32 %v8246_v29, %v8245_v62  ;;  %6877 = vrot.lane.b32.xlu1 %v6764_v53, %s8757_s30 }
 0x4e9   : > { %v8248_v27 = vpop.f32.mrf.mxu1 }
 0x4ea   : > { %v5685_v34 = vpop.permute.xlu1 %5684  ;;  %v6769_v45 = vadd.f32 %v8247_v57, %v12854_v1 }
 0x4eb   : > { %5754 = vst.msk [vmem:[%s12333_s25 + $0xd8] sm:$0xff] %vm5726_vm2, %v5685_v34  ;;  %v8249_v33 = vpop.f32.mrf.mxu1 }
 0x4ec   : > { %v8250_v22 = vadd.f32 %v8249_v33, %v8248_v27  ;;  %6879 = vrot.lane.b32.xlu0 %v6769_v45, %s8757_s30 }
 0x4ed   : > { %v8251_v11 = vpop.f32.mrf.mxu1 }
 0x4ee   : > { %v5687_v32 = vpop.permute.xlu0 %5686  ;;  %v6772_v5 = vadd.f32 %v8250_v22, %v12854_v1 }
 0x4ef   : > { %5755 = vst.msk [vmem:[%s12333_s25 + $0xe0] sm:$0xff] %vm5726_vm2, %v5687_v32  ;;  %v8252_v8 = vpop.f32.mrf.mxu1 }
 0x4f0   : > { %v8253_v36 = vadd.f32 %v8252_v8, %v8251_v11  ;;  %6881 = vrot.lane.b32.xlu1 %v6772_v5, %s8757_s30 }
 0x4f1   : > { %v8254_v56 = vpop.f32.mrf.mxu1 }
 0x4f2   : > { %v5689_v39 = vpop.permute.xlu1 %5688  ;;  %v6777_v58 = vadd.f32 %v8253_v36, %v12854_v1 }
 0x4f3   : > { %5756 = vst.msk [vmem:[%s12333_s25 + $0xe8] sm:$0xff] %vm5726_vm2, %v5689_v39  ;;  %v8255_v26 = vpop.f32.mrf.mxu1 }
 0x4f4   : > { %v8256_v47 = vadd.f32 %v8255_v26, %v8254_v56  ;;  %6883 = vrot.lane.b32.xlu0 %v6777_v58, %s8757_s30 }
 0x4f5   : > { %v8257_v9 = vpop.f32.mrf.mxu1 }
 0x4f6   : > { %v6780_v23 = vadd.f32 %v8256_v47, %v12854_v1  ;;  %v5691_v2 = vpop.permute.xlu0 %5690 }
 0x4f7   : > { %5757 = vst.msk [vmem:[%s12333_s25 + $0xf0] sm:$0xff] %vm5726_vm2, %v5691_v2  ;;  %v8258_v48 = vpop.f32.mrf.mxu1 }
 0x4f8   : > { %v8259_v41 = vadd.f32 %v8258_v48, %v8257_v9  ;;  %6885 = vrot.lane.b32.xlu1 %v6780_v23, %s8757_s30 }
 0x4f9   : > { %v8260_v24 = vpop.f32.mrf.mxu1 }
 0x4fa   : > { %v6785_v35 = vadd.f32 %v8259_v41, %v12854_v1  ;;  %v5693_v0 = vpop.permute.xlu1 %5692 }
 0x4fb   : > { %5758 = vst.msk [vmem:[%s12333_s25 + $0xf8] sm:$0xff] %vm5726_vm2, %v5693_v0  ;;  %v8261_v50 = vpop.f32.mrf.mxu1 }
 0x4fc   : > { %v8262_v52 = vadd.f32 %v8261_v50, %v8260_v24  ;;  %6887 = vrot.lane.b32.xlu0 %v6785_v35, %s8757_s30 }
 0x4fd   : > { %v8263_v46 = vpop.f32.mrf.mxu1 }
 0x4fe   : > { %v6788_v60 = vadd.f32 %v8262_v52, %v12854_v1  ;;  %v6832_v51 = vpop.permute.xlu0 %6831 }
 0x4ff   : > { %6928 = vst.msk [vmem:[%s12333_s25] sm:$0xff] %vm6927_vm3, %v6832_v51  ;;  %v8264_v13 = vpop.f32.mrf.mxu1 }
 0x500   : > { %v8265_v61 = vadd.f32 %v8264_v13, %v8263_v46  ;;  %6889 = vrot.lane.b32.xlu1 %v6788_v60, %s8757_s30 }
 0x501   : > { %v8266_v18 = vpop.f32.mrf.mxu1 }
 0x502   : > { %v6793_v44 = vadd.f32 %v8265_v61, %v12854_v1  ;;  %v6834_v12 = vpop.permute.xlu1 %6833 }
 0x503   : > { %6929 = vst.msk [vmem:[%s12333_s25 + $0x8] sm:$0xff] %vm6927_vm3, %v6834_v12  ;;  %v8267_v10 = vpop.f32.mrf.mxu1 }
 0x504   : > { %v8268_v17 = vadd.f32 %v8267_v10, %v8266_v18  ;;  %6891 = vrot.lane.b32.xlu0 %v6793_v44, %s8757_s30 }
 0x506   : > { %v6796_v55 = vadd.f32 %v8268_v17, %v12854_v1  ;;  %v6836_v54 = vpop.permute.xlu0 %6835 }
 0x507   : > { %6930 = vst.msk [vmem:[%s12333_s25 + $0x10] sm:$0xff] %vm6927_vm3, %v6836_v54 }
 0x508   : > { %6893 = vrot.lane.b32.xlu1 %v6796_v55, %s8757_s30 }
 0x50a   : > { %v6838_v20 = vpop.permute.xlu1 %6837 }
 0x50b   : > { %6931 = vst.msk [vmem:[%s12333_s25 + $0x18] sm:$0xff] %vm6927_vm3, %v6838_v20 }
 0x50e   : > { %v6840_v14 = vpop.permute.xlu0 %6839 }
 0x50f   : > { %6932 = vst.msk [vmem:[%s12333_s25 + $0x20] sm:$0xff] %vm6927_vm3, %v6840_v14 }
 0x512   : > { %v6842_v25 = vpop.permute.xlu1 %6841 }
 0x513   : > { %6933 = vst.msk [vmem:[%s12333_s25 + $0x28] sm:$0xff] %vm6927_vm3, %v6842_v25 }
 0x516   : > { %v6844_v1 = vpop.permute.xlu0 %6843 }
 0x517   : > { %6934 = vst.msk [vmem:[%s12333_s25 + $0x30] sm:$0xff] %vm6927_vm3, %v6844_v1 }
 0x51a   : > { %v6846_v42 = vpop.permute.xlu1 %6845 }
 0x51b   : > { %6935 = vst.msk [vmem:[%s12333_s25 + $0x38] sm:$0xff] %vm6927_vm3, %v6846_v42 }
 0x51e   : > { %v6848_v31 = vpop.permute.xlu0 %6847 }
 0x51f   : > { %6936 = vst.msk [vmem:[%s12333_s25 + $0x40] sm:$0xff] %vm6927_vm3, %v6848_v31 }
 0x522   : > { %v6850_v4 = vpop.permute.xlu1 %6849 }
 0x523   : > { %6937 = vst.msk [vmem:[%s12333_s25 + $0x48] sm:$0xff] %vm6927_vm3, %v6850_v4 }
 0x526   : > { %v6852_v63 = vpop.permute.xlu0 %6851 }
 0x527   : > { %6938 = vst.msk [vmem:[%s12333_s25 + $0x50] sm:$0xff] %vm6927_vm3, %v6852_v63 }
 0x52a   : > { %v6854_v21 = vpop.permute.xlu1 %6853 }
 0x52b   : > { %6939 = vst.msk [vmem:[%s12333_s25 + $0x58] sm:$0xff] %vm6927_vm3, %v6854_v21 }
 0x52e   : > { %v6856_v37 = vpop.permute.xlu0 %6855 }
 0x52f   : > { %6940 = vst.msk [vmem:[%s12333_s25 + $0x60] sm:$0xff] %vm6927_vm3, %v6856_v37 }
 0x532   : > { %v6858_v6 = vpop.permute.xlu1 %6857 }
 0x533   : > { %6941 = vst.msk [vmem:[%s12333_s25 + $0x68] sm:$0xff] %vm6927_vm3, %v6858_v6 }
 0x536   : > { %v6860_v38 = vpop.permute.xlu0 %6859 }
 0x537   : > { %6942 = vst.msk [vmem:[%s12333_s25 + $0x70] sm:$0xff] %vm6927_vm3, %v6860_v38 }
 0x53a   : > { %v6862_v59 = vpop.permute.xlu1 %6861 }
 0x53b   : > { %6943 = vst.msk [vmem:[%s12333_s25 + $0x78] sm:$0xff] %vm6927_vm3, %v6862_v59 }
 0x53e   : > { %v6864_v16 = vpop.permute.xlu0 %6863 }
 0x53f   : > { %6944 = vst.msk [vmem:[%s12333_s25 + $0x80] sm:$0xff] %vm6927_vm3, %v6864_v16 }
 0x542   : > { %v6866_v40 = vpop.permute.xlu1 %6865 }
 0x543   : > { %6945 = vst.msk [vmem:[%s12333_s25 + $0x88] sm:$0xff] %vm6927_vm3, %v6866_v40 }
 0x546   : > { %v6868_v28 = vpop.permute.xlu0 %6867 }
 0x547   : > { %6946 = vst.msk [vmem:[%s12333_s25 + $0x90] sm:$0xff] %vm6927_vm3, %v6868_v28 }
 0x54a   : > { %v6870_v43 = vpop.permute.xlu1 %6869 }
 0x54b   : > { %6947 = vst.msk [vmem:[%s12333_s25 + $0x98] sm:$0xff] %vm6927_vm3, %v6870_v43 }
 0x54e   : > { %v6872_v30 = vpop.permute.xlu0 %6871 }
 0x54f   : > { %6948 = vst.msk [vmem:[%s12333_s25 + $0xa0] sm:$0xff] %vm6927_vm3, %v6872_v30 }
 0x552   : > { %v6874_v19 = vpop.permute.xlu1 %6873 }
 0x553   : > { %6949 = vst.msk [vmem:[%s12333_s25 + $0xa8] sm:$0xff] %vm6927_vm3, %v6874_v19 }
 0x556   : > { %v6876_v15 = vpop.permute.xlu0 %6875 }
 0x557   : > { %6950 = vst.msk [vmem:[%s12333_s25 + $0xb0] sm:$0xff] %vm6927_vm3, %v6876_v15 }
 0x55a   : > { %v6878_v49 = vpop.permute.xlu1 %6877 }
 0x55b   : > { %6951 = vst.msk [vmem:[%s12333_s25 + $0xb8] sm:$0xff] %vm6927_vm3, %v6878_v49 }
 0x55e   : > { %v6880_v3 = vpop.permute.xlu0 %6879 }
 0x55f   : > { %6952 = vst.msk [vmem:[%s12333_s25 + $0xc0] sm:$0xff] %vm6927_vm3, %v6880_v3 }
 0x562   : > { %v6882_v62 = vpop.permute.xlu1 %6881 }
 0x563   : > { %6953 = vst.msk [vmem:[%s12333_s25 + $0xc8] sm:$0xff] %vm6927_vm3, %v6882_v62 }
 0x566   : > { %v6884_v7 = vpop.permute.xlu0 %6883 }
 0x567   : > { %6954 = vst.msk [vmem:[%s12333_s25 + $0xd0] sm:$0xff] %vm6927_vm3, %v6884_v7 }
 0x56a   : > { %v6886_v53 = vpop.permute.xlu1 %6885 }
 0x56b   : > { %6955 = vst.msk [vmem:[%s12333_s25 + $0xd8] sm:$0xff] %vm6927_vm3, %v6886_v53 }
 0x56e   : > { %v6888_v29 = vpop.permute.xlu0 %6887 }
 0x56f   : > { %6956 = vst.msk [vmem:[%s12333_s25 + $0xe0] sm:$0xff] %vm6927_vm3, %v6888_v29 }
 0x572   : > { %v6890_v57 = vpop.permute.xlu1 %6889 }
 0x573   : > { %6957 = vst.msk [vmem:[%s12333_s25 + $0xe8] sm:$0xff] %vm6927_vm3, %v6890_v57 }
 0x576   : > { %v6892_v27 = vpop.permute.xlu0 %6891 }
 0x577   : > { %6958 = vst.msk [vmem:[%s12333_s25 + $0xf0] sm:$0xff] %vm6927_vm3, %v6892_v27 }
 0x57a   : > { %v6894_v34 = vpop.permute.xlu1 %6893 }
 0x57b   : > { %6959 = vst.msk [vmem:[%s12333_s25 + $0xf8] sm:$0xff] %vm6927_vm3, %v6894_v34 }
 0x57c PF: > { %s18_s27 = sadd.s32 1, %s8753_s27  }
 0x57d   : > { %p15_p4 = scmp.ge.s32.totalorder %s18_s27, 4  }
 0x57f   :  { %17 = sbr.rel (!%p15_p4) target bundleno = 1 (0x1), region = 85 }

// kernel: custom-call
= control target key start
LH: loop header
LB: loop body
LE: loop exit
PB: predicated region body
PF: predicated region fallthrough
CT: control target
= control target key end

     0   :  { %s92_s0 = inlined_call_operand.vmem [shape: f32[2,128,128], index: 0, kind: input, shape index: {}]   ;;  %s93_s1 = inlined_call_operand.vmem [shape: f32[2,128,128], index: 1, kind: input, shape index: {}]   ;;  %s94_s2 = inlined_call_operand.hbm [shape: c64[2,128,128], index: 2, kind: output, shape index: {}]  }
   0x1   :  { %s3_s11 = scalar_lea.hbm %s94_s2, 4096 }
   0x2   :  { %4 = vsyncpa [#allocation0], 0  ;;  %s5_s14 = sshll.u32 %s92_s0, 4  ;;  %s6_s14 = int_to_ptr.vmem [resolvable:$true] %s5_s14 }
   0x3   :  { %s18_s15 = scalar_lea.vmem %s6_s14, 4096  ;;  %p23_p1 = scmp.lt.s32.totalorder %s6_s14, %s6_s14 }
   0x4   :  { %p19_p0 = scmp.ne.s32.totalorder %s6_s14, %s18_s15  ;;  %p24_p2 = scmp.lt.s32.totalorder %s18_s15, %s18_s15 }
   0x6   :  { %p25_p3 = por %p24_p2, %p23_p1 }
   0x8   :  { %p26_p4 = pnand %p25_p3, %p19_p0 }
   0xa   :  { %29 = shalt.err (!%p26_p4)  }
   0xb   :  { %8 = dma.vmem_to_hbm [thread:$0]  %s6_s14, 4096, %s94_s2, [#allocation0] }
   0xc   :  { %61 = dma.done.wait [#allocation0], 4096  }
   0xd   :  { %62 = vsyncadd [#allocation0], 4294963200 }
   0xe   :  { %10 = vsyncpa [#allocation0], 1 }
   0xf   :  { %11 = vsyncpa [#allocation1], 0  ;;  %s12_s0 = sshll.u32 %s93_s1, 4  ;;  %s13_s0 = int_to_ptr.vmem [resolvable:$true] %s12_s0 }
  0x10   :  { %s38_s20 = scalar_lea.vmem %s13_s0, 4096  ;;  %p43_p6 = scmp.lt.s32.totalorder %s13_s0, %s13_s0 }
  0x11   :  { %p39_p5 = scmp.ne.s32.totalorder %s13_s0, %s38_s20  ;;  %p44_p7 = scmp.lt.s32.totalorder %s38_s20, %s38_s20 }
  0x13   :  { %p45_p8 = por %p44_p7, %p43_p6 }
  0x15   :  { %p46_p9 = pnand %p45_p8, %p39_p5 }
  0x17   :  { %49 = shalt.err (!%p46_p9)  }
  0x18   :  { %15 = dma.vmem_to_hbm [thread:$0]  %s13_s0, 4096, %s3_s11, [#allocation1] }
  0x19   :  { %63 = dma.done.wait [#allocation1], 4096  }
  0x1a   :  { %64 = vsyncadd [#allocation1], 4294963200 }
  0x1b   :  { %17 = vsyncpa [#allocation1], 1 }

// kernel: decoder_forward.3
= control target key start
LH: loop header
LB: loop body
LE: loop exit
PB: predicated region body
PF: predicated region fallthrough
CT: control target
= control target key end

     0   :  { %s717_s9 = smov 0   ;;  %s1149_s0 = inlined_call_operand.vmem [shape: f32[2,2,128,128], index: 0, kind: input, shape index: {}]   ;;  %s1150_s1 = inlined_call_operand.vmem [shape: f32[2,128,128], index: 1, kind: output, shape index: {0}]   ;;  %s1151_s2 = inlined_call_operand.vmem [shape: f32[2,128,128], index: 2, kind: output, shape index: {1}]  }
   0x1 LB: > { %s648_s10 = sadd.s32 4294967295, %s699_s9   ;;  %p652_p0 = scmp.ge.s32.totalorder %s699_s9, 1  ;;  %s699_s9 = sphi %s717_s9, %s13_s9  }
   0x2   : > { %p115_p1 = scmp.lt.s32.totalorder %s699_s9, 3 }
   0x4   : > { %p116_p2 = pnand %p652_p0, %p115_p1 }
   0x5   : > { %p142_p3 = scmp.lt.s32.totalorder (!%p116_p2), %s648_s10, 1 }
   0x6   : > { %119 = sbr.rel (%p116_p2) target bundleno = 418 (0x1a2), region = 24 }
   0xb   : > { %s1153_s10 = smov (!%p142_p3, %s648_s10), 1 }
   0xc   : > { %s677_s11 = sshll.u32 %s1153_s10, 8  ;;  %s678_s15 = sshll.u32 %s1153_s10, 7 }
   0xd   : > { %s731_s14 = scalar_lea.vmem %s1149_s0, %s677_s11  ;;  %s1067_s18 = scalar_lea.vmem %s1150_s1, %s678_s15 }
   0xe   : > { %v734_v0 = vld [vmem:[%s731_s14 + $0x80] sm:$0xff]  ;;  %v742_v2 = vld [vmem:[%s731_s14 + $0x88] sm:$0xff]  ;;  %v750_v4 = vld [vmem:[%s731_s14 + $0x90] sm:$0xff]  ;;  %s1084_s21 = scalar_lea.vmem %s1151_s2, %s678_s15 }
   0xf   : > { %v737_v1 = vld [vmem:[%s731_s14] sm:$0xff]  ;;  %254 = vxpose.xlu1.b32.start [1/16] %v734_v0, 128  ;;  %v745_v3 = vld [vmem:[%s731_s14 + $0x8] sm:$0xff]  ;;  %v753_v5 = vld [vmem:[%s731_s14 + $0x10] sm:$0xff] }
  0x10   : > { %190 = vxpose.xlu0.b32.start [1/16] %v737_v1, 128  ;;  %v758_v6 = vld [vmem:[%s731_s14 + $0x98] sm:$0xff]  ;;  %v766_v8 = vld [vmem:[%s731_s14 + $0xa0] sm:$0xff]  ;;  %v774_v10 = vld [vmem:[%s731_s14 + $0xa8] sm:$0xff] }
  0x11   : > { %v761_v7 = vld [vmem:[%s731_s14 + $0x18] sm:$0xff]  ;;  %v769_v9 = vld [vmem:[%s731_s14 + $0x20] sm:$0xff]  ;;  %v777_v11 = vld [vmem:[%s731_s14 + $0x28] sm:$0xff] }
  0x12   : > { %v782_v12 = vld [vmem:[%s731_s14 + $0xb0] sm:$0xff]  ;;  %v790_v14 = vld [vmem:[%s731_s14 + $0xb8] sm:$0xff]  ;;  %v798_v16 = vld [vmem:[%s731_s14 + $0xc0] sm:$0xff] }
  0x13   : > { %255 = vxpose.xlu1.b32.cont [2/16] %v742_v2, 128  ;;  %v785_v13 = vld [vmem:[%s731_s14 + $0x30] sm:$0xff]  ;;  %v793_v15 = vld [vmem:[%s731_s14 + $0x38] sm:$0xff]  ;;  %v801_v17 = vld [vmem:[%s731_s14 + $0x40] sm:$0xff] }
  0x14   : > { %191 = vxpose.xlu0.b32.cont [2/16] %v745_v3, 128  ;;  %v806_v18 = vld [vmem:[%s731_s14 + $0xc8] sm:$0xff]  ;;  %v814_v20 = vld [vmem:[%s731_s14 + $0xd0] sm:$0xff]  ;;  %v822_v22 = vld [vmem:[%s731_s14 + $0xd8] sm:$0xff] }
  0x15   : > { %v809_v19 = vld [vmem:[%s731_s14 + $0x48] sm:$0xff]  ;;  %v817_v21 = vld [vmem:[%s731_s14 + $0x50] sm:$0xff]  ;;  %v825_v23 = vld [vmem:[%s731_s14 + $0x58] sm:$0xff] }
  0x16   : > { %v830_v24 = vld [vmem:[%s731_s14 + $0xe0] sm:$0xff]  ;;  %v838_v26 = vld [vmem:[%s731_s14 + $0xe8] sm:$0xff]  ;;  %v846_v28 = vld [vmem:[%s731_s14 + $0xf0] sm:$0xff] }
  0x17   : > { %256 = vxpose.xlu1.b32.cont [3/16] %v750_v4, 128  ;;  %v833_v25 = vld [vmem:[%s731_s14 + $0x60] sm:$0xff]  ;;  %v841_v27 = vld [vmem:[%s731_s14 + $0x68] sm:$0xff]  ;;  %v849_v29 = vld [vmem:[%s731_s14 + $0x70] sm:$0xff] }
  0x18   : > { %192 = vxpose.xlu0.b32.cont [3/16] %v753_v5, 128  ;;  %v854_v30 = vld [vmem:[%s731_s14 + $0xf8] sm:$0xff] }
  0x19   : > { %v857_v31 = vld [vmem:[%s731_s14 + $0x78] sm:$0xff] }
  0x1b   : > { %257 = vxpose.xlu1.b32.cont [4/16] %v758_v6, 128 }
  0x1c   : > { %193 = vxpose.xlu0.b32.cont [4/16] %v761_v7, 128 }
  0x1f   : > { %258 = vxpose.xlu1.b32.cont [5/16] %v766_v8, 128 }
  0x20   : > { %194 = vxpose.xlu0.b32.cont [5/16] %v769_v9, 128 }
  0x23   : > { %259 = vxpose.xlu1.b32.cont [6/16] %v774_v10, 128 }
  0x24   : > { %195 = vxpose.xlu0.b32.cont [6/16] %v777_v11, 128 }
  0x27   : > { %260 = vxpose.xlu1.b32.cont [7/16] %v782_v12, 128 }
  0x28   : > { %196 = vxpose.xlu0.b32.cont [7/16] %v785_v13, 128 }
  0x2b   : > { %261 = vxpose.xlu1.b32.cont [8/16] %v790_v14, 128 }
  0x2c   : > { %197 = vxpose.xlu0.b32.cont [8/16] %v793_v15, 128 }
  0x2f   : > { %262 = vxpose.xlu1.b32.cont [9/16] %v798_v16, 128 }
  0x30   : > { %198 = vxpose.xlu0.b32.cont [9/16] %v801_v17, 128 }
  0x33   : > { %263 = vxpose.xlu1.b32.cont [10/16] %v806_v18, 128 }
  0x34   : > { %199 = vxpose.xlu0.b32.cont [10/16] %v809_v19, 128 }
  0x37   : > { %264 = vxpose.xlu1.b32.cont [11/16] %v814_v20, 128 }
  0x38   : > { %200 = vxpose.xlu0.b32.cont [11/16] %v817_v21, 128 }
  0x3b   : > { %265 = vxpose.xlu1.b32.cont [12/16] %v822_v22, 128 }
  0x3c   : > { %201 = vxpose.xlu0.b32.cont [12/16] %v825_v23, 128 }
  0x3f   : > { %266 = vxpose.xlu1.b32.cont [13/16] %v830_v24, 128 }
  0x40   : > { %202 = vxpose.xlu0.b32.cont [13/16] %v833_v25, 128 }
  0x43   : > { %267 = vxpose.xlu1.b32.cont [14/16] %v838_v26, 128 }
  0x44   : > { %203 = vxpose.xlu0.b32.cont [14/16] %v841_v27, 128 }
  0x47   : > { %268 = vxpose.xlu1.b32.cont [15/16] %v846_v28, 128 }
  0x48   : > { %204 = vxpose.xlu0.b32.cont [15/16] %v849_v29, 128 }
  0x4b   : > { %269 = vxpose.xlu1.b32.end [16/16] %v854_v30, 128 }
  0x4c   : > { %205 = vxpose.xlu0.b32.end [16/16] %v857_v31, 128 }
  0x8b   : > { %v270_v32 = vpop.trf.xlu1 }
  0x8c   : > { %v206_v33 = vpop.trf.xlu0  ;;  %v286_v34 = vsub.f32 %v734_v0, %v270_v32 }
  0x8d   : > { %v222_v35 = vadd.f32 %v206_v33, %v737_v1 }
  0x8e   : > { %v863_v36 = vmul.f32 0.5, %v286_v34 }
  0x8f   : > { %v865_v37 = vmul.f32 0.5, %v222_v35  ;;  %v271_v38 = vpop.trf.xlu1 }
  0x90   : > { %v207_v39 = vpop.trf.xlu0  ;;  %v334_v40 = vmul.f32 %v863_v36, %v863_v36  ;;  %v287_v42 = vsub.f32 %v742_v2, %v271_v38 }
  0x91   : > { %v318_v41 = vmul.f32 %v865_v37, %v865_v37  ;;  %v223_v43 = vadd.f32 %v207_v39, %v745_v3 }
  0x92   : > { %v873_v44 = vmul.f32 0.5, %v287_v42 }
  0x93   : > { %v875_v45 = vmul.f32 0.5, %v223_v43  ;;  %v350_v46 = vadd.f32 %v334_v40, %v318_v41  ;;  %v272_v47 = vpop.trf.xlu1 }
  0x94   : > { %v208_v48 = vpop.trf.xlu0  ;;  %v335_v49 = vmul.f32 %v873_v44, %v873_v44  ;;  %v288_v51 = vsub.f32 %v750_v4, %v272_v47 }
  0x95   : > { %v319_v50 = vmul.f32 %v875_v45, %v875_v45  ;;  %v224_v52 = vadd.f32 %v208_v48, %v753_v5  ;;  %366 = vadd.xlane.f32.xlu0 %v350_v46 }
  0x96   : > { %v883_v53 = vmul.f32 0.5, %v288_v51 }
  0x97   : > { %v885_v54 = vmul.f32 0.5, %v224_v52  ;;  %v351_v55 = vadd.f32 %v335_v49, %v319_v50  ;;  %v273_v56 = vpop.trf.xlu1 }
  0x98   : > { %v209_v57 = vpop.trf.xlu0  ;;  %v336_v58 = vmul.f32 %v883_v53, %v883_v53  ;;  %v289_v60 = vsub.f32 %v758_v6, %v273_v56 }
  0x99   : > { %v320_v59 = vmul.f32 %v885_v54, %v885_v54  ;;  %v225_v61 = vadd.f32 %v209_v57, %v761_v7  ;;  %368 = vadd.xlane.f32.xlu1 %v351_v55 }
  0x9a   : > { %v893_v62 = vmul.f32 0.5, %v289_v60 }
  0x9b   : > { %v895_v63 = vmul.f32 0.5, %v225_v61  ;;  %v352_v0 = vadd.f32 %v336_v58, %v320_v59  ;;  %v274_v1 = vpop.trf.xlu1 }
  0x9c   : > { %v210_v2 = vpop.trf.xlu0  ;;  %v337_v3 = vmul.f32 %v893_v62, %v893_v62  ;;  %v290_v5 = vsub.f32 %v766_v8, %v274_v1 }
  0x9d   : > { %v321_v4 = vmul.f32 %v895_v63, %v895_v63  ;;  %v226_v6 = vadd.f32 %v210_v2, %v769_v9  ;;  %370 = vadd.xlane.f32.xlu1 %v352_v0 }
  0x9e   : > { %v903_v7 = vmul.f32 0.5, %v290_v5 }
  0x9f   : > { %v905_v32 = vmul.f32 0.5, %v226_v6  ;;  %v353_v33 = vadd.f32 %v337_v3, %v321_v4  ;;  %v275_v34 = vpop.trf.xlu1 }
  0xa0   : > { %v211_v35 = vpop.trf.xlu0  ;;  %v338_v38 = vmul.f32 %v903_v7, %v903_v7  ;;  %v291_v40 = vsub.f32 %v774_v10, %v275_v34 }
  0xa1   : > { %v322_v39 = vmul.f32 %v905_v32, %v905_v32  ;;  %v227_v8 = vadd.f32 %v211_v35, %v777_v11  ;;  %372 = vadd.xlane.f32.xlu1 %v353_v33 }
  0xa2   : > { %v913_v9 = vmul.f32 0.5, %v291_v40 }
  0xa3   : > { %v915_v41 = vmul.f32 0.5, %v227_v8  ;;  %v354_v42 = vadd.f32 %v338_v38, %v322_v39  ;;  %v276_v43 = vpop.trf.xlu1 }
  0xa4   : > { %v212_v46 = vpop.trf.xlu0  ;;  %v339_v47 = vmul.f32 %v913_v9, %v913_v9  ;;  %v292_v49 = vsub.f32 %v782_v12, %v276_v43 }
  0xa5   : > { %v323_v48 = vmul.f32 %v915_v41, %v915_v41  ;;  %v228_v10 = vadd.f32 %v212_v46, %v785_v13  ;;  %374 = vadd.xlane.f32.xlu0 %v354_v42 }
  0xa6   : > { %v923_v11 = vmul.f32 0.5, %v292_v49 }
  0xa7   : > { %v925_v50 = vmul.f32 0.5, %v228_v10  ;;  %v355_v51 = vadd.f32 %v339_v47, %v323_v48  ;;  %v277_v52 = vpop.trf.xlu1 }
  0xa8   : > { %v213_v55 = vpop.trf.xlu0  ;;  %v340_v56 = vmul.f32 %v923_v11, %v923_v11  ;;  %v293_v58 = vsub.f32 %v790_v14, %v277_v52 }
  0xa9   : > { %v324_v57 = vmul.f32 %v925_v50, %v925_v50  ;;  %v229_v12 = vadd.f32 %v213_v55, %v793_v15  ;;  %376 = vadd.xlane.f32.xlu1 %v355_v51 }
  0xaa   : > { %v933_v13 = vmul.f32 0.5, %v293_v58 }
  0xab   : > { %v935_v59 = vmul.f32 0.5, %v229_v12  ;;  %v356_v60 = vadd.f32 %v340_v56, %v324_v57  ;;  %v278_v61 = vpop.trf.xlu1 }
  0xac   : > { %v214_v0 = vpop.trf.xlu0  ;;  %v341_v1 = vmul.f32 %v933_v13, %v933_v13  ;;  %v294_v3 = vsub.f32 %v798_v16, %v278_v61 }
  0xad   : > { %v325_v2 = vmul.f32 %v935_v59, %v935_v59  ;;  %v230_v14 = vadd.f32 %v214_v0, %v801_v17  ;;  %378 = vadd.xlane.f32.xlu0 %v356_v60 }
  0xae   : > { %v943_v15 = vmul.f32 0.5, %v294_v3 }
  0xaf   : > { %v945_v4 = vmul.f32 0.5, %v230_v14  ;;  %v357_v5 = vadd.f32 %v341_v1, %v325_v2  ;;  %v279_v6 = vpop.trf.xlu1 }
  0xb0   : > { %v215_v33 = vpop.trf.xlu0  ;;  %v342_v34 = vmul.f32 %v943_v15, %v943_v15  ;;  %v295_v38 = vsub.f32 %v806_v18, %v279_v6 }
  0xb1   : > { %v326_v35 = vmul.f32 %v945_v4, %v945_v4  ;;  %v231_v16 = vadd.f32 %v215_v33, %v809_v19  ;;  %380 = vadd.xlane.f32.xlu1 %v357_v5 }
  0xb2   : > { %v953_v17 = vmul.f32 0.5, %v295_v38 }
  0xb3   : > { %v955_v39 = vmul.f32 0.5, %v231_v16  ;;  %v358_v40 = vadd.f32 %v342_v34, %v326_v35  ;;  %v280_v8 = vpop.trf.xlu1 }
  0xb4   : > { %v216_v42 = vpop.trf.xlu0  ;;  %v343_v43 = vmul.f32 %v953_v17, %v953_v17  ;;  %v296_v47 = vsub.f32 %v814_v20, %v280_v8 }
  0xb5   : > { %v327_v46 = vmul.f32 %v955_v39, %v955_v39  ;;  %v232_v18 = vadd.f32 %v216_v42, %v817_v21  ;;  %382 = vadd.xlane.f32.xlu0 %v358_v40 }
  0xb6   : > { %v963_v19 = vmul.f32 0.5, %v296_v47 }
  0xb7   : > { %v965_v48 = vmul.f32 0.5, %v232_v18  ;;  %v359_v49 = vadd.f32 %v343_v43, %v327_v46  ;;  %v281_v10 = vpop.trf.xlu1 }
  0xb8   : > { %v217_v51 = vpop.trf.xlu0  ;;  %v344_v52 = vmul.f32 %v963_v19, %v963_v19  ;;  %v297_v56 = vsub.f32 %v822_v22, %v281_v10 }
  0xb9   : > { %v328_v55 = vmul.f32 %v965_v48, %v965_v48  ;;  %v233_v20 = vadd.f32 %v217_v51, %v825_v23  ;;  %384 = vadd.xlane.f32.xlu1 %v359_v49 }
  0xba   : > { %v973_v21 = vmul.f32 0.5, %v297_v56 }
  0xbb   : > { %v975_v57 = vmul.f32 0.5, %v233_v20  ;;  %v360_v58 = vadd.f32 %v344_v52, %v328_v55  ;;  %v282_v12 = vpop.trf.xlu1 }
  0xbc   : > { %v218_v60 = vpop.trf.xlu0  ;;  %v345_v61 = vmul.f32 %v973_v21, %v973_v21  ;;  %v298_v1 = vsub.f32 %v830_v24, %v282_v12 }
  0xbd   : > { %v329_v0 = vmul.f32 %v975_v57, %v975_v57  ;;  %v234_v22 = vadd.f32 %v218_v60, %v833_v25  ;;  %386 = vadd.xlane.f32.xlu0 %v360_v58 }
  0xbe   : > { %v983_v23 = vmul.f32 0.5, %v298_v1 }
  0xbf   : > { %v985_v2 = vmul.f32 0.5, %v234_v22  ;;  %v361_v3 = vadd.f32 %v345_v61, %v329_v0  ;;  %v283_v14 = vpop.trf.xlu1 }
  0xc0   : > { %v219_v5 = vpop.trf.xlu0  ;;  %v346_v6 = vmul.f32 %v983_v23, %v983_v23  ;;  %v299_v34 = vsub.f32 %v838_v26, %v283_v14 }
  0xc1   : > { %v330_v33 = vmul.f32 %v985_v2, %v985_v2  ;;  %v235_v24 = vadd.f32 %v219_v5, %v841_v27  ;;  %388 = vadd.xlane.f32.xlu1 %v361_v3 }
  0xc2   : > { %v993_v25 = vmul.f32 0.5, %v299_v34 }
  0xc3   : > { %v995_v35 = vmul.f32 0.5, %v235_v24  ;;  %v362_v38 = vadd.f32 %v346_v6, %v330_v33  ;;  %v284_v16 = vpop.trf.xlu1 }
  0xc4   : > { %v220_v40 = vpop.trf.xlu0  ;;  %v347_v8 = vmul.f32 %v993_v25, %v993_v25  ;;  %v300_v43 = vsub.f32 %v846_v28, %v284_v16 }
  0xc5   : > { %v331_v42 = vmul.f32 %v995_v35, %v995_v35  ;;  %v236_v26 = vadd.f32 %v220_v40, %v849_v29  ;;  %390 = vadd.xlane.f32.xlu0 %v362_v38 }
  0xc6   : > { %v1003_v27 = vmul.f32 0.5, %v300_v43 }
  0xc7   : > { %v1005_v46 = vmul.f32 0.5, %v236_v26  ;;  %v363_v47 = vadd.f32 %v347_v8, %v331_v42  ;;  %v285_v18 = vpop.trf.xlu1 }
  0xc8   : > { %v221_v49 = vpop.trf.xlu0  ;;  %v348_v10 = vmul.f32 %v1003_v27, %v1003_v27  ;;  %v301_v52 = vsub.f32 %v854_v30, %v285_v18 }
  0xc9   : > { %v332_v51 = vmul.f32 %v1005_v46, %v1005_v46  ;;  %v237_v28 = vadd.f32 %v221_v49, %v857_v31  ;;  %392 = vadd.xlane.f32.xlu1 %v363_v47 }
  0xca   : > { %v1013_v29 = vmul.f32 0.5, %v301_v52 }
  0xcb   : > { %v1015_v55 = vmul.f32 0.5, %v237_v28  ;;  %v364_v56 = vadd.f32 %v348_v10, %v332_v51 }
  0xcc   : > { %v349_v20 = vmul.f32 %v1013_v29, %v1013_v29 }
  0xcd   : > { %v333_v58 = vmul.f32 %v1015_v55, %v1015_v55  ;;  %394 = vadd.xlane.f32.xlu0 %v364_v56 }
  0xcf   : > { %v365_v12 = vadd.f32 %v349_v20, %v333_v58 }
  0xd1   : > { %396 = vadd.xlane.f32.xlu1 %v365_v12 }
 0x11e   : > { %v367_v30 = vpop.xlane.xlu0 %366 }
 0x122   : > { %v369_v60 = vpop.xlane.xlu1 %368 }
 0x123   : > { %v398_v0 = vadd.f32 %v369_v60, %v367_v30 }
 0x126   : > { %v371_v61 = vpop.xlane.xlu1 %370 }
 0x127   : > { %v399_v1 = vadd.f32 %v398_v0, %v371_v61 }
 0x12a   : > { %v373_v31 = vpop.xlane.xlu1 %372 }
 0x12b   : > { %v400_v3 = vadd.f32 %v399_v1, %v373_v31 }
 0x12e   : > { %v375_v22 = vpop.xlane.xlu0 %374 }
 0x12f   : > { %v401_v5 = vadd.f32 %v400_v3, %v375_v22  ;;  %v429_v22 = vlaneseq }
 0x132   : > { %v377_v14 = vpop.xlane.xlu1 %376 }
 0x133   : > { %v402_v33 = vadd.f32 %v401_v5, %v377_v14 }
 0x136   : > { %v379_v6 = vpop.xlane.xlu0 %378 }
 0x137   : > { %v403_v24 = vadd.f32 %v402_v33, %v379_v6  ;;  %v430_v33 = vshrl.u32 %v429_v22, 7 }
 0x13a   : > { %v381_v34 = vpop.xlane.xlu1 %380 }
 0x13b   : > { %v404_v16 = vadd.f32 %v403_v24, %v381_v34  ;;  %v431_v24 = vadd.s32 8, %v430_v33 }
 0x13e   : > { %v383_v38 = vpop.xlane.xlu0 %382 }
 0x13f   : > { %v405_v8 = vadd.f32 %v404_v16, %v383_v38  ;;  %v432_v38 = vadd.s32 16, %v430_v33  ;;  %v433_v16 = vadd.s32 24, %v430_v33 }
 0x142   : > { %v385_v40 = vpop.xlane.xlu1 %384 }
 0x143   : > { %v406_v43 = vadd.f32 %v405_v8, %v385_v40  ;;  %v447_v40 = vand.u32 127, %v429_v22  ;;  %v434_v8 = vadd.s32 32, %v430_v33 }
 0x145   : > { %vm448_vm2 = vcmp.eq.s32.totalorder %v430_v33, %v447_v40  ;;  %vm449_vm3 = vcmp.eq.s32.totalorder %v431_v24, %v447_v40  ;;  %vm450_vm4 = vcmp.eq.s32.totalorder %v432_v38, %v447_v40  ;;  %vm451_vm5 = vcmp.eq.s32.totalorder %v433_v16, %v447_v40 }
 0x146   : > { %v387_v42 = vpop.xlane.xlu0 %386  ;;  %vm452_vm6 = vcmp.eq.s32.totalorder %v434_v8, %v447_v40 }
 0x147   : > { %v407_v47 = vadd.f32 %v406_v43, %v387_v42  ;;  %v435_v42 = vadd.s32 40, %v430_v33  ;;  %v436_v43 = vadd.s32 48, %v430_v33 }
 0x149   : > { %vm453_vm7 = vcmp.eq.s32.totalorder %v435_v42, %v447_v40  ;;  %vm454_vm8 = vcmp.eq.s32.totalorder %v436_v43, %v447_v40 }
 0x14a   : > { %v389_v26 = vpop.xlane.xlu1 %388 }
 0x14b   : > { %v408_v49 = vadd.f32 %v407_v47, %v389_v26  ;;  %v437_v26 = vadd.s32 56, %v430_v33  ;;  %v438_v47 = vadd.s32 64, %v430_v33 }
 0x14d   : > { %vm455_vm9 = vcmp.eq.s32.totalorder %v437_v26, %v447_v40  ;;  %vm456_vm10 = vcmp.eq.s32.totalorder %v438_v47, %v447_v40 }
 0x14e   : > { %v391_v18 = vpop.xlane.xlu0 %390 }
 0x14f   : > { %v409_v51 = vadd.f32 %v408_v49, %v391_v18  ;;  %v439_v18 = vadd.s32 72, %v430_v33  ;;  %v440_v49 = vadd.s32 80, %v430_v33 }
 0x151   : > { %vm457_vm11 = vcmp.eq.s32.totalorder %v439_v18, %v447_v40  ;;  %vm458_vm12 = vcmp.eq.s32.totalorder %v440_v49, %v447_v40 }
 0x152   : > { %v393_v10 = vpop.xlane.xlu1 %392 }
 0x153   : > { %v410_v28 = vadd.f32 %v409_v51, %v393_v10  ;;  %v441_v10 = vadd.s32 88, %v430_v33  ;;  %v442_v51 = vadd.s32 96, %v430_v33 }
 0x155   : > { %vm459_vm13 = vcmp.eq.s32.totalorder %v441_v10, %v447_v40  ;;  %vm460_vm14 = vcmp.eq.s32.totalorder %v442_v51, %v447_v40 }
 0x156   : > { %v395_v52 = vpop.xlane.xlu0 %394 }
 0x157   : > { %v411_v56 = vadd.f32 %v410_v28, %v395_v52  ;;  %v443_v52 = vadd.s32 104, %v430_v33  ;;  %v444_v28 = vadd.s32 112, %v430_v33 }
 0x159   : > { %vm461_vm15 = vcmp.eq.s32.totalorder %v443_v52, %v447_v40 }
 0x15a   : > { %v397_v20 = vpop.xlane.xlu1 %396 }
 0x15b   : > { %v412_v58 = vadd.f32 %v411_v56, %v397_v20  ;;  %v445_v56 = vadd.s32 120, %v430_v33  ;;  %v701_v20 = vmov 0.0  }
 0x15c   : > { %v472_v22 = vsel %vm456_vm10, 1.0, %v701_v20  ;;  %v476_v33 = vsel %vm460_vm14, 1.0, %v701_v20 }
 0x15d   : > { %v413_v12 = vrot.slane %v412_v58, 4 }
 0x15f   : > { %v414_v60 = vadd.f32 %v413_v12, %v412_v58  ;;  %v464_v58 = vsel %vm448_vm2, 1.0, %v701_v20  ;;  %v465_v12 = vsel %vm449_vm3, 1.0, %v701_v20 }
 0x161   : > { %v415_v61 = vrot.slane %v414_v60, 2 }
 0x163   : > { %v416_v30 = vadd.f32 %v415_v61, %v414_v60  ;;  %v466_v60 = vsel %vm450_vm4, 1.0, %v701_v20  ;;  %v467_v61 = vsel %vm451_vm5, 1.0, %v701_v20 }
 0x165   : > { %v417_v0 = vrot.slane %v416_v30, 1 }
 0x167   : > { %v418_v31 = vadd.f32 %v417_v0, %v416_v30  ;;  %v468_v30 = vsel %vm452_vm6, 1.0, %v701_v20  ;;  %v469_v0 = vsel %vm453_vm7, 1.0, %v701_v20 }
 0x169   : > { %689 = vrsqrt.f32 %v418_v31  ;;  %vm421_vm0 = vcmp.eq.f32.partialorder %v418_v31, inf  ;;  %v424_v14 = vand.u32 2147483648, %v418_v31  ;;  %vm423_vm1 = vcmp.eq.f32.partialorder %v418_v31, 0.0 }
 0x176   : > { %v690_v1 = vpop.eup %689 }
 0x177   : > { %v420_v3 = vmul.f32 %v690_v1, %v418_v31  ;;  %v471_v1 = vsel %vm455_vm9, 1.0, %v701_v20 }
 0x179   : > { %v422_v5 = vsel %vm421_vm0, %v418_v31, %v420_v3  ;;  %vm462_vm0 = vcmp.eq.s32.totalorder %v444_v28, %v447_v40  ;;  %v470_v31 = vsel %vm454_vm8, 1.0, %v701_v20  ;;  %v473_v3 = vsel %vm457_vm11, 1.0, %v701_v20 }
 0x17a   : > { %v425_v6 = vsel %vm423_vm1, %v424_v14, %v422_v5  ;;  %vm463_vm1 = vcmp.eq.s32.totalorder %v445_v56, %v447_v40  ;;  %v474_v14 = vsel %vm458_vm12, 1.0, %v701_v20  ;;  %v475_v5 = vsel %vm459_vm13, 1.0, %v701_v20 }
 0x17b   : > { %v426_v34 = vmax.f32 %v425_v6, 1e-12  ;;  %v478_v24 = vsel %vm462_vm0, 1.0, %v701_v20  ;;  %v479_v38 = vsel %vm463_vm1, 1.0, %v701_v20 }
 0x17d   : > { %691 = vrcp.f32 %v426_v34  ;;  %v477_v34 = vsel %vm461_vm15, 1.0, %v701_v20 }
 0x18a   : > { %v1033_v6 = vpop.eup %691 }
 0x18b   : > { %v480_v16 = vmul.f32 %v1033_v6, %v865_v37  ;;  %v481_v8 = vmul.f32 %v1033_v6, %v875_v45  ;;  %v482_v42 = vmul.f32 %v1033_v6, %v885_v54  ;;  %v483_v43 = vmul.f32 %v1033_v6, %v895_v63 }
 0x18c   : > { %v484_v26 = vmul.f32 %v1033_v6, %v905_v32  ;;  %v485_v47 = vmul.f32 %v1033_v6, %v915_v41  ;;  %v486_v40 = vmul.f32 %v1033_v6, %v925_v50  ;;  %v487_v37 = vmul.f32 %v1033_v6, %v935_v59 }
 0x18d   : > { %v488_v45 = vmul.f32 %v1033_v6, %v945_v4  ;;  %v489_v54 = vmul.f32 %v1033_v6, %v955_v39  ;;  %v490_v63 = vmul.f32 %v1033_v6, %v965_v48  ;;  %v491_v32 = vmul.f32 %v1033_v6, %v975_v57 }
 0x18e   : > { %v492_v41 = vmul.f32 %v1033_v6, %v985_v2  ;;  %v493_v50 = vmul.f32 %v1033_v6, %v995_v35  ;;  %v494_v59 = vmul.f32 %v1033_v6, %v1005_v46  ;;  %v495_v4 = vmul.f32 %v1033_v6, %v1015_v55 }
 0x18f   : > { %v496_v39 = vadd.f32 %v480_v16, %v464_v58  ;;  %v497_v48 = vadd.f32 %v481_v8, %v465_v12  ;;  %v498_v57 = vadd.f32 %v482_v42, %v466_v60  ;;  %v499_v18 = vadd.f32 %v483_v43, %v467_v61 }
 0x190   : > { %v500_v49 = vadd.f32 %v484_v26, %v468_v30  ;;  %v501_v10 = vadd.f32 %v485_v47, %v469_v0  ;;  %v502_v2 = vadd.f32 %v486_v40, %v470_v31  ;;  %v503_v51 = vadd.f32 %v487_v37, %v471_v1 }
 0x191   : > { %v504_v35 = vadd.f32 %v488_v45, %v472_v22  ;;  %v505_v52 = vadd.f32 %v489_v54, %v473_v3  ;;  %v506_v46 = vadd.f32 %v490_v63, %v474_v14  ;;  %v507_v28 = vadd.f32 %v491_v32, %v475_v5  ;;  %512 = vst [vmem:[%s1067_s18] sm:$0xff] %v496_v39 }
 0x192   : > { %513 = vst [vmem:[%s1067_s18 + $0x8] sm:$0xff] %v497_v48  ;;  %514 = vst [vmem:[%s1067_s18 + $0x10] sm:$0xff] %v498_v57  ;;  %v508_v55 = vadd.f32 %v492_v41, %v476_v33  ;;  %v509_v56 = vadd.f32 %v493_v50, %v477_v34  ;;  %v510_v20 = vadd.f32 %v494_v59, %v478_v24 }
 0x193   : > { %515 = vst [vmem:[%s1067_s18 + $0x18] sm:$0xff] %v499_v18  ;;  %v511_v58 = vadd.f32 %v495_v4, %v479_v38  ;;  %516 = vst [vmem:[%s1067_s18 + $0x20] sm:$0xff] %v500_v49  ;;  %v528_v12 = vmul.f32 %v1033_v6, %v863_v36  ;;  %v529_v60 = vmul.f32 %v1033_v6, %v873_v44 }
 0x194   : > { %517 = vst [vmem:[%s1067_s18 + $0x28] sm:$0xff] %v501_v10  ;;  %518 = vst [vmem:[%s1067_s18 + $0x30] sm:$0xff] %v502_v2  ;;  %v530_v61 = vmul.f32 %v1033_v6, %v883_v53  ;;  %v531_v30 = vmul.f32 %v1033_v6, %v893_v62  ;;  %v532_v36 = vmul.f32 %v1033_v6, %v903_v7 }
 0x195   : > { %519 = vst [vmem:[%s1067_s18 + $0x38] sm:$0xff] %v503_v51  ;;  %520 = vst [vmem:[%s1067_s18 + $0x40] sm:$0xff] %v504_v35  ;;  %v533_v44 = vmul.f32 %v1033_v6, %v913_v9  ;;  %v534_v53 = vmul.f32 %v1033_v6, %v923_v11  ;;  %v535_v62 = vmul.f32 %v1033_v6, %v933_v13 }
 0x196   : > { %521 = vst [vmem:[%s1067_s18 + $0x48] sm:$0xff] %v505_v52  ;;  %522 = vst [vmem:[%s1067_s18 + $0x50] sm:$0xff] %v506_v46  ;;  %v536_v0 = vmul.f32 %v1033_v6, %v943_v15  ;;  %v537_v7 = vmul.f32 %v1033_v6, %v953_v17  ;;  %v538_v9 = vmul.f32 %v1033_v6, %v963_v19 }
 0x197   : > { %523 = vst [vmem:[%s1067_s18 + $0x58] sm:$0xff] %v507_v28  ;;  %524 = vst [vmem:[%s1067_s18 + $0x60] sm:$0xff] %v508_v55  ;;  %v539_v11 = vmul.f32 %v1033_v6, %v973_v21  ;;  %v540_v13 = vmul.f32 %v1033_v6, %v983_v23  ;;  %v541_v15 = vmul.f32 %v1033_v6, %v993_v25 }
 0x198   : > { %525 = vst [vmem:[%s1067_s18 + $0x68] sm:$0xff] %v509_v56  ;;  %526 = vst [vmem:[%s1067_s18 + $0x70] sm:$0xff] %v510_v20  ;;  %v542_v17 = vmul.f32 %v1033_v6, %v1003_v27  ;;  %v543_v19 = vmul.f32 %v1033_v6, %v1013_v29 }
 0x199   : > { %527 = vst [vmem:[%s1067_s18 + $0x78] sm:$0xff] %v511_v58  ;;  %544 = vst [vmem:[%s1084_s21] sm:$0xff] %v528_v12 }
 0x19a   : > { %545 = vst [vmem:[%s1084_s21 + $0x8] sm:$0xff] %v529_v60  ;;  %546 = vst [vmem:[%s1084_s21 + $0x10] sm:$0xff] %v530_v61 }
 0x19b   : > { %547 = vst [vmem:[%s1084_s21 + $0x18] sm:$0xff] %v531_v30  ;;  %548 = vst [vmem:[%s1084_s21 + $0x20] sm:$0xff] %v532_v36 }
 0x19c   : > { %549 = vst [vmem:[%s1084_s21 + $0x28] sm:$0xff] %v533_v44  ;;  %550 = vst [vmem:[%s1084_s21 + $0x30] sm:$0xff] %v534_v53 }
 0x19d   : > { %551 = vst [vmem:[%s1084_s21 + $0x38] sm:$0xff] %v535_v62  ;;  %552 = vst [vmem:[%s1084_s21 + $0x40] sm:$0xff] %v536_v0 }
 0x19e   : > { %553 = vst [vmem:[%s1084_s21 + $0x48] sm:$0xff] %v537_v7  ;;  %554 = vst [vmem:[%s1084_s21 + $0x50] sm:$0xff] %v538_v9 }
 0x19f   : > { %555 = vst [vmem:[%s1084_s21 + $0x58] sm:$0xff] %v539_v11  ;;  %556 = vst [vmem:[%s1084_s21 + $0x60] sm:$0xff] %v540_v13 }
 0x1a0   : > { %557 = vst [vmem:[%s1084_s21 + $0x68] sm:$0xff] %v541_v15  ;;  %558 = vst [vmem:[%s1084_s21 + $0x70] sm:$0xff] %v542_v17 }
 0x1a1   : > { %559 = vst [vmem:[%s1084_s21 + $0x78] sm:$0xff] %v543_v19 }
 0x1a2 PF: > { %s13_s9 = sadd.s32 1, %s699_s9  }
 0x1a3   : > { %p10_p4 = scmp.ge.s32.totalorder %s13_s9, 4  }
 0x1a5   :  { %12 = sbr.rel (!%p10_p4) target bundleno = 1 (0x1), region = 67 }

</bundles_post_ra>
